<compile_context>
chip_gen: v7x
topology: tpu7x:2x2x1
jax: 0.10.0
libtpu: 0.0.40
codegen_flags: <defaults>
</compile_context>

<pallas_src>
import jax
import jax.numpy as jnp
from jax.experimental import pallas as pl
from jax.experimental.pallas import tpu as pltpu


# ----------------------------- Pallas kernels ------------------------------ #

def _stem_conv3x3_kernel(xp_ref, w_ref, b_ref, o_ref):
    """3x3 conv with Cin == 1: 9 VPU multiply-adds of shifted views (no MXU)."""
    Hp, Wp, _ = xp_ref.shape
    H, W = Hp - 2, Wp - 2
    Cout = w_ref.shape[-1]
    xp = xp_ref[...].astype(jnp.float32)               # (Hp, Wp, 1)
    acc = jnp.zeros((H, W, Cout), jnp.float32)
    for dh in range(3):
        for dw in range(3):
            xs = xp[dh:dh + H, dw:dw + W, :]           # (H, W, 1)
            wt = w_ref[dh * 3 + dw].astype(jnp.float32).reshape(1, 1, Cout)
            acc = acc + xs * wt                        # lane-broadcast MAC
    acc = jnp.maximum(acc + b_ref[...].reshape(1, 1, Cout), 0.0)
    o_ref[...] = acc.astype(o_ref.dtype)


def _conv3x3_relu_kernel(xp_ref, w_ref, b_ref, o_ref):
    """3x3 conv (stride 1, 'same'): 9-tap MXU accumulation on a halo tile,
    fused bias + ReLU."""
    Hp, Wp, Cin = xp_ref.shape
    H, W = Hp - 2, Wp - 2
    Cout = w_ref.shape[-1]
    xp = xp_ref[...]                                   # (Hp, Wp, Cin) bf16
    acc = jnp.zeros((H * W, Cout), jnp.float32)
    for dh in range(3):
        for dw in range(3):
            xs = xp[dh:dh + H, dw:dw + W, :].reshape(H * W, Cin)
            acc = acc + jnp.dot(xs, w_ref[dh * 3 + dw],
                                preferred_element_type=jnp.float32)
    acc = jnp.maximum(acc + b_ref[...], 0.0)
    o_ref[...] = acc.reshape(H, W, Cout).astype(o_ref.dtype)


def _conv3x3_res_gap_head_kernel(xp_ref, w_ref, b_ref, res_ref,
                                 fcw_ref, fcb_ref, o_ref):
    """3x3 conv + bias + residual add + ReLU + global-avg-pool + Linear head,
    fully fused; only the (1, target_size) logits leave the kernel."""
    Hp, Wp, Cin = xp_ref.shape
    H, W = Hp - 2, Wp - 2
    Cout = w_ref.shape[-1]
    xp = xp_ref[...]
    acc = jnp.zeros((H * W, Cout), jnp.float32)
    for dh in range(3):
        for dw in range(3):
            xs = xp[dh:dh + H, dw:dw + W, :].reshape(H * W, Cin)
            acc = acc + jnp.dot(xs, w_ref[dh * 3 + dw],
                                preferred_element_type=jnp.float32)
    acc = acc + b_ref[...]
    acc = acc + res_ref[...].reshape(H * W, Cout).astype(jnp.float32)
    acc = jnp.maximum(acc, 0.0)
    pooled = jnp.sum(acc, axis=0, keepdims=True) * (1.0 / (H * W))  # (1, Cout)
    out = jnp.dot(pooled, fcw_ref[...],
                  preferred_element_type=jnp.float32) + fcb_ref[...]
    o_ref[...] = out.astype(o_ref.dtype)


# ------------------------------- wrappers ----------------------------------- #

def _pad_hw(x):
    return jnp.pad(x, ((0, 0), (1, 1), (1, 1), (0, 0)))


def stem_conv3x3(x, w9, b):
    """x: (B, H, W, 1) bf16, w9: (9, 1, Cout) bf16 -> (B, H, W, Cout) bf16."""
    B, H, W, Cin = x.shape
    Cout = w9.shape[-1]
    xp = _pad_hw(x)
    return pl.pallas_call(
        _stem_conv3x3_kernel,
        out_shape=jax.ShapeDtypeStruct((B, H, W, Cout), jnp.bfloat16),
        grid=(B,),
        in_specs=[
            pl.BlockSpec((None, H + 2, W + 2, Cin), lambda i: (i, 0, 0, 0)),
            pl.BlockSpec((9, Cin, Cout), lambda i: (0, 0, 0)),
            pl.BlockSpec((1, Cout), lambda i: (0, 0)),
        ],
        out_specs=pl.BlockSpec((None, H, W, Cout), lambda i: (i, 0, 0, 0)),
        compiler_params=pltpu.CompilerParams(dimension_semantics=("parallel",)),
    )(xp, w9, b.reshape(1, Cout))


def conv3x3_relu(x, w9, b):
    """x: (B, H, W, Cin) bf16, w9: (9, Cin, Cout) bf16 -> (B, H, W, Cout) bf16."""
    B, H, W, Cin = x.shape
    Cout = w9.shape[-1]
    xp = _pad_hw(x)
    return pl.pallas_call(
        _conv3x3_relu_kernel,
        out_shape=jax.ShapeDtypeStruct((B, H, W, Cout), jnp.bfloat16),
        grid=(B,),
        in_specs=[
            pl.BlockSpec((None, H + 2, W + 2, Cin), lambda i: (i, 0, 0, 0)),
            pl.BlockSpec((9, Cin, Cout), lambda i: (0, 0, 0)),
            pl.BlockSpec((1, Cout), lambda i: (0, 0)),
        ],
        out_specs=pl.BlockSpec((None, H, W, Cout), lambda i: (i, 0, 0, 0)),
        compiler_params=pltpu.CompilerParams(dimension_semantics=("parallel",)),
    )(xp, w9, b.reshape(1, Cout))


def conv3x3_res_gap_head(r, w9, b, h_res, fc_w, fc_b):
    """Second block conv on r, + residual h_res, ReLU, GAP, Linear head.
    Returns (B, target_size) float32."""
    B, H, W, Cin = r.shape
    Cout = w9.shape[-1]
    T = fc_w.shape[-1]
    rp = _pad_hw(r)
    out = pl.pallas_call(
        _conv3x3_res_gap_head_kernel,
        out_shape=jax.ShapeDtypeStruct((B, 1, T), jnp.float32),
        grid=(B,),
        in_specs=[
            pl.BlockSpec((None, H + 2, W + 2, Cin), lambda i: (i, 0, 0, 0)),
            pl.BlockSpec((9, Cin, Cout), lambda i: (0, 0, 0)),
            pl.BlockSpec((1, Cout), lambda i: (0, 0)),
            pl.BlockSpec((None, H, W, Cout), lambda i: (i, 0, 0, 0)),
            pl.BlockSpec((Cout, T), lambda i: (0, 0)),
            pl.BlockSpec((1, T), lambda i: (0, 0)),
        ],
        out_specs=pl.BlockSpec((None, 1, T), lambda i: (i, 0, 0)),
        compiler_params=pltpu.CompilerParams(dimension_semantics=("parallel",)),
    )(rp, w9, b.reshape(1, Cout), h_res, fc_w, fc_b.reshape(1, T))
    return out.reshape(B, T)


# ------------------------------- model glue --------------------------------- #

def init_params(key, width=128, target_size=1):
    ks = jax.random.split(key, 4)

    def he(k, shape, fan_in, dtype):
        return (jax.random.normal(k, shape, jnp.float32)
                * (2.0 / fan_in) ** 0.5).astype(dtype)

    return {
        # conv weights laid out (tap=9, Cin, Cout); bf16 for MXU / HBM traffic
        "stem_w": he(ks[0], (9, 1, width), 9 * 1, jnp.bfloat16),
        "stem_b": jnp.zeros((width,), jnp.float32),
        "blk_w1": he(ks[1], (9, width, width), 9 * width, jnp.bfloat16),
        "blk_b1": jnp.zeros((width,), jnp.float32),
        "blk_w2": he(ks[2], (9, width, width), 9 * width, jnp.bfloat16),
        "blk_b2": jnp.zeros((width,), jnp.float32),
        # replaced head: nn.Linear(n_features=width, target_size), kept f32
        "fc_w": he(ks[3], (width, target_size), width, jnp.float32),
        "fc_b": jnp.zeros((target_size,), jnp.float32),
    }


def seti_model_forward(params, x_nchw):
    """x_nchw: (B, 1, H, W) float32 (in_chans=1) -> (B, target_size) float32."""
    x = jnp.transpose(x_nchw, (0, 2, 3, 1)).astype(jnp.bfloat16)   # NCHW -> NHWC
    h = stem_conv3x3(x, params["stem_w"], params["stem_b"])        # stem + ReLU
    r = conv3x3_relu(h, params["blk_w1"], params["blk_b1"])        # block conv1
    # block conv2 + residual add + ReLU + global-avg-pool + Linear head (fused)
    return conv3x3_res_gap_head(r, params["blk_w2"], params["blk_b2"], h,
                                params["fc_w"], params["fc_b"])


if __name__ == "__main__":
    key = jax.random.PRNGKey(0)
    pkey, xkey = jax.random.split(key)

    width, target_size = 128, 1
    params = init_params(pkey, width=width, target_size=target_size)
    x = jax.random.normal(xkey, (2, 1, 16, 16), jnp.float32)  # B=2, in_chans=1

    out = jax.jit(seti_model_forward)(params, x)
    jax.block_until_ready(out)
    assert out.shape == (2, target_size), out.shape
    assert out.dtype == jnp.float32
    print("KERNEL_OK")
</pallas_src>

<mosaic_0001>
module attributes {stable_mosaic.version = 11 : i64} {
  func.func @_conv3x3_relu_kernel(%arg0: i32, %arg1: memref<1x18x18x128xbf16, #tpu.memory_space<vmem>>, %arg2: memref<9x128x128xbf16, #tpu.memory_space<vmem>>, %arg3: memref<1x128xf32, #tpu.memory_space<vmem>>, %arg4: memref<1x16x16x128xbf16, #tpu.memory_space<vmem>>) attributes {dimension_semantics = [#tpu.dimension_semantics<parallel>], iteration_bounds = array<i64: 2>, scalar_prefetch = 0 : i64, scratch_operands = 0 : i64, tpu.core_type = #tpu.core_type<tc>, window_params = [{transform_indices = @transform_0, window_bounds = array<i64: 1, 18, 18, 128>}, {pipeline_mode = #tpu.pipeline_mode<synchronous>, transform_indices = @transform_1, window_bounds = array<i64: 9, 128, 128>}, {pipeline_mode = #tpu.pipeline_mode<synchronous>, transform_indices = @transform_2, window_bounds = array<i64: 1, 128>}, {transform_indices = @transform_3, window_bounds = array<i64: 1, 16, 16, 128>}]} {
    %c0 = arith.constant 0 : index
    %c0_0 = arith.constant 0 : index
    %c0_1 = arith.constant 0 : index
    %c0_2 = arith.constant 0 : index
    %0 = vector.load %arg1[%c0, %c0_0, %c0_1, %c0_2] : memref<1x18x18x128xbf16, #tpu.memory_space<vmem>>, vector<1x18x18x128xbf16>
    %1 = vector.shape_cast %0 : vector<1x18x18x128xbf16> to vector<18x18x128xbf16>
    %cst = arith.constant 0.000000e+00 : f32
    %2 = vector.broadcast %cst : f32 to vector<256x128xf32>
    %3 = vector.extract_strided_slice %1 {offsets = [0, 0, 0], sizes = [16, 16, 128], strides = [1, 1, 1]} : vector<18x18x128xbf16> to vector<16x16x128xbf16>
    %4 = vector.shape_cast %3 : vector<16x16x128xbf16> to vector<256x128xbf16>
    %c0_3 = arith.constant 0 : index
    %c0_4 = arith.constant 0 : index
    %c0_5 = arith.constant 0 : index
    %5 = vector.load %arg2[%c0_3, %c0_4, %c0_5] : memref<9x128x128xbf16, #tpu.memory_space<vmem>>, vector<1x128x128xbf16>
    %6 = vector.shape_cast %5 : vector<1x128x128xbf16> to vector<128x128xbf16>
    %cst_6 = arith.constant dense<0.000000e+00> : vector<256x128xf32>
    %7 = tpu.matmul %4, %6, %cst_6 {dimension_numbers = #tpu.dot_dimension_numbers<[1], [0], [0], [1], [0, 0, 1, 1], [], []>} : vector<256x128xbf16>, vector<128x128xbf16>, vector<256x128xf32> -> vector<256x128xf32>
    %8 = arith.addf %2, %7 : vector<256x128xf32>
    %9 = vector.extract_strided_slice %1 {offsets = [0, 1, 0], sizes = [16, 16, 128], strides = [1, 1, 1]} : vector<18x18x128xbf16> to vector<16x16x128xbf16>
    %10 = vector.shape_cast %9 : vector<16x16x128xbf16> to vector<256x128xbf16>
    %c1 = arith.constant 1 : index
    %c0_7 = arith.constant 0 : index
    %c0_8 = arith.constant 0 : index
    %11 = vector.load %arg2[%c1, %c0_7, %c0_8] : memref<9x128x128xbf16, #tpu.memory_space<vmem>>, vector<1x128x128xbf16>
    %12 = vector.shape_cast %11 : vector<1x128x128xbf16> to vector<128x128xbf16>
    %cst_9 = arith.constant dense<0.000000e+00> : vector<256x128xf32>
    %13 = tpu.matmul %10, %12, %cst_9 {dimension_numbers = #tpu.dot_dimension_numbers<[1], [0], [0], [1], [0, 0, 1, 1], [], []>} : vector<256x128xbf16>, vector<128x128xbf16>, vector<256x128xf32> -> vector<256x128xf32>
    %14 = arith.addf %8, %13 : vector<256x128xf32>
    %15 = vector.extract_strided_slice %1 {offsets = [0, 2, 0], sizes = [16, 16, 128], strides = [1, 1, 1]} : vector<18x18x128xbf16> to vector<16x16x128xbf16>
    %16 = vector.shape_cast %15 : vector<16x16x128xbf16> to vector<256x128xbf16>
    %c2 = arith.constant 2 : index
    %c0_10 = arith.constant 0 : index
    %c0_11 = arith.constant 0 : index
    %17 = vector.load %arg2[%c2, %c0_10, %c0_11] : memref<9x128x128xbf16, #tpu.memory_space<vmem>>, vector<1x128x128xbf16>
    %18 = vector.shape_cast %17 : vector<1x128x128xbf16> to vector<128x128xbf16>
    %cst_12 = arith.constant dense<0.000000e+00> : vector<256x128xf32>
    %19 = tpu.matmul %16, %18, %cst_12 {dimension_numbers = #tpu.dot_dimension_numbers<[1], [0], [0], [1], [0, 0, 1, 1], [], []>} : vector<256x128xbf16>, vector<128x128xbf16>, vector<256x128xf32> -> vector<256x128xf32>
    %20 = arith.addf %14, %19 : vector<256x128xf32>
    %21 = vector.extract_strided_slice %1 {offsets = [1, 0, 0], sizes = [16, 16, 128], strides = [1, 1, 1]} : vector<18x18x128xbf16> to vector<16x16x128xbf16>
    %22 = vector.shape_cast %21 : vector<16x16x128xbf16> to vector<256x128xbf16>
    %c3 = arith.constant 3 : index
    %c0_13 = arith.constant 0 : index
    %c0_14 = arith.constant 0 : index
    %23 = vector.load %arg2[%c3, %c0_13, %c0_14] : memref<9x128x128xbf16, #tpu.memory_space<vmem>>, vector<1x128x128xbf16>
    %24 = vector.shape_cast %23 : vector<1x128x128xbf16> to vector<128x128xbf16>
    %cst_15 = arith.constant dense<0.000000e+00> : vector<256x128xf32>
    %25 = tpu.matmul %22, %24, %cst_15 {dimension_numbers = #tpu.dot_dimension_numbers<[1], [0], [0], [1], [0, 0, 1, 1], [], []>} : vector<256x128xbf16>, vector<128x128xbf16>, vector<256x128xf32> -> vector<256x128xf32>
    %26 = arith.addf %20, %25 : vector<256x128xf32>
    %27 = vector.extract_strided_slice %1 {offsets = [1, 1, 0], sizes = [16, 16, 128], strides = [1, 1, 1]} : vector<18x18x128xbf16> to vector<16x16x128xbf16>
    %28 = vector.shape_cast %27 : vector<16x16x128xbf16> to vector<256x128xbf16>
    %c4 = arith.constant 4 : index
    %c0_16 = arith.constant 0 : index
    %c0_17 = arith.constant 0 : index
    %29 = vector.load %arg2[%c4, %c0_16, %c0_17] : memref<9x128x128xbf16, #tpu.memory_space<vmem>>, vector<1x128x128xbf16>
    %30 = vector.shape_cast %29 : vector<1x128x128xbf16> to vector<128x128xbf16>
    %cst_18 = arith.constant dense<0.000000e+00> : vector<256x128xf32>
    %31 = tpu.matmul %28, %30, %cst_18 {dimension_numbers = #tpu.dot_dimension_numbers<[1], [0], [0], [1], [0, 0, 1, 1], [], []>} : vector<256x128xbf16>, vector<128x128xbf16>, vector<256x128xf32> -> vector<256x128xf32>
    %32 = arith.addf %26, %31 : vector<256x128xf32>
    %33 = vector.extract_strided_slice %1 {offsets = [1, 2, 0], sizes = [16, 16, 128], strides = [1, 1, 1]} : vector<18x18x128xbf16> to vector<16x16x128xbf16>
    %34 = vector.shape_cast %33 : vector<16x16x128xbf16> to vector<256x128xbf16>
    %c5 = arith.constant 5 : index
    %c0_19 = arith.constant 0 : index
    %c0_20 = arith.constant 0 : index
    %35 = vector.load %arg2[%c5, %c0_19, %c0_20] : memref<9x128x128xbf16, #tpu.memory_space<vmem>>, vector<1x128x128xbf16>
    %36 = vector.shape_cast %35 : vector<1x128x128xbf16> to vector<128x128xbf16>
    %cst_21 = arith.constant dense<0.000000e+00> : vector<256x128xf32>
    %37 = tpu.matmul %34, %36, %cst_21 {dimension_numbers = #tpu.dot_dimension_numbers<[1], [0], [0], [1], [0, 0, 1, 1], [], []>} : vector<256x128xbf16>, vector<128x128xbf16>, vector<256x128xf32> -> vector<256x128xf32>
    %38 = arith.addf %32, %37 : vector<256x128xf32>
    %39 = vector.extract_strided_slice %1 {offsets = [2, 0, 0], sizes = [16, 16, 128], strides = [1, 1, 1]} : vector<18x18x128xbf16> to vector<16x16x128xbf16>
    %40 = vector.shape_cast %39 : vector<16x16x128xbf16> to vector<256x128xbf16>
    %c6 = arith.constant 6 : index
    %c0_22 = arith.constant 0 : index
    %c0_23 = arith.constant 0 : index
    %41 = vector.load %arg2[%c6, %c0_22, %c0_23] : memref<9x128x128xbf16, #tpu.memory_space<vmem>>, vector<1x128x128xbf16>
    %42 = vector.shape_cast %41 : vector<1x128x128xbf16> to vector<128x128xbf16>
    %cst_24 = arith.constant dense<0.000000e+00> : vector<256x128xf32>
    %43 = tpu.matmul %40, %42, %cst_24 {dimension_numbers = #tpu.dot_dimension_numbers<[1], [0], [0], [1], [0, 0, 1, 1], [], []>} : vector<256x128xbf16>, vector<128x128xbf16>, vector<256x128xf32> -> vector<256x128xf32>
    %44 = arith.addf %38, %43 : vector<256x128xf32>
    %45 = vector.extract_strided_slice %1 {offsets = [2, 1, 0], sizes = [16, 16, 128], strides = [1, 1, 1]} : vector<18x18x128xbf16> to vector<16x16x128xbf16>
    %46 = vector.shape_cast %45 : vector<16x16x128xbf16> to vector<256x128xbf16>
    %c7 = arith.constant 7 : index
    %c0_25 = arith.constant 0 : index
    %c0_26 = arith.constant 0 : index
    %47 = vector.load %arg2[%c7, %c0_25, %c0_26] : memref<9x128x128xbf16, #tpu.memory_space<vmem>>, vector<1x128x128xbf16>
    %48 = vector.shape_cast %47 : vector<1x128x128xbf16> to vector<128x128xbf16>
    %cst_27 = arith.constant dense<0.000000e+00> : vector<256x128xf32>
    %49 = tpu.matmul %46, %48, %cst_27 {dimension_numbers = #tpu.dot_dimension_numbers<[1], [0], [0], [1], [0, 0, 1, 1], [], []>} : vector<256x128xbf16>, vector<128x128xbf16>, vector<256x128xf32> -> vector<256x128xf32>
    %50 = arith.addf %44, %49 : vector<256x128xf32>
    %51 = vector.extract_strided_slice %1 {offsets = [2, 2, 0], sizes = [16, 16, 128], strides = [1, 1, 1]} : vector<18x18x128xbf16> to vector<16x16x128xbf16>
    %52 = vector.shape_cast %51 : vector<16x16x128xbf16> to vector<256x128xbf16>
    %c8 = arith.constant 8 : index
    %c0_28 = arith.constant 0 : index
    %c0_29 = arith.constant 0 : index
    %53 = vector.load %arg2[%c8, %c0_28, %c0_29] : memref<9x128x128xbf16, #tpu.memory_space<vmem>>, vector<1x128x128xbf16>
    %54 = vector.shape_cast %53 : vector<1x128x128xbf16> to vector<128x128xbf16>
    %cst_30 = arith.constant dense<0.000000e+00> : vector<256x128xf32>
    %55 = tpu.matmul %52, %54, %cst_30 {dimension_numbers = #tpu.dot_dimension_numbers<[1], [0], [0], [1], [0, 0, 1, 1], [], []>} : vector<256x128xbf16>, vector<128x128xbf16>, vector<256x128xf32> -> vector<256x128xf32>
    %56 = arith.addf %50, %55 : vector<256x128xf32>
    %c0_31 = arith.constant 0 : index
    %c0_32 = arith.constant 0 : index
    %57 = vector.load %arg3[%c0_31, %c0_32] : memref<1x128xf32, #tpu.memory_space<vmem>>, vector<1x128xf32>
    %58 = vector.broadcast %57 : vector<1x128xf32> to vector<256x128xf32>
    %59 = arith.addf %56, %58 : vector<256x128xf32>
    %cst_33 = arith.constant 0.000000e+00 : f32
    %60 = vector.broadcast %cst_33 : f32 to vector<256x128xf32>
    %61 = arith.maximumf %59, %60 : vector<256x128xf32>
    %62 = vector.shape_cast %61 : vector<256x128xf32> to vector<16x16x128xf32>
    %63 = arith.truncf %62 : vector<16x16x128xf32> to vector<16x16x128xbf16>
    %c0_34 = arith.constant 0 : index
    %c0_35 = arith.constant 0 : index
    %c0_36 = arith.constant 0 : index
    %c0_37 = arith.constant 0 : index
    %64 = vector.load %arg4[%c0_34, %c0_35, %c0_36, %c0_37] : memref<1x16x16x128xbf16, #tpu.memory_space<vmem>>, vector<1x16x16x128xbf16>
    %65 = vector.shape_cast %64 : vector<1x16x16x128xbf16> to vector<16x16x128xbf16>
    %66 = vector.shape_cast %63 : vector<16x16x128xbf16> to vector<1x16x16x128xbf16>
    tpu.vector_store %arg4[%c0_34, %c0_35, %c0_36, %c0_37], %66 {strides = array<i32>} : memref<1x16x16x128xbf16, #tpu.memory_space<vmem>>, vector<1x16x16x128xbf16>,
    return
  }
  func.func @transform_0(%arg0: i32) -> (i32, i32, i32, i32) {
    %c0_i32 = arith.constant 0 : i32
    %c0_i32_0 = arith.constant 0 : i32
    %c0_i32_1 = arith.constant 0 : i32
    %c0_i32_2 = arith.constant 0 : i32
    return %arg0, %c0_i32, %c0_i32_0, %c0_i32_1 : i32, i32, i32, i32
  }
  func.func @transform_1(%arg0: i32) -> (i32, i32, i32) {
    %c0_i32 = arith.constant 0 : i32
    %c0_i32_0 = arith.constant 0 : i32
    %c0_i32_1 = arith.constant 0 : i32
    %c0_i32_2 = arith.constant 0 : i32
    return %c0_i32, %c0_i32_0, %c0_i32_1 : i32, i32, i32
  }
  func.func @transform_2(%arg0: i32) -> (i32, i32) {
    %c0_i32 = arith.constant 0 : i32
    %c0_i32_0 = arith.constant 0 : i32
    %c0_i32_1 = arith.constant 0 : i32
    return %c0_i32, %c0_i32_0 : i32, i32
  }
  func.func @transform_3(%arg0: i32) -> (i32, i32, i32, i32) {
    %c0_i32 = arith.constant 0 : i32
    %c0_i32_0 = arith.constant 0 : i32
    %c0_i32_1 = arith.constant 0 : i32
    %c0_i32_2 = arith.constant 0 : i32
    return %arg0, %c0_i32, %c0_i32_0, %c0_i32_1 : i32, i32, i32, i32
  }
}

module attributes {stable_mosaic.version = 11 : i64} {
  func.func @_stem_conv3x3_kernel(%arg0: i32, %arg1: memref<1x18x18x1xbf16, #tpu.memory_space<vmem>>, %arg2: memref<9x1x128xbf16, #tpu.memory_space<vmem>>, %arg3: memref<1x128xf32, #tpu.memory_space<vmem>>, %arg4: memref<1x16x16x128xbf16, #tpu.memory_space<vmem>>) attributes {dimension_semantics = [#tpu.dimension_semantics<parallel>], iteration_bounds = array<i64: 2>, scalar_prefetch = 0 : i64, scratch_operands = 0 : i64, tpu.core_type = #tpu.core_type<tc>, window_params = [{transform_indices = @transform_0, window_bounds = array<i64: 1, 18, 18, 1>}, {pipeline_mode = #tpu.pipeline_mode<synchronous>, transform_indices = @transform_1, window_bounds = array<i64: 9, 1, 128>}, {pipeline_mode = #tpu.pipeline_mode<synchronous>, transform_indices = @transform_2, window_bounds = array<i64: 1, 128>}, {transform_indices = @transform_3, window_bounds = array<i64: 1, 16, 16, 128>}]} {
    %c0 = arith.constant 0 : index
    %c0_0 = arith.constant 0 : index
    %c0_1 = arith.constant 0 : index
    %c0_2 = arith.constant 0 : index
    %0 = vector.load %arg1[%c0, %c0_0, %c0_1, %c0_2] : memref<1x18x18x1xbf16, #tpu.memory_space<vmem>>, vector<1x18x18x1xbf16>
    %1 = vector.shape_cast %0 : vector<1x18x18x1xbf16> to vector<18x18x1xbf16>
    %2 = arith.extf %1 : vector<18x18x1xbf16> to vector<18x18x1xf32>
    %cst = arith.constant 0.000000e+00 : f32
    %3 = vector.broadcast %cst : f32 to vector<16x16x128xf32>
    %4 = vector.extract_strided_slice %2 {offsets = [0, 0, 0], sizes = [16, 16, 1], strides = [1, 1, 1]} : vector<18x18x1xf32> to vector<16x16x1xf32>
    %c0_3 = arith.constant 0 : index
    %c0_4 = arith.constant 0 : index
    %c0_5 = arith.constant 0 : index
    %5 = vector.load %arg2[%c0_3, %c0_4, %c0_5] : memref<9x1x128xbf16, #tpu.memory_space<vmem>>, vector<1x1x128xbf16>
    %6 = vector.shape_cast %5 : vector<1x1x128xbf16> to vector<1x128xbf16>
    %7 = arith.extf %6 : vector<1x128xbf16> to vector<1x128xf32>
    %8 = vector.shape_cast %7 : vector<1x128xf32> to vector<1x1x128xf32>
    %9 = vector.broadcast %4 : vector<16x16x1xf32> to vector<16x16x128xf32>
    %10 = vector.broadcast %8 : vector<1x1x128xf32> to vector<16x16x128xf32>
    %11 = arith.mulf %9, %10 : vector<16x16x128xf32>
    %12 = arith.addf %3, %11 : vector<16x16x128xf32>
    %13 = vector.extract_strided_slice %2 {offsets = [0, 1, 0], sizes = [16, 16, 1], strides = [1, 1, 1]} : vector<18x18x1xf32> to vector<16x16x1xf32>
    %c1 = arith.constant 1 : index
    %c0_6 = arith.constant 0 : index
    %c0_7 = arith.constant 0 : index
    %14 = vector.load %arg2[%c1, %c0_6, %c0_7] : memref<9x1x128xbf16, #tpu.memory_space<vmem>>, vector<1x1x128xbf16>
    %15 = vector.shape_cast %14 : vector<1x1x128xbf16> to vector<1x128xbf16>
    %16 = arith.extf %15 : vector<1x128xbf16> to vector<1x128xf32>
    %17 = vector.shape_cast %16 : vector<1x128xf32> to vector<1x1x128xf32>
    %18 = vector.broadcast %13 : vector<16x16x1xf32> to vector<16x16x128xf32>
    %19 = vector.broadcast %17 : vector<1x1x128xf32> to vector<16x16x128xf32>
    %20 = arith.mulf %18, %19 : vector<16x16x128xf32>
    %21 = arith.addf %12, %20 : vector<16x16x128xf32>
    %22 = vector.extract_strided_slice %2 {offsets = [0, 2, 0], sizes = [16, 16, 1], strides = [1, 1, 1]} : vector<18x18x1xf32> to vector<16x16x1xf32>
    %c2 = arith.constant 2 : index
    %c0_8 = arith.constant 0 : index
    %c0_9 = arith.constant 0 : index
    %23 = vector.load %arg2[%c2, %c0_8, %c0_9] : memref<9x1x128xbf16, #tpu.memory_space<vmem>>, vector<1x1x128xbf16>
    %24 = vector.shape_cast %23 : vector<1x1x128xbf16> to vector<1x128xbf16>
    %25 = arith.extf %24 : vector<1x128xbf16> to vector<1x128xf32>
    %26 = vector.shape_cast %25 : vector<1x128xf32> to vector<1x1x128xf32>
    %27 = vector.broadcast %22 : vector<16x16x1xf32> to vector<16x16x128xf32>
    %28 = vector.broadcast %26 : vector<1x1x128xf32> to vector<16x16x128xf32>
    %29 = arith.mulf %27, %28 : vector<16x16x128xf32>
    %30 = arith.addf %21, %29 : vector<16x16x128xf32>
    %31 = vector.extract_strided_slice %2 {offsets = [1, 0, 0], sizes = [16, 16, 1], strides = [1, 1, 1]} : vector<18x18x1xf32> to vector<16x16x1xf32>
    %c3 = arith.constant 3 : index
    %c0_10 = arith.constant 0 : index
    %c0_11 = arith.constant 0 : index
    %32 = vector.load %arg2[%c3, %c0_10, %c0_11] : memref<9x1x128xbf16, #tpu.memory_space<vmem>>, vector<1x1x128xbf16>
    %33 = vector.shape_cast %32 : vector<1x1x128xbf16> to vector<1x128xbf16>
    %34 = arith.extf %33 : vector<1x128xbf16> to vector<1x128xf32>
    %35 = vector.shape_cast %34 : vector<1x128xf32> to vector<1x1x128xf32>
    %36 = vector.broadcast %31 : vector<16x16x1xf32> to vector<16x16x128xf32>
    %37 = vector.broadcast %35 : vector<1x1x128xf32> to vector<16x16x128xf32>
    %38 = arith.mulf %36, %37 : vector<16x16x128xf32>
    %39 = arith.addf %30, %38 : vector<16x16x128xf32>
    %40 = vector.extract_strided_slice %2 {offsets = [1, 1, 0], sizes = [16, 16, 1], strides = [1, 1, 1]} : vector<18x18x1xf32> to vector<16x16x1xf32>
    %c4 = arith.constant 4 : index
    %c0_12 = arith.constant 0 : index
    %c0_13 = arith.constant 0 : index
    %41 = vector.load %arg2[%c4, %c0_12, %c0_13] : memref<9x1x128xbf16, #tpu.memory_space<vmem>>, vector<1x1x128xbf16>
    %42 = vector.shape_cast %41 : vector<1x1x128xbf16> to vector<1x128xbf16>
    %43 = arith.extf %42 : vector<1x128xbf16> to vector<1x128xf32>
    %44 = vector.shape_cast %43 : vector<1x128xf32> to vector<1x1x128xf32>
    %45 = vector.broadcast %40 : vector<16x16x1xf32> to vector<16x16x128xf32>
    %46 = vector.broadcast %44 : vector<1x1x128xf32> to vector<16x16x128xf32>
    %47 = arith.mulf %45, %46 : vector<16x16x128xf32>
    %48 = arith.addf %39, %47 : vector<16x16x128xf32>
    %49 = vector.extract_strided_slice %2 {offsets = [1, 2, 0], sizes = [16, 16, 1], strides = [1, 1, 1]} : vector<18x18x1xf32> to vector<16x16x1xf32>
    %c5 = arith.constant 5 : index
    %c0_14 = arith.constant 0 : index
    %c0_15 = arith.constant 0 : index
    %50 = vector.load %arg2[%c5, %c0_14, %c0_15] : memref<9x1x128xbf16, #tpu.memory_space<vmem>>, vector<1x1x128xbf16>
    %51 = vector.shape_cast %50 : vector<1x1x128xbf16> to vector<1x128xbf16>
    %52 = arith.extf %51 : vector<1x128xbf16> to vector<1x128xf32>
    %53 = vector.shape_cast %52 : vector<1x128xf32> to vector<1x1x128xf32>
    %54 = vector.broadcast %49 : vector<16x16x1xf32> to vector<16x16x128xf32>
    %55 = vector.broadcast %53 : vector<1x1x128xf32> to vector<16x16x128xf32>
    %56 = arith.mulf %54, %55 : vector<16x16x128xf32>
    %57 = arith.addf %48, %56 : vector<16x16x128xf32>
    %58 = vector.extract_strided_slice %2 {offsets = [2, 0, 0], sizes = [16, 16, 1], strides = [1, 1, 1]} : vector<18x18x1xf32> to vector<16x16x1xf32>
    %c6 = arith.constant 6 : index
    %c0_16 = arith.constant 0 : index
    %c0_17 = arith.constant 0 : index
    %59 = vector.load %arg2[%c6, %c0_16, %c0_17] : memref<9x1x128xbf16, #tpu.memory_space<vmem>>, vector<1x1x128xbf16>
    %60 = vector.shape_cast %59 : vector<1x1x128xbf16> to vector<1x128xbf16>
    %61 = arith.extf %60 : vector<1x128xbf16> to vector<1x128xf32>
    %62 = vector.shape_cast %61 : vector<1x128xf32> to vector<1x1x128xf32>
    %63 = vector.broadcast %58 : vector<16x16x1xf32> to vector<16x16x128xf32>
    %64 = vector.broadcast %62 : vector<1x1x128xf32> to vector<16x16x128xf32>
    %65 = arith.mulf %63, %64 : vector<16x16x128xf32>
    %66 = arith.addf %57, %65 : vector<16x16x128xf32>
    %67 = vector.extract_strided_slice %2 {offsets = [2, 1, 0], sizes = [16, 16, 1], strides = [1, 1, 1]} : vector<18x18x1xf32> to vector<16x16x1xf32>
    %c7 = arith.constant 7 : index
    %c0_18 = arith.constant 0 : index
    %c0_19 = arith.constant 0 : index
    %68 = vector.load %arg2[%c7, %c0_18, %c0_19] : memref<9x1x128xbf16, #tpu.memory_space<vmem>>, vector<1x1x128xbf16>
    %69 = vector.shape_cast %68 : vector<1x1x128xbf16> to vector<1x128xbf16>
    %70 = arith.extf %69 : vector<1x128xbf16> to vector<1x128xf32>
    %71 = vector.shape_cast %70 : vector<1x128xf32> to vector<1x1x128xf32>
    %72 = vector.broadcast %67 : vector<16x16x1xf32> to vector<16x16x128xf32>
    %73 = vector.broadcast %71 : vector<1x1x128xf32> to vector<16x16x128xf32>
    %74 = arith.mulf %72, %73 : vector<16x16x128xf32>
    %75 = arith.addf %66, %74 : vector<16x16x128xf32>
    %76 = vector.extract_strided_slice %2 {offsets = [2, 2, 0], sizes = [16, 16, 1], strides = [1, 1, 1]} : vector<18x18x1xf32> to vector<16x16x1xf32>
    %c8 = arith.constant 8 : index
    %c0_20 = arith.constant 0 : index
    %c0_21 = arith.constant 0 : index
    %77 = vector.load %arg2[%c8, %c0_20, %c0_21] : memref<9x1x128xbf16, #tpu.memory_space<vmem>>, vector<1x1x128xbf16>
    %78 = vector.shape_cast %77 : vector<1x1x128xbf16> to vector<1x128xbf16>
    %79 = arith.extf %78 : vector<1x128xbf16> to vector<1x128xf32>
    %80 = vector.shape_cast %79 : vector<1x128xf32> to vector<1x1x128xf32>
    %81 = vector.broadcast %76 : vector<16x16x1xf32> to vector<16x16x128xf32>
    %82 = vector.broadcast %80 : vector<1x1x128xf32> to vector<16x16x128xf32>
    %83 = arith.mulf %81, %82 : vector<16x16x128xf32>
    %84 = arith.addf %75, %83 : vector<16x16x128xf32>
    %c0_22 = arith.constant 0 : index
    %c0_23 = arith.constant 0 : index
    %85 = vector.load %arg3[%c0_22, %c0_23] : memref<1x128xf32, #tpu.memory_space<vmem>>, vector<1x128xf32>
    %86 = vector.shape_cast %85 : vector<1x128xf32> to vector<1x1x128xf32>
    %87 = vector.broadcast %86 : vector<1x1x128xf32> to vector<16x16x128xf32>
    %88 = arith.addf %84, %87 : vector<16x16x128xf32>
    %cst_24 = arith.constant 0.000000e+00 : f32
    %89 = vector.broadcast %cst_24 : f32 to vector<16x16x128xf32>
    %90 = arith.maximumf %88, %89 : vector<16x16x128xf32>
    %91 = arith.truncf %90 : vector<16x16x128xf32> to vector<16x16x128xbf16>
    %c0_25 = arith.constant 0 : index
    %c0_26 = arith.constant 0 : index
    %c0_27 = arith.constant 0 : index
    %c0_28 = arith.constant 0 : index
    %92 = vector.load %arg4[%c0_25, %c0_26, %c0_27, %c0_28] : memref<1x16x16x128xbf16, #tpu.memory_space<vmem>>, vector<1x16x16x128xbf16>
    %93 = vector.shape_cast %92 : vector<1x16x16x128xbf16> to vector<16x16x128xbf16>
    %94 = vector.shape_cast %91 : vector<16x16x128xbf16> to vector<1x16x16x128xbf16>
    tpu.vector_store %arg4[%c0_25, %c0_26, %c0_27, %c0_28], %94 {strides = array<i32>} : memref<1x16x16x128xbf16, #tpu.memory_space<vmem>>, vector<1x16x16x128xbf16>,
    return
  }
  func.func @transform_0(%arg0: i32) -> (i32, i32, i32, i32) {
    %c0_i32 = arith.constant 0 : i32
    %c0_i32_0 = arith.constant 0 : i32
    %c0_i32_1 = arith.constant 0 : i32
    %c0_i32_2 = arith.constant 0 : i32
    return %arg0, %c0_i32, %c0_i32_0, %c0_i32_1 : i32, i32, i32, i32
  }
  func.func @transform_1(%arg0: i32) -> (i32, i32, i32) {
    %c0_i32 = arith.constant 0 : i32
    %c0_i32_0 = arith.constant 0 : i32
    %c0_i32_1 = arith.constant 0 : i32
    %c0_i32_2 = arith.constant 0 : i32
    return %c0_i32, %c0_i32_0, %c0_i32_1 : i32, i32, i32
  }
  func.func @transform_2(%arg0: i32) -> (i32, i32) {
    %c0_i32 = arith.constant 0 : i32
    %c0_i32_0 = arith.constant 0 : i32
    %c0_i32_1 = arith.constant 0 : i32
    return %c0_i32, %c0_i32_0 : i32, i32
  }
  func.func @transform_3(%arg0: i32) -> (i32, i32, i32, i32) {
    %c0_i32 = arith.constant 0 : i32
    %c0_i32_0 = arith.constant 0 : i32
    %c0_i32_1 = arith.constant 0 : i32
    %c0_i32_2 = arith.constant 0 : i32
    return %arg0, %c0_i32, %c0_i32_0, %c0_i32_1 : i32, i32, i32, i32
  }
}

module attributes {stable_mosaic.version = 11 : i64} {
  func.func @_conv3x3_res_gap_head_kernel(%arg0: i32, %arg1: memref<1x18x18x128xbf16, #tpu.memory_space<vmem>>, %arg2: memref<9x128x128xbf16, #tpu.memory_space<vmem>>, %arg3: memref<1x128xf32, #tpu.memory_space<vmem>>, %arg4: memref<1x16x16x128xbf16, #tpu.memory_space<vmem>>, %arg5: memref<128x1xf32, #tpu.memory_space<vmem>>, %arg6: memref<1x1xf32, #tpu.memory_space<vmem>>, %arg7: memref<1x1x1xf32, #tpu.memory_space<vmem>>) attributes {dimension_semantics = [#tpu.dimension_semantics<parallel>], iteration_bounds = array<i64: 2>, scalar_prefetch = 0 : i64, scratch_operands = 0 : i64, tpu.core_type = #tpu.core_type<tc>, window_params = [{transform_indices = @transform_0, window_bounds = array<i64: 1, 18, 18, 128>}, {pipeline_mode = #tpu.pipeline_mode<synchronous>, transform_indices = @transform_1, window_bounds = array<i64: 9, 128, 128>}, {pipeline_mode = #tpu.pipeline_mode<synchronous>, transform_indices = @transform_2, window_bounds = array<i64: 1, 128>}, {transform_indices = @transform_3, window_bounds = array<i64: 1, 16, 16, 128>}, {pipeline_mode = #tpu.pipeline_mode<synchronous>, transform_indices = @transform_4, window_bounds = array<i64: 128, 1>}, {pipeline_mode = #tpu.pipeline_mode<synchronous>, transform_indices = @transform_5, window_bounds = array<i64: 1, 1>}, {transform_indices = @transform_6, window_bounds = array<i64: 1, 1, 1>}]} {
    %c0 = arith.constant 0 : index
    %c0_0 = arith.constant 0 : index
    %c0_1 = arith.constant 0 : index
    %c0_2 = arith.constant 0 : index
    %0 = vector.load %arg1[%c0, %c0_0, %c0_1, %c0_2] : memref<1x18x18x128xbf16, #tpu.memory_space<vmem>>, vector<1x18x18x128xbf16>
    %1 = vector.shape_cast %0 : vector<1x18x18x128xbf16> to vector<18x18x128xbf16>
    %cst = arith.constant 0.000000e+00 : f32
    %2 = vector.broadcast %cst : f32 to vector<256x128xf32>
    %3 = vector.extract_strided_slice %1 {offsets = [0, 0, 0], sizes = [16, 16, 128], strides = [1, 1, 1]} : vector<18x18x128xbf16> to vector<16x16x128xbf16>
    %4 = vector.shape_cast %3 : vector<16x16x128xbf16> to vector<256x128xbf16>
    %c0_3 = arith.constant 0 : index
    %c0_4 = arith.constant 0 : index
    %c0_5 = arith.constant 0 : index
    %5 = vector.load %arg2[%c0_3, %c0_4, %c0_5] : memref<9x128x128xbf16, #tpu.memory_space<vmem>>, vector<1x128x128xbf16>
    %6 = vector.shape_cast %5 : vector<1x128x128xbf16> to vector<128x128xbf16>
    %cst_6 = arith.constant dense<0.000000e+00> : vector<256x128xf32>
    %7 = tpu.matmul %4, %6, %cst_6 {dimension_numbers = #tpu.dot_dimension_numbers<[1], [0], [0], [1], [0, 0, 1, 1], [], []>} : vector<256x128xbf16>, vector<128x128xbf16>, vector<256x128xf32> -> vector<256x128xf32>
    %8 = arith.addf %2, %7 : vector<256x128xf32>
    %9 = vector.extract_strided_slice %1 {offsets = [0, 1, 0], sizes = [16, 16, 128], strides = [1, 1, 1]} : vector<18x18x128xbf16> to vector<16x16x128xbf16>
    %10 = vector.shape_cast %9 : vector<16x16x128xbf16> to vector<256x128xbf16>
    %c1 = arith.constant 1 : index
    %c0_7 = arith.constant 0 : index
    %c0_8 = arith.constant 0 : index
    %11 = vector.load %arg2[%c1, %c0_7, %c0_8] : memref<9x128x128xbf16, #tpu.memory_space<vmem>>, vector<1x128x128xbf16>
    %12 = vector.shape_cast %11 : vector<1x128x128xbf16> to vector<128x128xbf16>
    %cst_9 = arith.constant dense<0.000000e+00> : vector<256x128xf32>
    %13 = tpu.matmul %10, %12, %cst_9 {dimension_numbers = #tpu.dot_dimension_numbers<[1], [0], [0], [1], [0, 0, 1, 1], [], []>} : vector<256x128xbf16>, vector<128x128xbf16>, vector<256x128xf32> -> vector<256x128xf32>
    %14 = arith.addf %8, %13 : vector<256x128xf32>
    %15 = vector.extract_strided_slice %1 {offsets = [0, 2, 0], sizes = [16, 16, 128], strides = [1, 1, 1]} : vector<18x18x128xbf16> to vector<16x16x128xbf16>
    %16 = vector.shape_cast %15 : vector<16x16x128xbf16> to vector<256x128xbf16>
    %c2 = arith.constant 2 : index
    %c0_10 = arith.constant 0 : index
    %c0_11 = arith.constant 0 : index
    %17 = vector.load %arg2[%c2, %c0_10, %c0_11] : memref<9x128x128xbf16, #tpu.memory_space<vmem>>, vector<1x128x128xbf16>
    %18 = vector.shape_cast %17 : vector<1x128x128xbf16> to vector<128x128xbf16>
    %cst_12 = arith.constant dense<0.000000e+00> : vector<256x128xf32>
    %19 = tpu.matmul %16, %18, %cst_12 {dimension_numbers = #tpu.dot_dimension_numbers<[1], [0], [0], [1], [0, 0, 1, 1], [], []>} : vector<256x128xbf16>, vector<128x128xbf16>, vector<256x128xf32> -> vector<256x128xf32>
    %20 = arith.addf %14, %19 : vector<256x128xf32>
    %21 = vector.extract_strided_slice %1 {offsets = [1, 0, 0], sizes = [16, 16, 128], strides = [1, 1, 1]} : vector<18x18x128xbf16> to vector<16x16x128xbf16>
    %22 = vector.shape_cast %21 : vector<16x16x128xbf16> to vector<256x128xbf16>
    %c3 = arith.constant 3 : index
    %c0_13 = arith.constant 0 : index
    %c0_14 = arith.constant 0 : index
    %23 = vector.load %arg2[%c3, %c0_13, %c0_14] : memref<9x128x128xbf16, #tpu.memory_space<vmem>>, vector<1x128x128xbf16>
    %24 = vector.shape_cast %23 : vector<1x128x128xbf16> to vector<128x128xbf16>
    %cst_15 = arith.constant dense<0.000000e+00> : vector<256x128xf32>
    %25 = tpu.matmul %22, %24, %cst_15 {dimension_numbers = #tpu.dot_dimension_numbers<[1], [0], [0], [1], [0, 0, 1, 1], [], []>} : vector<256x128xbf16>, vector<128x128xbf16>, vector<256x128xf32> -> vector<256x128xf32>
    %26 = arith.addf %20, %25 : vector<256x128xf32>
    %27 = vector.extract_strided_slice %1 {offsets = [1, 1, 0], sizes = [16, 16, 128], strides = [1, 1, 1]} : vector<18x18x128xbf16> to vector<16x16x128xbf16>
    %28 = vector.shape_cast %27 : vector<16x16x128xbf16> to vector<256x128xbf16>
    %c4 = arith.constant 4 : index
    %c0_16 = arith.constant 0 : index
    %c0_17 = arith.constant 0 : index
    %29 = vector.load %arg2[%c4, %c0_16, %c0_17] : memref<9x128x128xbf16, #tpu.memory_space<vmem>>, vector<1x128x128xbf16>
    %30 = vector.shape_cast %29 : vector<1x128x128xbf16> to vector<128x128xbf16>
    %cst_18 = arith.constant dense<0.000000e+00> : vector<256x128xf32>
    %31 = tpu.matmul %28, %30, %cst_18 {dimension_numbers = #tpu.dot_dimension_numbers<[1], [0], [0], [1], [0, 0, 1, 1], [], []>} : vector<256x128xbf16>, vector<128x128xbf16>, vector<256x128xf32> -> vector<256x128xf32>
    %32 = arith.addf %26, %31 : vector<256x128xf32>
    %33 = vector.extract_strided_slice %1 {offsets = [1, 2, 0], sizes = [16, 16, 128], strides = [1, 1, 1]} : vector<18x18x128xbf16> to vector<16x16x128xbf16>
    %34 = vector.shape_cast %33 : vector<16x16x128xbf16> to vector<256x128xbf16>
    %c5 = arith.constant 5 : index
    %c0_19 = arith.constant 0 : index
    %c0_20 = arith.constant 0 : index
    %35 = vector.load %arg2[%c5, %c0_19, %c0_20] : memref<9x128x128xbf16, #tpu.memory_space<vmem>>, vector<1x128x128xbf16>
    %36 = vector.shape_cast %35 : vector<1x128x128xbf16> to vector<128x128xbf16>
    %cst_21 = arith.constant dense<0.000000e+00> : vector<256x128xf32>
    %37 = tpu.matmul %34, %36, %cst_21 {dimension_numbers = #tpu.dot_dimension_numbers<[1], [0], [0], [1], [0, 0, 1, 1], [], []>} : vector<256x128xbf16>, vector<128x128xbf16>, vector<256x128xf32> -> vector<256x128xf32>
    %38 = arith.addf %32, %37 : vector<256x128xf32>
    %39 = vector.extract_strided_slice %1 {offsets = [2, 0, 0], sizes = [16, 16, 128], strides = [1, 1, 1]} : vector<18x18x128xbf16> to vector<16x16x128xbf16>
    %40 = vector.shape_cast %39 : vector<16x16x128xbf16> to vector<256x128xbf16>
    %c6 = arith.constant 6 : index
    %c0_22 = arith.constant 0 : index
    %c0_23 = arith.constant 0 : index
    %41 = vector.load %arg2[%c6, %c0_22, %c0_23] : memref<9x128x128xbf16, #tpu.memory_space<vmem>>, vector<1x128x128xbf16>
    %42 = vector.shape_cast %41 : vector<1x128x128xbf16> to vector<128x128xbf16>
    %cst_24 = arith.constant dense<0.000000e+00> : vector<256x128xf32>
    %43 = tpu.matmul %40, %42, %cst_24 {dimension_numbers = #tpu.dot_dimension_numbers<[1], [0], [0], [1], [0, 0, 1, 1], [], []>} : vector<256x128xbf16>, vector<128x128xbf16>, vector<256x128xf32> -> vector<256x128xf32>
    %44 = arith.addf %38, %43 : vector<256x128xf32>
    %45 = vector.extract_strided_slice %1 {offsets = [2, 1, 0], sizes = [16, 16, 128], strides = [1, 1, 1]} : vector<18x18x128xbf16> to vector<16x16x128xbf16>
    %46 = vector.shape_cast %45 : vector<16x16x128xbf16> to vector<256x128xbf16>
    %c7 = arith.constant 7 : index
    %c0_25 = arith.constant 0 : index
    %c0_26 = arith.constant 0 : index
    %47 = vector.load %arg2[%c7, %c0_25, %c0_26] : memref<9x128x128xbf16, #tpu.memory_space<vmem>>, vector<1x128x128xbf16>
    %48 = vector.shape_cast %47 : vector<1x128x128xbf16> to vector<128x128xbf16>
    %cst_27 = arith.constant dense<0.000000e+00> : vector<256x128xf32>
    %49 = tpu.matmul %46, %48, %cst_27 {dimension_numbers = #tpu.dot_dimension_numbers<[1], [0], [0], [1], [0, 0, 1, 1], [], []>} : vector<256x128xbf16>, vector<128x128xbf16>, vector<256x128xf32> -> vector<256x128xf32>
    %50 = arith.addf %44, %49 : vector<256x128xf32>
    %51 = vector.extract_strided_slice %1 {offsets = [2, 2, 0], sizes = [16, 16, 128], strides = [1, 1, 1]} : vector<18x18x128xbf16> to vector<16x16x128xbf16>
    %52 = vector.shape_cast %51 : vector<16x16x128xbf16> to vector<256x128xbf16>
    %c8 = arith.constant 8 : index
    %c0_28 = arith.constant 0 : index
    %c0_29 = arith.constant 0 : index
    %53 = vector.load %arg2[%c8, %c0_28, %c0_29] : memref<9x128x128xbf16, #tpu.memory_space<vmem>>, vector<1x128x128xbf16>
    %54 = vector.shape_cast %53 : vector<1x128x128xbf16> to vector<128x128xbf16>
    %cst_30 = arith.constant dense<0.000000e+00> : vector<256x128xf32>
    %55 = tpu.matmul %52, %54, %cst_30 {dimension_numbers = #tpu.dot_dimension_numbers<[1], [0], [0], [1], [0, 0, 1, 1], [], []>} : vector<256x128xbf16>, vector<128x128xbf16>, vector<256x128xf32> -> vector<256x128xf32>
    %56 = arith.addf %50, %55 : vector<256x128xf32>
    %c0_31 = arith.constant 0 : index
    %c0_32 = arith.constant 0 : index
    %57 = vector.load %arg3[%c0_31, %c0_32] : memref<1x128xf32, #tpu.memory_space<vmem>>, vector<1x128xf32>
    %58 = vector.broadcast %57 : vector<1x128xf32> to vector<256x128xf32>
    %59 = arith.addf %56, %58 : vector<256x128xf32>
    %c0_33 = arith.constant 0 : index
    %c0_34 = arith.constant 0 : index
    %c0_35 = arith.constant 0 : index
    %c0_36 = arith.constant 0 : index
    %60 = vector.load %arg4[%c0_33, %c0_34, %c0_35, %c0_36] : memref<1x16x16x128xbf16, #tpu.memory_space<vmem>>, vector<1x16x16x128xbf16>
    %61 = vector.shape_cast %60 : vector<1x16x16x128xbf16> to vector<16x16x128xbf16>
    %62 = vector.shape_cast %61 : vector<16x16x128xbf16> to vector<256x128xbf16>
    %63 = arith.extf %62 : vector<256x128xbf16> to vector<256x128xf32>
    %64 = arith.addf %59, %63 : vector<256x128xf32>
    %cst_37 = arith.constant 0.000000e+00 : f32
    %65 = vector.broadcast %cst_37 : f32 to vector<256x128xf32>
    %66 = arith.maximumf %64, %65 : vector<256x128xf32>
    %cst_38 = arith.constant dense<0.000000e+00> : vector<128xf32>
    %67 = vector.multi_reduction <add>, %66, %cst_38 [0] : vector<256x128xf32> to vector<128xf32>
    %68 = vector.shape_cast %67 : vector<128xf32> to vector<1x128xf32>
    %cst_39 = arith.constant 3.906250e-03 : f32
    %69 = vector.broadcast %cst_39 : f32 to vector<1x128xf32>
    %70 = arith.mulf %68, %69 : vector<1x128xf32>
    %c0_40 = arith.constant 0 : index
    %c0_41 = arith.constant 0 : index
    %71 = vector.load %arg5[%c0_40, %c0_41] : memref<128x1xf32, #tpu.memory_space<vmem>>, vector<128x1xf32>
    %cst_42 = arith.constant dense<0.000000e+00> : vector<1x1xf32>
    %72 = tpu.matmul %70, %71, %cst_42 {dimension_numbers = #tpu.dot_dimension_numbers<[1], [0], [0], [1], [0, 0, 1, 1], [], []>} : vector<1x128xf32>, vector<128x1xf32>, vector<1x1xf32> -> vector<1x1xf32>
    %c0_43 = arith.constant 0 : index
    %c0_44 = arith.constant 0 : index
    %73 = vector.load %arg6[%c0_43, %c0_44] : memref<1x1xf32, #tpu.memory_space<vmem>>, vector<1x1xf32>
    %74 = arith.addf %72, %73 : vector<1x1xf32>
    %c0_45 = arith.constant 0 : index
    %c0_46 = arith.constant 0 : index
    %c0_47 = arith.constant 0 : index
    %75 = vector.load %arg7[%c0_45, %c0_46, %c0_47] : memref<1x1x1xf32, #tpu.memory_space<vmem>>, vector<1x1x1xf32>
    %76 = vector.shape_cast %75 : vector<1x1x1xf32> to vector<1x1xf32>
    %77 = vector.shape_cast %74 : vector<1x1xf32> to vector<1x1x1xf32>
    tpu.vector_store %arg7[%c0_45, %c0_46, %c0_47], %77 {strides = array<i32>} : memref<1x1x1xf32, #tpu.memory_space<vmem>>, vector<1x1x1xf32>,
    return
  }
  func.func @transform_0(%arg0: i32) -> (i32, i32, i32, i32) {
    %c0_i32 = arith.constant 0 : i32
    %c0_i32_0 = arith.constant 0 : i32
    %c0_i32_1 = arith.constant 0 : i32
    %c0_i32_2 = arith.constant 0 : i32
    return %arg0, %c0_i32, %c0_i32_0, %c0_i32_1 : i32, i32, i32, i32
  }
  func.func @transform_1(%arg0: i32) -> (i32, i32, i32) {
    %c0_i32 = arith.constant 0 : i32
    %c0_i32_0 = arith.constant 0 : i32
    %c0_i32_1 = arith.constant 0 : i32
    %c0_i32_2 = arith.constant 0 : i32
    return %c0_i32, %c0_i32_0, %c0_i32_1 : i32, i32, i32
  }
  func.func @transform_2(%arg0: i32) -> (i32, i32) {
    %c0_i32 = arith.constant 0 : i32
    %c0_i32_0 = arith.constant 0 : i32
    %c0_i32_1 = arith.constant 0 : i32
    return %c0_i32, %c0_i32_0 : i32, i32
  }
  func.func @transform_3(%arg0: i32) -> (i32, i32, i32, i32) {
    %c0_i32 = arith.constant 0 : i32
    %c0_i32_0 = arith.constant 0 : i32
    %c0_i32_1 = arith.constant 0 : i32
    %c0_i32_2 = arith.constant 0 : i32
    return %arg0, %c0_i32, %c0_i32_0, %c0_i32_1 : i32, i32, i32, i32
  }
  func.func @transform_4(%arg0: i32) -> (i32, i32) {
    %c0_i32 = arith.constant 0 : i32
    %c0_i32_0 = arith.constant 0 : i32
    %c0_i32_1 = arith.constant 0 : i32
    return %c0_i32, %c0_i32_0 : i32, i32
  }
  func.func @transform_5(%arg0: i32) -> (i32, i32) {
    %c0_i32 = arith.constant 0 : i32
    %c0_i32_0 = arith.constant 0 : i32
    %c0_i32_1 = arith.constant 0 : i32
    return %c0_i32, %c0_i32_0 : i32, i32
  }
  func.func @transform_6(%arg0: i32) -> (i32, i32, i32) {
    %c0_i32 = arith.constant 0 : i32
    %c0_i32_0 = arith.constant 0 : i32
    %c0_i32_1 = arith.constant 0 : i32
    return %arg0, %c0_i32, %c0_i32_0 : i32, i32, i32
  }
}

</mosaic_0001>

<bundles_post_ra>
// kernel: seti_model_forward.3
= control target key start
LH: loop header
LB: loop body
LE: loop exit
PB: predicated region body
PF: predicated region fallthrough
CT: control target
= control target key end

     0   :  { %s2926_s12 = smov 0   ;;  %s4595_s0 = inlined_call_operand.vmem [shape: bf16[2,18,18,1], index: 0, kind: input, shape index: {}]   ;;  %s4596_s1 = inlined_call_operand.vmem [shape: bf16[9,1,128], index: 1, kind: input, shape index: {}]   ;;  %s4597_s2 = inlined_call_operand.vmem [shape: f32[1,128], index: 2, kind: input, shape index: {}]   ;;  %s4598_s3 = inlined_call_operand.vmem [shape: bf16[2,16,16,128], index: 3, kind: output, shape index: {}]  }
   0x1 LB: > { %s2531_s13 = sadd.s32 4294967295, %s2903_s12   ;;  %p2535_p0 = scmp.ge.s32.totalorder %s2903_s12, 1  ;;  %s2903_s12 = sphi %s2926_s12, %s13_s12  }
   0x2   : > { %p137_p1 = scmp.lt.s32.totalorder %s2903_s12, 3 }
   0x4   : > { %p138_p2 = pnand %p2535_p0, %p137_p1 }
   0x6   : > { %141 = sbr.rel (%p138_p2) target bundleno = 481 (0x1e1), region = 32 }
   0xd   : > { %p161_p3 = scmp.lt.s32.totalorder %s2531_s13, 1  ;;  %v2905_v0 = vmov 0   ;;  %vm692_vm0 = vcmask 1046528   ;;  %vm940_vm1 = vcmask 1045504  }
   0xe   : > { %2775 = vset.pattern.permute.xlu1 %v2905_v0  ;;  %2764 = vset.pattern.permute.xlu0 %v2905_v0 }
   0xf   : > { %s4812_s13 = smov (!%p161_p3, %s2531_s13), 1 }
  0x10   : > { %s2754_s14 = smul.u32 216, %s4812_s13  ;;  %s2582_s11 = sshll.u32 %s4812_s13, 7 }
  0x11   : > { %s3466_s15 = scalar_lea.vmem %s4598_s3, %s2582_s11 }
  0x12   : > { %s2940_s17 = scalar_lea.vmem %s4595_s0, %s2754_s14 }
  0x13   : > { %v2731_v1 = vld [vmem:[%s2940_s17 + $0x18] sm:$0xff]   ;;  %v2616_v2 = vld [vmem:[%s2940_s17] sm:$0xff]   ;;  %v174_v8 = vld [vmem:[%s2940_s17 + $0xc] sm:$0xff]  }
  0x14   : > { %v180_v3 = vld [vmem:[%s2940_s17 + $0x24] sm:$0xff]   ;;  %v2621_v4 = vunpack.c.l.bf16 %v2731_v1  ;;  %v2622_v5 = vunpack.c.h.bf16 %v2731_v1  ;;  %v2617_v6 = vunpack.c.l.bf16 %v2616_v2  ;;  %v2618_v7 = vunpack.c.h.bf16 %v2616_v2  ;;  %v186_v9 = vld [vmem:[%s2940_s17 + $0x3c] sm:$0xff]   ;;  %v2732_v14 = vld [vmem:[%s2940_s17 + $0x30] sm:$0xff]  }
  0x15   : > { %v234_v10 = vunpack.c.l.bf16 %v180_v3  ;;  %v235_v11 = vunpack.c.h.bf16 %v180_v3  ;;  %v228_v12 = vunpack.c.l.bf16 %v174_v8  ;;  %v229_v13 = vunpack.c.h.bf16 %v174_v8  ;;  %v192_v23 = vld [vmem:[%s2940_s17 + $0x54] sm:$0xff]   ;;  %v2733_v24 = vld [vmem:[%s2940_s17 + $0x48] sm:$0xff]   ;;  %v2734_v32 = vld [vmem:[%s2940_s17 + $0x60] sm:$0xff]  }
  0x16   : > { %v2776_v15 = vpack.i.bf16 %v2622_v5, %v2621_v4  ;;  %v2765_v16 = vpack.i.bf16 %v2618_v7, %v2617_v6  ;;  %v240_v17 = vunpack.c.l.bf16 %v186_v9  ;;  %v241_v18 = vunpack.c.h.bf16 %v186_v9  ;;  %v198_v31 = vld [vmem:[%s2940_s17 + $0x6c] sm:$0xff]   ;;  %v204_v39 = vld [vmem:[%s2940_s17 + $0x84] sm:$0xff]   ;;  %v2735_v40 = vld [vmem:[%s2940_s17 + $0x78] sm:$0xff]  }
  0x17   : > { %v2781_v19 = vpack.i.bf16 %v235_v11, %v234_v10  ;;  %v2770_v20 = vpack.i.bf16 %v229_v13, %v228_v12  ;;  %v2625_v21 = vunpack.c.l.bf16 %v2732_v14  ;;  %v2626_v22 = vunpack.c.h.bf16 %v2732_v14  ;;  %v210_v47 = vld [vmem:[%s2940_s17 + $0x9c] sm:$0xff]   ;;  %v2736_v48 = vld [vmem:[%s2940_s17 + $0x90] sm:$0xff]   ;;  %v2737_v56 = vld [vmem:[%s2940_s17 + $0xa8] sm:$0xff]  }
  0x18   : > { %2777 = vperm.xlu1 %2775, %v2776_v15   ;;  %2766 = vperm.xlu0 %2764, %v2765_v16   ;;  %v2791_v25 = vpack.i.bf16 %v241_v18, %v240_v17  ;;  %v246_v26 = vunpack.c.l.bf16 %v192_v23  ;;  %v247_v28 = vunpack.c.h.bf16 %v192_v23  ;;  %v2629_v29 = vunpack.c.l.bf16 %v2733_v24  ;;  %v216_v55 = vld [vmem:[%s2940_s17 + $0xb4] sm:$0xff]   ;;  %v179_v63 = vld [vmem:[%s2940_s17 + $0x20] sm:$0x1]  ;;  %v182_v0 = vld [vmem:[%s2940_s17 + $0x2c] sm:$0x1] }
  0x19   : > { %v2786_v27 = vpack.i.bf16 %v2626_v22, %v2625_v21  ;;  %v2630_v30 = vunpack.c.h.bf16 %v2733_v24  ;;  %v252_v33 = vunpack.c.l.bf16 %v198_v31  ;;  %v253_v34 = vunpack.c.h.bf16 %v198_v31  ;;  %v173_v1 = vld [vmem:[%s2940_s17 + $0x8] sm:$0x1]  ;;  %v176_v2 = vld [vmem:[%s2940_s17 + $0x14] sm:$0x1]  ;;  %v191_v9 = vld [vmem:[%s2940_s17 + $0x50] sm:$0x1] }
  0x1a   : > { %v2801_v35 = vpack.i.bf16 %v247_v28, %v246_v26  ;;  %v2633_v37 = vunpack.c.l.bf16 %v2734_v32  ;;  %v2634_v38 = vunpack.c.h.bf16 %v2734_v32  ;;  %v258_v42 = vunpack.c.l.bf16 %v204_v39  ;;  %v194_v10 = vld [vmem:[%s2940_s17 + $0x5c] sm:$0x1]  ;;  %v185_v11 = vld [vmem:[%s2940_s17 + $0x38] sm:$0x1]  ;;  %v188_v12 = vld [vmem:[%s2940_s17 + $0x44] sm:$0x1] }
  0x1b   : > { %v2796_v36 = vpack.i.bf16 %v2630_v30, %v2629_v29  ;;  %v2811_v41 = vpack.i.bf16 %v253_v34, %v252_v33  ;;  %v259_v44 = vunpack.c.h.bf16 %v204_v39  ;;  %v2637_v45 = vunpack.c.l.bf16 %v2735_v40  ;;  %v197_v21 = vld [vmem:[%s2940_s17 + $0x68] sm:$0x1]  ;;  %v200_v22 = vld [vmem:[%s2940_s17 + $0x74] sm:$0x1]  ;;  %v215_v29 = vld [vmem:[%s2940_s17 + $0xb0] sm:$0x1] }
  0x1c   : > { %2782 = vperm.xlu1 %2775, %v2781_v19   ;;  %2771 = vperm.xlu0 %2764, %v2770_v20   ;;  %v2806_v43 = vpack.i.bf16 %v2634_v38, %v2633_v37  ;;  %v2638_v46 = vunpack.c.h.bf16 %v2735_v40  ;;  %v264_v49 = vunpack.c.l.bf16 %v210_v47  ;;  %v265_v50 = vunpack.c.h.bf16 %v210_v47  ;;  %v203_v19 = vld [vmem:[%s2940_s17 + $0x80] sm:$0x1]  ;;  %v206_v20 = vld [vmem:[%s2940_s17 + $0x8c] sm:$0x1]  ;;  %v218_v30 = vld [vmem:[%s2940_s17 + $0xbc] sm:$0x1] }
  0x1d   : > { %v2821_v51 = vpack.i.bf16 %v259_v44, %v258_v42  ;;  %v2641_v53 = vunpack.c.l.bf16 %v2736_v48  ;;  %v2642_v54 = vunpack.c.h.bf16 %v2736_v48  ;;  %v270_v58 = vunpack.c.l.bf16 %v216_v55  ;;  %v209_v31 = vld [vmem:[%s2940_s17 + $0x98] sm:$0x1]  ;;  %v212_v32 = vld [vmem:[%s2940_s17 + $0xa4] sm:$0x1]  ;;  %v221_v44 = vld [vmem:[%s2940_s17 + $0xc8] sm:$0x1] }
  0x1e   : > { %v2816_v52 = vpack.i.bf16 %v2638_v46, %v2637_v45  ;;  %v2831_v57 = vpack.i.bf16 %v265_v50, %v264_v49  ;;  %v271_v60 = vunpack.c.h.bf16 %v216_v55  ;;  %v2645_v61 = vunpack.c.l.bf16 %v2737_v56  ;;  %v2738_v39 = vld [vmem:[%s2940_s17 + $0xc0] sm:$0xff]   ;;  %v222_v45 = vld [vmem:[%s2940_s17 + $0xcc] sm:$0xff]   ;;  %v224_v50 = vld [vmem:[%s2940_s17 + $0xd4] sm:$0x1] }
  0x1f   : > { %v2826_v59 = vpack.i.bf16 %v2642_v54, %v2641_v53  ;;  %v2646_v62 = vunpack.c.h.bf16 %v2737_v56  ;;  %v233_v3 = vunpack.c.l.bf16 %v179_v63  ;;  %v236_v4 = vunpack.c.l.bf16 %v182_v0  ;;  %v2539_v55 = vld [vmem:[%s4596_s1 + $0x1] sm:$0x1]  ;;  %v2540_v56 = vld [vmem:[%s4596_s1 + $0x2] sm:$0x1]  ;;  %v2545_v63 = vld [vmem:[%s4596_s1 + $0x7] sm:$0x1] }
  0x20   : > { %2792 = vperm.xlu1 %2775, %v2791_v25   ;;  %2787 = vperm.xlu0 %2764, %v2786_v27   ;;  %v2841_v5 = vpack.i.bf16 %v271_v60, %v270_v58  ;;  %v227_v7 = vunpack.c.l.bf16 %v173_v1  ;;  %v230_v8 = vunpack.c.l.bf16 %v176_v2  ;;  %v245_v14 = vunpack.c.l.bf16 %v191_v9  ;;  %v2546_v1 = vld [vmem:[%s4596_s1 + $0x8] sm:$0x1] }
  0x21   : > { %v2836_v6 = vpack.i.bf16 %v2646_v62, %v2645_v61  ;;  %v2851_v13 = vpack.i.bf16 %v236_v4, %v233_v3  ;;  %v248_v16 = vunpack.c.l.bf16 %v194_v10  ;;  %v239_v17 = vunpack.c.l.bf16 %v185_v11  ;;  %v2542_v61 = vld [vmem:[%s4596_s1 + $0x4] sm:$0x1]  ;;  %v2543_v62 = vld [vmem:[%s4596_s1 + $0x5] sm:$0x1] }
  0x22   : > { %v2846_v15 = vpack.i.bf16 %v230_v8, %v227_v7  ;;  %v242_v18 = vunpack.c.l.bf16 %v188_v12  ;;  %v257_v23 = vunpack.c.l.bf16 %v203_v19  ;;  %v260_v24 = vunpack.c.l.bf16 %v206_v20 }
  0x23   : > { %v2861_v25 = vpack.i.bf16 %v248_v16, %v245_v14  ;;  %v251_v27 = vunpack.c.l.bf16 %v197_v21  ;;  %v254_v28 = vunpack.c.l.bf16 %v200_v22  ;;  %v269_v34 = vunpack.c.l.bf16 %v215_v29 }
  0x24   : > { %2802 = vperm.xlu1 %2775, %v2801_v35   ;;  %2797 = vperm.xlu0 %2764, %v2796_v36   ;;  %v2856_v26 = vpack.i.bf16 %v242_v18, %v239_v17  ;;  %v2871_v33 = vpack.i.bf16 %v260_v24, %v257_v23  ;;  %v272_v36 = vunpack.c.l.bf16 %v218_v30  ;;  %v263_v37 = vunpack.c.l.bf16 %v209_v31 }
  0x25   : > { %v2866_v35 = vpack.i.bf16 %v254_v28, %v251_v27  ;;  %v266_v38 = vunpack.c.l.bf16 %v212_v32  ;;  %v2649_v42 = vunpack.c.l.bf16 %v2738_v39  ;;  %v275_v46 = vunpack.c.l.bf16 %v221_v44 }
  0x26   : > { %v2881_v40 = vpack.i.bf16 %v272_v36, %v269_v34  ;;  %v276_v48 = vunpack.c.l.bf16 %v222_v45  ;;  %v277_v49 = vunpack.c.h.bf16 %v222_v45  ;;  %v441_v53 = vlaneseq }
  0x27   : > { %v839_v60 = vunpack.c.l.bf16 %v2540_v56  ;;  %v1168_v4 = vunpack.c.l.bf16 %v2542_v61  ;;  %v1748_v8 = vunpack.c.l.bf16 %v2545_v63  ;;  %v2000_v10 = vunpack.c.l.bf16 %v2546_v1 }
  0x28   : > { %2812 = vperm.xlu1 %2775, %v2811_v41   ;;  %2807 = vperm.xlu0 %2764, %v2806_v43   ;;  %v2876_v41 = vpack.i.bf16 %v266_v38, %v263_v37  ;;  %v2650_v43 = vunpack.c.h.bf16 %v2738_v39  ;;  %v442_v54 = vshrl.u32 %v441_v53, 7 }
  0x2a   : > { %v2886_v47 = vpack.i.bf16 %v2650_v43, %v2649_v42  ;;  %v443_v58 = vsub.s32 0, %v442_v54 }
  0x2c   : > { %2822 = vperm.xlu1 %2775, %v2821_v51   ;;  %2817 = vperm.xlu0 %2764, %v2816_v52   ;;  %v278_v51 = vunpack.c.l.bf16 %v224_v50  ;;  %v2891_v52 = vpack.i.bf16 %v277_v49, %v276_v48  ;;  %v3001_v3 = vrot.slane %v839_v60, %v443_v58  ;;  %v3011_v16 = vrot.slane %v1168_v4, %v443_v58 }
  0x2d   : > { %v3021_v20 = vrot.slane %v1748_v8, %v443_v58  ;;  %v3029_v28 = vrot.slane %v2000_v10, %v443_v58 }
  0x2e   : > { %4661 = vst [vmem:[#allocation3_spill] sm:$0xff] %v3001_v3 }
  0x30   : > { %2832 = vperm.xlu1 %2775, %v2831_v57   ;;  %2827 = vperm.xlu0 %2764, %v2826_v59   ;;  %v279_v57 = vld [vmem:[%s4596_s1] sm:$0x1]  ;;  %v511_v59 = vunpack.c.l.bf16 %v2539_v55 }
  0x31   : > { %v280_v0 = vunpack.c.l.bf16 %v279_v57 }
  0x32   : > { %v2999_v2 = vrot.slane %v511_v59, %v443_v58 }
  0x33   : > { %v3009_v14 = vrot.slane %v280_v0, %v443_v58 }
  0x34   : > { %2842 = vperm.xlu1 %2775, %v2841_v5   ;;  %2837 = vperm.xlu0 %2764, %v2836_v6   ;;  %4660 = vst [vmem:[#allocation2_spill] sm:$0xff] %v2999_v2  ;;  %v1420_v5 = vunpack.c.l.bf16 %v2543_v62  ;;  %v2541_v6 = vld [vmem:[%s4596_s1 + $0x3] sm:$0x1] }
  0x35   : > { %4662 = vst [vmem:[#allocation4_spill] sm:$0xff] %v3009_v14 }
  0x36   : > { %v3013_v17 = vrot.slane %v1420_v5, %v443_v58 }
  0x38   : > { %2852 = vperm.xlu1 %2775, %v2851_v13   ;;  %2847 = vperm.xlu0 %2764, %v2846_v15   ;;  %v2544_v13 = vld [vmem:[%s4596_s1 + $0x6] sm:$0x1]  ;;  %v1087_v15 = vunpack.c.l.bf16 %v2541_v6 }
  0x3a   : > { %v3033_v32 = vrot.slane %v1087_v15, %v443_v58 }
  0x3c   : > { %2862 = vperm.xlu1 %2775, %v2861_v25   ;;  %2857 = vperm.xlu0 %2764, %v2856_v26   ;;  %v1667_v25 = vunpack.c.l.bf16 %v2544_v13  ;;  %4663 = vst [vmem:[#allocation5_spill] sm:$0xff] %v3033_v32 }
  0x3e   : > { %v3049_v43 = vrot.slane %v1667_v25, %v443_v58 }
  0x40   : > { %2872 = vperm.xlu1 %2775, %v2871_v33   ;;  %2867 = vperm.xlu0 %2764, %v2866_v35   ;;  %4664 = vst [vmem:[#allocation6_spill] sm:$0xff] %v3049_v43 }
  0x44   : > { %2882 = vperm.xlu1 %2775, %v2881_v40   ;;  %2877 = vperm.xlu0 %2764, %v2876_v41  }
  0x48   : > { %1171 = vperm.xlu1 %2775, %v275_v46   ;;  %2887 = vperm.xlu0 %2764, %v2886_v47  }
  0x4c   : > { %1751 = vperm.xlu1 %2775, %v278_v51   ;;  %2892 = vperm.xlu0 %2764, %v2891_v52  }
  0x97   : > { %v2778_v7 = vpop.permute.xlu1 %2777  ;;  %v2767_v9 = vpop.permute.xlu0 %2766 }
  0x98   : > { %v2769_v11 = vunpack.i.h.bf16 %v2767_v9  ;;  %v2768_v12 = vunpack.i.l.bf16 %v2767_v9  ;;  %v3025_v26 = vunpack.i.h.bf16 %v2778_v7  ;;  %v3027_v27 = vunpack.i.l.bf16 %v2778_v7 }
  0x9a   : > { %v3016_v18 = vmul.f32 %v2769_v11, %v2999_v2  ;;  %v3019_v19 = vmul.f32 %v2769_v11, %v3001_v3  ;;  %v596_v21 = vmul.f32 %v2768_v12, %v2999_v2  ;;  %v844_v22 = vmul.f32 %v2768_v12, %v3001_v3 }
  0x9b   : > { %v2783_v23 = vpop.permute.xlu1 %2782  ;;  %v2772_v24 = vpop.permute.xlu0 %2771  ;;  %v445_v30 = vmul.f32 %v2768_v12, %v3009_v14  ;;  %v3041_v38 = vmul.f32 %v2769_v11, %v3009_v14  ;;  %v449_v46 = vmul.f32 %v3027_v27, %v3009_v14  ;;  %v3058_v47 = vmul.f32 %v3025_v26, %v3009_v14 }
  0x9c   : > { %v4600_v29 = vrot.slane %v3016_v18, 1  ;;  %v693_v31 = vrot.slane %v596_v21, 1  ;;  %v2773_v33 = vunpack.i.l.bf16 %v2772_v24  ;;  %v4599_v34 = vrot.slane %v3019_v19, 2 }
  0x9d   : > { %v941_v35 = vrot.slane %v844_v22, 2  ;;  %v3036_v36 = vunpack.i.h.bf16 %v2783_v23  ;;  %v3038_v37 = vunpack.i.l.bf16 %v2783_v23  ;;  %v3060_v48 = vunpack.i.h.bf16 %v2772_v24 }
  0x9e   : > { %v695_v39 = vsel %vm692_vm0, %v693_v31, %v4600_v29  ;;  %v3047_v40 = vmul.f32 %v2773_v33, %v2999_v2  ;;  %v3052_v45 = vmul.f32 %v2773_v33, %v3001_v3  ;;  %v3063_v49 = vmul.f32 %v2773_v33, %v3011_v16 }
  0x9f   : > { %v2793_v41 = vpop.permute.xlu1 %2792  ;;  %v2788_v42 = vpop.permute.xlu0 %2787  ;;  %v805_v44 = vadd.f32 %v695_v39, %v445_v30  ;;  %v602_v50 = vmul.f32 %v3027_v27, %v2999_v2  ;;  %v3069_v51 = vmul.f32 %v3025_v26, %v2999_v2  ;;  %v943_v52 = vsel %vm940_vm1, %v941_v35, %v4599_v34 }
  0xa0   : > { %v3075_v53 = vmul.f32 %v2773_v33, %v3009_v14  ;;  %v3079_v54 = vmul.f32 %v3038_v37, %v3009_v14  ;;  %v3083_v55 = vmul.f32 %v3036_v36, %v3009_v14  ;;  %v1102_v58 = vmul.f32 %v2773_v33, %v3033_v32 }
  0xa1   : > { %v1053_v56 = vadd.f32 %v943_v52, %v805_v44  ;;  %v3088_v59 = vmul.f32 %v2773_v33, %v3013_v17  ;;  %v3091_v63 = vunpack.i.h.bf16 %v2793_v41  ;;  %v3093_v0 = vunpack.i.l.bf16 %v2793_v41 }
  0xa2   : > { %v605_v1 = vmul.f32 %v3038_v37, %v2999_v2  ;;  %v3100_v5 = vmul.f32 %v3036_v36, %v2999_v2  ;;  %v703_v6 = vrot.slane %v602_v50, 1  ;;  %v4602_v7 = vrot.slane %v3069_v51, 1 }
  0xa3   : > { %v2803_v60 = vpop.permute.xlu1 %2802  ;;  %v2798_v61 = vpop.permute.xlu0 %2797  ;;  %4665 = vst [vmem:[#allocation7_spill] sm:$0xff] %v3091_v63  ;;  %4666 = vst [vmem:[#allocation8_spill] sm:$0xff] %v3093_v0  ;;  %v3103_v8 = vunpack.i.h.bf16 %v2788_v42  ;;  %v850_v10 = vmul.f32 %v3027_v27, %v3001_v3  ;;  %v3111_v11 = vmul.f32 %v3025_v26, %v3001_v3  ;;  %v3113_v12 = vadd.f32 %v1102_v58, %v1053_v56 }
  0xa4   : > { %v3105_v9 = vunpack.i.l.bf16 %v2803_v60  ;;  %v3116_v15 = vunpack.i.l.bf16 %v2788_v42  ;;  %v705_v22 = vsel %vm692_vm0, %v703_v6, %v4602_v7  ;;  %v3121_v23 = vunpack.i.h.bf16 %v2803_v60 }
  0xa5   : > { %4667 = vst [vmem:[#allocation9_spill] sm:$0xff] %v3103_v8  ;;  %v3123_v24 = vunpack.i.h.bf16 %v2798_v61  ;;  %v3125_v25 = vunpack.i.l.bf16 %v2798_v61  ;;  %v708_v31 = vrot.slane %v605_v1, 1  ;;  %v4604_v33 = vrot.slane %v3100_v5, 1 }
  0xa6   : > { %4668 = vst [vmem:[#allocation10_spill] sm:$0xff] %v3105_v9  ;;  %4669 = vst [vmem:[#allocation11_spill] sm:$0xff] %v3116_v15  ;;  %v809_v35 = vadd.f32 %v705_v22, %v449_v46  ;;  %v951_v39 = vrot.slane %v850_v10, 2  ;;  %v4601_v41 = vrot.slane %v3111_v11, 2  ;;  %v3131_v42 = vmul.f32 %v3105_v9, %v3049_v43 }
  0xa7   : > { %v2813_v21 = vpop.permute.xlu1 %2812  ;;  %4670 = vst [vmem:[#allocation12_spill] sm:$0xff] %v3121_v23  ;;  %4671 = vst [vmem:[#allocation13_spill] sm:$0xff] %v3123_v24  ;;  %v2808_v30 = vpop.permute.xlu0 %2807  ;;  %v853_v44 = vmul.f32 %v3038_v37, %v3001_v3  ;;  %v3137_v50 = vmul.f32 %v3036_v36, %v3001_v3  ;;  %v1106_v52 = vmul.f32 %v3038_v37, %v3033_v32 }
  0xa8   : > { %4672 = vst [vmem:[#allocation14_spill] sm:$0xff] %v3131_v42  ;;  %v953_v46 = vsel %vm940_vm1, %v951_v39, %v4601_v41  ;;  %v1184_v58 = vmul.f32 %v3038_v37, %v3011_v16  ;;  %v3148_v60 = vmul.f32 %v3036_v36, %v3011_v16  ;;  %v1431_v61 = vmul.f32 %v3038_v37, %v3013_v17 }
  0xa9   : > { %v3152_v1 = vunpack.i.h.bf16 %v2813_v21  ;;  %v3154_v6 = vunpack.i.l.bf16 %v2813_v21  ;;  %v3156_v10 = vunpack.i.h.bf16 %v2808_v30  ;;  %v3158_v22 = vunpack.i.l.bf16 %v2808_v30 }
  0xaa   : > { %v710_v39 = vsel %vm692_vm0, %v708_v31, %v4604_v33  ;;  %v1057_v13 = vadd.f32 %v953_v46, %v809_v35  ;;  %v1284_v4 = vrot.slane %v1184_v58, 1  ;;  %v4603_v62 = vrot.slane %v3148_v60, 1 }
  0xab   : > { %v2823_v56 = vpop.permute.xlu1 %2822  ;;  %4673 = vst [vmem:[#allocation15_spill] sm:$0xff] %v3152_v1  ;;  %4674 = vst [vmem:[#allocation16_spill] sm:$0xff] %v3154_v6  ;;  %v2818_v34 = vpop.permute.xlu0 %2817  ;;  %v956_v29 = vrot.slane %v853_v44, 2  ;;  %v3167_v21 = vmul.f32 %v3036_v36, %v3013_v17  ;;  %v1531_v41 = vrot.slane %v1431_v61, 2  ;;  %v1761_v35 = vmul.f32 %v3038_v37, %v3021_v20 }
  0xac   : > { %4675 = vst [vmem:[#allocation17_spill] sm:$0xff] %v3156_v10  ;;  %4676 = vst [vmem:[#allocation18_spill] sm:$0xff] %v3158_v22  ;;  %v1138_v30 = vadd.f32 %v1106_v52, %v1057_v13  ;;  %v1286_v31 = vsel %vm692_vm0, %v1284_v4, %v4603_v62  ;;  %v3178_v44 = vmul.f32 %v3036_v36, %v3021_v20  ;;  %v3180_v46 = vunpack.i.h.bf16 %v2823_v56 }
  0xad   : > { %v3182_v58 = vunpack.i.l.bf16 %v2823_v56  ;;  %v811_v61 = vadd.f32 %v710_v39, %v3079_v54  ;;  %v3187_v13 = vmul.f32 %v3036_v36, %v3033_v32  ;;  %v3189_v52 = vunpack.i.h.bf16 %v2818_v34 }
  0xae   : > { %4678 = vst [vmem:[#allocation20_spill] sm:$0xff] %v3180_v46  ;;  %v3191_v4 = vunpack.i.l.bf16 %v2818_v34  ;;  %v1390_v62 = vadd.f32 %v1286_v31, %v1138_v30  ;;  %v4608_v33 = vrot.slane %v3167_v21, 2  ;;  %v1859_v57 = vrot.slane %v1761_v35, 1 }
  0xaf   : > { %v3169_v7 = vpop.permute.xlu1 %2832  ;;  %4679 = vst [vmem:[#allocation21_spill] sm:$0xff] %v3182_v58  ;;  %4680 = vst [vmem:[#allocation22_spill] sm:$0xff] %v3189_v52  ;;  %v2008_v56 = vmul.f32 %v3038_v37, %v3029_v28  ;;  %v3199_v54 = vmul.f32 %v3036_v36, %v3029_v28  ;;  %v4683_v22 = vrot.slane %v3137_v50, 2  ;;  %v1181_v31 = vmul.f32 %v3027_v27, %v3011_v16  ;;  %v3232_v52 = vpop.permute.xlu0 %2827 }
  0xb0   : > { %4677 = vst [vmem:[#allocation19_spill] sm:$0xff] %v3169_v7  ;;  %4681 = vst [vmem:[#allocation23_spill] sm:$0xff] %v3191_v4  ;;  %v1533_v30 = vsel %vm940_vm1, %v1531_v41, %v4608_v33  ;;  %v3213_v35 = vmul.f32 %v3025_v26, %v3011_v16  ;;  %v3217_v10 = vmul.f32 %v3182_v58, %v3049_v43 }
  0xb1   : > { %v958_v34 = vsel %vm940_vm1, %v956_v29, %v4683_v22  ;;  %v3223_v29 = vmul.f32 %v3027_v27, %v3033_v32  ;;  %v3227_v41 = vmul.f32 %v3025_v26, %v3033_v32  ;;  %v3229_v22 = vadd.f32 %v1533_v30, %v1390_v62  ;;  %4687 = vst [vmem:[#allocation28_spill] sm:$0xff] %v3232_v52 }
  0xb2   : > { %4684 = vst [vmem:[#allocation25_spill] sm:$0xff] %v3217_v10  ;;  %v3219_v1 = vadd.f32 %v958_v34, %v811_v61  ;;  %v2106_v33 = vrot.slane %v2008_v56, 2  ;;  %v2107_v6 = vrot.slane %v3199_v54, 2  ;;  %v1279_v46 = vrot.slane %v1181_v31, 1 }
  0xb3   : > { %v3201_v39 = vpop.permute.xlu1 %2842  ;;  %4686 = vst [vmem:[#allocation27_spill] sm:$0xff] %v3229_v22  ;;  %v4688_v10 = vrot.slane %v3178_v44, 1  ;;  %v1280_v34 = vrot.slane %v3213_v35, 1  ;;  %v1428_v58 = vmul.f32 %v3027_v27, %v3013_v17  ;;  %v1429_v62 = vmul.f32 %v3025_v26, %v3013_v17  ;;  %v3278_v8 = vpop.permute.xlu0 %2837 }
  0xb4   : > { %4682 = vst [vmem:[#allocation24_spill] sm:$0xff] %v3201_v39  ;;  %4685 = vst [vmem:[#allocation26_spill] sm:$0xff] %v3219_v1  ;;  %v3245_v56 = vsel %vm940_vm1, %v2106_v33, %v2107_v6  ;;  %v3249_v54 = vmul.f32 %v3027_v27, %v3049_v43  ;;  %v3264_v52 = vmul.f32 %v3036_v36, %v3049_v43 }
  0xb5   : > { %v3237_v61 = vsel %vm692_vm0, %v1859_v57, %v4688_v10  ;;  %4690 = vst [vmem:[#allocation30_spill] sm:$0xff] %v3245_v56  ;;  %v3253_v57 = vmul.f32 %v3025_v26, %v3049_v43  ;;  %v3257_v10 = vmul.f32 %v3038_v37, %v3049_v43  ;;  %v3260_v4 = vsel %vm692_vm0, %v1279_v46, %v1280_v34 }
  0xb6   : > { %4689 = vst [vmem:[#allocation29_spill] sm:$0xff] %v3237_v61  ;;  %v1526_v39 = vrot.slane %v1428_v58, 2  ;;  %v1527_v33 = vrot.slane %v1429_v62, 2  ;;  %4693 = vst [vmem:[#allocation33_spill] sm:$0xff] %v3264_v52  ;;  %v1758_v7 = vmul.f32 %v3027_v27, %v3021_v20  ;;  %v1759_v42 = vmul.f32 %v3025_v26, %v3021_v20 }
  0xb7   : > { %v2853_v30 = vpop.permute.xlu1 %2852  ;;  %4691 = vst [vmem:[#allocation31_spill] sm:$0xff] %v3253_v57  ;;  %4692 = vst [vmem:[#allocation32_spill] sm:$0xff] %v3257_v10  ;;  %v4695_v10 = vrot.slane %v3100_v5, 1  ;;  %v4699_v5 = vrot.slane %v3111_v11, 2 }
  0xb8   : > { %v2855_v31 = vunpack.i.h.bf16 %v2853_v30  ;;  %v2854_v35 = vunpack.i.l.bf16 %v2853_v30  ;;  %4694 = vst [vmem:[#allocation34_spill] sm:$0xff] %v3278_v8  ;;  %v4697_v8 = vrot.slane %v3148_v60, 1 }
  0xba   : > { %v607_v37 = vmul.f32 %v2855_v31, %v2999_v2  ;;  %v855_v22 = vmul.f32 %v2855_v31, %v3001_v3  ;;  %v1186_v30 = vmul.f32 %v2855_v31, %v3011_v16  ;;  %v1433_v46 = vmul.f32 %v2855_v31, %v3013_v17 }
  0xbb   : > { %v1763_v58 = vmul.f32 %v2855_v31, %v3021_v20  ;;  %v2010_v62 = vmul.f32 %v2855_v31, %v3029_v28  ;;  %v604_v36 = vmul.f32 %v2854_v35, %v2999_v2  ;;  %v852_v1 = vmul.f32 %v2854_v35, %v3001_v3 }
  0xbc   : > { %v711_v15 = vrot.slane %v607_v37, 1  ;;  %v959_v43 = vrot.slane %v855_v22, 2  ;;  %v1287_v63 = vrot.slane %v1186_v30, 1  ;;  %v1534_v0 = vrot.slane %v1433_v46, 2 }
  0xbd   : > { %v1862_v56 = vrot.slane %v1763_v58, 1  ;;  %v2109_v61 = vrot.slane %v2010_v62, 2  ;;  %v706_v23 = vrot.slane %v604_v36, 1  ;;  %v954_v52 = vrot.slane %v852_v1, 2 }
  0xbe   : > { %v712_v57 = vsel %vm692_vm0, %v4695_v10, %v711_v15  ;;  %v4696_v31 = vrot.slane %v3137_v50, 2  ;;  %v1183_v24 = vmul.f32 %v2854_v35, %v3011_v16  ;;  %v1288_v22 = vsel %vm692_vm0, %v4697_v8, %v1287_v63 }
  0xbf   : > { %v4698_v37 = vrot.slane %v3069_v51, 1  ;;  %v812_v1 = vadd.f32 %v712_v57, %v3083_v55  ;;  %v955_v15 = vsel %vm940_vm1, %v4699_v5, %v954_v52  ;;  %v1430_v50 = vmul.f32 %v2854_v35, %v3013_v17 }
  0xc0   : > { %v960_v9 = vsel %vm940_vm1, %v4696_v31, %v959_v43  ;;  %v1282_v10 = vrot.slane %v1183_v24, 1  ;;  %v4700_v46 = vrot.slane %v3167_v21, 2  ;;  %v1760_v63 = vmul.f32 %v2854_v35, %v3021_v20 }
  0xc1   : > { %v707_v30 = vsel %vm692_vm0, %v4698_v37, %v706_v23  ;;  %v3303_v51 = vadd.f32 %v960_v9, %v812_v1  ;;  %v1529_v8 = vrot.slane %v1430_v50, 2  ;;  %v4701_v55 = vrot.slane %v3178_v44, 1 }
  0xc2   : > { %v810_v43 = vadd.f32 %v707_v30, %v3058_v47  ;;  %v1535_v60 = vsel %vm940_vm1, %v4700_v46, %v1534_v0  ;;  %v2007_v23 = vmul.f32 %v2854_v35, %v3029_v28  ;;  %v1857_v57 = vrot.slane %v1760_v63, 1  ;;  %v2848_v0 = vpop.permute.xlu0 %2847 }
  0xc3   : > { %v3308_v11 = vsel %vm692_vm0, %v4701_v55, %v1862_v56  ;;  %v3312_v47 = vsel %vm940_vm1, %v2107_v6, %v2109_v61  ;;  %v3315_v24 = vsel %vm692_vm0, %v1280_v34, %v1282_v10  ;;  %v3318_v9 = vsel %vm940_vm1, %v1526_v39, %v1527_v33 }
  0xc4   : > { %v1058_v52 = vadd.f32 %v955_v15, %v810_v43  ;;  %v2104_v21 = vrot.slane %v2007_v23, 2  ;;  %v3321_v44 = vsel %vm940_vm1, %v1527_v33, %v1529_v8  ;;  %v1854_v56 = vrot.slane %v1758_v7, 1 }
  0xc5   : > { %v1855_v35 = vrot.slane %v1759_v42, 1  ;;  %v2005_v62 = vmul.f32 %v3027_v27, %v3029_v28  ;;  %v2006_v6 = vmul.f32 %v3025_v26, %v3029_v28  ;;  %v2850_v61 = vunpack.i.h.bf16 %v2848_v0 }
  0xc6   : > { %v1139_v58 = vadd.f32 %v3187_v13, %v1058_v52  ;;  %v2849_v34 = vunpack.i.l.bf16 %v2848_v0  ;;  %v448_v36 = vmul.f32 %v3060_v48, %v3009_v14  ;;  %v600_v39 = vmul.f32 %v3060_v48, %v2999_v2 }
  0xc7   : > { %v3333_v7 = vsel %vm692_vm0, %v1854_v56, %v1855_v35  ;;  %v3336_v42 = vsel %vm692_vm0, %v1855_v35, %v1857_v57  ;;  %v2101_v13 = vrot.slane %v2005_v62, 2  ;;  %v2102_v27 = vrot.slane %v2006_v6, 2 }
  0xc8   : > { %v1391_v33 = vadd.f32 %v1288_v22, %v1139_v58  ;;  %v601_v31 = vmul.f32 %v2850_v61, %v2999_v2  ;;  %v849_v26 = vmul.f32 %v2850_v61, %v3001_v3  ;;  %v1180_v37 = vmul.f32 %v2850_v61, %v3011_v16 }
  0xc9   : > { %v1427_v1 = vmul.f32 %v2850_v61, %v3013_v17  ;;  %v598_v22 = vmul.f32 %v2849_v34, %v2999_v2  ;;  %v699_v5 = vrot.slane %v600_v39, 1  ;;  %v3346_v15 = vsel %vm940_vm1, %v2101_v13, %v2102_v27 }
  0xca   : > { %v3341_v30 = vadd.f32 %v1535_v60, %v1391_v33  ;;  %v3349_v50 = vsel %vm940_vm1, %v2102_v27, %v2104_v21  ;;  %v701_v43 = vrot.slane %v601_v31, 1  ;;  %v949_v10 = vrot.slane %v849_v26, 2  ;;  %v2863_v21 = vpop.permute.xlu1 %2862 }
  0xcb   : > { %v1277_v46 = vrot.slane %v1180_v37, 1  ;;  %v1524_v63 = vrot.slane %v1427_v1, 2  ;;  %v696_v8 = vrot.slane %v598_v22, 1  ;;  %v4702_v55 = vrot.slane %v3047_v40, 1 }
  0xcc   : > { %v702_v23 = vsel %vm692_vm0, %v699_v5, %v701_v43  ;;  %v846_v57 = vmul.f32 %v2849_v34, %v3001_v3  ;;  %v848_v0 = vmul.f32 %v3060_v48, %v3001_v3  ;;  %v4703_v56 = vrot.slane %v3016_v18, 1 }
  0xcd   : > { %v700_v60 = vsel %vm692_vm0, %v4702_v55, %v699_v5  ;;  %v808_v35 = vadd.f32 %v702_v23, %v448_v36  ;;  %v1103_v40 = vmul.f32 %v3060_v48, %v3033_v32  ;;  %v1179_v62 = vmul.f32 %v3060_v48, %v3011_v16 }
  0xce   : > { %v807_v52 = vadd.f32 %v700_v60, %v3075_v53  ;;  %v697_v58 = vsel %vm692_vm0, %v4703_v56, %v696_v8  ;;  %v944_v53 = vrot.slane %v846_v57, 2  ;;  %v947_v61 = vrot.slane %v848_v0, 2 }
  0xcf   : > { %v806_v6 = vadd.f32 %v697_v58, %v3041_v38  ;;  %v1426_v34 = vmul.f32 %v3060_v48, %v3013_v17  ;;  %v1275_v39 = vrot.slane %v1179_v62, 1  ;;  %v2865_v33 = vunpack.i.h.bf16 %v2863_v21 }
  0xd0   : > { %v3369_v13 = vunpack.i.l.bf16 %v2863_v21  ;;  %v3373_v18 = vmul.f32 %v3125_v25, %v3009_v14  ;;  %v4704_v36 = vrot.slane %v3019_v19, 2  ;;  %v4705_v31 = vrot.slane %v3052_v45, 2 }
  0xd1   : > { %v950_v26 = vsel %vm940_vm1, %v947_v61, %v949_v10  ;;  %v1522_v37 = vrot.slane %v1426_v34, 2  ;;  %v4706_v5 = vrot.slane %v3063_v49, 1  ;;  %v1278_v8 = vsel %vm692_vm0, %v1275_v39, %v1277_v46  ;;  %v4709_v34 = vld [vmem:[#allocation10_spill] sm:$0xff] }
  0xd2   : > { %v945_v27 = vsel %vm940_vm1, %v4704_v36, %v944_v53  ;;  %v948_v38 = vsel %vm940_vm1, %v4705_v31, %v947_v61  ;;  %v1056_v22 = vadd.f32 %v950_v26, %v808_v35  ;;  %v4707_v55 = vrot.slane %v3088_v59, 2 }
  0xd3   : > { %v1054_v48 = vadd.f32 %v945_v27, %v806_v6  ;;  %v1055_v1 = vadd.f32 %v948_v38, %v807_v52  ;;  %v1276_v43 = vsel %vm692_vm0, %v4706_v5, %v1275_v39  ;;  %v1525_v60 = vsel %vm940_vm1, %v1522_v37, %v1524_v63  ;;  %v4712_v27 = vld [vmem:[#allocation32_spill] sm:$0xff]  ;;  %v4713_v38 = vld [vmem:[#allocation33_spill] sm:$0xff] }
  0xd4   : > { %v1386_v19 = vadd.f32 %v1276_v43, %v3113_v12  ;;  %v1523_v45 = vsel %vm940_vm1, %v4707_v55, %v1522_v37  ;;  %v1137_v52 = vadd.f32 %v3227_v41, %v1056_v22  ;;  %v619_v57 = vmul.f32 %v2865_v33, %v2999_v2  ;;  %v4715_v43 = vld [vmem:[#allocation29_spill] sm:$0xff] }
  0xd5   : > { %v1135_v23 = vadd.f32 %v1103_v40, %v1054_v48  ;;  %v1136_v10 = vadd.f32 %v3223_v29, %v1055_v1  ;;  %v3395_v0 = vmul.f32 %v2865_v33, %v3001_v3  ;;  %v3398_v46 = vmul.f32 %v2865_v33, %v3011_v16  ;;  %v4714_v48 = vld [vmem:[#allocation12_spill] sm:$0xff] }
  0xd6   : > { %v1633_v49 = vadd.f32 %v1523_v45, %v1386_v19  ;;  %v3401_v59 = vmul.f32 %v2865_v33, %v3013_v17  ;;  %v1389_v21 = vadd.f32 %v3315_v24, %v1137_v52  ;;  %v731_v29 = vrot.slane %v619_v57, 1 }
  0xd7   : > { %v1387_v12 = vadd.f32 %v1278_v8, %v1135_v23  ;;  %v1388_v63 = vadd.f32 %v3260_v4, %v1136_v10  ;;  %v979_v56 = vrot.slane %v3395_v0, 2  ;;  %v1307_v58 = vrot.slane %v3398_v46, 1  ;;  %v4716_v10 = vld [vmem:[#allocation30_spill] sm:$0xff] }
  0xd8   : > { %v1714_v41 = vadd.f32 %v3249_v54, %v1633_v49  ;;  %v1554_v35 = vrot.slane %v3401_v59, 2  ;;  %v1636_v6 = vadd.f32 %v3321_v44, %v1389_v21  ;;  %v3412_v53 = vmul.f32 %v2865_v33, %v3021_v20  ;;  %v4708_v54 = vld [vmem:[#allocation13_spill] sm:$0xff]  ;;  %v4711_v44 = vld [vmem:[#allocation31_spill] sm:$0xff] }
  0xd9   : > { %v1634_v40 = vadd.f32 %v1525_v60, %v1387_v12  ;;  %v1635_v62 = vadd.f32 %v3318_v9, %v1388_v63  ;;  %v3416_v24 = vmul.f32 %v2865_v33, %v3029_v28  ;;  %v458_v61 = vmul.f32 %v4708_v54, %v3009_v14  ;;  %v3425_v9 = vld [vmem:[%s4597_s2] ss:$0 sm:$0xff] }
  0xda   : > { %v1966_v4 = vadd.f32 %v3333_v7, %v1714_v41  ;;  %v459_v39 = vmul.f32 %v4709_v34, %v3009_v14  ;;  %4710 = vst [vmem:[#allocation13_spill] sm:$0xff] %v3425_v9  ;;  %v1717_v7 = vadd.f32 %v4713_v38, %v1636_v6  ;;  %v1882_v33 = vrot.slane %v3412_v53, 1 }
  0xdb   : > { %v1715_v36 = vadd.f32 %v4711_v44, %v1634_v40  ;;  %v1716_v31 = vadd.f32 %v4712_v27, %v1635_v62  ;;  %v2129_v37 = vrot.slane %v3416_v24, 2  ;;  %v460_v1 = vmul.f32 %v4714_v48, %v3009_v14 }
  0xdc   : > { %v2213_v26 = vadd.f32 %v3346_v15, %v1966_v4  ;;  %v614_v22 = vmul.f32 %v3125_v25, %v2999_v2  ;;  %v1969_v19 = vadd.f32 %v3308_v11, %v1717_v7  ;;  %v615_v55 = vmul.f32 %v4708_v54, %v2999_v2 }
  0xdd   : > { %v1967_v5 = vadd.f32 %v3336_v42, %v1715_v36  ;;  %v1968_v8 = vadd.f32 %v4715_v43, %v1716_v31  ;;  %v616_v45 = vmul.f32 %v3369_v13, %v2999_v2  ;;  %v617_v60 = vmul.f32 %v4709_v34, %v2999_v2 }
  0xde   : > { %v2252_v15 = vadd.f32 %v3425_v9, %v2213_v26  ;;  %v618_v23 = vmul.f32 %v4714_v48, %v2999_v2  ;;  %v2216_v11 = vadd.f32 %v3312_v47, %v1969_v19  ;;  %v723_v57 = vrot.slane %v614_v22, 1 }
  0xdf   : > { %v2214_v42 = vadd.f32 %v3349_v50, %v1967_v5  ;;  %v2215_v52 = vadd.f32 %v4716_v10, %v1968_v8  ;;  %v724_v12 = vrot.slane %v615_v55, 1  ;;  %v726_v63 = vrot.slane %v616_v45, 1 }
  0xe0   : > { %v2284_v49 = vmax.f32 %v2252_v15, 0.0  ;;  %v728_v21 = vrot.slane %v617_v60, 1  ;;  %v2255_v62 = vadd.f32 %v3425_v9, %v2216_v11  ;;  %v729_v6 = vrot.slane %v618_v23, 1 }
  0xe1   : > { %v2253_v41 = vadd.f32 %v3425_v9, %v2214_v42  ;;  %v2254_v40 = vadd.f32 %v3425_v9, %v2215_v52  ;;  %v725_v4 = vsel %vm692_vm0, %v723_v57, %v724_v12  ;;  %v727_v50 = vsel %vm692_vm0, %v724_v12, %v726_v63 }
  0xe2   : > { %v862_v47 = vmul.f32 %v3125_v25, %v3001_v3  ;;  %v863_v44 = vmul.f32 %v4708_v54, %v3001_v3  ;;  %v2287_v31 = vmax.f32 %v2255_v62, 0.0  ;;  %v730_v38 = vsel %vm692_vm0, %v728_v21, %v729_v6 }
  0xe3   : > { %v2285_v36 = vmax.f32 %v2253_v41, 0.0  ;;  %v2286_v27 = vmax.f32 %v2254_v40, 0.0  ;;  %v732_v7 = vsel %vm692_vm0, %v729_v6, %v731_v29  ;;  %v817_v26 = vadd.f32 %v725_v4, %v3373_v18 }
  0xe4   : > { %v818_v22 = vadd.f32 %v727_v50, %v458_v61  ;;  %v819_v5 = vadd.f32 %v730_v38, %v459_v39  ;;  %v820_v19 = vadd.f32 %v732_v7, %v460_v1  ;;  %v864_v55 = vmul.f32 %v3369_v13, %v3001_v3 }
  0xe5   : > { %v2654_v43 = vpack.c.bf16 %v2285_v36, %v2284_v49  ;;  %v2659_v8 = vpack.c.bf16 %v2287_v31, %v2286_v27  ;;  %v865_v15 = vmul.f32 %v4709_v34, %v3001_v3  ;;  %v866_v45 = vmul.f32 %v4714_v48, %v3001_v3 }
  0xe6   : > { %v971_v60 = vrot.slane %v862_v47, 2  ;;  %v972_v23 = vrot.slane %v863_v44, 2  ;;  %v974_v29 = vrot.slane %v864_v55, 2  ;;  %v1114_v18 = vmul.f32 %v4709_v34, %v3033_v32 }
  0xe7   : > { %2655 = vst [vmem:[%s3466_s15] sm:$0xff] %v2654_v43   ;;  %2739 = vst [vmem:[%s3466_s15 + $0x8] sm:$0xff] %v2659_v8   ;;  %v1115_v61 = vmul.f32 %v4714_v48, %v3033_v32  ;;  %v1193_v39 = vmul.f32 %v3125_v25, %v3011_v16  ;;  %v976_v42 = vrot.slane %v865_v15, 2  ;;  %v977_v10 = vrot.slane %v866_v45, 2 }
  0xe8   : > { %v973_v1 = vsel %vm940_vm1, %v971_v60, %v972_v23  ;;  %v1194_v52 = vmul.f32 %v4708_v54, %v3011_v16  ;;  %v975_v11 = vsel %vm940_vm1, %v972_v23, %v974_v29  ;;  %v1195_v49 = vmul.f32 %v3369_v13, %v3011_v16 }
  0xe9   : > { %v1065_v57 = vadd.f32 %v973_v1, %v817_v26  ;;  %v1196_v12 = vmul.f32 %v4709_v34, %v3011_v16  ;;  %v978_v63 = vsel %vm940_vm1, %v976_v42, %v977_v10  ;;  %v980_v21 = vsel %vm940_vm1, %v977_v10, %v979_v56 }
  0xea   : > { %v1066_v41 = vadd.f32 %v975_v11, %v818_v22  ;;  %v1197_v40 = vmul.f32 %v4714_v48, %v3011_v16  ;;  %v3498_v62 = vadd.f32 %v978_v63, %v819_v5  ;;  %v3500_v6 = vadd.f32 %v980_v21, %v820_v19 }
  0xeb   : > { %v1146_v4 = vadd.f32 %v1114_v18, %v1065_v57  ;;  %v1299_v50 = vrot.slane %v1193_v39, 1  ;;  %v1300_v44 = vrot.slane %v1194_v52, 1  ;;  %v1302_v36 = vrot.slane %v1195_v49, 1 }
  0xec   : > { %4717 = vst [vmem:[#allocation10_spill] sm:$0xff] %v3498_v62  ;;  %4718 = vst [vmem:[#allocation31_spill] sm:$0xff] %v3500_v6  ;;  %v1147_v47 = vadd.f32 %v1115_v61, %v1066_v41  ;;  %v1304_v27 = vrot.slane %v1196_v12, 1  ;;  %v1305_v31 = vrot.slane %v1197_v40, 1  ;;  %v1440_v0 = vmul.f32 %v3125_v25, %v3013_v17 }
  0xed   : > { %v1441_v56 = vmul.f32 %v4708_v54, %v3013_v17  ;;  %v1442_v38 = vmul.f32 %v3369_v13, %v3013_v17  ;;  %v3509_v7 = vsel %vm692_vm0, %v1299_v50, %v1300_v44  ;;  %v3512_v26 = vsel %vm692_vm0, %v1300_v44, %v1302_v36 }
  0xee   : > { %v1443_v22 = vmul.f32 %v4709_v34, %v3013_v17  ;;  %v1444_v5 = vmul.f32 %v4714_v48, %v3013_v17  ;;  %v1306_v43 = vsel %vm692_vm0, %v1304_v27, %v1305_v31  ;;  %v1308_v8 = vsel %vm692_vm0, %v1305_v31, %v1307_v58 }
  0xef   : > { %v1546_v19 = vrot.slane %v1440_v0, 2  ;;  %v1547_v55 = vrot.slane %v1441_v56, 2  ;;  %v1398_v15 = vadd.f32 %v1306_v43, %v1146_v4  ;;  %v1399_v45 = vadd.f32 %v1308_v8, %v1147_v47  ;;  %v4722_v43 = vld [vmem:[#allocation7_spill] sm:$0xff] }
  0xf0   : > { %v1549_v60 = vrot.slane %v1442_v38, 2  ;;  %v1551_v23 = vrot.slane %v1443_v22, 2  ;;  %v1552_v18 = vrot.slane %v1444_v5, 2  ;;  %v1770_v61 = vmul.f32 %v3125_v25, %v3021_v20 }
  0xf1   : > { %v3523_v29 = vsel %vm940_vm1, %v1546_v19, %v1547_v55  ;;  %v1771_v39 = vmul.f32 %v4708_v54, %v3021_v20  ;;  %v1772_v58 = vmul.f32 %v3369_v13, %v3021_v20  ;;  %v1773_v1 = vmul.f32 %v4709_v34, %v3021_v20 }
  0xf2   : > { %v3530_v46 = vsel %vm940_vm1, %v1547_v55, %v1549_v60  ;;  %v1774_v42 = vmul.f32 %v4714_v48, %v3021_v20  ;;  %v1553_v10 = vsel %vm940_vm1, %v1551_v23, %v1552_v18  ;;  %v1555_v52 = vsel %vm940_vm1, %v1552_v18, %v1554_v35 }
  0xf3   : > { %v1874_v11 = vrot.slane %v1770_v61, 1  ;;  %v1875_v57 = vrot.slane %v1771_v39, 1  ;;  %v3542_v49 = vadd.f32 %v1553_v10, %v1398_v15  ;;  %v3544_v12 = vadd.f32 %v1555_v52, %v1399_v45 }
  0xf4   : > { %v1877_v63 = vrot.slane %v1772_v58, 1  ;;  %v1879_v21 = vrot.slane %v1773_v1, 1  ;;  %v1880_v40 = vrot.slane %v1774_v42, 1  ;;  %v2017_v4 = vmul.f32 %v3125_v25, %v3029_v28 }
  0xf5   : > { %4719 = vst [vmem:[#allocation32_spill] sm:$0xff] %v3542_v49  ;;  %4720 = vst [vmem:[#allocation33_spill] sm:$0xff] %v3544_v12  ;;  %v3547_v41 = vsel %vm692_vm0, %v1874_v11, %v1875_v57  ;;  %v2018_v59 = vmul.f32 %v4708_v54, %v3029_v28  ;;  %v2019_v50 = vmul.f32 %v3369_v13, %v3029_v28  ;;  %v4721_v13 = vld [vmem:[#allocation8_spill] sm:$0xff] }
  0xf6   : > { %v3554_v35 = vsel %vm692_vm0, %v1875_v57, %v1877_v63  ;;  %v2020_v47 = vmul.f32 %v4709_v34, %v3029_v28  ;;  %v2021_v44 = vmul.f32 %v4714_v48, %v3029_v28  ;;  %v3563_v36 = vsel %vm692_vm0, %v1879_v21, %v1880_v40  ;;  %v4723_v21 = vld [vmem:[#allocation6_spill] sm:$0xff] }
  0xf7   : > { %v3568_v27 = vsel %vm692_vm0, %v1880_v40, %v1882_v33  ;;  %v2121_v31 = vrot.slane %v2017_v4, 2  ;;  %v2122_v0 = vrot.slane %v2018_v59, 2  ;;  %v2124_v56 = vrot.slane %v2019_v50, 2 }
  0xf8   : > { %v2126_v38 = vrot.slane %v2020_v47, 2  ;;  %v2127_v22 = vrot.slane %v2021_v44, 2  ;;  %v455_v5 = vmul.f32 %v4721_v13, %v3009_v14  ;;  %v3577_v8 = vmul.f32 %v4722_v43, %v3009_v14  ;;  %v2858_v44 = vpop.permute.xlu0 %2857 }
  0xf9   : > { %v3573_v34 = vsel %vm940_vm1, %v2121_v31, %v2122_v0  ;;  %v611_v53 = vmul.f32 %v4721_v13, %v2999_v2  ;;  %v612_v33 = vmul.f32 %v4722_v43, %v2999_v2  ;;  %v3584_v19 = vsel %vm940_vm1, %v2122_v0, %v2124_v56 }
  0xfa   : > { %v3587_v55 = vsel %vm940_vm1, %v2126_v38, %v2127_v22  ;;  %v3592_v15 = vsel %vm940_vm1, %v2127_v22, %v2129_v37  ;;  %v859_v45 = vmul.f32 %v4721_v13, %v3001_v3  ;;  %v860_v18 = vmul.f32 %v4722_v43, %v3001_v3 }
  0xfb   : > { %v718_v60 = vrot.slane %v611_v53, 1  ;;  %v719_v23 = vrot.slane %v612_v33, 1  ;;  %v3600_v61 = vmul.f32 %v4721_v13, %v3033_v32  ;;  %v3604_v58 = vmul.f32 %v4722_v43, %v3033_v32 }
  0xfc   : > { %v966_v39 = vrot.slane %v859_v45, 2  ;;  %v1190_v24 = vmul.f32 %v4721_v13, %v3011_v16  ;;  %v1191_v37 = vmul.f32 %v4722_v43, %v3011_v16  ;;  %v967_v42 = vrot.slane %v860_v18, 2 }
  0xfd   : > { %v720_v1 = vsel %vm692_vm0, %v718_v60, %v719_v23  ;;  %v1437_v10 = vmul.f32 %v4721_v13, %v3013_v17  ;;  %v1438_v52 = vmul.f32 %v4722_v43, %v3013_v17  ;;  %v3617_v40 = vmul.f32 %v4721_v13, %v4723_v21 }
  0xfe   : > { %v815_v11 = vadd.f32 %v720_v1, %v455_v5  ;;  %v1294_v57 = vrot.slane %v1190_v24, 1  ;;  %v1295_v63 = vrot.slane %v1191_v37, 1  ;;  %v968_v4 = vsel %vm940_vm1, %v966_v39, %v967_v42 }
  0xff   : > { %v1541_v59 = vrot.slane %v1437_v10, 2  ;;  %v1542_v50 = vrot.slane %v1438_v52, 2  ;;  %v3622_v47 = vmul.f32 %v4722_v43, %v4723_v21  ;;  %v3631_v56 = vmul.f32 %v4714_v48, %v4723_v21  ;;  %v4724_v48 = vld [vmem:[#allocation11_spill] sm:$0xff]  ;;  %v4725_v10 = vld [vmem:[#allocation9_spill] sm:$0xff] }
 0x100   : > { %v3624_v31 = vadd.f32 %v968_v4, %v815_v11  ;;  %v3627_v0 = vsel %vm692_vm0, %v1294_v57, %v1295_v63  ;;  %v1767_v38 = vmul.f32 %v4721_v13, %v3021_v20  ;;  %v1768_v5 = vmul.f32 %v4722_v43, %v3021_v20 }
 0x101   : > { %v3636_v22 = vsel %vm940_vm1, %v1541_v59, %v1542_v50  ;;  %v2014_v53 = vmul.f32 %v4721_v13, %v3029_v28  ;;  %v2015_v33 = vmul.f32 %v4722_v43, %v3029_v28  ;;  %v2860_v60 = vunpack.i.h.bf16 %v2858_v44 }
 0x102   : > { %v1869_v45 = vrot.slane %v1767_v38, 1  ;;  %v3644_v18 = vunpack.i.l.bf16 %v2858_v44  ;;  %v453_v39 = vmul.f32 %v4724_v48, %v3009_v14  ;;  %v1870_v24 = vrot.slane %v1768_v5, 1 }
 0x103   : > { %v2116_v37 = vrot.slane %v2014_v53, 2  ;;  %v2117_v1 = vrot.slane %v2015_v33, 2  ;;  %v454_v52 = vmul.f32 %v4725_v10, %v3009_v14  ;;  %v613_v11 = vmul.f32 %v2860_v60, %v2999_v2 }
 0x104   : > { %v861_v13 = vmul.f32 %v2860_v60, %v3001_v3  ;;  %v1192_v57 = vmul.f32 %v2860_v60, %v3011_v16  ;;  %v1439_v43 = vmul.f32 %v2860_v60, %v3013_v17  ;;  %v3655_v4 = vsel %vm692_vm0, %v1869_v45, %v1870_v24 }
 0x105   : > { %v3658_v59 = vsel %vm940_vm1, %v2116_v37, %v2117_v1  ;;  %v1769_v44 = vmul.f32 %v2860_v60, %v3021_v20  ;;  %v2016_v38 = vmul.f32 %v2860_v60, %v3029_v28  ;;  %v721_v5 = vrot.slane %v613_v11, 1 }
 0x106   : > { %v969_v53 = vrot.slane %v861_v13, 2  ;;  %v1297_v33 = vrot.slane %v1192_v57, 1  ;;  %v1544_v12 = vrot.slane %v1439_v43, 2  ;;  %v608_v62 = vmul.f32 %v4724_v48, %v2999_v2 }
 0x107   : > { %v1872_v49 = vrot.slane %v1769_v44, 1  ;;  %v2119_v6 = vrot.slane %v2016_v38, 2  ;;  %v609_v45 = vmul.f32 %v4725_v10, %v2999_v2  ;;  %v722_v14 = vsel %vm692_vm0, %v719_v23, %v721_v5 }
 0x108   : > { %v970_v37 = vsel %vm940_vm1, %v967_v42, %v969_v53  ;;  %v1298_v9 = vsel %vm692_vm0, %v1295_v63, %v1297_v33  ;;  %v1545_v60 = vsel %vm940_vm1, %v1542_v50, %v1544_v12  ;;  %v816_v11 = vadd.f32 %v722_v14, %v3577_v8 }
 0x109   : > { %v3672_v13 = vsel %vm692_vm0, %v1870_v24, %v1872_v49  ;;  %v3675_v57 = vsel %vm940_vm1, %v2117_v1, %v2119_v6  ;;  %v610_v43 = vmul.f32 %v3644_v18, %v2999_v2  ;;  %v713_v44 = vrot.slane %v608_v62, 1 }
 0x10a   : > { %v714_v38 = vrot.slane %v609_v45, 1  ;;  %v856_v23 = vmul.f32 %v4724_v48, %v3001_v3  ;;  %v857_v42 = vmul.f32 %v4725_v10, %v3001_v3  ;;  %v1064_v12 = vadd.f32 %v970_v37, %v816_v11  ;;  %v4726_v11 = vld [vmem:[#allocation26_spill] sm:$0xff] }
 0x10b   : > { %v716_v63 = vrot.slane %v610_v43, 1  ;;  %v858_v14 = vmul.f32 %v3644_v18, %v3001_v3  ;;  %v1108_v6 = vmul.f32 %v4724_v48, %v3033_v32  ;;  %v1109_v62 = vmul.f32 %v4725_v10, %v3033_v32 }
 0x10c   : > { %v715_v49 = vsel %vm692_vm0, %v713_v44, %v714_v38  ;;  %v961_v8 = vrot.slane %v856_v23, 2  ;;  %v962_v50 = vrot.slane %v857_v42, 2  ;;  %v1112_v53 = vmul.f32 %v3125_v25, %v3033_v32 }
 0x10d   : > { %v717_v24 = vsel %vm692_vm0, %v714_v38, %v716_v63  ;;  %v813_v1 = vadd.f32 %v715_v49, %v453_v39  ;;  %v964_v5 = vrot.slane %v858_v14, 2  ;;  %v1113_v37 = vmul.f32 %v4708_v54, %v3033_v32 }
 0x10e   : > { %v814_v33 = vadd.f32 %v717_v24, %v454_v52  ;;  %v963_v45 = vsel %vm940_vm1, %v961_v8, %v962_v50  ;;  %v1140_v43 = vadd.f32 %v1108_v6, %v4726_v11  ;;  %v1141_v42 = vadd.f32 %v1109_v62, %v3303_v51 }
 0x10f   : > { %v965_v44 = vsel %vm940_vm1, %v962_v50, %v964_v5  ;;  %v1061_v23 = vadd.f32 %v963_v45, %v813_v1  ;;  %v1144_v38 = vadd.f32 %v1112_v53, %v3624_v31  ;;  %v1145_v63 = vadd.f32 %v1113_v37, %v1064_v12 }
 0x110   : > { %v1062_v39 = vadd.f32 %v965_v44, %v814_v33  ;;  %v1187_v14 = vmul.f32 %v4724_v48, %v3011_v16  ;;  %v1188_v52 = vmul.f32 %v4725_v10, %v3011_v16  ;;  %v1189_v6 = vmul.f32 %v3644_v18, %v3011_v16 }
 0x111   : > { %v1142_v49 = vadd.f32 %v3600_v61, %v1061_v23  ;;  %v1396_v8 = vadd.f32 %v3509_v7, %v1144_v38  ;;  %v1434_v51 = vmul.f32 %v4724_v48, %v3013_v17  ;;  %v1397_v62 = vadd.f32 %v3512_v26, %v1145_v63 }
 0x112   : > { %v1143_v31 = vadd.f32 %v3604_v58, %v1062_v39  ;;  %v1289_v50 = vrot.slane %v1187_v14, 1  ;;  %v1290_v12 = vrot.slane %v1188_v52, 1  ;;  %v1292_v24 = vrot.slane %v1189_v6, 1 }
 0x113   : > { %v1394_v1 = vadd.f32 %v3627_v0, %v1142_v49  ;;  %v1435_v61 = vmul.f32 %v4725_v10, %v3013_v17  ;;  %v1436_v5 = vmul.f32 %v3644_v18, %v3013_v17  ;;  %v1536_v33 = vrot.slane %v1434_v51, 2  ;;  %v4728_v49 = vld [vmem:[#allocation14_spill] sm:$0xff] }
 0x114   : > { %v1291_v7 = vsel %vm692_vm0, %v1289_v50, %v1290_v12  ;;  %v1395_v53 = vadd.f32 %v1298_v9, %v1143_v31  ;;  %v1643_v45 = vadd.f32 %v3523_v29, %v1396_v8  ;;  %v1293_v58 = vsel %vm692_vm0, %v1290_v12, %v1292_v24 }
 0x115   : > { %v1392_v37 = vadd.f32 %v1291_v7, %v1140_v43  ;;  %v1537_v11 = vrot.slane %v1435_v61, 2  ;;  %v1539_v26 = vrot.slane %v1436_v5, 2  ;;  %v1393_v44 = vadd.f32 %v1293_v58, %v1141_v42 }
 0x116   : > { %v1641_v0 = vadd.f32 %v3636_v22, %v1394_v1  ;;  %v1642_v23 = vadd.f32 %v1545_v60, %v1395_v53  ;;  %v1644_v38 = vadd.f32 %v3530_v46, %v1397_v62  ;;  %v1686_v9 = vmul.f32 %v4724_v48, %v4723_v21  ;;  %v4727_v60 = vld [vmem:[#allocation27_spill] sm:$0xff] }
 0x117   : > { %v1538_v39 = vsel %vm940_vm1, %v1536_v33, %v1537_v11  ;;  %v1540_v63 = vsel %vm940_vm1, %v1537_v11, %v1539_v26  ;;  %v1687_v29 = vmul.f32 %v4725_v10, %v4723_v21  ;;  %v1690_v42 = vmul.f32 %v3125_v25, %v4723_v21 }
 0x118   : > { %v1639_v14 = vadd.f32 %v1538_v39, %v1392_v37  ;;  %v1640_v43 = vadd.f32 %v1540_v63, %v1393_v44  ;;  %v1691_v22 = vmul.f32 %v4708_v54, %v4723_v21  ;;  %v1718_v46 = vadd.f32 %v1686_v9, %v4727_v60  ;;  %v4729_v44 = vld [vmem:[#allocation13_spill] sm:$0xff] }
 0x119   : > { %v1719_v52 = vadd.f32 %v1687_v29, %v3341_v30  ;;  %v1724_v6 = vadd.f32 %v4728_v49, %v1643_v45  ;;  %v1725_v8 = vadd.f32 %v3631_v56, %v1644_v38  ;;  %v1722_v50 = vadd.f32 %v1690_v42, %v1641_v0 }
 0x11a   : > { %v1720_v51 = vadd.f32 %v3617_v40, %v1639_v14  ;;  %v1721_v31 = vadd.f32 %v3622_v47, %v1640_v43  ;;  %v1723_v12 = vadd.f32 %v1691_v22, %v1642_v23  ;;  %v1764_v25 = vmul.f32 %v4724_v48, %v3021_v20 }
 0x11b   : > { %v1765_v54 = vmul.f32 %v4725_v10, %v3021_v20  ;;  %v1766_v62 = vmul.f32 %v3644_v18, %v3021_v20  ;;  %v1976_v30 = vadd.f32 %v3563_v36, %v1724_v6  ;;  %v1974_v40 = vadd.f32 %v3547_v41, %v1722_v50  ;;  %v4730_v6 = vld [vmem:[#allocation19_spill] sm:$0xff] }
 0x11c   : > { %v1972_v24 = vadd.f32 %v3655_v4, %v1720_v51  ;;  %v1973_v56 = vadd.f32 %v3672_v13, %v1721_v31  ;;  %v1975_v47 = vadd.f32 %v3554_v35, %v1723_v12  ;;  %v1864_v1 = vrot.slane %v1764_v25, 1 }
 0x11d   : > { %v1865_v61 = vrot.slane %v1765_v54, 1  ;;  %v1867_v5 = vrot.slane %v1766_v62, 1  ;;  %v1977_v7 = vadd.f32 %v3568_v27, %v1725_v8  ;;  %v2011_v53 = vmul.f32 %v4724_v48, %v3029_v28 }
 0x11e   : > { %v2012_v33 = vmul.f32 %v4725_v10, %v3029_v28  ;;  %v2013_v36 = vmul.f32 %v3644_v18, %v3029_v28  ;;  %v2219_v4 = vadd.f32 %v3658_v59, %v1972_v24  ;;  %v2220_v13 = vadd.f32 %v3675_v57, %v1973_v56  ;;  %v4736_v56 = vld [vmem:[#allocation24_spill] sm:$0xff] }
 0x11f   : > { %v1866_v41 = vsel %vm692_vm0, %v1864_v1, %v1865_v61  ;;  %v1868_v35 = vsel %vm692_vm0, %v1865_v61, %v1867_v5  ;;  %v2221_v45 = vadd.f32 %v3573_v34, %v1974_v40  ;;  %v2111_v37 = vrot.slane %v2011_v53, 2  ;;  %v4738_v61 = vld [vmem:[#allocation34_spill] sm:$0xff] }
 0x120   : > { %v1970_v27 = vadd.f32 %v1866_v41, %v1718_v46  ;;  %v1971_v58 = vadd.f32 %v1868_v35, %v1719_v52  ;;  %v2112_v48 = vrot.slane %v2012_v33, 2  ;;  %v2114_v11 = vrot.slane %v2013_v36, 2  ;;  %v4740_v33 = vld [vmem:[#allocation4_spill] sm:$0xff]  ;;  %v4741_v36 = vld [vmem:[#allocation23_spill] sm:$0xff] }
 0x121   : > { %v2222_v10 = vadd.f32 %v3584_v19, %v1975_v47  ;;  %v2223_v26 = vadd.f32 %v3587_v55, %v1976_v30  ;;  %v2224_v18 = vadd.f32 %v3592_v15, %v1977_v7  ;;  %v2258_v0 = vadd.f32 %v4729_v44, %v2219_v4  ;;  %v2873_v19 = vpop.permute.xlu1 %2872  ;;  %v4734_v30 = vld [vmem:[#allocation28_spill] sm:$0xff] }
 0x122   : > { %v2113_v59 = vsel %vm940_vm1, %v2111_v37, %v2112_v48  ;;  %v2259_v23 = vadd.f32 %v4729_v44, %v2220_v13  ;;  %v2260_v57 = vadd.f32 %v4729_v44, %v2221_v45  ;;  %v2115_v34 = vsel %vm940_vm1, %v2112_v48, %v2114_v11 }
 0x123   : > { %v2217_v38 = vadd.f32 %v2113_v59, %v1970_v27  ;;  %v2261_v39 = vadd.f32 %v4729_v44, %v2222_v10  ;;  %v2262_v63 = vadd.f32 %v4729_v44, %v2223_v26  ;;  %v2218_v9 = vadd.f32 %v2115_v34, %v1971_v58  ;;  %v4742_v58 = vld [vmem:[#allocation22_spill] sm:$0xff]  ;;  %v4743_v26 = vld [vmem:[#allocation21_spill] sm:$0xff]  ;;  %v4744_v59 = vld [vmem:[#allocation20_spill] sm:$0xff] }
 0x124   : > { %v2263_v55 = vadd.f32 %v4729_v44, %v2224_v18  ;;  %v2290_v15 = vmax.f32 %v2258_v0, 0.0  ;;  %v2291_v29 = vmax.f32 %v2259_v23, 0.0  ;;  %v2292_v43 = vmax.f32 %v2260_v57, 0.0 }
 0x125   : > { %v2256_v14 = vadd.f32 %v4729_v44, %v2217_v38  ;;  %v2293_v42 = vmax.f32 %v2261_v39, 0.0  ;;  %v2294_v22 = vmax.f32 %v2262_v63, 0.0  ;;  %v2257_v60 = vadd.f32 %v4729_v44, %v2218_v9 }
 0x126   : > { %v2295_v46 = vmax.f32 %v2263_v55, 0.0  ;;  %v2669_v52 = vpack.c.bf16 %v2291_v29, %v2290_v15  ;;  %v2875_v49 = vunpack.i.h.bf16 %v2873_v19  ;;  %v3775_v8 = vunpack.i.h.bf16 %v4730_v6 }
 0x127   : > { %v3778_v51 = vunpack.i.l.bf16 %v4730_v6  ;;  %v2288_v31 = vmax.f32 %v2256_v14, 0.0  ;;  %v2674_v50 = vpack.c.bf16 %v2293_v42, %v2292_v43  ;;  %v2289_v12 = vmax.f32 %v2257_v60, 0.0 }
 0x128   : > { %4731 = vst [vmem:[#allocation12_spill] sm:$0xff] %v3775_v8  ;;  %2741 = vst [vmem:[%s3466_s15 + $0x18] sm:$0xff] %v2669_v52   ;;  %v2679_v25 = vpack.c.bf16 %v2295_v46, %v2294_v22  ;;  %v631_v54 = vmul.f32 %v2875_v49, %v2999_v2  ;;  %v3783_v62 = vmul.f32 %v2875_v49, %v3001_v3  ;;  %v3786_v24 = vunpack.i.h.bf16 %v4734_v30 }
 0x129   : > { %4732 = vst [vmem:[#allocation29_spill] sm:$0xff] %v3778_v51  ;;  %v3789_v40 = vunpack.i.l.bf16 %v4736_v56  ;;  %2742 = vst [vmem:[%s3466_s15 + $0x20] sm:$0xff] %v2674_v50   ;;  %v3793_v47 = vmul.f32 %v2875_v49, %v3011_v16  ;;  %v3795_v1 = vunpack.i.l.bf16 %v2873_v19  ;;  %v3798_v5 = vunpack.i.h.bf16 %v4738_v61 }
 0x12a   : > { %4733 = vst [vmem:[#allocation30_spill] sm:$0xff] %v3783_v62  ;;  %4735 = vst [vmem:[#allocation8_spill] sm:$0xff] %v3786_v24  ;;  %v2664_v7 = vpack.c.bf16 %v2289_v12, %v2288_v31  ;;  %v3802_v53 = vmul.f32 %v2875_v49, %v3013_v17  ;;  %v465_v4 = vmul.f32 %v4741_v36, %v4740_v33  ;;  %v751_v41 = vrot.slane %v631_v54, 1  ;;  %v4753_v62 = vld [vmem:[#allocation17_spill] sm:$0xff] }
 0x12b   : > { %4737 = vst [vmem:[#allocation7_spill] sm:$0xff] %v3789_v40  ;;  %4739 = vst [vmem:[#allocation6_spill] sm:$0xff] %v3798_v5  ;;  %v3808_v13 = vmul.f32 %v2875_v49, %v3021_v20  ;;  %v3811_v45 = vmul.f32 %v2875_v49, %v3029_v28  ;;  %v1327_v27 = vrot.slane %v3793_v47, 1  ;;  %v466_v37 = vmul.f32 %v4742_v58, %v4740_v33 }
 0x12c   : > { %2743 = vst [vmem:[%s3466_s15 + $0x28] sm:$0xff] %v2679_v25   ;;  %2740 = vst [vmem:[%s3466_s15 + $0x10] sm:$0xff] %v2664_v7   ;;  %v626_v48 = vmul.f32 %v4741_v36, %v2999_v2  ;;  %v627_v11 = vmul.f32 %v4742_v58, %v2999_v2  ;;  %v628_v10 = vmul.f32 %v3795_v1, %v2999_v2  ;;  %v1574_v23 = vrot.slane %v3802_v53, 2 }
 0x12d   : > { %v629_v18 = vmul.f32 %v4743_v26, %v2999_v2  ;;  %v630_v44 = vmul.f32 %v4744_v59, %v2999_v2  ;;  %v874_v0 = vmul.f32 %v4741_v36, %v3001_v3  ;;  %v875_v38 = vmul.f32 %v4742_v58, %v3001_v3 }
 0x12e   : > { %v743_v57 = vrot.slane %v626_v48, 1  ;;  %v744_v34 = vrot.slane %v627_v11, 1  ;;  %v746_v39 = vrot.slane %v628_v10, 1  ;;  %v876_v9 = vmul.f32 %v3795_v1, %v3001_v3 }
 0x12f   : > { %v748_v63 = vrot.slane %v629_v18, 1  ;;  %v749_v19 = vrot.slane %v630_v44, 1  ;;  %v1902_v55 = vrot.slane %v3808_v13, 1  ;;  %v991_v29 = vrot.slane %v874_v0, 2 }
 0x130   : > { %v745_v15 = vsel %vm692_vm0, %v743_v57, %v744_v34  ;;  %v992_v14 = vrot.slane %v875_v38, 2  ;;  %v2149_v43 = vrot.slane %v3811_v45, 2  ;;  %v747_v42 = vsel %vm692_vm0, %v744_v34, %v746_v39 }
 0x131   : > { %v825_v22 = vadd.f32 %v745_v15, %v465_v4  ;;  %v3840_v60 = vmul.f32 %v4743_v26, %v3001_v3  ;;  %v750_v46 = vsel %vm692_vm0, %v748_v63, %v749_v19  ;;  %v752_v52 = vsel %vm692_vm0, %v749_v19, %v751_v41 }
 0x132   : > { %v826_v49 = vadd.f32 %v747_v42, %v466_v37  ;;  %v993_v6 = vsel %vm940_vm1, %v991_v29, %v992_v14  ;;  %v467_v31 = vmul.f32 %v4743_v26, %v4740_v33  ;;  %v468_v50 = vmul.f32 %v4744_v59, %v4740_v33 }
 0x133   : > { %4745 = vst [vmem:[#allocation11_spill] sm:$0xff] %v3840_v60  ;;  %v994_v12 = vrot.slane %v876_v9, 2  ;;  %v1073_v25 = vadd.f32 %v993_v6, %v825_v22  ;;  %v3851_v54 = vmul.f32 %v4744_v59, %v3001_v3  ;;  %v1122_v47 = vmul.f32 %v4743_v26, %v3033_v32 }
 0x134   : > { %v1205_v7 = vmul.f32 %v4741_v36, %v3011_v16  ;;  %v1206_v4 = vmul.f32 %v4742_v58, %v3011_v16  ;;  %v3859_v41 = vadd.f32 %v750_v46, %v467_v31  ;;  %v3861_v37 = vadd.f32 %v752_v52, %v468_v50 }
 0x135   : > { %v995_v48 = vsel %vm940_vm1, %v992_v14, %v994_v12  ;;  %v1207_v11 = vmul.f32 %v3795_v1, %v3011_v16  ;;  %v1123_v44 = vmul.f32 %v4744_v59, %v3033_v32  ;;  %v1154_v0 = vadd.f32 %v1122_v47, %v1073_v25 }
 0x136   : > { %4746 = vst [vmem:[#allocation9_spill] sm:$0xff] %v3859_v41  ;;  %4747 = vst [vmem:[#allocation26_spill] sm:$0xff] %v3861_v37  ;;  %v1074_v18 = vadd.f32 %v995_v48, %v826_v49  ;;  %v1208_v57 = vmul.f32 %v4743_v26, %v3011_v16  ;;  %v1209_v34 = vmul.f32 %v4744_v59, %v3011_v16  ;;  %v1319_v38 = vrot.slane %v1205_v7, 1 }
 0x137   : > { %v1320_v39 = vrot.slane %v1206_v4, 1  ;;  %v1322_v19 = vrot.slane %v1207_v11, 1  ;;  %v1452_v9 = vmul.f32 %v4741_v36, %v3013_v17  ;;  %v1453_v15 = vmul.f32 %v4742_v58, %v3013_v17 }
 0x138   : > { %v1155_v63 = vadd.f32 %v1123_v44, %v1074_v18  ;;  %v1324_v14 = vrot.slane %v1208_v57, 1  ;;  %v1325_v42 = vrot.slane %v1209_v34, 1  ;;  %v1454_v22 = vmul.f32 %v3795_v1, %v3013_v17 }
 0x139   : > { %v3878_v29 = vsel %vm692_vm0, %v1319_v38, %v1320_v39  ;;  %v3883_v46 = vsel %vm692_vm0, %v1320_v39, %v1322_v19  ;;  %v1455_v52 = vmul.f32 %v4743_v26, %v3013_v17  ;;  %v1456_v49 = vmul.f32 %v4744_v59, %v3013_v17 }
 0x13a   : > { %v1566_v6 = vrot.slane %v1452_v9, 2  ;;  %v1326_v31 = vsel %vm692_vm0, %v1324_v14, %v1325_v42  ;;  %v1328_v50 = vsel %vm692_vm0, %v1325_v42, %v1327_v27  ;;  %v1567_v12 = vrot.slane %v1453_v15, 2 }
 0x13b   : > { %v1569_v25 = vrot.slane %v1454_v22, 2  ;;  %v1406_v47 = vadd.f32 %v1326_v31, %v1154_v0  ;;  %v1407_v7 = vadd.f32 %v1328_v50, %v1155_v63  ;;  %v1571_v4 = vrot.slane %v1455_v52, 2 }
 0x13c   : > { %v1572_v48 = vrot.slane %v1456_v49, 2  ;;  %v3892_v11 = vsel %vm940_vm1, %v1566_v6, %v1567_v12  ;;  %v1782_v44 = vmul.f32 %v4741_v36, %v3021_v20  ;;  %v1783_v57 = vmul.f32 %v4742_v58, %v3021_v20 }
 0x13d   : > { %v3895_v18 = vsel %vm940_vm1, %v1567_v12, %v1569_v25  ;;  %v1784_v34 = vmul.f32 %v3795_v1, %v3021_v20  ;;  %v1785_v38 = vmul.f32 %v4743_v26, %v3021_v20  ;;  %v1786_v19 = vmul.f32 %v4744_v59, %v3021_v20 }
 0x13e   : > { %v1573_v27 = vsel %vm940_vm1, %v1571_v4, %v1572_v48  ;;  %v1575_v0 = vsel %vm940_vm1, %v1572_v48, %v1574_v23  ;;  %v1894_v9 = vrot.slane %v1782_v44, 1  ;;  %v1895_v15 = vrot.slane %v1783_v57, 1  ;;  %v4750_v48 = vld [vmem:[#allocation16_spill] sm:$0xff]  ;;  %v4751_v57 = vld [vmem:[#allocation15_spill] sm:$0xff] }
 0x13f   : > { %v3909_v39 = vadd.f32 %v1573_v27, %v1406_v47  ;;  %v3911_v63 = vadd.f32 %v1575_v0, %v1407_v7  ;;  %v1897_v14 = vrot.slane %v1784_v34, 1  ;;  %v1899_v42 = vrot.slane %v1785_v38, 1 }
 0x140   : > { %v2029_v53 = vmul.f32 %v4741_v36, %v3029_v28  ;;  %v1900_v23 = vrot.slane %v1786_v19, 1  ;;  %v2030_v22 = vmul.f32 %v4742_v58, %v3029_v28  ;;  %v2031_v52 = vmul.f32 %v3795_v1, %v3029_v28 }
 0x141   : > { %4748 = vst [vmem:[#allocation27_spill] sm:$0xff] %v3909_v39  ;;  %4749 = vst [vmem:[#allocation14_spill] sm:$0xff] %v3911_v63  ;;  %v2032_v49 = vmul.f32 %v4743_v26, %v3029_v28  ;;  %v3924_v6 = vsel %vm692_vm0, %v1894_v9, %v1895_v15  ;;  %v3927_v31 = vsel %vm692_vm0, %v1895_v15, %v1897_v14 }
 0x142   : > { %v2033_v50 = vmul.f32 %v4744_v59, %v3029_v28  ;;  %v2141_v12 = vrot.slane %v2029_v53, 2  ;;  %v3932_v25 = vsel %vm692_vm0, %v1899_v42, %v1900_v23  ;;  %v3937_v1 = vsel %vm692_vm0, %v1900_v23, %v1902_v55 }
 0x143   : > { %v2142_v47 = vrot.slane %v2030_v22, 2  ;;  %v2144_v26 = vrot.slane %v2031_v52, 2  ;;  %v2146_v7 = vrot.slane %v2032_v49, 2  ;;  %v463_v44 = vmul.f32 %v4750_v48, %v4740_v33 }
 0x144   : > { %v2147_v4 = vrot.slane %v2033_v50, 2  ;;  %v464_v27 = vmul.f32 %v4751_v57, %v4740_v33  ;;  %v623_v13 = vmul.f32 %v4750_v48, %v2999_v2  ;;  %v624_v55 = vmul.f32 %v4751_v57, %v2999_v2 }
 0x145   : > { %v3944_v0 = vsel %vm940_vm1, %v2141_v12, %v2142_v47  ;;  %v3947_v34 = vsel %vm940_vm1, %v2142_v47, %v2144_v26  ;;  %v871_v9 = vmul.f32 %v4750_v48, %v3001_v3  ;;  %v872_v15 = vmul.f32 %v4751_v57, %v3001_v3 }
 0x146   : > { %v3954_v38 = vsel %vm940_vm1, %v2146_v7, %v2147_v4  ;;  %v3959_v19 = vsel %vm940_vm1, %v2147_v4, %v2149_v43  ;;  %v738_v14 = vrot.slane %v623_v13, 1  ;;  %v739_v42 = vrot.slane %v624_v55, 1  ;;  %v2868_v55 = vpop.permute.xlu0 %2867 }
 0x147   : > { %v3967_v53 = vmul.f32 %v4750_v48, %v3033_v32  ;;  %v3971_v23 = vmul.f32 %v4751_v57, %v3033_v32  ;;  %v986_v45 = vrot.slane %v871_v9, 2  ;;  %v987_v22 = vrot.slane %v872_v15, 2 }
 0x148   : > { %v1202_v43 = vmul.f32 %v4750_v48, %v3011_v16  ;;  %v1203_v52 = vmul.f32 %v4751_v57, %v3011_v16  ;;  %v740_v49 = vsel %vm692_vm0, %v738_v14, %v739_v42  ;;  %v1449_v50 = vmul.f32 %v4750_v48, %v3013_v17 }
 0x149   : > { %v1450_v12 = vmul.f32 %v4751_v57, %v3013_v17  ;;  %v3984_v47 = vmul.f32 %v4750_v48, %v4723_v21  ;;  %v823_v26 = vadd.f32 %v740_v49, %v463_v44  ;;  %v988_v7 = vsel %vm940_vm1, %v986_v45, %v987_v22 }
 0x14a   : > { %v1314_v4 = vrot.slane %v1202_v43, 1  ;;  %v1315_v13 = vrot.slane %v1203_v52, 1  ;;  %v1561_v9 = vrot.slane %v1449_v50, 2  ;;  %v3989_v14 = vmul.f32 %v4751_v57, %v4723_v21 }
 0x14b   : > { %v1562_v15 = vrot.slane %v1450_v12, 2  ;;  %v3993_v35 = vmul.f32 %v4744_v59, %v4723_v21  ;;  %v1071_v10 = vadd.f32 %v988_v7, %v823_v26  ;;  %v1779_v44 = vmul.f32 %v4750_v48, %v3021_v20  ;;  %v4752_v7 = vld [vmem:[#allocation18_spill] sm:$0xff] }
 0x14c   : > { %v3996_v63 = vsel %vm692_vm0, %v1314_v4, %v1315_v13  ;;  %v1780_v45 = vmul.f32 %v4751_v57, %v3021_v20  ;;  %v2026_v52 = vmul.f32 %v4750_v48, %v3029_v28  ;;  %v2027_v59 = vmul.f32 %v4751_v57, %v3029_v28 }
 0x14d   : > { %v4003_v43 = vsel %vm940_vm1, %v1561_v9, %v1562_v15  ;;  %v2870_v49 = vunpack.i.h.bf16 %v2868_v55  ;;  %v1889_v50 = vrot.slane %v1779_v44, 1  ;;  %v4009_v26 = vunpack.i.l.bf16 %v2868_v55 }
 0x14e   : > { %v1890_v12 = vrot.slane %v1780_v45, 1  ;;  %v461_v4 = vmul.f32 %v4752_v7, %v4740_v33  ;;  %v2136_v39 = vrot.slane %v2026_v52, 2  ;;  %v2137_v24 = vrot.slane %v2027_v59, 2 }
 0x14f   : > { %v625_v8 = vmul.f32 %v2870_v49, %v2999_v2  ;;  %v873_v9 = vmul.f32 %v2870_v49, %v3001_v3  ;;  %v1204_v48 = vmul.f32 %v2870_v49, %v3011_v16  ;;  %v1451_v57 = vmul.f32 %v2870_v49, %v3013_v17 }
 0x150   : > { %v4016_v51 = vsel %vm692_vm0, %v1889_v50, %v1890_v12  ;;  %v1781_v44 = vmul.f32 %v2870_v49, %v3021_v20  ;;  %v4022_v55 = vsel %vm940_vm1, %v2136_v39, %v2137_v24  ;;  %v2028_v52 = vmul.f32 %v2870_v49, %v3029_v28 }
 0x151   : > { %v741_v45 = vrot.slane %v625_v8, 1  ;;  %v989_v5 = vrot.slane %v873_v9, 2  ;;  %v1317_v59 = vrot.slane %v1204_v48, 1  ;;  %v1564_v37 = vrot.slane %v1451_v57, 2 }
 0x152   : > { %v1892_v41 = vrot.slane %v1781_v44, 1  ;;  %v462_v50 = vmul.f32 %v4753_v62, %v4740_v33  ;;  %v2139_v61 = vrot.slane %v2028_v52, 2  ;;  %v620_v56 = vmul.f32 %v4752_v7, %v2999_v2 }
 0x153   : > { %v742_v60 = vsel %vm692_vm0, %v739_v42, %v741_v45  ;;  %v990_v40 = vsel %vm940_vm1, %v987_v22, %v989_v5  ;;  %v1318_v8 = vsel %vm692_vm0, %v1315_v13, %v1317_v59  ;;  %v1565_v9 = vsel %vm940_vm1, %v1562_v15, %v1564_v37  ;;  %v4754_v59 = vld [vmem:[#allocation10_spill] sm:$0xff] }
 0x154   : > { %v824_v39 = vadd.f32 %v742_v60, %v464_v27  ;;  %v4034_v49 = vsel %vm692_vm0, %v1890_v12, %v1892_v41  ;;  %v4037_v48 = vsel %vm940_vm1, %v2137_v24, %v2139_v61  ;;  %v621_v42 = vmul.f32 %v4753_v62, %v2999_v2 }
 0x155   : > { %v622_v5 = vmul.f32 %v4009_v26, %v2999_v2  ;;  %v733_v22 = vrot.slane %v620_v56, 1  ;;  %v868_v60 = vmul.f32 %v4752_v7, %v3001_v3  ;;  %v869_v37 = vmul.f32 %v4753_v62, %v3001_v3 }
 0x156   : > { %v1072_v57 = vadd.f32 %v990_v40, %v824_v39  ;;  %v870_v41 = vmul.f32 %v4009_v26, %v3001_v3  ;;  %v734_v27 = vrot.slane %v621_v42, 1  ;;  %v1116_v61 = vmul.f32 %v4752_v7, %v3033_v32 }
 0x157   : > { %v736_v24 = vrot.slane %v622_v5, 1  ;;  %v1117_v13 = vmul.f32 %v4753_v62, %v3033_v32  ;;  %v981_v15 = vrot.slane %v868_v60, 2  ;;  %v982_v56 = vrot.slane %v869_v37, 2  ;;  %v4755_v37 = vld [vmem:[#allocation31_spill] sm:$0xff] }
 0x158   : > { %v984_v40 = vrot.slane %v870_v41, 2  ;;  %v1120_v12 = vmul.f32 %v4741_v36, %v3033_v32  ;;  %v735_v44 = vsel %vm692_vm0, %v733_v22, %v734_v27  ;;  %v1121_v52 = vmul.f32 %v4742_v58, %v3033_v32 }
 0x159   : > { %v737_v45 = vsel %vm692_vm0, %v734_v27, %v736_v24  ;;  %v1148_v39 = vadd.f32 %v1116_v61, %v4754_v59  ;;  %v821_v42 = vadd.f32 %v735_v44, %v461_v4  ;;  %v983_v3 = vsel %vm940_vm1, %v981_v15, %v982_v56 }
 0x15a   : > { %v822_v5 = vadd.f32 %v737_v45, %v462_v50  ;;  %v985_v60 = vsel %vm940_vm1, %v982_v56, %v984_v40  ;;  %v1149_v41 = vadd.f32 %v1117_v13, %v4755_v37  ;;  %v1152_v2 = vadd.f32 %v1120_v12, %v1071_v10 }
 0x15b   : > { %v1153_v33 = vadd.f32 %v1121_v52, %v1072_v57  ;;  %v1199_v22 = vmul.f32 %v4752_v7, %v3011_v16  ;;  %v1069_v30 = vadd.f32 %v983_v3, %v821_v42  ;;  %v1200_v24 = vmul.f32 %v4753_v62, %v3011_v16 }
 0x15c   : > { %v1070_v27 = vadd.f32 %v985_v60, %v822_v5  ;;  %v1201_v4 = vmul.f32 %v4009_v26, %v3011_v16  ;;  %v1404_v61 = vadd.f32 %v3878_v29, %v1152_v2  ;;  %v1446_v10 = vmul.f32 %v4752_v7, %v3013_v17 }
 0x15d   : > { %v1309_v50 = vrot.slane %v1199_v22, 1  ;;  %v1405_v15 = vadd.f32 %v3883_v46, %v1153_v33  ;;  %v1150_v57 = vadd.f32 %v3967_v53, %v1069_v30  ;;  %v1310_v3 = vrot.slane %v1200_v24, 1  ;;  %v4757_v22 = vld [vmem:[#allocation33_spill] sm:$0xff] }
 0x15e   : > { %v1151_v13 = vadd.f32 %v3971_v23, %v1070_v27  ;;  %v1312_v56 = vrot.slane %v1201_v4, 1  ;;  %v1447_v40 = vmul.f32 %v4753_v62, %v3013_v17  ;;  %v1448_v12 = vmul.f32 %v4009_v26, %v3013_v17  ;;  %v4758_v4 = vld [vmem:[#allocation25_spill] sm:$0xff] }
 0x15f   : > { %v1556_v44 = vrot.slane %v1446_v10, 2  ;;  %v1651_v2 = vadd.f32 %v3892_v11, %v1404_v61  ;;  %v1311_v33 = vsel %vm692_vm0, %v1309_v50, %v1310_v3  ;;  %v1402_v46 = vadd.f32 %v3996_v63, %v1150_v57 }
 0x160   : > { %v1313_v29 = vsel %vm692_vm0, %v1310_v3, %v1312_v56  ;;  %v1403_v30 = vadd.f32 %v1318_v8, %v1151_v13  ;;  %v1400_v53 = vadd.f32 %v1311_v33, %v1148_v39  ;;  %v1557_v45 = vrot.slane %v1447_v40, 2 }
 0x161   : > { %v1401_v23 = vadd.f32 %v1313_v29, %v1149_v41  ;;  %v1559_v52 = vrot.slane %v1448_v12, 2  ;;  %v1649_v59 = vadd.f32 %v4003_v43, %v1402_v46  ;;  %v1652_v5 = vadd.f32 %v3895_v18, %v1405_v15 }
 0x162   : > { %v1650_v42 = vadd.f32 %v1565_v9, %v1403_v30  ;;  %v1694_v60 = vmul.f32 %v4752_v7, %v4723_v21  ;;  %v1558_v11 = vsel %vm940_vm1, %v1556_v44, %v1557_v45  ;;  %v1695_v63 = vmul.f32 %v4753_v62, %v4723_v21  ;;  %v4756_v9 = vld [vmem:[#allocation32_spill] sm:$0xff] }
 0x163   : > { %v1560_v37 = vsel %vm940_vm1, %v1557_v45, %v1559_v52  ;;  %v1698_v8 = vmul.f32 %v4741_v36, %v4723_v21  ;;  %v1647_v39 = vadd.f32 %v1558_v11, %v1400_v53  ;;  %v1699_v43 = vmul.f32 %v4742_v58, %v4723_v21 }
 0x164   : > { %v1648_v41 = vadd.f32 %v1560_v37, %v1401_v23  ;;  %v1726_v18 = vadd.f32 %v1694_v60, %v4756_v9  ;;  %v1727_v27 = vadd.f32 %v1695_v63, %v4757_v22  ;;  %v1732_v50 = vadd.f32 %v4758_v4, %v1651_v2  ;;  %v2883_v60 = vpop.permute.xlu1 %2882 }
 0x165   : > { %v1730_v24 = vadd.f32 %v1698_v8, %v1649_v59  ;;  %v1733_v61 = vadd.f32 %v3993_v35, %v1652_v5  ;;  %v1728_v15 = vadd.f32 %v3984_v47, %v1647_v39  ;;  %v1731_v57 = vadd.f32 %v1699_v43, %v1650_v42 }
 0x166   : > { %v1729_v10 = vadd.f32 %v3989_v14, %v1648_v41  ;;  %v1776_v36 = vmul.f32 %v4752_v7, %v3021_v20  ;;  %v1777_v58 = vmul.f32 %v4753_v62, %v3021_v20  ;;  %v1778_v13 = vmul.f32 %v4009_v26, %v3021_v20 }
 0x167   : > { %v1982_v3 = vadd.f32 %v3924_v6, %v1730_v24  ;;  %v1984_v56 = vadd.f32 %v3932_v25, %v1732_v50  ;;  %v1980_v35 = vadd.f32 %v4016_v51, %v1728_v15  ;;  %v1983_v14 = vadd.f32 %v3927_v31, %v1731_v57  ;;  %v4760_v15 = vld [vmem:[#allocation28_spill] sm:$0xff] }
 0x168   : > { %v1884_v40 = vrot.slane %v1776_v36, 1  ;;  %v1981_v47 = vadd.f32 %v4034_v49, %v1729_v10  ;;  %v1885_v12 = vrot.slane %v1777_v58, 1  ;;  %v1887_v44 = vrot.slane %v1778_v13, 1  ;;  %v4761_v57 = vld [vmem:[#allocation24_spill] sm:$0xff]  ;;  %v4763_v58 = vld [vmem:[#allocation34_spill] sm:$0xff] }
 0x169   : > { %v1985_v2 = vadd.f32 %v3937_v1, %v1733_v61  ;;  %v2023_v33 = vmul.f32 %v4752_v7, %v3029_v28  ;;  %v2024_v29 = vmul.f32 %v4753_v62, %v3029_v28  ;;  %v2025_v6 = vmul.f32 %v4009_v26, %v3029_v28 }
 0x16a   : > { %v2227_v25 = vadd.f32 %v4022_v55, %v1980_v35  ;;  %v2228_v51 = vadd.f32 %v4037_v48, %v1981_v47  ;;  %v1886_v49 = vsel %vm692_vm0, %v1884_v40, %v1885_v12  ;;  %v1888_v31 = vsel %vm692_vm0, %v1885_v12, %v1887_v44  ;;  %v4130_v55 = vld [vmem:[%s4597_s2] ss:$0 sm:$0xff]  ;;  %v4765_v35 = vld [vmem:[#allocation11_spill] sm:$0xff] }
 0x16b   : > { %v2131_v46 = vrot.slane %v2023_v33, 2  ;;  %v2229_v1 = vadd.f32 %v3944_v0, %v1982_v3  ;;  %v1978_v30 = vadd.f32 %v1886_v49, %v1726_v18  ;;  %v1979_v53 = vadd.f32 %v1888_v31, %v1727_v27  ;;  %4759 = vst [vmem:[#allocation13_spill] sm:$0xff] %v4130_v55  ;;  %v4767_v12 = vld [vmem:[#allocation30_spill] sm:$0xff] }
 0x16c   : > { %v2132_v7 = vrot.slane %v2024_v29, 2  ;;  %v2134_v23 = vrot.slane %v2025_v6, 2  ;;  %v2230_v62 = vadd.f32 %v3947_v34, %v1983_v14  ;;  %v2231_v45 = vadd.f32 %v3954_v38, %v1984_v56  ;;  %v4764_v56 = vld [vmem:[#allocation7_spill] sm:$0xff]  ;;  %v4769_v29 = vld [vmem:[#allocation9_spill] sm:$0xff] }
 0x16d   : > { %v2232_v26 = vadd.f32 %v3959_v19, %v1985_v2  ;;  %v2266_v48 = vadd.f32 %v4130_v55, %v2227_v25  ;;  %v2267_v59 = vadd.f32 %v4130_v55, %v2228_v51  ;;  %v2268_v42 = vadd.f32 %v4130_v55, %v2229_v1  ;;  %v4770_v25 = vld [vmem:[#allocation26_spill] sm:$0xff]  ;;  %v4772_v1 = vld [vmem:[#allocation4_spill] sm:$0xff] }
 0x16e   : > { %v2133_v52 = vsel %vm940_vm1, %v2131_v46, %v2132_v7  ;;  %v2135_v0 = vsel %vm940_vm1, %v2132_v7, %v2134_v23  ;;  %v2269_v38 = vadd.f32 %v4130_v55, %v2230_v62  ;;  %v2270_v19 = vadd.f32 %v4130_v55, %v2231_v45  ;;  %v4775_v7 = vld [vmem:[#allocation2_spill] sm:$0xff] }
 0x16f   : > { %v2225_v34 = vadd.f32 %v2133_v52, %v1978_v30  ;;  %v2226_v5 = vadd.f32 %v2135_v0, %v1979_v53  ;;  %v997_v11 = vrot.slane %v3851_v54, 2  ;;  %v2271_v37 = vadd.f32 %v4130_v55, %v2232_v26  ;;  %v4773_v30 = vld [vmem:[#allocation6_spill] sm:$0xff]  ;;  %v4778_v26 = vld [vmem:[#allocation3_spill] sm:$0xff] }
 0x170   : > { %v2298_v63 = vmax.f32 %v2266_v48, 0.0  ;;  %v2299_v8 = vmax.f32 %v2267_v59, 0.0  ;;  %v2300_v43 = vmax.f32 %v2268_v42, 0.0  ;;  %v2301_v9 = vmax.f32 %v2269_v38, 0.0 }
 0x171   : > { %v2264_v39 = vadd.f32 %v4130_v55, %v2225_v34  ;;  %v2265_v41 = vadd.f32 %v4130_v55, %v2226_v5  ;;  %v2302_v18 = vmax.f32 %v2270_v19, 0.0  ;;  %v2303_v22 = vmax.f32 %v2271_v37, 0.0 }
 0x172   : > { %v2689_v27 = vpack.c.bf16 %v2299_v8, %v2298_v63  ;;  %v2885_v24 = vunpack.i.h.bf16 %v2883_v60  ;;  %v2694_v54 = vpack.c.bf16 %v2301_v9, %v2300_v43  ;;  %v2884_v61 = vunpack.i.l.bf16 %v2883_v60 }
 0x173   : > { %v2296_v4 = vmax.f32 %v2264_v39, 0.0  ;;  %v2297_v50 = vmax.f32 %v2265_v41, 0.0  ;;  %v4144_v10 = vunpack.i.l.bf16 %v4760_v15  ;;  %v4147_v36 = vunpack.i.h.bf16 %v4761_v57 }
 0x174   : > { %v4150_v13 = vunpack.i.l.bf16 %v4763_v58  ;;  %2745 = vst [vmem:[%s3466_s15 + $0x38] sm:$0xff] %v2689_v27   ;;  %v2699_v3 = vpack.c.bf16 %v2303_v22, %v2302_v18  ;;  %v4155_v40 = vmul.f32 %v4764_v56, %v4723_v21  ;;  %v4766_v47 = vrot.slane %v4765_v35, 2  ;;  %2746 = vst [vmem:[%s3466_s15 + $0x40] sm:$0xff] %v2694_v54  }
 0x175   : > { %4762 = vst [vmem:[#allocation19_spill] sm:$0xff] %v4147_v36  ;;  %v4768_v44 = vrot.slane %v4767_v12, 2  ;;  %v2684_v33 = vpack.c.bf16 %v2297_v50, %v2296_v4  ;;  %v4172_v49 = vmul.f32 %v2885_v24, %v3011_v16  ;;  %v1799_v31 = vmul.f32 %v2885_v24, %v3021_v20 }
 0x176   : > { %v998_v14 = vsel %vm940_vm1, %v4766_v47, %v997_v11  ;;  %2747 = vst [vmem:[%s3466_s15 + $0x48] sm:$0xff] %v2699_v3   ;;  %v4177_v46 = vmul.f32 %v2885_v24, %v3029_v28  ;;  %v4181_v53 = vmul.f32 %v4773_v30, %v4772_v1  ;;  %v4185_v23 = vmul.f32 %v4773_v30, %v4775_v7 }
 0x177   : > { %v1000_v2 = vsel %vm940_vm1, %v997_v11, %v4768_v44  ;;  %v4165_v6 = vadd.f32 %v998_v14, %v4769_v29  ;;  %4771 = vst [vmem:[#allocation23_spill] sm:$0xff] %v4172_v49  ;;  %2744 = vst [vmem:[%s3466_s15 + $0x30] sm:$0xff] %v2684_v33   ;;  %v640_v62 = vmul.f32 %v2884_v61, %v4775_v7  ;;  %v1922_v19 = vrot.slane %v1799_v31, 1 }
 0x178   : > { %v4168_v51 = vadd.f32 %v1000_v2, %v4770_v25  ;;  %4774 = vst [vmem:[#allocation22_spill] sm:$0xff] %v4181_v53  ;;  %4776 = vst [vmem:[#allocation21_spill] sm:$0xff] %v4185_v23  ;;  %v4189_v45 = vmul.f32 %v2885_v24, %v4775_v7  ;;  %v4192_v48 = vmul.f32 %v2885_v24, %v4778_v26  ;;  %v2169_v37 = vrot.slane %v4177_v46, 2 }
 0x179   : > { %v4195_v52 = vmul.f32 %v2885_v24, %v3013_v17  ;;  %v1217_v0 = vmul.f32 %v4150_v13, %v3011_v16  ;;  %v766_v59 = vrot.slane %v640_v62, 1  ;;  %v4200_v42 = vmul.f32 %v2884_v61, %v4778_v26 }
 0x17a   : > { %4777 = vst [vmem:[#allocation20_spill] sm:$0xff] %v4189_v45  ;;  %4779 = vst [vmem:[#allocation16_spill] sm:$0xff] %v4192_v48  ;;  %v1218_v34 = vmul.f32 %v4773_v30, %v3011_v16  ;;  %v1219_v5 = vmul.f32 %v2884_v61, %v3011_v16  ;;  %v1464_v11 = vmul.f32 %v4150_v13, %v3013_v17  ;;  %v4645_v63 = vrot.slane %v4185_v23, 1 }
 0x17b   : > { %4780 = vst [vmem:[#allocation15_spill] sm:$0xff] %v4195_v52  ;;  %4781 = vst [vmem:[#allocation18_spill] sm:$0xff] %v4200_v42  ;;  %v1339_v60 = vrot.slane %v1217_v0, 1  ;;  %v4212_v41 = vmul.f32 %v4773_v30, %v4778_v26  ;;  %v4216_v43 = vmul.f32 %v4147_v36, %v3011_v16  ;;  %v1465_v9 = vmul.f32 %v4773_v30, %v3013_v17 }
 0x17c   : > { %v1340_v8 = vrot.slane %v1218_v34, 1  ;;  %v1342_v39 = vrot.slane %v1219_v5, 1  ;;  %v1466_v18 = vmul.f32 %v2884_v61, %v3013_v17  ;;  %v4224_v22 = vsel %vm692_vm0, %v4645_v63, %v766_v59  ;;  %v2878_v63 = vpop.permute.xlu0 %2877 }
 0x17d   : > { %4782 = vst [vmem:[#allocation17_spill] sm:$0xff] %v4212_v41  ;;  %4783 = vst [vmem:[#allocation10_spill] sm:$0xff] %v4216_v43  ;;  %v1586_v4 = vrot.slane %v1464_v11, 2  ;;  %v1587_v54 = vrot.slane %v1465_v9, 2  ;;  %v1794_v57 = vmul.f32 %v4150_v13, %v3021_v20  ;;  %v1795_v58 = vmul.f32 %v4773_v30, %v3021_v20 }
 0x17e   : > { %4784 = vst [vmem:[#allocation31_spill] sm:$0xff] %v4224_v22  ;;  %v4228_v24 = vsel %vm692_vm0, %v1339_v60, %v1340_v8  ;;  %v4231_v50 = vsel %vm692_vm0, %v1340_v8, %v1342_v39  ;;  %v1589_v15 = vrot.slane %v1466_v18, 2  ;;  %v1796_v3 = vmul.f32 %v2884_v61, %v3021_v20  ;;  %v4788_v22 = vld [vmem:[#allocation8_spill] sm:$0xff] }
 0x17f   : > { %v1797_v35 = vmul.f32 %v4764_v56, %v3021_v20  ;;  %v1798_v47 = vmul.f32 %v4147_v36, %v3021_v20  ;;  %v4243_v14 = vsel %vm940_vm1, %v1586_v4, %v1587_v54  ;;  %v1914_v44 = vrot.slane %v1794_v57, 1  ;;  %v4785_v4 = vld [vmem:[#allocation29_spill] sm:$0xff] }
 0x180   : > { %v4246_v12 = vsel %vm940_vm1, %v1587_v54, %v1589_v15  ;;  %v2041_v2 = vmul.f32 %v4150_v13, %v3029_v28  ;;  %v1915_v33 = vrot.slane %v1795_v58, 1  ;;  %v1917_v29 = vrot.slane %v1796_v3, 1  ;;  %v4786_v15 = vld [vmem:[#allocation12_spill] sm:$0xff] }
 0x181   : > { %v1919_v25 = vrot.slane %v1797_v35, 1  ;;  %v1920_v31 = vrot.slane %v1798_v47, 1  ;;  %v2042_v46 = vmul.f32 %v4773_v30, %v3029_v28  ;;  %v2043_v62 = vmul.f32 %v2884_v61, %v3029_v28 }
 0x182   : > { %v2044_v0 = vmul.f32 %v4764_v56, %v3029_v28  ;;  %v2045_v59 = vmul.f32 %v4147_v36, %v3029_v28  ;;  %v4258_v34 = vsel %vm692_vm0, %v1914_v44, %v1915_v33  ;;  %v4261_v5 = vsel %vm692_vm0, %v1915_v33, %v1917_v29 }
 0x183   : > { %v4264_v60 = vsel %vm692_vm0, %v1919_v25, %v1920_v31  ;;  %v4267_v11 = vsel %vm692_vm0, %v1920_v31, %v1922_v19  ;;  %v2161_v8 = vrot.slane %v2041_v2, 2  ;;  %v2162_v61 = vrot.slane %v2042_v46, 2 }
 0x184   : > { %v2164_v39 = vrot.slane %v2043_v62, 2  ;;  %v2166_v9 = vrot.slane %v2044_v0, 2  ;;  %v2167_v18 = vrot.slane %v2045_v59, 2  ;;  %v471_v54 = vmul.f32 %v4785_v4, %v4772_v1 }
 0x185   : > { %v4273_v57 = vmul.f32 %v4786_v15, %v4772_v1  ;;  %v635_v58 = vmul.f32 %v4785_v4, %v4775_v7  ;;  %v4278_v3 = vsel %vm940_vm1, %v2161_v8, %v2162_v61  ;;  %v636_v35 = vmul.f32 %v4786_v15, %v4775_v7 }
 0x186   : > { %v4281_v19 = vsel %vm940_vm1, %v2162_v61, %v2164_v39  ;;  %v883_v47 = vmul.f32 %v4785_v4, %v4778_v26  ;;  %v4288_v44 = vsel %vm940_vm1, %v2166_v9, %v2167_v18  ;;  %v4291_v2 = vsel %vm940_vm1, %v2167_v18, %v2169_v37 }
 0x187   : > { %4787 = vst [vmem:[#allocation32_spill] sm:$0xff] %v4291_v2  ;;  %v758_v33 = vrot.slane %v635_v58, 1  ;;  %v884_v29 = vmul.f32 %v4786_v15, %v4778_v26  ;;  %v759_v25 = vrot.slane %v636_v35, 1  ;;  %v4297_v46 = vmul.f32 %v4785_v4, %v3033_v32 }
 0x188   : > { %v1006_v31 = vrot.slane %v883_v47, 2  ;;  %v4301_v62 = vmul.f32 %v4786_v15, %v3033_v32  ;;  %v1214_v59 = vmul.f32 %v4785_v4, %v3011_v16  ;;  %v1215_v37 = vmul.f32 %v4786_v15, %v3011_v16 }
 0x189   : > { %v1007_v0 = vrot.slane %v884_v29, 2  ;;  %v1461_v8 = vmul.f32 %v4785_v4, %v3013_v17  ;;  %v760_v61 = vsel %vm692_vm0, %v758_v33, %v759_v25  ;;  %v1462_v39 = vmul.f32 %v4786_v15, %v3013_v17 }
 0x18a   : > { %v4314_v9 = vmul.f32 %v4785_v4, %v4723_v21  ;;  %v4318_v18 = vmul.f32 %v4786_v15, %v4723_v21  ;;  %v831_v58 = vadd.f32 %v760_v61, %v471_v54  ;;  %v1334_v47 = vrot.slane %v1214_v59, 1 }
 0x18b   : > { %v1008_v35 = vsel %vm940_vm1, %v1006_v31, %v1007_v0  ;;  %v1335_v29 = vrot.slane %v1215_v37, 1  ;;  %v1581_v38 = vrot.slane %v1461_v8, 2  ;;  %v1582_v27 = vrot.slane %v1462_v39, 2 }
 0x18c   : > { %v4323_v33 = vmul.f32 %v4147_v36, %v4723_v21  ;;  %v1791_v23 = vmul.f32 %v4785_v4, %v3021_v20  ;;  %v1079_v56 = vadd.f32 %v1008_v35, %v831_v58  ;;  %v1792_v54 = vmul.f32 %v4786_v15, %v3021_v20 }
 0x18d   : > { %v4328_v49 = vsel %vm692_vm0, %v1334_v47, %v1335_v29  ;;  %v2038_v31 = vmul.f32 %v4785_v4, %v3029_v28  ;;  %v4335_v59 = vsel %vm940_vm1, %v1581_v38, %v1582_v27  ;;  %v2039_v8 = vmul.f32 %v4786_v15, %v3029_v28 }
 0x18e   : > { %v1909_v37 = vrot.slane %v1791_v23, 1  ;;  %v2880_v61 = vunpack.i.h.bf16 %v2878_v63  ;;  %v1910_v39 = vrot.slane %v1792_v54, 1  ;;  %v4339_v58 = vunpack.i.l.bf16 %v2878_v63 }
 0x18f   : > { %v2156_v36 = vrot.slane %v2038_v31, 2  ;;  %v469_v35 = vmul.f32 %v4144_v10, %v4772_v1  ;;  %v2157_v47 = vrot.slane %v2039_v8, 2  ;;  %v470_v53 = vmul.f32 %v4788_v22, %v4772_v1 }
 0x190   : > { %v637_v42 = vmul.f32 %v2880_v61, %v4775_v7  ;;  %v885_v4 = vmul.f32 %v2880_v61, %v4778_v26  ;;  %v1216_v38 = vmul.f32 %v2880_v61, %v3011_v16  ;;  %v4347_v23 = vsel %vm692_vm0, %v1909_v37, %v1910_v39 }
 0x191   : > { %v1463_v15 = vmul.f32 %v2880_v61, %v3013_v17  ;;  %v1793_v54 = vmul.f32 %v2880_v61, %v3021_v20  ;;  %v2040_v63 = vmul.f32 %v2880_v61, %v3029_v28  ;;  %v4353_v31 = vsel %vm940_vm1, %v2156_v36, %v2157_v47 }
 0x192   : > { %v761_v52 = vrot.slane %v637_v42, 1  ;;  %v1009_v8 = vrot.slane %v885_v4, 2  ;;  %v1337_v48 = vrot.slane %v1216_v38, 1  ;;  %v632_v61 = vmul.f32 %v4144_v10, %v4775_v7 }
 0x193   : > { %v1584_v45 = vrot.slane %v1463_v15, 2  ;;  %v1912_v43 = vrot.slane %v1793_v54, 1  ;;  %v2159_v41 = vrot.slane %v2040_v63, 2  ;;  %v1129_v63 = vmul.f32 %v4773_v30, %v3033_v32 }
 0x194   : > { %v762_v37 = vsel %vm692_vm0, %v759_v25, %v761_v52  ;;  %v1010_v55 = vsel %vm940_vm1, %v1007_v0, %v1009_v8  ;;  %v1338_v2 = vsel %vm692_vm0, %v1335_v29, %v1337_v48  ;;  %v633_v52 = vmul.f32 %v4788_v22, %v4775_v7 }
 0x195   : > { %v832_v36 = vadd.f32 %v762_v37, %v4273_v57  ;;  %v1585_v42 = vsel %vm940_vm1, %v1582_v27, %v1584_v45  ;;  %v4365_v4 = vsel %vm692_vm0, %v1910_v39, %v1912_v43  ;;  %v4368_v38 = vsel %vm940_vm1, %v2157_v47, %v2159_v41 }
 0x196   : > { %v634_v25 = vmul.f32 %v4339_v58, %v4775_v7  ;;  %v753_v48 = vrot.slane %v632_v61, 1  ;;  %v880_v0 = vmul.f32 %v4144_v10, %v4778_v26  ;;  %v881_v45 = vmul.f32 %v4788_v22, %v4778_v26 }
 0x197   : > { %v1080_v29 = vadd.f32 %v1010_v55, %v832_v36  ;;  %v882_v43 = vmul.f32 %v4339_v58, %v4778_v26  ;;  %v1124_v41 = vmul.f32 %v4144_v10, %v3033_v32  ;;  %v754_v27 = vrot.slane %v633_v52, 1 }
 0x198   : > { %v756_v57 = vrot.slane %v634_v25, 1  ;;  %v1001_v39 = vrot.slane %v880_v0, 2  ;;  %v1125_v47 = vmul.f32 %v4788_v22, %v3033_v32  ;;  %v1002_v15 = vrot.slane %v881_v45, 2 }
 0x199   : > { %v1004_v54 = vrot.slane %v882_v43, 2  ;;  %v1128_v55 = vmul.f32 %v4150_v13, %v3033_v32  ;;  %v755_v8 = vsel %vm692_vm0, %v753_v48, %v754_v27  ;;  %v1156_v61 = vadd.f32 %v1124_v41, %v4165_v6 }
 0x19a   : > { %v757_v37 = vsel %vm692_vm0, %v754_v27, %v756_v57  ;;  %v1157_v36 = vadd.f32 %v1125_v47, %v4168_v51  ;;  %v829_v52 = vadd.f32 %v755_v8, %v469_v35  ;;  %v1003_v0 = vsel %vm940_vm1, %v1001_v39, %v1002_v15 }
 0x19b   : > { %v830_v25 = vadd.f32 %v757_v37, %v470_v53  ;;  %v1005_v45 = vsel %vm940_vm1, %v1002_v15, %v1004_v54  ;;  %v1160_v43 = vadd.f32 %v1128_v55, %v1079_v56  ;;  %v1161_v1 = vadd.f32 %v1129_v63, %v1080_v29 }
 0x19c   : > { %v1211_v26 = vmul.f32 %v4144_v10, %v3011_v16  ;;  %v1212_v48 = vmul.f32 %v4788_v22, %v3011_v16  ;;  %v1077_v32 = vadd.f32 %v1003_v0, %v829_v52  ;;  %v1213_v6 = vmul.f32 %v4339_v58, %v3011_v16 }
 0x19d   : > { %v1078_v27 = vadd.f32 %v1005_v45, %v830_v25  ;;  %v1458_v51 = vmul.f32 %v4144_v10, %v3013_v17  ;;  %v1412_v41 = vadd.f32 %v4228_v24, %v1160_v43  ;;  %v1413_v56 = vadd.f32 %v4231_v50, %v1161_v1  ;;  %v4790_v45 = vld [vmem:[#allocation14_spill] sm:$0xff] }
 0x19e   : > { %v1329_v53 = vrot.slane %v1211_v26, 1  ;;  %v1330_v35 = vrot.slane %v1212_v48, 1  ;;  %v1158_v29 = vadd.f32 %v4297_v46, %v1077_v32  ;;  %v1332_v39 = vrot.slane %v1213_v6, 1 }
 0x19f   : > { %v1159_v57 = vadd.f32 %v4301_v62, %v1078_v27  ;;  %v1459_v47 = vmul.f32 %v4788_v22, %v3013_v17  ;;  %v1460_v54 = vmul.f32 %v4339_v58, %v3013_v17  ;;  %v1576_v55 = vrot.slane %v1458_v51, 2 }
 0x1a0   : > { %v1331_v15 = vsel %vm692_vm0, %v1329_v53, %v1330_v35  ;;  %v1659_v26 = vadd.f32 %v4243_v14, %v1412_v41  ;;  %v1333_v24 = vsel %vm692_vm0, %v1330_v35, %v1332_v39  ;;  %v1410_v1 = vadd.f32 %v4328_v49, %v1158_v29 }
 0x1a1   : > { %v1408_v63 = vadd.f32 %v1331_v15, %v1156_v61  ;;  %v1411_v32 = vadd.f32 %v1338_v2, %v1159_v57  ;;  %v1409_v50 = vadd.f32 %v1333_v24, %v1157_v36  ;;  %v1577_v46 = vrot.slane %v1459_v47, 2 }
 0x1a2   : > { %v1579_v62 = vrot.slane %v1460_v54, 2  ;;  %v1660_v8 = vadd.f32 %v4246_v12, %v1413_v56  ;;  %v1657_v37 = vadd.f32 %v4335_v59, %v1410_v1  ;;  %v1702_v25 = vmul.f32 %v4144_v10, %v4723_v21  ;;  %v4789_v59 = vld [vmem:[#allocation27_spill] sm:$0xff] }
 0x1a3   : > { %v1658_v52 = vadd.f32 %v1585_v42, %v1411_v32  ;;  %v1703_v14 = vmul.f32 %v4788_v22, %v4723_v21  ;;  %v1578_v0 = vsel %vm940_vm1, %v1576_v55, %v1577_v46  ;;  %v1706_v49 = vmul.f32 %v4150_v13, %v4723_v21 }
 0x1a4   : > { %v1580_v61 = vsel %vm940_vm1, %v1577_v46, %v1579_v62  ;;  %v1707_v2 = vmul.f32 %v4773_v30, %v4723_v21  ;;  %v1655_v12 = vadd.f32 %v1578_v0, %v1408_v63  ;;  %v1734_v42 = vadd.f32 %v1702_v25, %v4789_v59 }
 0x1a5   : > { %v1656_v36 = vadd.f32 %v1580_v61, %v1409_v50  ;;  %v1735_v43 = vadd.f32 %v1703_v14, %v4790_v45  ;;  %v1738_v48 = vadd.f32 %v1706_v49, %v1657_v37  ;;  %v1740_v6 = vadd.f32 %v4155_v40, %v1659_v26  ;;  %v4794_v45 = vld [vmem:[#allocation31_spill] sm:$0xff] }
 0x1a6   : > { %v1739_v27 = vadd.f32 %v1707_v2, %v1658_v52  ;;  %v1741_v51 = vadd.f32 %v4323_v33, %v1660_v8  ;;  %v1736_v53 = vadd.f32 %v4314_v9, %v1655_v12  ;;  %v1788_v41 = vmul.f32 %v4144_v10, %v3021_v20 }
 0x1a7   : > { %v1737_v35 = vadd.f32 %v4318_v18, %v1656_v36  ;;  %v1789_v30 = vmul.f32 %v4788_v22, %v3021_v20  ;;  %v1790_v56 = vmul.f32 %v4339_v58, %v3021_v20  ;;  %v1990_v29 = vadd.f32 %v4258_v34, %v1738_v48  ;;  %v4795_v48 = vld [vmem:[#allocation17_spill] sm:$0xff] }
 0x1a8   : > { %v1991_v57 = vadd.f32 %v4261_v5, %v1739_v27  ;;  %v1992_v40 = vadd.f32 %v4264_v60, %v1740_v6  ;;  %v1904_v33 = vrot.slane %v1788_v41, 1  ;;  %v1988_v9 = vadd.f32 %v4347_v23, %v1736_v53  ;;  %v4796_v6 = vld [vmem:[#allocation10_spill] sm:$0xff] }
 0x1a9   : > { %v1905_v39 = vrot.slane %v1789_v30, 1  ;;  %v1989_v18 = vadd.f32 %v4365_v4, %v1737_v35  ;;  %v1907_v47 = vrot.slane %v1790_v56, 1  ;;  %v1993_v15 = vadd.f32 %v4267_v11, %v1741_v51 }
 0x1aa   : > { %v2035_v54 = vmul.f32 %v4144_v10, %v3029_v28  ;;  %v2036_v55 = vmul.f32 %v4788_v22, %v3029_v28  ;;  %v2037_v5 = vmul.f32 %v4339_v58, %v3029_v28  ;;  %v2235_v60 = vadd.f32 %v4353_v31, %v1988_v9  ;;  %v4791_v58 = vld [vmem:[#allocation32_spill] sm:$0xff]  ;;  %v4792_v31 = vld [vmem:[#allocation13_spill] sm:$0xff] }
 0x1ab   : > { %v1906_v34 = vsel %vm692_vm0, %v1904_v33, %v1905_v39  ;;  %v2236_v23 = vadd.f32 %v4368_v38, %v1989_v18  ;;  %v1908_v4 = vsel %vm692_vm0, %v1905_v39, %v1907_v47  ;;  %v2237_v10 = vadd.f32 %v4278_v3, %v1990_v29  ;;  %v1172_v29 = vpop.permute.xlu1 %1171  ;;  %v4798_v39 = vld [vmem:[#allocation16_spill] sm:$0xff]  ;;  %v4799_v18 = vld [vmem:[#allocation15_spill] sm:$0xff] }
 0x1ac   : > { %v1986_v26 = vadd.f32 %v1906_v34, %v1734_v42  ;;  %v2151_v24 = vrot.slane %v2035_v54, 2  ;;  %v2152_v11 = vrot.slane %v2036_v55, 2  ;;  %v1987_v63 = vadd.f32 %v1908_v4, %v1735_v43  ;;  %v4793_v42 = vld [vmem:[#allocation22_spill] sm:$0xff]  ;;  %v4802_v34 = vld [vmem:[#allocation23_spill] sm:$0xff] }
 0x1ad   : > { %v2154_v1 = vrot.slane %v2037_v5, 2  ;;  %v2238_v22 = vadd.f32 %v4281_v19, %v1991_v57  ;;  %v2239_v50 = vadd.f32 %v4288_v44, %v1992_v40  ;;  %v2240_v46 = vadd.f32 %v4791_v58, %v1993_v15  ;;  %v2888_v57 = vpop.permute.xlu0 %2887  ;;  %v4797_v40 = vld [vmem:[#allocation20_spill] sm:$0xff]  ;;  %v4800_v15 = vld [vmem:[#allocation18_spill] sm:$0xff] }
 0x1ae   : > { %v2153_v32 = vsel %vm940_vm1, %v2151_v24, %v2152_v11  ;;  %v2274_v62 = vadd.f32 %v4792_v31, %v2235_v60  ;;  %v2275_v37 = vadd.f32 %v4792_v31, %v2236_v23  ;;  %v2276_v52 = vadd.f32 %v4792_v31, %v2237_v10  ;;  %v4804_v24 = vld [vmem:[#allocation7_spill] sm:$0xff] }
 0x1af   : > { %v2155_v38 = vsel %vm940_vm1, %v2152_v11, %v2154_v1  ;;  %v2233_v8 = vadd.f32 %v2153_v32, %v1986_v26  ;;  %v2277_v3 = vadd.f32 %v4792_v31, %v2238_v22  ;;  %v2278_v19 = vadd.f32 %v4792_v31, %v2239_v50  ;;  %v4805_v22 = vld [vmem:[#allocation19_spill] sm:$0xff] }
 0x1b0   : > { %v2234_v25 = vadd.f32 %v2155_v38, %v1987_v63  ;;  %v2279_v14 = vadd.f32 %v4792_v31, %v2240_v46  ;;  %v2306_v0 = vmax.f32 %v2274_v62, 0.0  ;;  %v2307_v61 = vmax.f32 %v2275_v37, 0.0  ;;  %v4806_v46 = vld [vmem:[#allocation5_spill] sm:$0xff] }
 0x1b1   : > { %v2272_v44 = vadd.f32 %v4792_v31, %v2233_v8  ;;  %v2308_v49 = vmax.f32 %v2276_v52, 0.0  ;;  %v2309_v12 = vmax.f32 %v2277_v3, 0.0  ;;  %v2310_v36 = vmax.f32 %v2278_v19, 0.0  ;;  %v4807_v3 = vld [vmem:[#allocation3_spill] sm:$0xff] }
 0x1b2   : > { %v2273_v2 = vadd.f32 %v4792_v31, %v2234_v25  ;;  %v2311_v59 = vmax.f32 %v2279_v14, 0.0  ;;  %v834_v43 = vadd.f32 %v4794_v45, %v4793_v42  ;;  %v1012_v27 = vrot.slane %v4795_v48, 2 }
 0x1b3   : > { %v1345_v51 = vrot.slane %v4796_v6, 1  ;;  %v2709_v53 = vpack.c.bf16 %v2307_v61, %v2306_v0  ;;  %v2304_v35 = vmax.f32 %v2272_v44, 0.0  ;;  %v2714_v30 = vpack.c.bf16 %v2309_v12, %v2308_v49  ;;  %v4808_v0 = vld [vmem:[#allocation4_spill] sm:$0xff] }
 0x1b4   : > { %v2305_v41 = vmax.f32 %v2273_v2, 0.0  ;;  %v2719_v56 = vpack.c.bf16 %v2311_v59, %v2310_v36  ;;  %v771_v33 = vrot.slane %v4797_v40, 1  ;;  %v1019_v9 = vrot.slane %v4798_v39, 2  ;;  %v4809_v36 = vld [vmem:[#allocation21_spill] sm:$0xff] }
 0x1b5   : > { %2749 = vst [vmem:[%s3466_s15 + $0x58] sm:$0xff] %v2709_v53   ;;  %v1594_v47 = vrot.slane %v4799_v18, 2  ;;  %v4801_v54 = vrot.slane %v4800_v15, 2  ;;  %v4803_v5 = vrot.slane %v4802_v34, 1  ;;  %2750 = vst [vmem:[%s3466_s15 + $0x60] sm:$0xff] %v2714_v30   ;;  %v1802_v26 = vmul.f32 %v3021_v20, %v1172_v29 }
 0x1b6   : > { %v2704_v23 = vpack.c.bf16 %v2305_v41, %v2304_v35  ;;  %2751 = vst [vmem:[%s3466_s15 + $0x68] sm:$0xff] %v2719_v56   ;;  %v1220_v11 = vmul.f32 %v4804_v24, %v3011_v16  ;;  %v4487_v63 = vunpack.i.h.bf16 %v2888_v57  ;;  %v4491_v1 = vmul.f32 %v3011_v16, %v1172_v29 }
 0x1b7   : > { %v1015_v55 = vsel %vm940_vm1, %v1012_v27, %v4801_v54  ;;  %v1348_v60 = vsel %vm692_vm0, %v1345_v51, %v4803_v5  ;;  %v1467_v10 = vmul.f32 %v4804_v24, %v3013_v17  ;;  %v1468_v32 = vmul.f32 %v4805_v22, %v3013_v17 }
 0x1b8   : > { %v1082_v4 = vadd.f32 %v1015_v55, %v834_v43  ;;  %2748 = vst [vmem:[%s3466_s15 + $0x50] sm:$0xff] %v2704_v23   ;;  %v638_v50 = vmul.f32 %v4150_v13, %v4775_v7  ;;  %v2049_v58 = vmul.f32 %v3029_v28, %v1172_v29  ;;  %v1130_v62 = vmul.f32 %v4804_v24, %v4806_v46 }
 0x1b9   : > { %v1131_v38 = vmul.f32 %v4805_v22, %v4806_v46  ;;  %v1801_v8 = vmul.f32 %v4487_v63, %v3021_v20  ;;  %v2048_v37 = vmul.f32 %v4487_v63, %v3029_v28  ;;  %v4508_v52 = vunpack.i.l.bf16 %v2888_v57 }
 0x1ba   : > { %v763_v25 = vrot.slane %v638_v50, 1  ;;  %v886_v19 = vmul.f32 %v4150_v13, %v4807_v3  ;;  %v1927_v14 = vrot.slane %v1802_v26, 1  ;;  %v1344_v44 = vrot.slane %v1220_v11, 1 }
 0x1bb   : > { %v473_v61 = vmul.f32 %v4150_v13, %v4808_v0  ;;  %v1163_v49 = vadd.f32 %v1131_v38, %v1082_v4  ;;  %v1591_v2 = vrot.slane %v1467_v10, 2  ;;  %v1592_v12 = vrot.slane %v1468_v32, 2 }
 0x1bc   : > { %v4810_v59 = vrot.slane %v4809_v36, 1  ;;  %v1011_v45 = vrot.slane %v886_v19, 2  ;;  %v1925_v43 = vrot.slane %v1801_v8, 1  ;;  %v2172_v48 = vrot.slane %v2048_v37, 2 }
 0x1bd   : > { %v1415_v53 = vadd.f32 %v1348_v60, %v1163_v49  ;;  %v2174_v35 = vrot.slane %v2049_v58, 2  ;;  %v1595_v41 = vsel %vm940_vm1, %v1592_v12, %v1594_v47  ;;  %v1800_v13 = vmul.f32 %v4508_v52, %v3021_v20  ;;  %v2893_v58 = vpop.permute.xlu0 %2892 }
 0x1be   : > { %v765_v42 = vsel %vm692_vm0, %v763_v25, %v4810_v59  ;;  %v1013_v30 = vsel %vm940_vm1, %v1011_v45, %v1012_v27  ;;  %v1711_v56 = vmul.f32 %v4487_v63, %v4723_v21  ;;  %v2047_v15 = vmul.f32 %v4508_v52, %v3029_v28 }
 0x1bf   : > { %v833_v6 = vadd.f32 %v765_v42, %v473_v61  ;;  %v1662_v18 = vadd.f32 %v1595_v41, %v1415_v53  ;;  %v4526_v54 = vmul.f32 %v3013_v17, %v1172_v29  ;;  %v1346_v55 = vsel %vm692_vm0, %v1344_v44, %v1345_v51  ;;  %v1752_v41 = vpop.permute.xlu1 %1751 }
 0x1c0   : > { %v1593_v47 = vsel %vm940_vm1, %v1591_v2, %v1592_v12  ;;  %v1710_v27 = vmul.f32 %v4508_v52, %v4723_v21  ;;  %v1928_v34 = vsel %vm692_vm0, %v1925_v43, %v1927_v14  ;;  %v2175_v5 = vsel %vm940_vm1, %v2172_v48, %v2174_v35 }
 0x1c1   : > { %v1081_v57 = vadd.f32 %v1013_v30, %v833_v6  ;;  %v1743_v23 = vadd.f32 %v1711_v56, %v1662_v18  ;;  %v1924_v4 = vrot.slane %v1800_v13, 1  ;;  %v641_v26 = vmul.f32 %v4804_v24, %v4775_v7 }
 0x1c2   : > { %v642_v29 = vmul.f32 %v4805_v22, %v4775_v7  ;;  %v889_v51 = vmul.f32 %v4804_v24, %v4807_v3  ;;  %v2171_v32 = vrot.slane %v2047_v15, 2  ;;  %v890_v50 = vmul.f32 %v4805_v22, %v4807_v3 }
 0x1c3   : > { %v1162_v60 = vadd.f32 %v1130_v62, %v1081_v57  ;;  %v1995_v10 = vadd.f32 %v1928_v34, %v1743_v23  ;;  %v475_v62 = vmul.f32 %v4804_v24, %v4808_v0  ;;  %v476_v38 = vmul.f32 %v4805_v22, %v4808_v0 }
 0x1c4   : > { %v768_v8 = vrot.slane %v641_v26, 1  ;;  %v769_v37 = vrot.slane %v642_v29, 1  ;;  %v1016_v19 = vrot.slane %v889_v51, 2  ;;  %v1017_v14 = vrot.slane %v890_v50, 2 }
 0x1c5   : > { %v1414_v11 = vadd.f32 %v1346_v55, %v1162_v60  ;;  %v2242_v7 = vadd.f32 %v2175_v5, %v1995_v10  ;;  %v1926_v44 = vsel %vm692_vm0, %v1924_v4, %v1925_v43  ;;  %v2895_v49 = vunpack.i.h.bf16 %v2893_v58 }
 0x1c6   : > { %v770_v61 = vsel %vm692_vm0, %v768_v8, %v769_v37  ;;  %v772_v3 = vsel %vm692_vm0, %v769_v37, %v771_v33  ;;  %v1352_v24 = vrot.slane %v4491_v1, 1  ;;  %v1599_v0 = vrot.slane %v4526_v54, 2 }
 0x1c7   : > { %v1661_v25 = vadd.f32 %v1593_v47, %v1414_v11  ;;  %v835_v12 = vadd.f32 %v770_v61, %v475_v62  ;;  %v836_v22 = vadd.f32 %v772_v3, %v476_v38  ;;  %v2173_v36 = vsel %vm940_vm1, %v2171_v32, %v2172_v48 }
 0x1c8   : > { %v2281_v59 = vadd.f32 %v4792_v31, %v2242_v7  ;;  %v1020_v42 = vsel %vm940_vm1, %v1017_v14, %v1019_v9  ;;  %v1018_v40 = vsel %vm940_vm1, %v1016_v19, %v1017_v14  ;;  %v2894_v43 = vunpack.i.l.bf16 %v2893_v58 }
 0x1c9   : > { %v1742_v2 = vadd.f32 %v1710_v27, %v1661_v25  ;;  %v1084_v33 = vadd.f32 %v1020_v42, %v836_v22  ;;  %v1083_v6 = vadd.f32 %v1018_v40, %v835_v12  ;;  %v1804_v1 = vmul.f32 %v2895_v49, %v3021_v20 }
 0x1ca   : > { %v1132_v53 = vmul.f32 %v4508_v52, %v4806_v46  ;;  %v1133_v48 = vmul.f32 %v4487_v63, %v4806_v46  ;;  %v1223_v39 = vmul.f32 %v4508_v52, %v3011_v16  ;;  %v1224_v9 = vmul.f32 %v4487_v63, %v3011_v16 }
 0x1cb   : > { %v1994_v45 = vadd.f32 %v1926_v44, %v1742_v2  ;;  %v1470_v30 = vmul.f32 %v4508_v52, %v3013_v17  ;;  %v2313_v13 = vmax.f32 %v2281_v59, 0.0  ;;  %v1471_v18 = vmul.f32 %v4487_v63, %v3013_v17 }
 0x1cc   : > { %v1164_v56 = vadd.f32 %v1132_v53, %v1083_v6  ;;  %v1165_v57 = vadd.f32 %v1133_v48, %v1084_v33  ;;  %v1349_v46 = vrot.slane %v1223_v39, 1  ;;  %v1350_v54 = vrot.slane %v1224_v9, 1 }
 0x1cd   : > { %v2241_v35 = vadd.f32 %v2173_v36, %v1994_v45  ;;  %v1596_v55 = vrot.slane %v1470_v30, 2  ;;  %v1805_v47 = vmul.f32 %v3021_v20, %v1752_v41  ;;  %v2051_v27 = vmul.f32 %v2895_v49, %v3029_v28 }
 0x1ce   : > { %v1597_v34 = vrot.slane %v1471_v18, 2  ;;  %v1803_v16 = vmul.f32 %v2894_v43, %v3021_v20  ;;  %v1351_v52 = vsel %vm692_vm0, %v1349_v46, %v1350_v54  ;;  %v1353_v60 = vsel %vm692_vm0, %v1350_v54, %v1352_v24 }
 0x1cf   : > { %v2280_v15 = vadd.f32 %v4792_v31, %v2241_v35  ;;  %v2050_v17 = vmul.f32 %v2894_v43, %v3029_v28  ;;  %v2052_v63 = vmul.f32 %v3029_v28, %v1752_v41  ;;  %v1930_v23 = vrot.slane %v1804_v1, 1 }
 0x1d0   : > { %v1416_v4 = vadd.f32 %v1351_v52, %v1164_v56  ;;  %v1417_v26 = vadd.f32 %v1353_v60, %v1165_v57  ;;  %v1598_v51 = vsel %vm940_vm1, %v1596_v55, %v1597_v34  ;;  %v1600_v11 = vsel %vm940_vm1, %v1597_v34, %v1599_v0 }
 0x1d1   : > { %v2312_v5 = vmax.f32 %v2280_v15, 0.0  ;;  %v1929_v10 = vrot.slane %v1803_v16, 1  ;;  %v1713_v20 = vmul.f32 %v2895_v49, %v4723_v21  ;;  %v1712_v58 = vmul.f32 %v2894_v43, %v4723_v21 }
 0x1d2   : > { %v1663_v32 = vadd.f32 %v1598_v51, %v1416_v4  ;;  %v1664_v50 = vadd.f32 %v1600_v11, %v1417_v26  ;;  %v1932_v62 = vrot.slane %v1805_v47, 1  ;;  %v2177_v38 = vrot.slane %v2051_v27, 2 }
 0x1d3   : > { %v2724_v29 = vpack.c.bf16 %v2313_v13, %v2312_v5  ;;  %v2176_v8 = vrot.slane %v2050_v17, 2  ;;  %v2179_v25 = vrot.slane %v2052_v63, 2  ;;  %v1931_v19 = vsel %vm692_vm0, %v1929_v10, %v1930_v23 }
 0x1d4   : > { %v1744_v28 = vadd.f32 %v1712_v58, %v1663_v32  ;;  %v1745_v37 = vadd.f32 %v1713_v20, %v1664_v50  ;;  %v1933_v7 = vsel %vm692_vm0, %v1930_v23, %v1932_v62 }
 0x1d5   : > { %2752 = vst [vmem:[%s3466_s15 + $0x70] sm:$0xff] %v2724_v29   ;;  %v2180_v61 = vsel %vm940_vm1, %v2177_v38, %v2179_v25  ;;  %v2178_v3 = vsel %vm940_vm1, %v2176_v8, %v2177_v38 }
 0x1d6   : > { %v1996_v14 = vadd.f32 %v1931_v19, %v1744_v28  ;;  %v1997_v44 = vadd.f32 %v1933_v7, %v1745_v37 }
 0x1d8   : > { %v2243_v49 = vadd.f32 %v2178_v3, %v1996_v14  ;;  %v2244_v21 = vadd.f32 %v2180_v61, %v1997_v44 }
 0x1da   : > { %v2282_v24 = vadd.f32 %v4792_v31, %v2243_v49  ;;  %v2283_v2 = vadd.f32 %v4792_v31, %v2244_v21 }
 0x1dc   : > { %v2314_v12 = vmax.f32 %v2282_v24, 0.0  ;;  %v2315_v22 = vmax.f32 %v2283_v2, 0.0 }
 0x1de   : > { %v2729_v0 = vpack.c.bf16 %v2315_v22, %v2314_v12 }
 0x1e0   : > { %2753 = vst [vmem:[%s3466_s15 + $0x78] sm:$0xff] %v2729_v0  }
 0x1e1 PF: > { %s13_s12 = sadd.s32 1, %s2903_s12  }
 0x1e2   : > { %p10_p4 = scmp.ge.s32.totalorder %s13_s12, 4  }
 0x1e4   :  { %12 = sbr.rel (!%p10_p4) target bundleno = 1 (0x1), region = 70 }

// kernel: seti_model_forward.5
= control target key start
LH: loop header
LB: loop body
LE: loop exit
PB: predicated region body
PF: predicated region fallthrough
CT: control target
= control target key end

     0   :  { %s5296_s23 = smov 0   ;;  %s6424_s0 = inlined_call_operand.vmem [shape: bf16[2,18,18,128], index: 0, kind: input, shape index: {}]   ;;  %s6425_s1 = inlined_call_operand.vmem [shape: bf16[9,128,128], index: 1, kind: input, shape index: {}]   ;;  %s6426_s2 = inlined_call_operand.vmem [shape: f32[1,128], index: 2, kind: input, shape index: {}]   ;;  %s6427_s3 = inlined_call_operand.vmem [shape: bf16[2,16,16,128], index: 3, kind: input, shape index: {}]   ;;  %s6428_s4 = inlined_call_operand.vmem [shape: f32[128,1], index: 4, kind: input, shape index: {}]   ;;  %s6429_s5 = inlined_call_operand.<no memory space> [shape: f32[1,1], index: 5, kind: input, shape index: {}]   ;;  %s6430_s6 = inlined_call_operand.vmem [shape: f32[2,1,1], index: 6, kind: output, shape index: {}]  }
   0x1   :  { %v11_v0 = vstv %s6429_s5 }
   0x2   :  { %12 = vst [vmem:[#allocation2] sm:$0x1] %v11_v0 }
   0x3 LB: > { %s3769_s24 = sadd.s32 4294967295, %s5253_s23   ;;  %p3773_p0 = scmp.ge.s32.totalorder %s5253_s23, 1  ;;  %s5253_s23 = sphi %s5296_s23, %s18_s23  }
   0x4   : > { %p224_p1 = scmp.lt.s32.totalorder %s5253_s23, 3 }
   0x6   : > { %p225_p2 = pnand %p3773_p0, %p224_p1 }
   0x8   : > { %228 = sbr.rel (%p225_p2) target bundleno = 797 (0x31d), region = 44 }
   0xf   : > { %v5140_v1 = vld [vmem:[%s6425_s1 + $0x40] sm:$0xff]   ;;  %p257_p3 = scmp.lt.s32.totalorder %s3769_s24, 1  ;;  %v5142_v3 = vld [vmem:[%s6425_s1 + $0x48] sm:$0xff]   ;;  %v5144_v5 = vld [vmem:[%s6425_s1 + $0x50] sm:$0xff]   ;;  %vm341_vm0 = vsmask.f32 3328 }
  0x10   : > { %v5141_v2 = vld [vmem:[%s6425_s1 + $0x100] sm:$0xff]   ;;  %4365 = vmatprep.subr.bf16.mxu1 %v5140_v1  ;;  %v5143_v4 = vld [vmem:[%s6425_s1 + $0x108] sm:$0xff]   ;;  %v5145_v6 = vld [vmem:[%s6425_s1 + $0x110] sm:$0xff]   ;;  %vm342_vm1 = vsmask.f32 7440  ;;  %vm1339_vm3 = vcmask 1042432  }
  0x11   : > { %4557 = vmatprep.subr.bf16.mxu0 %v5141_v2  ;;  %4366 = vmatpush3.bf16.msra.mxu1 %v5140_v1  ;;  %s6475_s24 = smov (!%p257_p3, %s3769_s24), 1  ;;  %v5146_v7 = vld [vmem:[%s6425_s1 + $0x58] sm:$0xff]   ;;  %v5148_v9 = vld [vmem:[%s6425_s1 + $0x60] sm:$0xff]   ;;  %v5150_v11 = vld [vmem:[%s6425_s1 + $0x68] sm:$0xff]   ;;  %vm1340_vm4 = vcmask 1046532   ;;  %vm5256_vm6 = vmmov 0  }
  0x12   : > { %4558 = vmatpush3.bf16.msra.mxu0 %v5141_v2  ;;  %4367 = vmatprep.subr.bf16.mxu1 %v5142_v3  ;;  %v5147_v8 = vld [vmem:[%s6425_s1 + $0x118] sm:$0xff]   ;;  %s5128_s16 = smul.u32 216, %s6475_s24  ;;  %v5149_v10 = vld [vmem:[%s6425_s1 + $0x120] sm:$0xff]   ;;  %v5151_v12 = vld [vmem:[%s6425_s1 + $0x128] sm:$0xff]   ;;  %s4052_s17 = sshll.u32 %s6475_s24, 7  ;;  %vm3708_vm7 = vcmask 0  }
  0x13   : > { %4559 = vmatprep.subr.bf16.mxu0 %v5143_v4  ;;  %v5152_v18 = vld [vmem:[%s6425_s1 + $0x70] sm:$0xff]   ;;  %v5154_v37 = vld [vmem:[%s6425_s1 + $0x78] sm:$0xff]   ;;  %vm5385_vm2 = vmor %vm341_vm0, %vm342_vm1  ;;  %s6354_s20 = scalar_lea.vmem %s6427_s3, %s4052_s17  ;;  %s269_s5 = scalar_lea.vmem %s6430_s6, %s6475_s24 }
  0x14   : > { %s5340_s25 = scalar_lea.vmem %s6424_s0, %s5128_s16  ;;  %v5153_v32 = vld [vmem:[%s6425_s1 + $0x130] sm:$0xff]   ;;  %v5155_v54 = vld [vmem:[%s6425_s1 + $0x138] sm:$0xff]   ;;  %v5156_v2 = vld [vmem:[%s6425_s1] sm:$0xff]  }
  0x15   : > { %4368 = vmatpush3.bf16.msra.mxu1 %v5142_v3  ;;  %v5349_v13 = vld [vmem:[%s5340_s25] sm:$0xf]  ;;  %v5352_v14 = vld [vmem:[%s5340_s25 + $0x4] sm:$0xf]  ;;  %v273_v15 = vld [vmem:[%s5340_s25 + $0x8] sm:$0x1] }
  0x16   : > { %4560 = vmatpush3.bf16.msra.mxu0 %v5143_v4  ;;  %4369 = vmatprep.subr.bf16.mxu1 %v5144_v5  ;;  %v345_v16 = vshrl.u32 %v5349_v13, 16  ;;  %v348_v17 = vshll.u32 %v5349_v13, 16  ;;  %v354_v19 = vshll.u32 %v5352_v14, 16  ;;  %v358_v20 = vshrl.u32 %v5352_v14, 16  ;;  %v5363_v22 = vld [vmem:[%s5340_s25 + $0xc] sm:$0xf]  ;;  %vm5592_vm5 = vmor %vm1339_vm3, %vm1340_vm4 }
  0x17   : > { %4561 = vmatprep.subr.bf16.mxu0 %v5145_v6  ;;  %v364_v21 = vshll.u32 %v273_v15, 16  ;;  %v5366_v25 = vld [vmem:[%s5340_s25 + $0x10] sm:$0xf]  ;;  %v5369_v26 = vld [vmem:[%s5340_s25 + $0x14] sm:$0x1]  ;;  %v369_v31 = vshrl.u32 %v5363_v22, 16 }
  0x18   : > { %v347_v23 = vrot.slane %v345_v16, 4  ;;  %v350_v24 = vrot.slane %v348_v17, 5  ;;  %v356_v28 = vrot.slane %v354_v19, 5  ;;  %v360_v29 = vrot.slane %v358_v20, 4  ;;  %v5391_v42 = vld [vmem:[%s5340_s25 + $0x18] sm:$0xf] }
  0x19   : > { %4370 = vmatpush3.bf16.msra.mxu1 %v5144_v5  ;;  %v366_v30 = vrot.slane %v364_v21, 5  ;;  %v372_v34 = vshll.u32 %v5363_v22, 16  ;;  %v378_v35 = vshll.u32 %v5366_v25, 16  ;;  %v382_v36 = vshrl.u32 %v5366_v25, 16  ;;  %v5394_v43 = vld [vmem:[%s5340_s25 + $0x1c] sm:$0xf] }
  0x1a   : > { %4562 = vmatpush3.bf16.msra.mxu0 %v5145_v6  ;;  %4371 = vmatprep.subr.bf16.mxu1 %v5146_v7  ;;  %v351_v33 = vor.u32 %v350_v24, %v347_v23  ;;  %v361_v39 = vor.u32 %v360_v29, %v356_v28  ;;  %v371_v40 = vrot.slane %v369_v31, 4  ;;  %v388_v41 = vshll.u32 %v5369_v26, 16  ;;  %v5401_v49 = vld [vmem:[%s5340_s25 + $0x20] sm:$0x1]  ;;  %v5418_v4 = vld [vmem:[%s5340_s25 + $0x24] sm:$0xf] }
  0x1b   : > { %4563 = vmatprep.subr.bf16.mxu0 %v5147_v8  ;;  %v5398_v44 = vcombine.low %v5363_v22, %v5366_v25  ;;  %v374_v46 = vrot.slane %v372_v34, 5  ;;  %v380_v47 = vrot.slane %v378_v35, 5  ;;  %v384_v48 = vrot.slane %v382_v36, 4  ;;  %v5433_v15 = vld [vmem:[%s5340_s25 + $0x2c] sm:$0x1]  ;;  %v5246_v38 = vld [vmem:[%s6425_s1 + $0x138] sm:$0xff]  }
  0x1c   : > { %v352_v45 = vrot.slane %v351_v33, 4  ;;  %v362_v50 = vrot.slane %v361_v39, 4  ;;  %v390_v51 = vrot.slane %v388_v41, 5  ;;  %v393_v52 = vshrl.u32 %v5391_v42, 16  ;;  %v5438_v23 = vld [vmem:[%s5340_s25 + $0x30] sm:$0xf] }
  0x1d   : > { %4372 = vmatpush3.bf16.msra.mxu1 %v5146_v7  ;;  %v396_v53 = vshll.u32 %v5391_v42, 16  ;;  %v375_v56 = vor.u32 %v374_v46, %v371_v40  ;;  %v385_v57 = vor.u32 %v384_v48, %v380_v47  ;;  %v402_v58 = vshll.u32 %v5394_v43, 16  ;;  %v5443_v31 = vld [vmem:[%s5340_s25 + $0x34] sm:$0xf]  ;;  %v5159_v35 = vld [vmem:[%s6425_s1 + $0x8] sm:$0xff]  }
  0x1e   : > { %4564 = vmatpush3.bf16.msra.mxu0 %v5147_v8  ;;  %4373 = vmatprep.subr.bf16.mxu1 %v5148_v9  ;;  %v357_v55 = vsel %vm5385_vm2, %v352_v45, %v356_v28  ;;  %v367_v59 = vsel %vm5385_vm2, %v362_v50, %v366_v30  ;;  %v395_v60 = vrot.slane %v393_v52, 4  ;;  %v406_v62 = vshrl.u32 %v5394_v43, 16  ;;  %v5452_v36 = vld [vmem:[%s5340_s25 + $0x38] sm:$0x1] }
  0x1f   : > { %4565 = vmatprep.subr.bf16.mxu0 %v5149_v10  ;;  %v398_v61 = vrot.slane %v396_v53, 5  ;;  %v3793_v63 = vcombine.low %v357_v55, %v367_v59  ;;  %v376_v0 = vrot.slane %v375_v56, 4  ;;  %v386_v1 = vrot.slane %v385_v57, 4  ;;  %v5467_v59 = vld [vmem:[%s5340_s25 + $0x3c] sm:$0xf] }
  0x20   : > { %v404_v3 = vrot.slane %v402_v58, 5  ;;  %v408_v6 = vrot.slane %v406_v62, 4  ;;  %v412_v7 = vshll.u32 %v5401_v49, 16  ;;  %v1361_v8 = vrot.slane %v5401_v49, 5 }
  0x21   : > { %4374 = vmatpush3.bf16.msra.mxu1 %v5148_v9  ;;  %v399_v5 = vor.u32 %v398_v61, %v395_v60  ;;  %v5157_v9 = vld [vmem:[%s6425_s1 + $0x140] sm:$0xff]   ;;  %4381 = vmatprep.mubr.bf16.mxu1 %v3793_v63  ;;  %v417_v16 = vshrl.u32 %v5418_v4, 16  ;;  %v420_v17 = vshll.u32 %v5418_v4, 16  ;;  %v436_v34 = vshll.u32 %v5433_v15, 16  ;;  %v5162_v60 = vld [vmem:[%s6425_s1 + $0x10] sm:$0xff]  }
  0x22   : > { %4566 = vmatpush3.bf16.msra.mxu0 %v5149_v10  ;;  %4375 = vmatprep.subr.bf16.mxu1 %v5150_v11  ;;  %v5426_v10 = vld [vmem:[%s5340_s25 + $0x28] sm:$0xf]  ;;  %v409_v20 = vor.u32 %v408_v6, %v404_v3  ;;  %v414_v21 = vrot.slane %v412_v7, 5  ;;  %v444_v45 = vshll.u32 %v5438_v23, 16  ;;  %v454_v57 = vshrl.u32 %v5443_v31, 16 }
  0x23   : > { %4567 = vmatprep.subr.bf16.mxu0 %v5151_v12  ;;  %v400_v19 = vrot.slane %v399_v5, 4  ;;  %v419_v24 = vrot.slane %v417_v16, 4  ;;  %v422_v28 = vrot.slane %v420_v17, 5  ;;  %v426_v29 = vshll.u32 %v5426_v10, 16  ;;  %v5160_v17 = vld [vmem:[%s6425_s1 + $0x150] sm:$0xff]  }
  0x24   : > { %v430_v30 = vshrl.u32 %v5426_v10, 16  ;;  %v410_v33 = vrot.slane %v409_v20, 4  ;;  %v438_v48 = vrot.slane %v436_v34, 5  ;;  %v446_v55 = vrot.slane %v444_v45, 5  ;;  %v5507_v34 = vld [vmem:[%s5340_s25 + $0x50] sm:$0x1] }
  0x25   : > { %4376 = vmatpush3.bf16.msra.mxu1 %v5150_v11  ;;  %v381_v11 = vsel %vm5385_vm2, %v376_v0, %v380_v47  ;;  %v423_v39 = vor.u32 %v422_v28, %v419_v24  ;;  %v428_v40 = vrot.slane %v426_v29, 5  ;;  %v5158_v47 = vld [vmem:[%s6425_s1 + $0x148] sm:$0xff]   ;;  %v460_v58 = vshll.u32 %v5452_v36, 16 }
  0x26   : > { %4568 = vmatpush3.bf16.msra.mxu0 %v5151_v12  ;;  %4377 = vmatprep.subr.bf16.mxu1 %v5152_v18  ;;  %v391_v12 = vsel %vm5385_vm2, %v386_v1, %v390_v51  ;;  %v432_v41 = vrot.slane %v430_v30, 4  ;;  %v415_v46 = vsel %vm5385_vm2, %v410_v33, %v414_v21  ;;  %v450_v51 = vshll.u32 %v5443_v31, 16  ;;  %v5481_v1 = vld [vmem:[%s5340_s25 + $0x40] sm:$0xf]  ;;  %v5498_v28 = vld [vmem:[%s5340_s25 + $0x48] sm:$0xf] }
  0x27   : > { %4569 = vmatprep.subr.bf16.mxu0 %v5153_v32  ;;  %v424_v53 = vrot.slane %v423_v39, 4  ;;  %v5474_v61 = vcombine.low %v5391_v42, %v5394_v43  ;;  %v456_v5 = vrot.slane %v454_v57, 4  ;;  %v462_v6 = vrot.slane %v460_v58, 5  ;;  %v5501_v29 = vld [vmem:[%s5340_s25 + $0x4c] sm:$0xf] }
  0x28   : > { %v452_v56 = vrot.slane %v450_v51, 5  ;;  %v468_v7 = vshll.u32 %v5467_v59, 16  ;;  %v498_v45 = vshll.u32 %v5501_v29, 16  ;;  %v502_v51 = vshrl.u32 %v5501_v29, 16 }
  0x29   : > { %4378 = vmatpush3.bf16.msra.mxu1 %v5152_v18  ;;  %v3794_v18 = vcombine.low %v381_v11, %v391_v12  ;;  %v429_v62 = vsel %vm5385_vm2, %v424_v53, %v428_v40  ;;  %v474_v11 = vshll.u32 %v5481_v1, 16 }
  0x2a   : > { %4570 = vmatpush3.bf16.msra.mxu0 %v5153_v32  ;;  %4379 = vmatprep.subr.bf16.mxu1 %v5154_v37  ;;  %v405_v32 = vsel %vm5385_vm2, %v400_v19, %v404_v3  ;;  %v465_v3 = vshrl.u32 %v5467_v59, 16  ;;  %v457_v20 = vor.u32 %v456_v5, %v452_v56  ;;  %v470_v21 = vrot.slane %v468_v7, 5  ;;  %v5538_v7 = vld [vmem:[%s5340_s25 + $0x58] sm:$0xf] }
  0x2b   : > { %4571 = vmatprep.subr.bf16.mxu0 %v5155_v54  ;;  %4573 = vmatprep.mubr.bf16.mxu0 %v3794_v18  ;;  %v5462_v52 = vcombine.low %v405_v32, %v415_v46  ;;  %v476_v24 = vrot.slane %v474_v11, 5  ;;  %v5161_v46 = vld [vmem:[%s6425_s1 + $0x158] sm:$0xff]  }
  0x2c   : > { %v458_v39 = vrot.slane %v457_v20, 4  ;;  %v5541_v11 = vld [vmem:[%s5340_s25 + $0x5c] sm:$0x1] }
  0x2d   : > { %4380 = vmatpush3.bf16.msra.mxu1 %v5154_v37  ;;  %v441_v37 = vshrl.u32 %v5438_v23, 16 }
  0x2e   : > { %4572 = vmatpush3.bf16.msra.mxu0 %v5155_v54  ;;  %4413 = vmatprep.subr.bf16.mxu1 %v5156_v2  ;;  %v433_v54 = vor.u32 %v432_v41, %v428_v40  ;;  %v492_v41 = vshll.u32 %v5498_v28, 16  ;;  %v463_v53 = vsel %vm5385_vm2, %v458_v39, %v462_v6  ;;  %v5535_v6 = vld [vmem:[%s5340_s25 + $0x54] sm:$0xf] }
  0x2f   : > { %4605 = vmatprep.subr.bf16.mxu0 %v5157_v9  ;;  %v443_v50 = vrot.slane %v441_v37, 4  ;;  %v5165_v37 = vld [vmem:[%s6425_s1 + $0x18] sm:$0xff]   ;;  %v513_v20 = vshrl.u32 %v5535_v6, 16 }
  0x30   : > { %4382 = vmatmul.mubr.bf16.vlgmr.msra.gmra.mrb[0].mxu1 %v3794_v18  ;;  %v434_v63 = vrot.slane %v433_v54, 4  ;;  %v478_v18 = vshrl.u32 %v5481_v1, 16 }
  0x31   : > { %4414 = vmatpush3.bf16.msra.mxu1 %v5156_v2  ;;  %4574 = vmatmul.mubr.bf16.vlgmr.msra.gmra.mrb[0].mxu0 %v5462_v52  ;;  %v447_v0 = vor.u32 %v446_v55, %v443_v50  ;;  %v5484_v2 = vld [vmem:[%s5340_s25 + $0x44] sm:$0x1]  ;;  %v494_v55 = vrot.slane %v492_v41, 5  ;;  %v526_v41 = vshrl.u32 %v5538_v7, 16 }
  0x32   : > { %4415 = vmatprep.subr.bf16.mxu1 %v5159_v35  ;;  %4385 = vmatprep.mubr.bf16.mxu1 %v5462_v52  ;;  %v439_v12 = vsel %vm5385_vm2, %v434_v63, %v438_v48  ;;  %v480_v32 = vrot.slane %v478_v18, 4  ;;  %v484_v33 = vshll.u32 %v5484_v2, 16  ;;  %v508_v63 = vshll.u32 %v5507_v34, 16 }
  0x33   : > { %4606 = vmatpush3.bf16.msra.mxu0 %v5157_v9  ;;  %v448_v16 = vrot.slane %v447_v0, 4  ;;  %v467_v9 = vrot.slane %v465_v3, 4  ;;  %v5495_v19 = vcombine.low %v429_v62, %v439_v12  ;;  %v504_v62 = vrot.slane %v502_v51, 4  ;;  %v5163_v0 = vld [vmem:[%s6425_s1 + $0x160] sm:$0xff]   ;;  %v5575_v51 = vld [vmem:[%s5340_s25 + $0x68] sm:$0x1] }
  0x34   : > { %4607 = vmatprep.subr.bf16.mxu0 %v5158_v47  ;;  %v481_v48 = vor.u32 %v480_v32, %v476_v24  ;;  %v486_v50 = vrot.slane %v484_v33, 5  ;;  %v5168_v3 = vld [vmem:[%s6425_s1 + $0x20] sm:$0xff]   ;;  %v5545_v12 = vcombine.low %v5418_v4, %v5426_v10  ;;  %v510_v18 = vrot.slane %v508_v63, 5 }
  0x35   : > { %4416 = vmatpush3.bf16.msra.mxu1 %v5159_v35  ;;  %6449 = vst [vmem:[#allocation3_spill] sm:$0xff] %v5495_v19  ;;  %v453_v30 = vsel %vm5385_vm2, %v448_v16, %v452_v56  ;;  %v489_v35 = vshrl.u32 %v5498_v28, 16  ;;  %4577 = vmatprep.mubr.bf16.mxu0 %v5495_v19  ;;  %v471_v40 = vor.u32 %v470_v21, %v467_v9  ;;  %v500_v56 = vrot.slane %v498_v45, 5  ;;  %v5561_v33 = vld [vmem:[%s5340_s25 + $0x60] sm:$0xf] }
  0x36   : > { %4417 = vmatprep.subr.bf16.mxu1 %v5162_v60  ;;  %v5523_v57 = vcombine.low %v453_v30, %v463_v53  ;;  %v482_v58 = vrot.slane %v481_v48, 4  ;;  %v5549_v16 = vcombine.low %v5438_v23, %v5443_v31  ;;  %v516_v30 = vshll.u32 %v5535_v6, 16  ;;  %v5569_v48 = vld [vmem:[%s5340_s25 + $0x64] sm:$0xf] }
  0x37   : > { %4608 = vmatpush3.bf16.msra.mxu0 %v5158_v47  ;;  %v491_v47 = vrot.slane %v489_v35, 4  ;;  %v472_v54 = vrot.slane %v471_v40, 4  ;;  %v505_v9 = vor.u32 %v504_v62, %v500_v56  ;;  %v522_v32 = vshll.u32 %v5538_v7, 16  ;;  %v5170_v35 = vld [vmem:[%s6425_s1 + $0x28] sm:$0xff]  }
  0x38   : > { %4386 = vmatmul.mubr.bf16.gmra.mrb[4].mxu1 %v5495_v19  ;;  %4609 = vmatprep.subr.bf16.mxu0 %v5160_v17  ;;  %6450 = vst [vmem:[#allocation4_spill] sm:$0xff] %v5523_v57  ;;  %v515_v40 = vrot.slane %v513_v20, 4  ;;  %v532_v45 = vshll.u32 %v5541_v11, 16  ;;  %v537_v53 = vshrl.u32 %v5561_v33, 16  ;;  %v556_v20 = vshll.u32 %v5575_v51, 16 }
  0x39   : > { %4418 = vmatpush3.bf16.msra.mxu1 %v5162_v60  ;;  %v477_v5 = vsel %vm5385_vm2, %v472_v54, %v476_v24  ;;  %v495_v60 = vor.u32 %v494_v55, %v491_v47  ;;  %4578 = vmatmul.mubr.bf16.gmra.mrb[4].mxu0 %v5523_v57  ;;  %v506_v39 = vrot.slane %v505_v9, 4  ;;  %v524_v47 = vrot.slane %v522_v32, 5 }
  0x3a   : > { %4419 = vmatprep.subr.bf16.mxu1 %v5165_v37  ;;  %4389 = vmatprep.mubr.bf16.mxu1 %v5523_v57  ;;  %v528_v55 = vrot.slane %v526_v41, 4  ;;  %v5603_v41 = vld [vmem:[%s5340_s25 + $0x6c] sm:$0xf] }
  0x3b   : > { %4610 = vmatpush3.bf16.msra.mxu0 %v5160_v17  ;;  %v487_v17 = vsel %vm5385_vm2, %v482_v58, %v486_v50  ;;  %v496_v24 = vrot.slane %v495_v60, 4  ;;  %v511_v54 = vsel %vm5385_vm2, %v506_v39, %v510_v18  ;;  %v534_v58 = vrot.slane %v532_v45, 5 }
  0x3c   : > { %4611 = vmatprep.subr.bf16.mxu0 %v5161_v46  ;;  %v5556_v21 = vcombine.low %v477_v5, %v487_v17  ;;  %v539_v5 = vrot.slane %v537_v53, 4  ;;  %v546_v60 = vshll.u32 %v5569_v48, 16  ;;  %v529_v17 = vor.u32 %v528_v55, %v524_v47 }
  0x3d   : > { %4420 = vmatpush3.bf16.msra.mxu1 %v5165_v37  ;;  %v501_v50 = vsel %vm5385_vm2, %v496_v24, %v500_v56  ;;  %v518_v37 = vrot.slane %v516_v30, 5  ;;  %v540_v56 = vshll.u32 %v5561_v33, 16  ;;  %v550_v18 = vshrl.u32 %v5569_v48, 16  ;;  %v5172_v30 = vld [vmem:[%s6425_s1 + $0x30] sm:$0xff]  }
  0x3e   : > { %6451 = vst [vmem:[#allocation5_spill] sm:$0xff] %v5556_v21  ;;  %4421 = vmatprep.subr.bf16.mxu1 %v5168_v3  ;;  %4581 = vmatprep.mubr.bf16.mxu0 %v5556_v21  ;;  %v5585_v62 = vcombine.low %v501_v50, %v511_v54  ;;  %v548_v32 = vrot.slane %v546_v60, 5  ;;  %v3842_v39 = vrot.slane %v5363_v22, 9  ;;  %v530_v45 = vrot.slane %v529_v17, 4  ;;  %v5610_v54 = vld [vmem:[%s5340_s25 + $0x70] sm:$0xf] }
  0x3f   : > { %4612 = vmatpush3.bf16.msra.mxu0 %v5161_v46  ;;  %v5164_v46 = vld [vmem:[%s6425_s1 + $0x168] sm:$0xff]   ;;  %v519_v63 = vor.u32 %v518_v37, %v515_v40  ;;  %v542_v9 = vrot.slane %v540_v56, 5  ;;  %v1351_v40 = vrot.slane %v5366_v25, 5  ;;  %v552_v37 = vrot.slane %v550_v18, 4  ;;  %v3623_v24 = vld [vmem:[%s6428_s4 + $0x10] sm:$0xff] }
  0x40   : > { %4390 = vmatmul.mubr.bf16.gmra.mrb[8].mxu1 %v5556_v21  ;;  %4613 = vmatprep.subr.bf16.mxu0 %v5163_v0  ;;  %6452 = vst [vmem:[#allocation6_spill] sm:$0xff] %v5585_v62  ;;  %v558_v53 = vrot.slane %v556_v20, 5  ;;  %v1354_v56 = vrot.slane %v5369_v26, 5  ;;  %v535_v60 = vsel %vm5385_vm2, %v530_v45, %v534_v58  ;;  %v570_v20 = vshll.u32 %v5610_v54, 16 }
  0x41   : > { %4422 = vmatpush3.bf16.msra.mxu1 %v5168_v3  ;;  %4393 = vmatprep.mubr.bf16.mxu1 %v5585_v62  ;;  %v520_v3 = vrot.slane %v519_v63, 4  ;;  %v543_v50 = vor.u32 %v542_v9, %v539_v5  ;;  %v1352_v25 = vsel %vm5592_vm5, %v3842_v39, %v1351_v40  ;;  %v1353_v55 = vrot.slane %v1351_v40, 4  ;;  %v5618_v63 = vld [vmem:[%s5340_s25 + $0x74] sm:$0x1]  ;;  %v5174_v5 = vld [vmem:[%s6425_s1 + $0x38] sm:$0xff]  }
  0x42   : > { %4423 = vmatprep.subr.bf16.mxu1 %v5170_v35  ;;  %4582 = vmatmul.mubr.bf16.gmra.mrb[8].mxu0 %v5585_v62  ;;  %v553_v9 = vor.u32 %v552_v37, %v548_v32  ;;  %v572_v37 = vrot.slane %v570_v20, 5  ;;  %v1372_v21 = vrot.slane %v5443_v31, 5 }
  0x43   : > { %4614 = vmatpush3.bf16.msra.mxu0 %v5163_v0  ;;  %v5166_v0 = vld [vmem:[%s6425_s1 + $0x170] sm:$0xff]   ;;  %v525_v22 = vsel %vm5385_vm2, %v520_v3, %v524_v47  ;;  %v544_v17 = vrot.slane %v543_v50, 4  ;;  %v561_v47 = vshrl.u32 %v5603_v41, 16  ;;  %v1355_v26 = vsel %vm5592_vm5, %v1353_v55, %v1354_v56  ;;  %v5633_v3 = vld [vmem:[%s5340_s25 + $0x78] sm:$0xf] }
  0x44   : > { %4615 = vmatprep.subr.bf16.mxu0 %v5164_v46  ;;  %v5626_v18 = vcombine.low %v525_v22, %v535_v60  ;;  %v554_v39 = vrot.slane %v553_v9, 4  ;;  %v5640_v40 = vcombine.low %v1352_v25, %v1355_v26  ;;  %v574_v22 = vshrl.u32 %v5610_v54, 16  ;;  %v5647_v55 = vld [vmem:[%s5340_s25 + $0x7c] sm:$0xf] }
  0x45   : > { %4424 = vmatpush3.bf16.msra.mxu1 %v5170_v35  ;;  %v564_v35 = vshll.u32 %v5603_v41, 16  ;;  %v549_v58 = vsel %vm5385_vm2, %v544_v17, %v548_v32  ;;  %v563_v45 = vrot.slane %v561_v47, 4  ;;  %v580_v32 = vshll.u32 %v5618_v63, 16  ;;  %v5654_v17 = vld [vmem:[%s5340_s25 + $0x80] sm:$0x1] }
  0x46   : > { %4425 = vmatprep.subr.bf16.mxu1 %v5172_v30  ;;  %6455 = vst [vmem:[#allocation7_spill] sm:$0xff] %v5626_v18  ;;  %4585 = vmatprep.mubr.bf16.mxu0 %v5626_v18  ;;  %v559_v56 = vsel %vm5385_vm2, %v554_v39, %v558_v53  ;;  %v3843_v60 = vrot.slane %v5391_v42, 9  ;;  %v1358_v25 = vrot.slane %v5394_v43, 5  ;;  %v585_v9 = vshrl.u32 %v5633_v3, 16  ;;  %v5662_v53 = vld [vmem:[%s6425_s1 + $0x80] sm:$0xff]  }
  0x47   : > { %4616 = vmatpush3.bf16.msra.mxu0 %v5164_v46  ;;  %v5167_v46 = vld [vmem:[%s6425_s1 + $0x178] sm:$0xff]   ;;  %v566_v50 = vrot.slane %v564_v35, 5  ;;  %v5657_v47 = vcombine.low %v549_v58, %v559_v56  ;;  %v576_v35 = vrot.slane %v574_v22, 4  ;;  %v582_v20 = vrot.slane %v580_v32, 5  ;;  %v5671_v39 = vld [vmem:[%s5340_s25 + $0x84] sm:$0xf] }
  0x48   : > { %4617 = vmatprep.subr.bf16.mxu0 %v5166_v0  ;;  %4394 = vmatmul.mubr.bf16.gmra.mrb[12].mxu1 %v5626_v18  ;;  %v1359_v42 = vsel %vm5592_vm5, %v3843_v60, %v1358_v25  ;;  %v1360_v43 = vrot.slane %v1358_v25, 4  ;;  %v587_v58 = vrot.slane %v585_v9, 4  ;;  %v594_v22 = vshll.u32 %v5647_v55, 16 }
  0x49   : > { %4426 = vmatpush3.bf16.msra.mxu1 %v5172_v30  ;;  %6456 = vst [vmem:[#allocation8_spill] sm:$0xff] %v5657_v47  ;;  %v567_v26 = vor.u32 %v566_v50, %v563_v45  ;;  %v5169_v30 = vld [vmem:[%s6425_s1 + $0x180] sm:$0xff]   ;;  %4397 = vmatprep.mubr.bf16.mxu1 %v5657_v47  ;;  %v577_v50 = vor.u32 %v576_v35, %v572_v37  ;;  %v598_v32 = vshrl.u32 %v5647_v55, 16  ;;  %v604_v25 = vshll.u32 %v5654_v17, 16 }
  0x4a   : > { %4427 = vmatprep.subr.bf16.mxu1 %v5174_v5  ;;  %4586 = vmatmul.mubr.bf16.gmra.mrb[12].mxu0 %v5657_v47  ;;  %v1362_v56 = vsel %vm5592_vm5, %v1360_v43, %v1361_v8  ;;  %v3844_v9 = vrot.slane %v5418_v4, 9  ;;  %v596_v47 = vrot.slane %v594_v22, 5  ;;  %v5691_v4 = vld [vmem:[%s5340_s25 + $0x88] sm:$0xf] }
  0x4b   : > { %4618 = vmatpush3.bf16.msra.mxu0 %v5166_v0  ;;  %v588_v0 = vshll.u32 %v5633_v3, 16  ;;  %v568_v45 = vrot.slane %v567_v26, 4  ;;  %4621 = vmatprep.mubr.bf16.mxu0 %v5640_v40  ;;  %v578_v35 = vrot.slane %v577_v50, 4  ;;  %v5686_v27 = vcombine.low %v1359_v42, %v1362_v56 }
  0x4c   : > { %4619 = vmatprep.subr.bf16.mxu0 %v5167_v46  ;;  %v600_v8 = vrot.slane %v598_v32, 4  ;;  %v606_v43 = vrot.slane %v604_v25, 5  ;;  %v609_v42 = vshrl.u32 %v5671_v39, 16  ;;  %v5171_v32 = vld [vmem:[%s6425_s1 + $0x188] sm:$0xff]   ;;  %v5710_v25 = vld [vmem:[%s5340_s25 + $0x90] sm:$0xf] }
  0x4d   : > { %v590_v60 = vrot.slane %v588_v0, 5  ;;  %4428 = vmatpush3.bf16.msra.mxu1 %v5174_v5  ;;  %v573_v26 = vsel %vm5385_vm2, %v568_v45, %v572_v37  ;;  %v1365_v0 = vrot.slane %v5426_v10, 5  ;;  %v583_v5 = vsel %vm5385_vm2, %v578_v35, %v582_v20  ;;  %v5697_v37 = vld [vmem:[%s5340_s25 + $0x8c] sm:$0x1]  ;;  %v5713_v35 = vld [vmem:[%s5340_s25 + $0x94] sm:$0xf] }
  0x4e   : > { %4461 = vmatprep.subr.bf16.mxu1 %v5662_v53  ;;  %v612_v45 = vshll.u32 %v5671_v39, 16  ;;  %v601_v22 = vor.u32 %v600_v8, %v596_v47  ;;  %v611_v56 = vrot.slane %v609_v42, 4  ;;  %v628_v8 = vshll.u32 %v5697_v37, 16 }
  0x4f   : > { %4620 = vmatpush3.bf16.msra.mxu0 %v5167_v46  ;;  %v591_v49 = vor.u32 %v590_v60, %v587_v58  ;;  %v1368_v46 = vrot.slane %v5433_v15, 5  ;;  %v5701_v58 = vcombine.low %v573_v26, %v583_v5  ;;  %v1366_v10 = vsel %vm5592_vm5, %v3844_v9, %v1365_v0 }
  0x50   : > { %4653 = vmatprep.subr.bf16.mxu0 %v5169_v30  ;;  %v1367_v20 = vrot.slane %v1365_v0, 4  ;;  %v614_v15 = vrot.slane %v612_v45, 5  ;;  %v618_v60 = vshll.u32 %v5691_v4, 16  ;;  %v622_v9 = vshrl.u32 %v5691_v4, 16 }
  0x51   : > { %6457 = vst [vmem:[#allocation9_spill] sm:$0xff] %v5701_v58  ;;  %v592_v50 = vrot.slane %v591_v49, 4  ;;  %4398 = vmatmul.mubr.bf16.gmra.mrb[16].mxu1 %v5701_v58  ;;  %v602_v49 = vrot.slane %v601_v22, 4  ;;  %v3845_v45 = vrot.slane %v5438_v23, 9  ;;  %v630_v22 = vrot.slane %v628_v8, 5  ;;  %v5173_v23 = vld [vmem:[%s6425_s1 + $0x190] sm:$0xff]  }
  0x52   : > { %4622 = vmatmul.mubr.bf16.vlgmr.msra.gmra.mrb[0].mxu0 %v5686_v27  ;;  %v1369_v0 = vsel %vm5592_vm5, %v1367_v20, %v1368_v46  ;;  %v615_v5 = vor.u32 %v614_v15, %v611_v56  ;;  %v620_v42 = vrot.slane %v618_v60, 5  ;;  %v1375_v46 = vrot.slane %v5452_v36, 5  ;;  %v5749_v60 = vld [vmem:[%s5340_s25 + $0x9c] sm:$0xf] }
  0x53   : > { %v597_v26 = vsel %vm5385_vm2, %v592_v50, %v596_v47  ;;  %4654 = vmatpush3.bf16.msra.mxu0 %v5169_v30  ;;  %v607_v58 = vsel %vm5385_vm2, %v602_v49, %v606_v43  ;;  %v5726_v47 = vcombine.low %v1366_v10, %v1369_v0  ;;  %v624_v50 = vrot.slane %v622_v9, 4  ;;  %v5737_v43 = vld [vmem:[%s5340_s25 + $0x98] sm:$0x1]  ;;  %v5752_v0 = vld [vmem:[%s5340_s25 + $0xa0] sm:$0xf] }
  0x54   : > { %v5728_v18 = vcombine.low %v597_v26, %v607_v58  ;;  %v616_v62 = vrot.slane %v615_v5, 4  ;;  %4655 = vmatprep.subr.bf16.mxu0 %v5171_v32  ;;  %v633_v58 = vshrl.u32 %v5710_v25, 16  ;;  %v636_v10 = vshll.u32 %v5710_v25, 16 }
  0x55   : > { %4625 = vmatprep.mubr.bf16.mxu0 %v5726_v47  ;;  %v625_v30 = vor.u32 %v624_v50, %v620_v42  ;;  %v642_v20 = vshll.u32 %v5713_v35, 16  ;;  %v1373_v36 = vsel %vm5592_vm5, %v3845_v45, %v1372_v21  ;;  %v1374_v56 = vrot.slane %v1372_v21, 4  ;;  %v5759_v21 = vld [vmem:[%s5340_s25 + $0xa4] sm:$0x1] }
  0x56   : > { %6458 = vst [vmem:[#allocation10_spill] sm:$0xff] %v5728_v18  ;;  %4401 = vmatprep.mubr.bf16.mxu1 %v5728_v18  ;;  %v621_v31 = vsel %vm5385_vm2, %v616_v62, %v620_v42  ;;  %v646_v15 = vshrl.u32 %v5713_v35, 16  ;;  %v635_v49 = vrot.slane %v633_v58, 4  ;;  %v638_v9 = vrot.slane %v636_v10, 5 }
  0x57   : > { %v626_v26 = vrot.slane %v625_v30, 4  ;;  %4656 = vmatpush3.bf16.msra.mxu0 %v5171_v32  ;;  %v644_v8 = vrot.slane %v642_v20, 5  ;;  %v1376_v5 = vsel %vm5592_vm5, %v1374_v56, %v1375_v46  ;;  %v652_v62 = vshll.u32 %v5737_v43, 16  ;;  %v5175_v46 = vld [vmem:[%s6425_s1 + $0x198] sm:$0xff]  }
  0x58   : > { %v648_v50 = vrot.slane %v646_v15, 4  ;;  %v3846_v42 = vrot.slane %v5467_v59, 9  ;;  %4657 = vmatprep.subr.bf16.mxu0 %v5173_v23  ;;  %v5763_v45 = vcombine.low %v1373_v36, %v1376_v5  ;;  %v639_v30 = vor.u32 %v638_v9, %v635_v49 }
  0x59   : > { %v631_v32 = vsel %vm5385_vm2, %v626_v26, %v630_v22  ;;  %v1379_v58 = vrot.slane %v5481_v1, 5  ;;  %v654_v59 = vrot.slane %v652_v62, 5  ;;  %v1382_v56 = vrot.slane %v5484_v2, 5  ;;  %v5777_v26 = vld [vmem:[%s5340_s25 + $0xa8] sm:$0xf] }
  0x5a   : > { %v5769_v10 = vcombine.low %v621_v31, %v631_v32  ;;  %v649_v20 = vor.u32 %v648_v50, %v644_v8  ;;  %4626 = vmatmul.mubr.bf16.gmra.mrb[4].mxu0 %v5763_v45  ;;  %v640_v15 = vrot.slane %v639_v30, 4  ;;  %v657_v1 = vshrl.u32 %v5749_v60, 16  ;;  %v5179_v31 = vld [vmem:[%s6425_s1 + $0x1a0] sm:$0xff]   ;;  %v5787_v50 = vld [vmem:[%s5340_s25 + $0xac] sm:$0xf] }
  0x5b   : > { %v1380_v22 = vsel %vm5592_vm5, %v3846_v42, %v1379_v58  ;;  %v1381_v36 = vrot.slane %v1379_v58, 4  ;;  %v660_v2 = vshll.u32 %v5749_v60, 16  ;;  %v666_v9 = vshll.u32 %v5752_v0, 16  ;;  %4658 = vmatpush3.bf16.msra.mxu0 %v5173_v23 }
  0x5c   : > { %6459 = vst [vmem:[#allocation11_spill] sm:$0xff] %v5769_v10  ;;  %4402 = vmatmul.mubr.bf16.gmra.mrb[20].mxu1 %v5769_v10  ;;  %v650_v49 = vrot.slane %v649_v20, 4  ;;  %v670_v5 = vshrl.u32 %v5752_v0, 16  ;;  %v645_v62 = vsel %vm5385_vm2, %v640_v15, %v644_v8  ;;  %v659_v32 = vrot.slane %v657_v1, 4  ;;  %4659 = vmatprep.subr.bf16.mxu0 %v5175_v46  ;;  %v5802_v15 = vld [vmem:[%s5340_s25 + $0xb0] sm:$0x1] }
  0x5d   : > { %v1383_v42 = vsel %vm5592_vm5, %v1381_v36, %v1382_v56  ;;  %v676_v30 = vshll.u32 %v5759_v21, 16  ;;  %v662_v10 = vrot.slane %v660_v2, 5  ;;  %v668_v18 = vrot.slane %v666_v9, 5 }
  0x5e   : > { %v655_v58 = vsel %vm5385_vm2, %v650_v49, %v654_v59  ;;  %v5796_v20 = vcombine.low %v1380_v22, %v1383_v42  ;;  %v672_v57 = vrot.slane %v670_v5, 4  ;;  %v3847_v8 = vrot.slane %v5498_v28, 9 }
  0x5f   : > { %v5798_v23 = vcombine.low %v645_v62, %v655_v58  ;;  %v678_v19 = vrot.slane %v676_v30, 5  ;;  %v663_v56 = vor.u32 %v662_v10, %v659_v32  ;;  %v1386_v36 = vrot.slane %v5501_v29, 5  ;;  %4660 = vmatpush3.bf16.msra.mxu0 %v5175_v46  ;;  %v5183_v29 = vld [vmem:[%s6425_s1 + $0x1a8] sm:$0xff]  }
  0x60   : > { %4629 = vmatprep.mubr.bf16.mxu0 %v5796_v20  ;;  %v1389_v1 = vrot.slane %v5507_v34, 5  ;;  %v681_v59 = vshrl.u32 %v5777_v26, 16  ;;  %v673_v22 = vor.u32 %v672_v57, %v668_v18  ;;  %v684_v49 = vshll.u32 %v5777_v26, 16  ;;  %4661 = vmatprep.subr.bf16.mxu0 %v5179_v31 }
  0x61   : > { %6460 = vst [vmem:[#allocation12_spill] sm:$0xff] %v5798_v23  ;;  %4405 = vmatprep.mubr.bf16.mxu1 %v5798_v23  ;;  %v690_v2 = vshll.u32 %v5787_v50, 16  ;;  %v694_v28 = vshrl.u32 %v5787_v50, 16  ;;  %v664_v10 = vrot.slane %v663_v56, 4  ;;  %v1387_v34 = vsel %vm5592_vm5, %v3847_v8, %v1386_v36  ;;  %v5824_v23 = vld [vmem:[%s5340_s25 + $0xb4] sm:$0xf] }
  0x62   : > { %v1388_v46 = vrot.slane %v1386_v36, 4  ;;  %v683_v9 = vrot.slane %v681_v59, 4  ;;  %v674_v57 = vrot.slane %v673_v22, 4  ;;  %v686_v5 = vrot.slane %v684_v49, 5  ;;  %v5831_v49 = vld [vmem:[%s5340_s25 + $0xb8] sm:$0xf] }
  0x63   : > { %v692_v62 = vrot.slane %v690_v2, 5  ;;  %v696_v42 = vrot.slane %v694_v28, 4  ;;  %v669_v32 = vsel %vm5385_vm2, %v664_v10, %v668_v18  ;;  %v700_v58 = vshll.u32 %v5802_v15, 16  ;;  %4662 = vmatpush3.bf16.msra.mxu0 %v5179_v31  ;;  %v5187_v18 = vld [vmem:[%s6425_s1 + $0x1b0] sm:$0xff]   ;;  %v5841_v28 = vld [vmem:[%s5340_s25 + $0xbc] sm:$0x1] }
  0x64   : > { %v1390_v30 = vsel %vm5592_vm5, %v1388_v46, %v1389_v1  ;;  %v3848_v56 = vrot.slane %v5535_v6, 9  ;;  %v679_v8 = vsel %vm5385_vm2, %v674_v57, %v678_v19  ;;  %v687_v59 = vor.u32 %v686_v5, %v683_v9  ;;  %4663 = vmatprep.subr.bf16.mxu0 %v5183_v29  ;;  %v5191_v5 = vld [vmem:[%s6425_s1 + $0x1b8] sm:$0xff]  }
  0x65   : > { %v5828_v36 = vcombine.low %v1387_v34, %v1390_v30  ;;  %v697_v22 = vor.u32 %v696_v42, %v692_v62  ;;  %v5836_v1 = vcombine.low %v669_v32, %v679_v8  ;;  %v702_v6 = vrot.slane %v700_v58, 5 }
  0x66   : > { %v1393_v2 = vrot.slane %v5538_v7, 5  ;;  %v1396_v31 = vrot.slane %v5541_v11, 5  ;;  %v688_v19 = vrot.slane %v687_v59, 4  ;;  %v705_v34 = vshrl.u32 %v5824_v23, 16 }
  0x67   : > { %6461 = vst [vmem:[#allocation13_spill] sm:$0xff] %v5836_v1  ;;  %4630 = vmatmul.mubr.bf16.gmra.mrb[8].mxu0 %v5828_v36  ;;  %v698_v10 = vrot.slane %v697_v22, 4  ;;  %v708_v46 = vshll.u32 %v5824_v23, 16  ;;  %4406 = vmatmul.mubr.bf16.gmra.mrb[24].mxu1 %v5836_v1  ;;  %v714_v7 = vshll.u32 %v5831_v49, 16  ;;  %v718_v11 = vshrl.u32 %v5831_v49, 16 }
  0x68   : > { %v1394_v9 = vsel %vm5592_vm5, %v3848_v56, %v1393_v2  ;;  %v1395_v57 = vrot.slane %v1393_v2, 4  ;;  %4664 = vmatpush3.bf16.msra.mxu0 %v5183_v29  ;;  %v693_v42 = vsel %vm5385_vm2, %v688_v19, %v692_v62  ;;  %v707_v30 = vrot.slane %v705_v34, 4 }
  0x69   : > { %v703_v32 = vsel %vm5385_vm2, %v698_v10, %v702_v6  ;;  %v710_v58 = vrot.slane %v708_v46, 5  ;;  %4665 = vmatprep.subr.bf16.mxu0 %v5187_v18  ;;  %v716_v59 = vrot.slane %v714_v7, 5  ;;  %v720_v29 = vrot.slane %v718_v11, 4 }
  0x6a   : > { %v5858_v56 = vcombine.low %v693_v42, %v703_v32  ;;  %v1397_v8 = vsel %vm5592_vm5, %v1395_v57, %v1396_v31  ;;  %v724_v1 = vshll.u32 %v5841_v28, 16  ;;  %v3849_v62 = vrot.slane %v5561_v33, 9  ;;  %v5873_v31 = vld [vmem:[%s6425_s1 + $0x1c0] sm:$0xff]  }
  0x6b   : > { %v5862_v22 = vcombine.low %v1394_v9, %v1397_v8  ;;  %v711_v2 = vor.u32 %v710_v58, %v707_v30  ;;  %v721_v6 = vor.u32 %v720_v29, %v716_v59  ;;  %v1400_v19 = vrot.slane %v5569_v48, 5 }
  0x6c   : > { %4409 = vmatprep.mubr.bf16.mxu1 %v5858_v56  ;;  %v1403_v10 = vrot.slane %v5575_v51, 5  ;;  %v3850_v34 = vrot.slane %v5603_v41, 9  ;;  %4666 = vmatpush3.bf16.msra.mxu0 %v5187_v18  ;;  %v726_v9 = vrot.slane %v724_v1, 5  ;;  %v1407_v57 = vrot.slane %v5610_v54, 5 }
  0x6d   : > { %4633 = vmatprep.mubr.bf16.mxu0 %v5862_v22  ;;  %v712_v46 = vrot.slane %v711_v2, 4  ;;  %v1410_v7 = vrot.slane %v5618_v63, 5  ;;  %4667 = vmatprep.subr.bf16.mxu0 %v5191_v5  ;;  %v722_v11 = vrot.slane %v721_v6, 4  ;;  %v1401_v51 = vsel %vm5592_vm5, %v3849_v62, %v1400_v19 }
  0x6e   : > { %v1402_v42 = vrot.slane %v1400_v19, 4  ;;  %v3851_v18 = vrot.slane %v5633_v3, 9  ;;  %v1408_v30 = vsel %vm5592_vm5, %v3850_v34, %v1407_v57  ;;  %v1409_v58 = vrot.slane %v1407_v57, 4 }
  0x6f   : > { %v717_v32 = vsel %vm5385_vm2, %v712_v46, %v716_v59  ;;  %v1414_v1 = vrot.slane %v5647_v55, 5  ;;  %v727_v63 = vsel %vm5385_vm2, %v722_v11, %v726_v9  ;;  %v1417_v29 = vrot.slane %v5654_v17, 5 }
  0x70   : > { %v1404_v8 = vsel %vm5592_vm5, %v1402_v42, %v1403_v10  ;;  %v3852_v2 = vrot.slane %v5671_v39, 9  ;;  %4668 = vmatpush3.bf16.msra.mxu0 %v5191_v5  ;;  %v5892_v62 = vcombine.low %v717_v32, %v727_v63  ;;  %v1411_v6 = vsel %vm5592_vm5, %v1409_v58, %v1410_v7  ;;  %v5182_v58 = vld [vmem:[%s6425_s1 + $0x88] sm:$0xff]  }
  0x71   : > { %v5894_v59 = vcombine.low %v1401_v51, %v1404_v8  ;;  %4701 = vmatprep.subr.bf16.mxu0 %v5873_v31  ;;  %v5899_v19 = vcombine.low %v1408_v30, %v1411_v6  ;;  %v1416_v34 = vrot.slane %v1414_v1, 4  ;;  %v1421_v46 = vrot.slane %v5691_v4, 5 }
  0x72   : > { %v1424_v10 = vrot.slane %v5697_v37, 5  ;;  %4410 = vmatmul.mubr.bf16.gmra.mrb[28].mxu1 %v5892_v62  ;;  %v6462_v17 = vcombine.low %v5349_v13, %v5352_v14  ;;  %v1415_v5 = vsel %vm5592_vm5, %v3851_v18, %v1414_v1  ;;  %v1428_v7 = vrot.slane %v5713_v35, 5 }
  0x73   : > { %4634 = vmatmul.mubr.bf16.gmra.mrb[12].mxu0 %v5894_v59  ;;  %v1418_v9 = vsel %vm5592_vm5, %v1416_v34, %v1417_v29  ;;  %v1423_v57 = vrot.slane %v1421_v46, 4  ;;  %v1435_v37 = vrot.slane %v5752_v0, 5  ;;  %v1422_v11 = vsel %vm5592_vm5, %v3852_v2, %v1421_v46 }
  0x74   : > { %4429 = vmatprep.mubr.bf16.mxu1 %v6462_v17  ;;  %4637 = vmatprep.mubr.bf16.mxu0 %v5899_v19  ;;  %v5919_v14 = vcombine.low %v1415_v5, %v1418_v9  ;;  %v3853_v51 = vrot.slane %v5710_v25, 9  ;;  %v1431_v42 = vrot.slane %v5737_v43, 5  ;;  %v1430_v18 = vrot.slane %v1428_v7, 4 }
  0x75   : > { %v1425_v13 = vsel %vm5592_vm5, %v1423_v57, %v1424_v10  ;;  %v3854_v32 = vrot.slane %v5749_v60, 9  ;;  %v1437_v1 = vrot.slane %v1435_v37, 4  ;;  %v1438_v63 = vrot.slane %v5759_v21, 5 }
  0x76   : > { %v5924_v30 = vcombine.low %v1422_v11, %v1425_v13  ;;  %v1429_v8 = vsel %vm5592_vm5, %v3853_v51, %v1428_v7  ;;  %v1442_v43 = vrot.slane %v5787_v50, 5  ;;  %v5937_v29 = vcombine.low %v5561_v33, %v5569_v48  ;;  %v5186_v48 = vld [vmem:[%s6425_s1 + $0x90] sm:$0xff]   ;;  %v321_v7 = vld [vmem:[%s5340_s25 + $0xc8] sm:$0x1]  ;;  %v5231_v11 = vld [vmem:[%s5340_s25 + $0x40] sm:$0xf] }
  0x77   : > { %v1432_v21 = vsel %vm5592_vm5, %v1430_v18, %v1431_v42  ;;  %v1436_v2 = vsel %vm5592_vm5, %v3854_v32, %v1435_v37  ;;  %v3855_v6 = vrot.slane %v5777_v26, 9  ;;  %v5948_v34 = vcombine.low %v5603_v41, %v5610_v54  ;;  %v5230_v37 = vld [vmem:[%s5340_s25 + $0x3c] sm:$0xf]  ;;  %v5232_v42 = vld [vmem:[%s5340_s25 + $0x48] sm:$0xf] }
  0x78   : > { %v1439_v33 = vsel %vm5592_vm5, %v1437_v1, %v1438_v63  ;;  %v5959_v46 = vcombine.low %v5633_v3, %v5647_v55  ;;  %v5963_v41 = vcombine.low %v5671_v39, %v5691_v4  ;;  %v5967_v54 = vcombine.low %v5710_v25, %v5713_v35  ;;  %v5987_v25 = vld [vmem:[%s5340_s25 + $0xc4] sm:$0xf]  ;;  %v5233_v18 = vld [vmem:[%s5340_s25 + $0x4c] sm:$0xf] }
  0x79   : > { %v5971_v10 = vcombine.low %v5749_v60, %v5752_v0  ;;  %v5975_v17 = vcombine.low %v5777_v26, %v5787_v50  ;;  %v5977_v5 = vcombine.low %v1429_v8, %v1432_v21  ;;  %v1444_v3 = vrot.slane %v1442_v43, 4  ;;  %v5190_v26 = vld [vmem:[%s6425_s1 + $0x98] sm:$0xff]  }
  0x7a   : > { %4430 = vmatmul.mubr.bf16.vlgmr.msra.gmra.mrb[0].mxu1 %v5398_v44  ;;  %v1445_v55 = vrot.slane %v5802_v15, 5  ;;  %v5982_v39 = vcombine.low %v5824_v23, %v5831_v49  ;;  %v5984_v4 = vcombine.low %v1436_v2, %v1439_v33  ;;  %v3856_v35 = vrot.slane %v5824_v23, 9  ;;  %v6001_v15 = vld [vmem:[%s5340_s25 + $0xc0] sm:$0xf] }
  0x7b   : > { %4638 = vmatmul.mubr.bf16.gmra.mrb[16].mxu0 %v5919_v14  ;;  %4462 = vmatpush3.bf16.msra.mxu1 %v5662_v53  ;;  %v1449_v53 = vrot.slane %v5831_v49, 5  ;;  %v1452_v0 = vrot.slane %v5841_v28, 5  ;;  %v1443_v50 = vsel %vm5592_vm5, %v3855_v6, %v1442_v43  ;;  %v2329_v49 = vrot.slane %v5987_v25, 5  ;;  %v5194_v28 = vld [vmem:[%s6425_s1 + $0xa0] sm:$0xff]  }
  0x7c   : > { %4433 = vmatprep.mubr.bf16.mxu1 %v5474_v61  ;;  %4641 = vmatprep.mubr.bf16.mxu0 %v5924_v30  ;;  %v1446_v23 = vsel %vm5592_vm5, %v1444_v3, %v1445_v55  ;;  %v6016_v13 = vcombine.low %v5230_v37, %v5231_v11  ;;  %v6022_v32 = vcombine.low %v5232_v42, %v5233_v18  ;;  %v2044_v1 = vshll.u32 %v6001_v15, 16  ;;  %v5198_v55 = vld [vmem:[%s6425_s1 + $0xa8] sm:$0xff]   ;;  %v5202_v37 = vld [vmem:[%s6425_s1 + $0xb0] sm:$0xff]   ;;  %v5235_v11 = vld [vmem:[%s5340_s25 + $0x58] sm:$0xf] }
  0x7d   : > { %4463 = vmatprep.subr.bf16.mxu1 %v5182_v58  ;;  %v1451_v60 = vrot.slane %v1449_v53, 4  ;;  %v1450_v9 = vsel %vm5592_vm5, %v3856_v35, %v1449_v53  ;;  %v6018_v51 = vcombine.low %v1443_v50, %v1446_v23  ;;  %v2050_v63 = vshll.u32 %v5987_v25, 16 }
  0x7e   : > { %v2054_v8 = vshrl.u32 %v5987_v25, 16  ;;  %v3947_v21 = vrot.slane %v6001_v15, 9  ;;  %v2331_v2 = vrot.slane %v2329_v49, 4  ;;  %v2332_v6 = vrot.slane %v321_v7, 5 }
  0x7f   : > { %4464 = vmatpush3.bf16.msra.mxu1 %v5182_v58  ;;  %v1453_v57 = vsel %vm5592_vm5, %v1451_v60, %v1452_v0  ;;  %v2041_v58 = vshrl.u32 %v6001_v15, 16  ;;  %v2052_v53 = vrot.slane %v2050_v63, 5  ;;  %v2060_v0 = vshll.u32 %v321_v7, 16  ;;  %v5234_v7 = vld [vmem:[%s5340_s25 + $0x54] sm:$0xf]  ;;  %v5208_v63 = vld [vmem:[%s6425_s1 + $0xc0] sm:$0xff]  }
  0x80   : > { %4465 = vmatprep.subr.bf16.mxu1 %v5186_v48  ;;  %v6028_v43 = vcombine.low %v1450_v9, %v1453_v57  ;;  %v2056_v3 = vrot.slane %v2054_v8, 4  ;;  %v2333_v50 = vsel %vm5592_vm5, %v2331_v2, %v2332_v6  ;;  %v6047_v42 = vcombine.low %v5234_v7, %v5235_v11  ;;  %v5199_v8 = vld [vmem:[%s6425_s1 + $0x1c8] sm:$0xff]   ;;  %v5207_v2 = vld [vmem:[%s6425_s1 + $0x1d8] sm:$0xff]   ;;  %v5212_v7 = vld [vmem:[%s6425_s1 + $0xd0] sm:$0xff]  }
  0x81   : > { %v2043_v33 = vrot.slane %v2041_v58, 4  ;;  %v2062_v57 = vrot.slane %v2060_v0, 5  ;;  %v5215_v11 = vld [vmem:[%s6425_s1 + $0xd8] sm:$0xff]  }
  0x82   : > { %4434 = vmatmul.mubr.bf16.gmra.mrb[4].mxu1 %v5545_v12  ;;  %v2057_v60 = vor.u32 %v2056_v3, %v2052_v53  ;;  %v5238_v3 = vld [vmem:[%s5340_s25] sm:$0xf] }
  0x83   : > { %4642 = vmatmul.mubr.bf16.gmra.mrb[20].mxu0 %v5977_v5  ;;  %4437 = vmatprep.mubr.bf16.mxu1 %v5549_v16 }
  0x84   : > { %4645 = vmatprep.mubr.bf16.mxu0 %v5984_v4  ;;  %4466 = vmatpush3.bf16.msra.mxu1 %v5186_v48  ;;  %v2046_v48 = vrot.slane %v2044_v1, 5  ;;  %v2058_v9 = vrot.slane %v2057_v60, 4  ;;  %v5206_v1 = vld [vmem:[%s6425_s1 + $0xb8] sm:$0xff]   ;;  %v5211_v60 = vld [vmem:[%s6425_s1 + $0x1e8] sm:$0xff]  }
  0x85   : > { %4467 = vmatprep.subr.bf16.mxu1 %v5190_v26 }
  0x86   : > { %v2047_v35 = vor.u32 %v2046_v48, %v2043_v33  ;;  %v5209_v33 = vld [vmem:[%s6425_s1 + $0x1e0] sm:$0xff]   ;;  %v5237_v48 = vld [vmem:[%s5340_s25 + $0x8] sm:$0x1] }
  0x88   : > { %4468 = vmatpush3.bf16.msra.mxu1 %v5190_v26  ;;  %v2330_v26 = vsel %vm5592_vm5, %v3947_v21, %v2329_v49  ;;  %v2048_v23 = vrot.slane %v2047_v35, 4  ;;  %v5203_v21 = vld [vmem:[%s6425_s1 + $0x1d0] sm:$0xff]  }
  0x89   : > { %4469 = vmatprep.subr.bf16.mxu1 %v5194_v28  ;;  %v6049_v18 = vcombine.low %v2330_v26, %v2333_v50  ;;  %v5213_v50 = vld [vmem:[%s6425_s1 + $0x1f0] sm:$0xff]  }
  0x8a   : > { %4438 = vmatmul.mubr.bf16.gmra.mrb[8].mxu1 %v6016_v13  ;;  %v2053_v49 = vsel %vm5385_vm2, %v2048_v23, %v2052_v53  ;;  %v1347_v53 = vrot.slane %v5237_v48, 5  ;;  %v6465_v48 = vld [vmem:[#allocation5_spill] sm:$0xff] }
  0x8b   : > { %4646 = vmatmul.mubr.bf16.gmra.mrb[24].mxu0 %v6018_v51  ;;  %4441 = vmatprep.mubr.bf16.mxu1 %v6022_v32 }
  0x8c   : > { %4649 = vmatprep.mubr.bf16.mxu0 %v6028_v43  ;;  %4470 = vmatpush3.bf16.msra.mxu1 %v5194_v28  ;;  %v2063_v28 = vsel %vm5385_vm2, %v2058_v9, %v2062_v57  ;;  %v5217_v9 = vld [vmem:[%s6425_s1 + $0x1f8] sm:$0xff]   ;;  %v5219_v57 = vld [vmem:[%s6425_s1 + $0x200] sm:$0xff]  }
  0x8d   : > { %4471 = vmatprep.subr.bf16.mxu1 %v5198_v55  ;;  %v6055_v58 = vcombine.low %v2053_v49, %v2063_v28  ;;  %v6136_v49 = vcombine.low %v6001_v15, %v5987_v25  ;;  %v5220_v28 = vld [vmem:[%s6425_s1 + $0xe8] sm:$0xff]   ;;  %v5222_v25 = vld [vmem:[%s6425_s1 + $0xf0] sm:$0xff]  }
  0x90   : > { %4472 = vmatpush3.bf16.msra.mxu1 %v5198_v55  ;;  %v3841_v55 = vrot.slane %v5238_v3, 9  ;;  %v5226_v3 = vld [vmem:[%s6425_s1 + $0x220] sm:$0xff]  }
  0x91   : > { %4473 = vmatprep.subr.bf16.mxu1 %v5202_v37 }
  0x92   : > { %4442 = vmatmul.mubr.bf16.gmra.mrb[12].mxu1 %v6047_v42 }
  0x93   : > { %4650 = vmatmul.mubr.bf16.gmra.mrb[28].mxu0 %v6049_v18  ;;  %4445 = vmatprep.mubr.bf16.mxu1 %v5937_v29 }
  0x94   : > { %4669 = vmatprep.mubr.bf16.mxu0 %v5474_v61  ;;  %4474 = vmatpush3.bf16.msra.mxu1 %v5202_v37  ;;  %v5210_v37 = vld [vmem:[%s6425_s1 + $0xc8] sm:$0xff]  }
  0x95   : > { %4475 = vmatprep.subr.bf16.mxu1 %v5206_v1 }
  0x98   : > { %4476 = vmatpush3.bf16.msra.mxu1 %v5206_v1  ;;  %v6146_v1 = vld [vmem:[%s5340_s25 + $0xcc] sm:$0xf] }
  0x99   : > { %4509 = vmatprep.subr.bf16.mxu1 %v5208_v63 }
  0x9a   : > { %4446 = vmatmul.mubr.bf16.gmra.mrb[16].mxu1 %v5948_v34 }
  0x9b   : > { %4670 = vmatmul.mubr.bf16.vlgmr.msra.gmra.mrb[0].mxu0 %v5545_v12  ;;  %4449 = vmatprep.mubr.bf16.mxu1 %v5959_v46 }
  0x9c   : > { %4702 = vmatpush3.bf16.msra.mxu0 %v5873_v31  ;;  %4673 = vmatprep.mubr.bf16.mxu0 %v5549_v16  ;;  %v5236_v31 = vld [vmem:[%s5340_s25 + $0x4] sm:$0xf] }
  0x9d   : > { %4703 = vmatprep.subr.bf16.mxu0 %v5199_v8  ;;  %v1344_v6 = vrot.slane %v5236_v31, 5  ;;  %v6463_v31 = vld [vmem:[#allocation3_spill] sm:$0xff] }
  0x9f   : > { %v1346_v35 = vrot.slane %v1344_v6, 4  ;;  %v1345_v0 = vsel %vm5592_vm5, %v3841_v55, %v1344_v6  ;;  %v5223_v6 = vld [vmem:[%s6425_s1 + $0x210] sm:$0xff]   ;;  %v5227_v55 = vld [vmem:[%s6425_s1 + $0x228] sm:$0xff]  }
  0xa0   : > { %4704 = vmatpush3.bf16.msra.mxu0 %v5199_v8  ;;  %v5224_v8 = vld [vmem:[%s6425_s1 + $0xf8] sm:$0xff]  }
  0xa1   : > { %4705 = vmatprep.subr.bf16.mxu0 %v5203_v21  ;;  %v1348_v26 = vsel %vm5592_vm5, %v1346_v35, %v1347_v53  ;;  %v6466_v53 = vld [vmem:[#allocation6_spill] sm:$0xff]  ;;  %v6467_v35 = vld [vmem:[#allocation7_spill] sm:$0xff] }
  0xa2   : > { %4450 = vmatmul.mubr.bf16.gmra.mrb[20].mxu1 %v5963_v41  ;;  %v3873_v23 = vcombine.low %v1345_v0, %v1348_v26  ;;  %v5228_v0 = vld [vmem:[%s6425_s1 + $0x230] sm:$0xff]   ;;  %v5229_v26 = vld [vmem:[%s6425_s1 + $0x238] sm:$0xff]  }
  0xa3   : > { %4674 = vmatmul.mubr.bf16.gmra.mrb[4].mxu0 %v6016_v13  ;;  %4453 = vmatprep.mubr.bf16.mxu1 %v5967_v54 }
  0xa4   : > { %4677 = vmatprep.mubr.bf16.mxu0 %v6022_v32  ;;  %4706 = vmatpush3.bf16.msra.mxu0 %v5203_v21  ;;  %v5221_v21 = vld [vmem:[%s6425_s1 + $0x208] sm:$0xff]  }
  0xa5   : > { %4707 = vmatprep.subr.bf16.mxu0 %v5207_v2 }
  0xa8   : > { %4708 = vmatpush3.bf16.msra.mxu0 %v5207_v2  ;;  %v5239_v2 = vld [vmem:[%s6425_s1 + $0x100] sm:$0xff]  }
  0xa9   : > { %4709 = vmatprep.subr.bf16.mxu0 %v5209_v33 }
  0xaa   : > { %4454 = vmatmul.mubr.bf16.gmra.mrb[24].mxu1 %v5971_v10 }
  0xab   : > { %4678 = vmatmul.mubr.bf16.gmra.mrb[8].mxu0 %v6047_v42  ;;  %4457 = vmatprep.mubr.bf16.mxu1 %v5975_v17 }
  0xac   : > { %4681 = vmatprep.mubr.bf16.mxu0 %v5937_v29  ;;  %4710 = vmatpush3.bf16.msra.mxu0 %v5209_v33  ;;  %v5225_v33 = vld [vmem:[%s6425_s1 + $0x218] sm:$0xff]  }
  0xad   : > { %4711 = vmatprep.subr.bf16.mxu0 %v5211_v60 }
  0xb0   : > { %4712 = vmatpush3.bf16.msra.mxu0 %v5211_v60  ;;  %v6468_v60 = vld [vmem:[#allocation8_spill] sm:$0xff] }
  0xb1   : > { %4713 = vmatprep.subr.bf16.mxu0 %v5213_v50 }
  0xb2   : > { %4458 = vmatmul.mubr.bf16.gmra.mrb[28].mxu1 %v5982_v39 }
  0xb3   : > { %4682 = vmatmul.mubr.bf16.gmra.mrb[12].mxu0 %v5948_v34  ;;  %4477 = vmatprep.mubr.bf16.mxu1 %v3873_v23  ;;  %v6470_v23 = vld [vmem:[#allocation10_spill] sm:$0xff] }
  0xb4   : > { %4685 = vmatprep.mubr.bf16.mxu0 %v5959_v46  ;;  %4714 = vmatpush3.bf16.msra.mxu0 %v5213_v50  ;;  %v6469_v50 = vld [vmem:[#allocation9_spill] sm:$0xff] }
  0xb5   : > { %4715 = vmatprep.subr.bf16.mxu0 %v5217_v9 }
  0xb8   : > { %4716 = vmatpush3.bf16.msra.mxu0 %v5217_v9  ;;  %v6471_v9 = vld [vmem:[#allocation11_spill] sm:$0xff] }
  0xb9   : > { %4749 = vmatprep.subr.bf16.mxu0 %v5219_v57 }
  0xba   : > { %4478 = vmatmul.mubr.bf16.vlgmr.msra.gmra.mrb[0].mxu1 %v5640_v40  ;;  %v5218_v40 = vld [vmem:[%s6425_s1 + $0xe0] sm:$0xff]  }
  0xbb   : > { %4686 = vmatmul.mubr.bf16.gmra.mrb[16].mxu0 %v5963_v41  ;;  %4510 = vmatpush3.bf16.msra.mxu1 %v5208_v63  ;;  %v6149_v63 = vld [vmem:[%s5340_s25 + $0xd0] sm:$0xf] }
  0xbc   : > { %4481 = vmatprep.mubr.bf16.mxu1 %v5686_v27  ;;  %4689 = vmatprep.mubr.bf16.mxu0 %v5967_v54  ;;  %v3989_v15 = vcombine.low %v6146_v1, %v6149_v63 }
  0xbd   : > { %4511 = vmatprep.subr.bf16.mxu1 %v5210_v37 }
  0xbf   : > { %4512 = vmatpush3.bf16.msra.mxu1 %v5210_v37  ;;  %v2864_v37 = vshll.u32 %v6146_v1, 16 }
  0xc0   : > { %4513 = vmatprep.subr.bf16.mxu1 %v5212_v7 }
  0xc2   : > { %4482 = vmatmul.mubr.bf16.gmra.mrb[4].mxu1 %v5726_v47 }
  0xc3   : > { %4690 = vmatmul.mubr.bf16.gmra.mrb[20].mxu0 %v5971_v10  ;;  %4485 = vmatprep.mubr.bf16.mxu1 %v5763_v45 }
  0xc4   : > { %4693 = vmatprep.mubr.bf16.mxu0 %v5975_v17  ;;  %4514 = vmatpush3.bf16.msra.mxu1 %v5212_v7  ;;  %v2874_v7 = vshrl.u32 %v6149_v63, 16 }
  0xc5   : > { %4515 = vmatprep.subr.bf16.mxu1 %v5215_v11 }
  0xc8   : > { %4516 = vmatpush3.bf16.msra.mxu1 %v5215_v11  ;;  %v6472_v11 = vld [vmem:[#allocation12_spill] sm:$0xff] }
  0xc9   : > { %4517 = vmatprep.subr.bf16.mxu1 %v5218_v40 }
  0xca   : > { %4486 = vmatmul.mubr.bf16.gmra.mrb[8].mxu1 %v5796_v20 }
  0xcb   : > { %4694 = vmatmul.mubr.bf16.gmra.mrb[24].mxu0 %v5982_v39  ;;  %4489 = vmatprep.mubr.bf16.mxu1 %v5828_v36 }
  0xcc   : > { %4697 = vmatprep.mubr.bf16.mxu0 %v6136_v49  ;;  %4518 = vmatpush3.bf16.msra.mxu1 %v5218_v40 }
  0xcd   : > { %4519 = vmatprep.subr.bf16.mxu1 %v5220_v28 }
  0xd0   : > { %4520 = vmatpush3.bf16.msra.mxu1 %v5220_v28  ;;  %v2866_v28 = vrot.slane %v2864_v37, 5 }
  0xd1   : > { %4521 = vmatprep.subr.bf16.mxu1 %v5222_v25 }
  0xd2   : > { %4490 = vmatmul.mubr.bf16.gmra.mrb[12].mxu1 %v5862_v22 }
  0xd3   : > { %4698 = vmatmul.mubr.bf16.gmra.mrb[28].mxu0 %v3989_v15  ;;  %4493 = vmatprep.mubr.bf16.mxu1 %v5894_v59  ;;  %v2876_v15 = vrot.slane %v2874_v7, 4 }
  0xd4   : > { %4717 = vmatprep.mubr.bf16.mxu0 %v5462_v52  ;;  %4522 = vmatpush3.bf16.msra.mxu1 %v5222_v25  ;;  %v6464_v52 = vld [vmem:[#allocation4_spill] sm:$0xff] }
  0xd5   : > { %4523 = vmatprep.subr.bf16.mxu1 %v5224_v8 }
  0xd8   : > { %4524 = vmatpush3.bf16.msra.mxu1 %v5224_v8  ;;  %v5241_v8 = vld [vmem:[%s6425_s1 + $0x110] sm:$0xff]  }
  0xd9   : > { %4856 = vmatprep.subr.bf16.mxu1 %v5239_v2 }
  0xda   : > { %4494 = vmatmul.mubr.bf16.gmra.mrb[16].mxu1 %v5899_v19 }
  0xdb   : > { %4718 = vmatmul.mubr.bf16.vlgmr.msra.gmra.mrb[0].mxu0 %v6463_v31  ;;  %4497 = vmatprep.mubr.bf16.mxu1 %v5919_v14 }
  0xdc   : > { %4750 = vmatpush3.bf16.msra.mxu0 %v5219_v57  ;;  %4721 = vmatprep.mubr.bf16.mxu0 %v6464_v52  ;;  %v2861_v57 = vshrl.u32 %v6146_v1, 16 }
  0xdd   : > { %4751 = vmatprep.subr.bf16.mxu0 %v5221_v21 }
  0xde   : > { %v2863_v40 = vrot.slane %v2861_v57, 4 }
  0xe0   : > { %4752 = vmatpush3.bf16.msra.mxu0 %v5221_v21  ;;  %v6473_v21 = vld [vmem:[#allocation13_spill] sm:$0xff] }
  0xe1   : > { %4753 = vmatprep.subr.bf16.mxu0 %v5223_v6 }
  0xe2   : > { %4498 = vmatmul.mubr.bf16.gmra.mrb[20].mxu1 %v5924_v30 }
  0xe3   : > { %4722 = vmatmul.mubr.bf16.gmra.mrb[4].mxu0 %v6465_v48  ;;  %4501 = vmatprep.mubr.bf16.mxu1 %v5977_v5 }
  0xe4   : > { %4725 = vmatprep.mubr.bf16.mxu0 %v6466_v53  ;;  %4754 = vmatpush3.bf16.msra.mxu0 %v5223_v6  ;;  %v5242_v6 = vld [vmem:[%s6425_s1 + $0x118] sm:$0xff]  }
  0xe5   : > { %4755 = vmatprep.subr.bf16.mxu0 %v5225_v33 }
  0xe8   : > { %4756 = vmatpush3.bf16.msra.mxu0 %v5225_v33 }
  0xe9   : > { %4757 = vmatprep.subr.bf16.mxu0 %v5226_v3 }
  0xea   : > { %4502 = vmatmul.mubr.bf16.gmra.mrb[24].mxu1 %v5984_v4 }
  0xeb   : > { %4726 = vmatmul.mubr.bf16.gmra.mrb[8].mxu0 %v6467_v35  ;;  %4505 = vmatprep.mubr.bf16.mxu1 %v6018_v51 }
  0xec   : > { %4729 = vmatprep.mubr.bf16.mxu0 %v6468_v60  ;;  %4758 = vmatpush3.bf16.msra.mxu0 %v5226_v3  ;;  %v5257_v60 = vmov 0.0  }
  0xed   : > { %4759 = vmatprep.subr.bf16.mxu0 %v5227_v55 }
  0xf0   : > { %4760 = vmatpush3.bf16.msra.mxu0 %v5227_v55  ;;  %v5244_v55 = vld [vmem:[%s6425_s1 + $0x128] sm:$0xff]  }
  0xf1   : > { %4761 = vmatprep.subr.bf16.mxu0 %v5228_v0 }
  0xf2   : > { %4506 = vmatmul.mubr.bf16.gmra.mrb[28].mxu1 %v6028_v43 }
  0xf3   : > { %4730 = vmatmul.mubr.bf16.gmra.mrb[12].mxu0 %v6469_v50  ;;  %4525 = vmatprep.mubr.bf16.mxu1 %v5398_v44  ;;  %v2870_v44 = vshll.u32 %v6149_v63, 16 }
  0xf4   : > { %4733 = vmatprep.mubr.bf16.mxu0 %v6470_v23  ;;  %4762 = vmatpush3.bf16.msra.mxu0 %v5228_v0 }
  0xf5   : > { %4763 = vmatprep.subr.bf16.mxu0 %v5229_v26  ;;  %v2872_v25 = vrot.slane %v2870_v44, 5 }
  0xf7   : > { %v2877_v31 = vor.u32 %v2876_v15, %v2872_v25 }
  0xf8   : > { %4764 = vmatpush3.bf16.msra.mxu0 %v5229_v26 }
  0xf9   : > { %v2878_v48 = vrot.slane %v2877_v31, 4  ;;  %v6360_v31 = vld [vmem:[%s6426_s2] ss:$0 sm:$0xff] }
  0xfa   : > { %4526 = vmatmul.mubr.bf16.vlgmr.msra.gmra.mrb[0].mxu1 %v5474_v61  ;;  %v5240_v61 = vld [vmem:[%s6425_s1 + $0x108] sm:$0xff]  }
  0xfb   : > { %4734 = vmatmul.mubr.bf16.gmra.mrb[16].mxu0 %v6471_v9  ;;  %4864 = vmatpush3.bf16.msra.mxu1 %v5239_v2  ;;  %v2867_v2 = vor.u32 %v2866_v28, %v2863_v40 }
  0xfc   : > { %4529 = vmatprep.mubr.bf16.mxu1 %v5545_v12  ;;  %4737 = vmatprep.mubr.bf16.mxu0 %v6472_v11  ;;  %v6217_v12 = vld [vmem:[%s5340_s25 + $0xd4] sm:$0x1] }
  0xfd   : > { %4857 = vmatprep.subr.bf16.mxu1 %v5240_v61  ;;  %v2880_v52 = vshll.u32 %v6217_v12, 16  ;;  %v2868_v33 = vrot.slane %v2867_v2, 4 }
  0xff   : > { %4865 = vmatpush3.bf16.msra.mxu1 %v5240_v61  ;;  %v2882_v53 = vrot.slane %v2880_v52, 5  ;;  %v4117_v52 = vld [vmem:[%s6354_s20 + $0x8] sm:$0xff]  }
 0x100   : > { %4858 = vmatprep.subr.bf16.mxu1 %v5241_v8 }
 0x101   : > { %v2883_v3 = vsel %vm5385_vm2, %v2878_v48, %v2882_v53 }
 0x102   : > { %4530 = vmatmul.mubr.bf16.gmra.mrb[4].mxu1 %v5549_v16  ;;  %v5243_v16 = vld [vmem:[%s6425_s1 + $0x120] sm:$0xff]  }
 0x103   : > { %4738 = vmatmul.mubr.bf16.gmra.mrb[20].mxu0 %v6473_v21  ;;  %4533 = vmatprep.mubr.bf16.mxu1 %v6016_v13  ;;  %v2873_v13 = vsel %vm5385_vm2, %v2868_v33, %v2872_v25 }
 0x104   : > { %4741 = vmatprep.mubr.bf16.mxu0 %v5858_v56  ;;  %4866 = vmatpush3.bf16.msra.mxu1 %v5241_v8  ;;  %v4014_v35 = vcombine.low %v2873_v13, %v2883_v3  ;;  %v4059_v3 = vunpack.c.l.bf16 %v4117_v52 }
 0x105   : > { %4859 = vmatprep.subr.bf16.mxu1 %v5242_v6 }
 0x108   : > { %4867 = vmatpush3.bf16.msra.mxu1 %v5242_v6 }
 0x109   : > { %4860 = vmatprep.subr.bf16.mxu1 %v5243_v16 }
 0x10a   : > { %4534 = vmatmul.mubr.bf16.gmra.mrb[8].mxu1 %v6022_v32  ;;  %v5245_v32 = vld [vmem:[%s6425_s1 + $0x130] sm:$0xff]  }
 0x10b   : > { %4742 = vmatmul.mubr.bf16.gmra.mrb[24].mxu0 %v5892_v62  ;;  %4537 = vmatprep.mubr.bf16.mxu1 %v6047_v42 }
 0x10c   : > { %4745 = vmatprep.mubr.bf16.mxu0 %v6055_v58  ;;  %4868 = vmatpush3.bf16.msra.mxu1 %v5243_v16 }
 0x10d   : > { %4861 = vmatprep.subr.bf16.mxu1 %v5244_v55 }
 0x110   : > { %4869 = vmatpush3.bf16.msra.mxu1 %v5244_v55 }
 0x111   : > { %4862 = vmatprep.subr.bf16.mxu1 %v5245_v32 }
 0x112   : > { %4538 = vmatmul.mubr.bf16.gmra.mrb[12].mxu1 %v5937_v29 }
 0x113   : > { %4746 = vmatmul.mubr.bf16.gmra.mrb[28].mxu0 %v4014_v35  ;;  %4541 = vmatprep.mubr.bf16.mxu1 %v5948_v34  ;;  %v3625_v34 = vld [vmem:[%s6428_s4 + $0x20] sm:$0xff] }
 0x114   : > { %4765 = vmatprep.mubr.bf16.mxu0 %v5686_v27  ;;  %4870 = vmatpush3.bf16.msra.mxu1 %v5245_v32  ;;  %v3149_v27 = vrot.slane %v6149_v63, 5  ;;  %v3636_v63 = vld [vmem:[%s6428_s4 + $0x78] sm:$0xff] }
 0x115   : > { %4863 = vmatprep.subr.bf16.mxu1 %v5246_v38 }
 0x118   : > { %4871 = vmatpush3.bf16.msra.mxu1 %v5246_v38 }
 0x11a   : > { %4542 = vmatmul.mubr.bf16.gmra.mrb[16].mxu1 %v5959_v46  ;;  %v3626_v46 = vld [vmem:[%s6428_s4 + $0x28] sm:$0xff] }
 0x11b   : > { %4766 = vmatmul.mubr.bf16.vlgmr.msra.gmra.mrb[0].mxu0 %v5726_v47  ;;  %4545 = vmatprep.mubr.bf16.mxu1 %v5963_v41  ;;  %v4023_v47 = vrot.slane %v6146_v1, 9  ;;  %v4839_v41 = vpack.c.bf16 %v3626_v46, %v3625_v34 }
 0x11c   : > { %4769 = vmatprep.mubr.bf16.mxu0 %v5763_v45  ;;  %v3151_v45 = vrot.slane %v3149_v27, 4 }
 0x122   : > { %4546 = vmatmul.mubr.bf16.gmra.mrb[20].mxu1 %v5967_v54  ;;  %v3627_v54 = vld [vmem:[%s6428_s4 + $0x30] sm:$0xff] }
 0x123   : > { %4770 = vmatmul.mubr.bf16.gmra.mrb[4].mxu0 %v5796_v20  ;;  %4549 = vmatprep.mubr.bf16.mxu1 %v5971_v10  ;;  %v3152_v20 = vrot.slane %v6217_v12, 5  ;;  %v3628_v10 = vld [vmem:[%s6428_s4 + $0x38] sm:$0xff] }
 0x124   : > { %4773 = vmatprep.mubr.bf16.mxu0 %v5828_v36  ;;  %v3150_v36 = vsel %vm5592_vm5, %v4023_v47, %v3149_v27 }
 0x12a   : > { %4550 = vmatmul.mubr.bf16.gmra.mrb[24].mxu1 %v5975_v17  ;;  %v4842_v17 = vpack.c.bf16 %v3628_v10, %v3627_v54 }
 0x12b   : > { %4774 = vmatmul.mubr.bf16.gmra.mrb[8].mxu0 %v5862_v22  ;;  %4553 = vmatprep.mubr.bf16.mxu1 %v5982_v39  ;;  %v3153_v22 = vsel %vm5592_vm5, %v3151_v45, %v3152_v20  ;;  %v3630_v39 = vld [vmem:[%s6428_s4 + $0x48] sm:$0xff]  ;;  %v4060_v45 = vunpack.c.h.bf16 %v4117_v52 }
 0x12c   : > { %4777 = vmatprep.mubr.bf16.mxu0 %v5894_v59  ;;  %v4040_v59 = vcombine.low %v3150_v36, %v3153_v22 }
 0x132   : > { %4554 = vmatmul.mubr.bf16.gmra.mrb[28].mxu1 %v6136_v49  ;;  %v3635_v49 = vld [vmem:[%s6428_s4 + $0x70] sm:$0xff] }
 0x133   : > { %4778 = vmatmul.mubr.bf16.gmra.mrb[12].mxu0 %v5899_v19  ;;  %4589 = vmatprep.mubr.bf16.mxu1 %v6469_v50  ;;  %v4854_v0 = vpack.c.bf16 %v3636_v63, %v3635_v49 }
 0x134   : > { %4781 = vmatprep.mubr.bf16.mxu0 %v5919_v14  ;;  %v5255_v14 = vmov 0.0|0.0  }
 0x135   : > { %4832 = vmatprep.subr.bf16.mxu1 %v5255_v14 }
 0x13a   : > { %4590 = vmatmul.mubr.bf16.vlgmr.msra.gmra.mrb[16].mxu1 %v6470_v23 }
 0x13b   : > { %4782 = vmatmul.mubr.bf16.gmra.mrb[16].mxu0 %v5924_v30  ;;  %4593 = vmatprep.mubr.bf16.mxu1 %v6471_v9  ;;  %v3624_v30 = vld [vmem:[%s6428_s4 + $0x18] sm:$0xff] }
 0x13c   : > { %4785 = vmatprep.mubr.bf16.mxu0 %v5977_v5  ;;  %v4836_v29 = vpack.c.bf16 %v3624_v30, %v3623_v24  ;;  %v3629_v5 = vld [vmem:[%s6428_s4 + $0x40] sm:$0xff] }
 0x142   : > { %4594 = vmatmul.mubr.bf16.gmra.mrb[20].mxu1 %v6472_v11 }
 0x143   : > { %4786 = vmatmul.mubr.bf16.gmra.mrb[20].mxu0 %v5984_v4  ;;  %4597 = vmatprep.mubr.bf16.mxu1 %v6473_v21  ;;  %v4845_v4 = vpack.c.bf16 %v3630_v39, %v3629_v5  ;;  %v4054_v21 = vld [vmem:[%s6354_s20] sm:$0xff]  }
 0x144   : > { %4789 = vmatprep.mubr.bf16.mxu0 %v6018_v51  ;;  %v3631_v51 = vld [vmem:[%s6428_s4 + $0x50] sm:$0xff]  ;;  %v4055_v53 = vunpack.c.l.bf16 %v4054_v21  ;;  %v4056_v27 = vunpack.c.h.bf16 %v4054_v21 }
 0x14a   : > { %4598 = vmatmul.mubr.bf16.gmra.mrb[24].mxu1 %v5858_v56  ;;  %v3621_v56 = vld [vmem:[%s6428_s4] sm:$0xff] }
 0x14b   : > { %4790 = vmatmul.mubr.bf16.gmra.mrb[24].mxu0 %v6028_v43  ;;  %4601 = vmatprep.mubr.bf16.mxu1 %v5892_v62  ;;  %v3622_v62 = vld [vmem:[%s6428_s4 + $0x8] sm:$0xff]  ;;  %v3632_v43 = vld [vmem:[%s6428_s4 + $0x58] sm:$0xff] }
 0x14c   : > { %4793 = vmatprep.mubr.bf16.mxu0 %v6049_v18  ;;  %v4833_v19 = vpack.c.bf16 %v3622_v62, %v3621_v56  ;;  %v4848_v42 = vpack.c.bf16 %v3632_v43, %v3631_v51  ;;  %v3633_v18 = vld [vmem:[%s6428_s4 + $0x60] sm:$0xff] }
 0x14e   : > { %4834 = vmatpush3.bf16.msra.mxu1 %v4833_v19  ;;  %v4119_v19 = vld [vmem:[%s6354_s20 + $0x18] sm:$0xff]  }
 0x14f   : > { %4835 = vmatprep.subr.bf16.mxu1 %v5255_v14  ;;  %v4068_v49 = vunpack.c.h.bf16 %v4119_v19 }
 0x152   : > { %4602 = vmatmul.mubr.bf16.gmra.mrb[28].mxu1 %v6055_v58  ;;  %v3634_v58 = vld [vmem:[%s6428_s4 + $0x68] sm:$0xff] }
 0x153   : > { %4794 = vmatmul.mubr.bf16.gmra.mrb[28].mxu0 %v4040_v59  ;;  %4837 = vmatpush3.bf16.msra.mxu1 %v4836_v29  ;;  %v4851_v1 = vpack.c.bf16 %v3634_v58, %v3633_v18  ;;  %v4118_v59 = vld [vmem:[%s6354_s20 + $0x10] sm:$0xff]  }
 0x154   : > { %4838 = vmatprep.subr.bf16.mxu1 %v5255_v14  ;;  %4829 = vmatprep.mubr.msk.f32.mxu1 %vm5256_vm6, %v5257_v60 }
 0x157   : > { %4840 = vmatpush3.bf16.msra.mxu1 %v4839_v41  ;;  %v4063_v41 = vunpack.c.l.bf16 %v4118_v59 }
 0x158   : > { %4841 = vmatprep.subr.bf16.mxu1 %v5255_v14 }
 0x15b   : > { %4843 = vmatpush3.bf16.msra.mxu1 %v4842_v17  ;;  %v4067_v17 = vunpack.c.l.bf16 %v4119_v19 }
 0x15c   : > { %4844 = vmatprep.subr.bf16.mxu1 %v5255_v14 }
 0x15f   : > { %4846 = vmatpush3.bf16.msra.mxu1 %v4845_v4  ;;  %v4064_v4 = vunpack.c.h.bf16 %v4118_v59 }
 0x160   : > { %4847 = vmatprep.subr.bf16.mxu1 %v5255_v14 }
 0x163   : > { %4849 = vmatpush3.bf16.msra.mxu1 %v4848_v42 }
 0x164   : > { %4850 = vmatprep.subr.bf16.mxu1 %v5255_v14 }
 0x167   : > { %4852 = vmatpush3.bf16.msra.mxu1 %v4851_v1 }
 0x168   : > { %4853 = vmatprep.subr.bf16.mxu1 %v5255_v14 }
 0x16b   : > { %4855 = vmatpush3.bf16.msra.mxu1 %v4854_v0 }
 0x1cd   : > { %v4527_v26 = vpop.f32.mrb[0].mxu1 }
 0x1ce   : > { %v1881_v50 = vpop.f32.mrb[1].mxu1 }
 0x1cf   : > { %v4528_v23 = vpop.f32.mrb[2].mxu1 }
 0x1d0   : > { %v1884_v9 = vpop.f32.mrb[3].mxu1 }
 0x1d5   : > { %v4531_v57 = vpop.f32.mrb[4].mxu1 }
 0x1d6   : > { %v1897_v37 = vpop.f32.mrb[5].mxu1 }
 0x1d7   : > { %v4532_v7 = vpop.f32.mrb[6].mxu1 }
 0x1d8   : > { %v1900_v44 = vpop.f32.mrb[7].mxu1 }
 0x1dd   : > { %v6334_v11 = vpop.f32.mrb[8].mxu1 }
 0x1de   : > { %v6336_v61 = vpop.f32.mrb[9].mxu1 }
 0x1df   : > { %v6338_v40 = vpop.f32.mrb[10].mxu1 }
 0x1e0   : > { %v6340_v28 = vpop.f32.mrb[11].mxu1 }
 0x1e5   : > { %v6342_v25 = vpop.f32.mrb[12].mxu1 }
 0x1e6   : > { %v6344_v15 = vpop.f32.mrb[13].mxu1 }
 0x1e7   : > { %v6347_v8 = vpop.f32.mrb[14].mxu1 }
 0x1e8   : > { %v6349_v12 = vpop.f32.mrb[15].mxu1 }
 0x1ee   : > { %v4767_v2 = vpop.f32.mrb[0].mxu0 }
 0x1ef   : > { %v4872_v6 = vadd.f32 %v4767_v2, %v4527_v26  ;;  %v3257_v33 = vpop.f32.mrb[1].mxu0  ;;  %v4120_v26 = vld [vmem:[%s6354_s20 + $0x20] sm:$0xff]  }
 0x1f0   : > { %v4873_v48 = vadd.f32 %v3257_v33, %v1881_v50  ;;  %v4768_v16 = vpop.f32.mrb[2].mxu0  ;;  %v4071_v52 = vunpack.c.l.bf16 %v4120_v26 }
 0x1f1   : > { %v3425_v13 = vadd.f32 %v4872_v6, %v6360_v31  ;;  %v4874_v55 = vadd.f32 %v4768_v16, %v4528_v23  ;;  %v3260_v35 = vpop.f32.mrb[3].mxu0 }
 0x1f2   : > { %v3423_v32 = vadd.f32 %v4873_v48, %v6360_v31  ;;  %v4875_v38 = vadd.f32 %v3260_v35, %v1884_v9  ;;  %v4072_v35 = vunpack.c.h.bf16 %v4120_v26 }
 0x1f3   : > { %v3426_v47 = vadd.f32 %v4874_v55, %v6360_v31  ;;  %v3521_v22 = vadd.f32 %v4059_v3, %v3425_v13 }
 0x1f4   : > { %v3519_v20 = vadd.f32 %v4055_v53, %v3423_v32  ;;  %v3424_v36 = vadd.f32 %v4875_v38, %v6360_v31 }
 0x1f5   : > { %v3522_v14 = vadd.f32 %v4060_v45, %v3426_v47  ;;  %v3553_v10 = vmax.f32 %v3521_v22, 0.0 }
 0x1f6   : > { %v3520_v56 = vadd.f32 %v4056_v27, %v3424_v36  ;;  %v4771_v62 = vpop.f32.mrb[4].mxu0  ;;  %v3551_v29 = vmax.f32 %v3519_v20, 0.0 }
 0x1f7   : > { %v4876_v24 = vadd.f32 %v4771_v62, %v4531_v57  ;;  %v3273_v30 = vpop.f32.mrb[5].mxu0  ;;  %v3554_v58 = vmax.f32 %v3522_v14, 0.0 }
 0x1f8   : > { %v3552_v34 = vmax.f32 %v3520_v56, 0.0  ;;  %v4877_v46 = vadd.f32 %v3273_v30, %v1897_v37  ;;  %v4772_v54 = vpop.f32.mrb[6].mxu0  ;;  %v4122_v56 = vld [vmem:[%s6354_s20 + $0x30] sm:$0xff]  }
 0x1f9   : > { %v4878_v5 = vadd.f32 %v4772_v54, %v4532_v7  ;;  %v3276_v39 = vpop.f32.mrb[7].mxu0  ;;  %v3429_v43 = vadd.f32 %v4876_v24, %v6360_v31  ;;  %v4121_v7 = vld [vmem:[%s6354_s20 + $0x28] sm:$0xff]   ;;  %v4123_v24 = vld [vmem:[%s6354_s20 + $0x38] sm:$0xff]   ;;  %v4079_v54 = vunpack.c.l.bf16 %v4122_v56 }
 0x1fa   : > { %v3583_v51 = vadd.f32 %v3552_v34, %v3551_v29  ;;  %v3427_v42 = vadd.f32 %v4877_v46, %v6360_v31  ;;  %v4879_v18 = vadd.f32 %v3276_v39, %v1900_v44  ;;  %v4075_v13 = vunpack.c.l.bf16 %v4121_v7 }
 0x1fb   : > { %v3430_v60 = vadd.f32 %v4878_v5, %v6360_v31  ;;  %v3525_v50 = vadd.f32 %v4067_v17, %v3429_v43  ;;  %v4076_v45 = vunpack.c.h.bf16 %v4121_v7  ;;  %v4083_v5 = vunpack.c.l.bf16 %v4123_v24 }
 0x1fc   : > { %v3584_v1 = vadd.f32 %v3583_v51, %v3553_v10  ;;  %v3523_v63 = vadd.f32 %v4063_v41, %v3427_v42  ;;  %v3428_v0 = vadd.f32 %v4879_v18, %v6360_v31  ;;  %v4080_v51 = vunpack.c.h.bf16 %v4122_v56 }
 0x1fd   : > { %v3526_v6 = vadd.f32 %v4068_v49, %v3430_v60  ;;  %v3557_v32 = vmax.f32 %v3525_v50, 0.0  ;;  %v4084_v49 = vunpack.c.h.bf16 %v4123_v24 }
 0x1fe   : > { %v3555_v23 = vmax.f32 %v3523_v63, 0.0  ;;  %v3585_v9 = vadd.f32 %v3584_v1, %v3554_v58  ;;  %v3524_v57 = vadd.f32 %v4064_v4, %v3428_v0  ;;  %v4775_v37 = vpop.f32.mrb[8].mxu0  ;;  %v4124_v0 = vld [vmem:[%s6354_s20 + $0x40] sm:$0xff]  }
 0x1ff   : > { %v4880_v21 = vadd.f32 %v4775_v37, %v6334_v11  ;;  %v3289_v2 = vpop.f32.mrb[9].mxu0  ;;  %v4125_v37 = vld [vmem:[%s6354_s20 + $0x48] sm:$0xff]  }
 0x200   : > { %v3586_v44 = vadd.f32 %v3585_v9, %v3555_v23  ;;  %v3556_v33 = vmax.f32 %v3524_v57, 0.0  ;;  %v4881_v48 = vadd.f32 %v3289_v2, %v6336_v61  ;;  %v4776_v53 = vpop.f32.mrb[10].mxu0  ;;  %v3558_v61 = vmax.f32 %v3526_v6, 0.0 }
 0x201   : > { %v3433_v16 = vadd.f32 %v4880_v21, %v6360_v31  ;;  %v4882_v3 = vadd.f32 %v4776_v53, %v6338_v40  ;;  %v3292_v55 = vpop.f32.mrb[11].mxu0 }
 0x202   : > { %v3587_v38 = vadd.f32 %v3586_v44, %v3556_v33  ;;  %v3431_v11 = vadd.f32 %v4881_v48, %v6360_v31  ;;  %v4883_v27 = vadd.f32 %v3292_v55, %v6340_v28 }
 0x203   : > { %v3434_v47 = vadd.f32 %v4882_v3, %v6360_v31  ;;  %v3529_v59 = vadd.f32 %v4075_v13, %v3433_v16  ;;  %v4091_v13 = vunpack.c.l.bf16 %v4125_v37 }
 0x204   : > { %v3588_v20 = vadd.f32 %v3587_v38, %v3557_v32  ;;  %v3527_v36 = vadd.f32 %v4071_v52, %v3431_v11  ;;  %v3432_v22 = vadd.f32 %v4883_v27, %v6360_v31  ;;  %v4088_v32 = vunpack.c.h.bf16 %v4124_v0 }
 0x205   : > { %v3530_v30 = vadd.f32 %v4076_v45, %v3434_v47  ;;  %v3561_v17 = vmax.f32 %v3529_v59, 0.0 }
 0x206   : > { %v3559_v40 = vmax.f32 %v3527_v36, 0.0  ;;  %v3589_v62 = vadd.f32 %v3588_v20, %v3558_v61  ;;  %v3528_v19 = vadd.f32 %v4072_v35, %v3432_v22  ;;  %v4779_v14 = vpop.f32.mrb[12].mxu0  ;;  %v4092_v61 = vunpack.c.h.bf16 %v4125_v37 }
 0x207   : > { %v4884_v29 = vadd.f32 %v4779_v14, %v6342_v25  ;;  %v3305_v34 = vpop.f32.mrb[13].mxu0  ;;  %v3562_v58 = vmax.f32 %v3530_v30, 0.0 }
 0x208   : > { %v3590_v28 = vadd.f32 %v3589_v62, %v3559_v40  ;;  %v3560_v46 = vmax.f32 %v3528_v19, 0.0  ;;  %v4885_v41 = vadd.f32 %v3305_v34, %v6344_v15  ;;  %v4780_v10 = vpop.f32.mrb[14].mxu0  ;;  %v4126_v40 = vld [vmem:[%s6354_s20 + $0x50] sm:$0xff]  }
 0x209   : > { %v4886_v39 = vadd.f32 %v4780_v10, %v6347_v8  ;;  %v3308_v4 = vpop.f32.mrb[15].mxu0  ;;  %v3437_v42 = vadd.f32 %v4884_v29, %v6360_v31  ;;  %v4127_v29 = vld [vmem:[%s6354_s20 + $0x58] sm:$0xff]  }
 0x20a   : > { %v3591_v43 = vadd.f32 %v3590_v28, %v3560_v46  ;;  %v3435_v25 = vadd.f32 %v4885_v41, %v6360_v31  ;;  %v4887_v18 = vadd.f32 %v3308_v4, %v6349_v12  ;;  %v4087_v12 = vunpack.c.l.bf16 %v4124_v0 }
 0x20b   : > { %v3438_v63 = vadd.f32 %v4886_v39, %v6360_v31  ;;  %v3533_v8 = vadd.f32 %v4083_v5, %v3437_v42  ;;  %v4095_v5 = vunpack.c.l.bf16 %v4126_v40  ;;  %v4100_v0 = vunpack.c.h.bf16 %v4127_v29 }
 0x20c   : > { %v3592_v15 = vadd.f32 %v3591_v43, %v3561_v17  ;;  %v3531_v1 = vadd.f32 %v4079_v54, %v3435_v25  ;;  %v3436_v60 = vadd.f32 %v4887_v18, %v6360_v31  ;;  %v4099_v43 = vunpack.c.l.bf16 %v4127_v29 }
 0x20d   : > { %v4591_v9 = vpop.f32.mrb[16].mxu1  ;;  %v3534_v44 = vadd.f32 %v4084_v49, %v3438_v63  ;;  %v3565_v38 = vmax.f32 %v3533_v8, 0.0 }
 0x20e   : > { %v3563_v26 = vmax.f32 %v3531_v1, 0.0  ;;  %v3593_v50 = vadd.f32 %v3592_v15, %v3562_v58  ;;  %v3532_v23 = vadd.f32 %v4080_v51, %v3436_v60  ;;  %v4783_v57 = vpop.f32.mrb[16].mxu0  ;;  %v2231_v21 = vpop.f32.mrb[17].mxu1  ;;  %v4096_v58 = vunpack.c.h.bf16 %v4126_v40 }
 0x20f   : > { %v4888_v7 = vadd.f32 %v4783_v57, %v4591_v9  ;;  %v3321_v2 = vpop.f32.mrb[17].mxu0  ;;  %v4592_v48 = vpop.f32.mrb[18].mxu1  ;;  %v3566_v20 = vmax.f32 %v3534_v44, 0.0  ;;  %v4128_v9 = vld [vmem:[%s6354_s20 + $0x60] sm:$0xff]  }
 0x210   : > { %v3594_v52 = vadd.f32 %v3593_v50, %v3563_v26  ;;  %v3564_v6 = vmax.f32 %v3532_v23, 0.0  ;;  %v4889_v33 = vadd.f32 %v3321_v2, %v2231_v21  ;;  %v4784_v53 = vpop.f32.mrb[18].mxu0  ;;  %v2234_v55 = vpop.f32.mrb[19].mxu1 }
 0x211   : > { %v3441_v16 = vadd.f32 %v4888_v7, %v6360_v31  ;;  %v4890_v3 = vadd.f32 %v4784_v53, %v4592_v48  ;;  %v3324_v35 = vpop.f32.mrb[19].mxu0  ;;  %v4103_v48 = vunpack.c.l.bf16 %v4128_v9 }
 0x212   : > { %v3595_v11 = vadd.f32 %v3594_v52, %v3564_v6  ;;  %v3439_v27 = vadd.f32 %v4889_v33, %v6360_v31  ;;  %v4891_v47 = vadd.f32 %v3324_v35, %v2234_v55  ;;  %v4129_v52 = vld [vmem:[%s6354_s20 + $0x68] sm:$0xff]  }
 0x213   : > { %v3442_v45 = vadd.f32 %v4890_v3, %v6360_v31  ;;  %v3537_v56 = vadd.f32 %v4091_v13, %v3441_v16 }
 0x214   : > { %v3596_v36 = vadd.f32 %v3595_v11, %v3565_v38  ;;  %v3535_v22 = vadd.f32 %v4087_v12, %v3439_v27  ;;  %v3440_v59 = vadd.f32 %v4891_v47, %v6360_v31  ;;  %v4107_v38 = vunpack.c.l.bf16 %v4129_v52 }
 0x215   : > { %v4595_v24 = vpop.f32.mrb[20].mxu1  ;;  %v3538_v34 = vadd.f32 %v4092_v61, %v3442_v45  ;;  %v3569_v51 = vmax.f32 %v3537_v56, 0.0  ;;  %v4104_v45 = vunpack.c.h.bf16 %v4128_v9  ;;  %v4108_v56 = vunpack.c.h.bf16 %v4129_v52 }
 0x216   : > { %v3567_v62 = vmax.f32 %v3535_v22, 0.0  ;;  %v3597_v19 = vadd.f32 %v3596_v36, %v3566_v20  ;;  %v3536_v14 = vadd.f32 %v4088_v32, %v3440_v59  ;;  %v4787_v30 = vpop.f32.mrb[20].mxu0  ;;  %v2247_v46 = vpop.f32.mrb[21].mxu1 }
 0x217   : > { %v4892_v28 = vadd.f32 %v4787_v30, %v4595_v24  ;;  %v3337_v41 = vpop.f32.mrb[21].mxu0  ;;  %v4596_v39 = vpop.f32.mrb[22].mxu1  ;;  %v3570_v60 = vmax.f32 %v3538_v34, 0.0  ;;  %v4130_v30 = vld [vmem:[%s6354_s20 + $0x70] sm:$0xff]  }
 0x218   : > { %v3598_v54 = vadd.f32 %v3597_v19, %v3567_v62  ;;  %v3568_v10 = vmax.f32 %v3536_v14, 0.0  ;;  %v4893_v17 = vadd.f32 %v3337_v41, %v2247_v46  ;;  %v4788_v4 = vpop.f32.mrb[22].mxu0  ;;  %v2250_v25 = vpop.f32.mrb[23].mxu1 }
 0x219   : > { %v4894_v42 = vadd.f32 %v4788_v4, %v4596_v39  ;;  %v3340_v18 = vpop.f32.mrb[23].mxu0  ;;  %v3445_v15 = vadd.f32 %v4892_v28, %v6360_v31 }
 0x21a   : > { %v3599_v49 = vadd.f32 %v3598_v54, %v3568_v10  ;;  %v3443_v1 = vadd.f32 %v4893_v17, %v6360_v31  ;;  %v4895_v63 = vadd.f32 %v3340_v18, %v2250_v25  ;;  %v4131_v54 = vld [vmem:[%s6354_s20 + $0x78] sm:$0xff]  }
 0x21b   : > { %v3446_v50 = vadd.f32 %v4894_v42, %v6360_v31  ;;  %v3541_v57 = vadd.f32 %v4099_v43, %v3445_v15  ;;  %v4111_v42 = vunpack.c.l.bf16 %v4130_v30  ;;  %v4116_v9 = vunpack.c.h.bf16 %v4131_v54 }
 0x21c   : > { %v3600_v8 = vadd.f32 %v3599_v49, %v3569_v51  ;;  %v3539_v26 = vadd.f32 %v4095_v5, %v3443_v1  ;;  %v3444_v23 = vadd.f32 %v4895_v63, %v6360_v31  ;;  %v4115_v49 = vunpack.c.l.bf16 %v4131_v54 }
 0x21d   : > { %v4599_v2 = vpop.f32.mrb[24].mxu1  ;;  %v3542_v16 = vadd.f32 %v4100_v0, %v3446_v50  ;;  %v3573_v61 = vmax.f32 %v3541_v57, 0.0 }
 0x21e   : > { %v3571_v37 = vmax.f32 %v3539_v26, 0.0  ;;  %v3601_v7 = vadd.f32 %v3600_v8, %v3570_v60  ;;  %v3540_v21 = vadd.f32 %v4096_v58, %v3444_v23  ;;  %v4791_v12 = vpop.f32.mrb[24].mxu0  ;;  %v2263_v6 = vpop.f32.mrb[25].mxu1  ;;  %v4112_v60 = vunpack.c.h.bf16 %v4130_v30 }
 0x21f   : > { %v4896_v44 = vadd.f32 %v4791_v12, %v4599_v2  ;;  %v3353_v33 = vpop.f32.mrb[25].mxu0  ;;  %v4600_v55 = vpop.f32.mrb[26].mxu1  ;;  %v3574_v40 = vmax.f32 %v3542_v16, 0.0 }
 0x220   : > { %v3602_v53 = vadd.f32 %v3601_v7, %v3571_v37  ;;  %v3572_v13 = vmax.f32 %v3540_v21, 0.0  ;;  %v4897_v3 = vadd.f32 %v3353_v33, %v2263_v6  ;;  %v4792_v35 = vpop.f32.mrb[26].mxu0  ;;  %v2266_v27 = vpop.f32.mrb[27].mxu1 }
 0x221   : > { %v3449_v32 = vadd.f32 %v4896_v44, %v6360_v31  ;;  %v4898_v11 = vadd.f32 %v4792_v35, %v4600_v55  ;;  %v3356_v47 = vpop.f32.mrb[27].mxu0 }
 0x222   : > { %v3603_v20 = vadd.f32 %v3602_v53, %v3572_v13  ;;  %v3447_v36 = vadd.f32 %v4897_v3, %v6360_v31  ;;  %v4899_v22 = vadd.f32 %v3356_v47, %v2266_v27 }
 0x223   : > { %v3450_v59 = vadd.f32 %v4898_v11, %v6360_v31  ;;  %v3545_v24 = vadd.f32 %v4107_v38, %v3449_v32 }
 0x224   : > { %v3604_v62 = vadd.f32 %v3603_v20, %v3573_v61  ;;  %v3543_v19 = vadd.f32 %v4103_v48, %v3447_v36  ;;  %v3448_v14 = vadd.f32 %v4899_v22, %v6360_v31 }
 0x225   : > { %v4603_v46 = vpop.f32.mrb[28].mxu1  ;;  %v3546_v10 = vadd.f32 %v4108_v56, %v3450_v59  ;;  %v3577_v58 = vmax.f32 %v3545_v24, 0.0 }
 0x226   : > { %v3575_v29 = vmax.f32 %v3543_v19, 0.0  ;;  %v3605_v34 = vadd.f32 %v3604_v62, %v3574_v40  ;;  %v3544_v28 = vadd.f32 %v4104_v45, %v3448_v14  ;;  %v4795_v41 = vpop.f32.mrb[28].mxu0  ;;  %v2279_v5 = vpop.f32.mrb[29].mxu1  ;;  %v3637_v45 = vld [vmem:[#allocation2] sm:$0x1] }
 0x227   : > { %v4900_v17 = vadd.f32 %v4795_v41, %v4603_v46  ;;  %v3369_v39 = vpop.f32.mrb[29].mxu0  ;;  %v4604_v25 = vpop.f32.mrb[30].mxu1  ;;  %v3578_v23 = vmax.f32 %v3546_v10, 0.0 }
 0x228   : > { %v3606_v4 = vadd.f32 %v3605_v34, %v3575_v29  ;;  %v3576_v51 = vmax.f32 %v3544_v28, 0.0  ;;  %v4901_v43 = vadd.f32 %v3369_v39, %v2279_v5  ;;  %v4796_v18 = vpop.f32.mrb[30].mxu0  ;;  %v2282_v1 = vpop.f32.mrb[31].mxu1 }
 0x229   : > { %v4902_v15 = vadd.f32 %v4796_v18, %v4604_v25  ;;  %v3372_v63 = vpop.f32.mrb[31].mxu0  ;;  %v3453_v8 = vadd.f32 %v4900_v17, %v6360_v31 }
 0x22a   : > { %v3607_v0 = vadd.f32 %v3606_v4, %v3576_v51  ;;  %v3451_v26 = vadd.f32 %v4901_v43, %v6360_v31  ;;  %v4903_v50 = vadd.f32 %v3372_v63, %v2282_v1 }
 0x22b   : > { %v3454_v7 = vadd.f32 %v4902_v15, %v6360_v31  ;;  %v3549_v2 = vadd.f32 %v4115_v49, %v3453_v8 }
 0x22c   : > { %v3608_v57 = vadd.f32 %v3607_v0, %v3577_v58  ;;  %v3547_v37 = vadd.f32 %v4111_v42, %v3451_v26  ;;  %v3452_v21 = vadd.f32 %v4903_v50, %v6360_v31 }
 0x22d   : > { %v3550_v33 = vadd.f32 %v4116_v9, %v3454_v7  ;;  %v3581_v53 = vmax.f32 %v3549_v2, 0.0 }
 0x22e   : > { %v3579_v12 = vmax.f32 %v3547_v37, 0.0  ;;  %v3609_v52 = vadd.f32 %v3608_v57, %v3578_v23  ;;  %v3548_v44 = vadd.f32 %v4112_v60, %v3452_v21 }
 0x22f   : > { %v3582_v13 = vmax.f32 %v3550_v33, 0.0 }
 0x230   : > { %v3610_v6 = vadd.f32 %v3609_v52, %v3579_v12  ;;  %v3580_v48 = vmax.f32 %v3548_v44, 0.0 }
 0x232   : > { %v3611_v16 = vadd.f32 %v3610_v6, %v3580_v48 }
 0x234   : > { %v3612_v3 = vadd.f32 %v3611_v16, %v3581_v53 }
 0x236   : > { %v3613_v55 = vadd.f32 %v3612_v3, %v3582_v13 }
 0x238   : > { %v3614_v35 = vrot.slane %v3613_v55, 4 }
 0x23a   : > { %v3615_v32 = vadd.f32 %v3614_v35, %v3613_v55 }
 0x23c   : > { %v3616_v38 = vrot.slane %v3615_v32, 2 }
 0x23e   : > { %v3617_v11 = vadd.f32 %v3616_v38, %v3615_v32 }
 0x240   : > { %v3618_v27 = vrot.slane %v3617_v11, 1 }
 0x242   : > { %v3619_v47 = vadd.f32 %v3618_v27, %v3617_v11 }
 0x244   : > { %v3620_v31 = vmul.f32 0.00390625, %v3619_v47 }
 0x246   : > { %4830 = vmatmul.mubr.f32.vlgmr.msra.gmra.mrb[32].mxu1 %v3620_v31 }
 0x319   : > { %v3704_v61 = vpop.f32.mrb[32].mxu1 }
 0x31a   : > { %v3705_v20 = vadd.f32 %v3704_v61, %v3637_v45  ;;  %v4831_v36 = vpop.f32.mrb[33].mxu1 }
 0x31c   : > { %3709 = vst.msk [vmem:[%s269_s5] sm:$0x1] %vm3708_vm7, %v3705_v20 }
 0x31d PF: > { %s18_s23 = sadd.s32 1, %s5253_s23  }
 0x31e   : > { %p15_p4 = scmp.ge.s32.totalorder %s18_s23, 4  }
 0x320   :  { %17 = sbr.rel (!%p15_p4) target bundleno = 3 (0x3), region = 85 }

// kernel: seti_model_forward.4
= control target key start
LH: loop header
LB: loop body
LE: loop exit
PB: predicated region body
PF: predicated region fallthrough
CT: control target
= control target key end

     0   :  { %s5110_s12 = smov 0   ;;  %s6174_s0 = inlined_call_operand.vmem [shape: bf16[2,18,18,128], index: 0, kind: input, shape index: {}]   ;;  %s6175_s1 = inlined_call_operand.vmem [shape: bf16[9,128,128], index: 1, kind: input, shape index: {}]   ;;  %s6176_s2 = inlined_call_operand.vmem [shape: f32[1,128], index: 2, kind: input, shape index: {}]   ;;  %s6177_s3 = inlined_call_operand.vmem [shape: bf16[2,16,16,128], index: 3, kind: output, shape index: {}]  }
   0x1 LB: > { %s3603_s13 = sadd.s32 4294967295, %s5088_s12   ;;  %p3607_p0 = scmp.ge.s32.totalorder %s5088_s12, 1  ;;  %s5088_s12 = sphi %s5110_s12, %s13_s12  }
   0x2   : > { %p137_p1 = scmp.lt.s32.totalorder %s5088_s12, 3 }
   0x4   : > { %p138_p2 = pnand %p3607_p0, %p137_p1 }
   0x6   : > { %141 = sbr.rel (%p138_p2) target bundleno = 561 (0x231), region = 32 }
   0xd   : > { %v4975_v0 = vld [vmem:[%s6175_s1 + $0x40] sm:$0xff]   ;;  %p161_p3 = scmp.lt.s32.totalorder %s3603_s13, 1  ;;  %v4977_v2 = vld [vmem:[%s6175_s1 + $0x48] sm:$0xff]   ;;  %v4979_v4 = vld [vmem:[%s6175_s1 + $0x50] sm:$0xff]   ;;  %vm242_vm0 = vsmask.f32 3328 }
   0xe   : > { %v4976_v1 = vld [vmem:[%s6175_s1 + $0x100] sm:$0xff]   ;;  %4262 = vmatprep.subr.bf16.mxu1 %v4975_v0  ;;  %v4978_v3 = vld [vmem:[%s6175_s1 + $0x108] sm:$0xff]   ;;  %v4980_v5 = vld [vmem:[%s6175_s1 + $0x110] sm:$0xff]   ;;  %vm243_vm1 = vsmask.f32 7440  ;;  %vm1240_vm3 = vcmask 1042432  }
   0xf   : > { %4454 = vmatprep.subr.bf16.mxu0 %v4976_v1  ;;  %4263 = vmatpush3.bf16.msra.mxu1 %v4975_v0  ;;  %s6222_s13 = smov (!%p161_p3, %s3603_s13), 1  ;;  %v4981_v6 = vld [vmem:[%s6175_s1 + $0x58] sm:$0xff]   ;;  %v4983_v8 = vld [vmem:[%s6175_s1 + $0x60] sm:$0xff]   ;;  %v4985_v10 = vld [vmem:[%s6175_s1 + $0x68] sm:$0xff]   ;;  %vm1241_vm4 = vcmask 1046532  }
  0x10   : > { %4455 = vmatpush3.bf16.msra.mxu0 %v4976_v1  ;;  %4264 = vmatprep.subr.bf16.mxu1 %v4977_v2  ;;  %v4982_v7 = vld [vmem:[%s6175_s1 + $0x118] sm:$0xff]   ;;  %s4966_s30 = smul.u32 216, %s6222_s13  ;;  %v4984_v9 = vld [vmem:[%s6175_s1 + $0x120] sm:$0xff]   ;;  %v4986_v11 = vld [vmem:[%s6175_s1 + $0x128] sm:$0xff]   ;;  %s3918_s7 = sshll.u32 %s6222_s13, 7 }
  0x11   : > { %4456 = vmatprep.subr.bf16.mxu0 %v4978_v3  ;;  %v4987_v17 = vld [vmem:[%s6175_s1 + $0x70] sm:$0xff]   ;;  %v4989_v36 = vld [vmem:[%s6175_s1 + $0x78] sm:$0xff]   ;;  %vm5199_vm2 = vmor %vm242_vm0, %vm243_vm1  ;;  %s6121_s11 = scalar_lea.vmem %s6177_s3, %s3918_s7 }
  0x12   : > { %s5154_s10 = scalar_lea.vmem %s6174_s0, %s4966_s30  ;;  %v4988_v31 = vld [vmem:[%s6175_s1 + $0x130] sm:$0xff]   ;;  %v4990_v53 = vld [vmem:[%s6175_s1 + $0x138] sm:$0xff]   ;;  %v4991_v1 = vld [vmem:[%s6175_s1] sm:$0xff]  }
  0x13   : > { %4265 = vmatpush3.bf16.msra.mxu1 %v4977_v2  ;;  %v5163_v12 = vld [vmem:[%s5154_s10] sm:$0xf]  ;;  %v5166_v13 = vld [vmem:[%s5154_s10 + $0x4] sm:$0xf]  ;;  %v174_v14 = vld [vmem:[%s5154_s10 + $0x8] sm:$0x1] }
  0x14   : > { %4457 = vmatpush3.bf16.msra.mxu0 %v4978_v3  ;;  %4266 = vmatprep.subr.bf16.mxu1 %v4979_v4  ;;  %v246_v15 = vshrl.u32 %v5163_v12, 16  ;;  %v249_v16 = vshll.u32 %v5163_v12, 16  ;;  %v255_v18 = vshll.u32 %v5166_v13, 16  ;;  %v259_v19 = vshrl.u32 %v5166_v13, 16  ;;  %v5177_v21 = vld [vmem:[%s5154_s10 + $0xc] sm:$0xf]  ;;  %vm5406_vm5 = vmor %vm1240_vm3, %vm1241_vm4 }
  0x15   : > { %4458 = vmatprep.subr.bf16.mxu0 %v4980_v5  ;;  %v265_v20 = vshll.u32 %v174_v14, 16  ;;  %v5180_v24 = vld [vmem:[%s5154_s10 + $0x10] sm:$0xf]  ;;  %v5183_v25 = vld [vmem:[%s5154_s10 + $0x14] sm:$0x1]  ;;  %v270_v30 = vshrl.u32 %v5177_v21, 16 }
  0x16   : > { %v248_v22 = vrot.slane %v246_v15, 4  ;;  %v251_v23 = vrot.slane %v249_v16, 5  ;;  %v257_v27 = vrot.slane %v255_v18, 5  ;;  %v261_v28 = vrot.slane %v259_v19, 4  ;;  %v5205_v41 = vld [vmem:[%s5154_s10 + $0x18] sm:$0xf] }
  0x17   : > { %4267 = vmatpush3.bf16.msra.mxu1 %v4979_v4  ;;  %v267_v29 = vrot.slane %v265_v20, 5  ;;  %v273_v33 = vshll.u32 %v5177_v21, 16  ;;  %v279_v34 = vshll.u32 %v5180_v24, 16  ;;  %v283_v35 = vshrl.u32 %v5180_v24, 16  ;;  %v5208_v42 = vld [vmem:[%s5154_s10 + $0x1c] sm:$0xf] }
  0x18   : > { %4459 = vmatpush3.bf16.msra.mxu0 %v4980_v5  ;;  %4268 = vmatprep.subr.bf16.mxu1 %v4981_v6  ;;  %v252_v32 = vor.u32 %v251_v23, %v248_v22  ;;  %v262_v38 = vor.u32 %v261_v28, %v257_v27  ;;  %v272_v39 = vrot.slane %v270_v30, 4  ;;  %v289_v40 = vshll.u32 %v5183_v25, 16  ;;  %v5215_v48 = vld [vmem:[%s5154_s10 + $0x20] sm:$0x1]  ;;  %v5232_v3 = vld [vmem:[%s5154_s10 + $0x24] sm:$0xf] }
  0x19   : > { %4460 = vmatprep.subr.bf16.mxu0 %v4982_v7  ;;  %v5212_v43 = vcombine.low %v5177_v21, %v5180_v24  ;;  %v275_v45 = vrot.slane %v273_v33, 5  ;;  %v281_v46 = vrot.slane %v279_v34, 5  ;;  %v285_v47 = vrot.slane %v283_v35, 4  ;;  %v5247_v14 = vld [vmem:[%s5154_s10 + $0x2c] sm:$0x1]  ;;  %v5081_v37 = vld [vmem:[%s6175_s1 + $0x138] sm:$0xff]  }
  0x1a   : > { %v253_v44 = vrot.slane %v252_v32, 4  ;;  %v263_v49 = vrot.slane %v262_v38, 4  ;;  %v291_v50 = vrot.slane %v289_v40, 5  ;;  %v294_v51 = vshrl.u32 %v5205_v41, 16  ;;  %v5252_v22 = vld [vmem:[%s5154_s10 + $0x30] sm:$0xf] }
  0x1b   : > { %4269 = vmatpush3.bf16.msra.mxu1 %v4981_v6  ;;  %v297_v52 = vshll.u32 %v5205_v41, 16  ;;  %v276_v55 = vor.u32 %v275_v45, %v272_v39  ;;  %v286_v56 = vor.u32 %v285_v47, %v281_v46  ;;  %v303_v57 = vshll.u32 %v5208_v42, 16  ;;  %v5257_v30 = vld [vmem:[%s5154_s10 + $0x34] sm:$0xf]  ;;  %v4994_v34 = vld [vmem:[%s6175_s1 + $0x8] sm:$0xff]  }
  0x1c   : > { %4461 = vmatpush3.bf16.msra.mxu0 %v4982_v7  ;;  %4270 = vmatprep.subr.bf16.mxu1 %v4983_v8  ;;  %v258_v54 = vsel %vm5199_vm2, %v253_v44, %v257_v27  ;;  %v268_v58 = vsel %vm5199_vm2, %v263_v49, %v267_v29  ;;  %v296_v59 = vrot.slane %v294_v51, 4  ;;  %v307_v61 = vshrl.u32 %v5208_v42, 16  ;;  %v5266_v35 = vld [vmem:[%s5154_s10 + $0x38] sm:$0x1] }
  0x1d   : > { %4462 = vmatprep.subr.bf16.mxu0 %v4984_v9  ;;  %v299_v60 = vrot.slane %v297_v52, 5  ;;  %v3627_v62 = vcombine.low %v258_v54, %v268_v58  ;;  %v277_v63 = vrot.slane %v276_v55, 4  ;;  %v287_v0 = vrot.slane %v286_v56, 4  ;;  %v5281_v58 = vld [vmem:[%s5154_s10 + $0x3c] sm:$0xf] }
  0x1e   : > { %v305_v2 = vrot.slane %v303_v57, 5  ;;  %v309_v5 = vrot.slane %v307_v61, 4  ;;  %v313_v6 = vshll.u32 %v5215_v48, 16  ;;  %v1262_v7 = vrot.slane %v5215_v48, 5 }
  0x1f   : > { %4271 = vmatpush3.bf16.msra.mxu1 %v4983_v8  ;;  %v300_v4 = vor.u32 %v299_v60, %v296_v59  ;;  %v4992_v8 = vld [vmem:[%s6175_s1 + $0x140] sm:$0xff]   ;;  %4278 = vmatprep.mubr.bf16.mxu1 %v3627_v62  ;;  %v318_v15 = vshrl.u32 %v5232_v3, 16  ;;  %v321_v16 = vshll.u32 %v5232_v3, 16  ;;  %v337_v33 = vshll.u32 %v5247_v14, 16  ;;  %v4997_v59 = vld [vmem:[%s6175_s1 + $0x10] sm:$0xff]  }
  0x20   : > { %4463 = vmatpush3.bf16.msra.mxu0 %v4984_v9  ;;  %4272 = vmatprep.subr.bf16.mxu1 %v4985_v10  ;;  %v5240_v9 = vld [vmem:[%s5154_s10 + $0x28] sm:$0xf]  ;;  %v310_v19 = vor.u32 %v309_v5, %v305_v2  ;;  %v315_v20 = vrot.slane %v313_v6, 5  ;;  %v345_v44 = vshll.u32 %v5252_v22, 16  ;;  %v355_v56 = vshrl.u32 %v5257_v30, 16 }
  0x21   : > { %4464 = vmatprep.subr.bf16.mxu0 %v4986_v11  ;;  %v301_v18 = vrot.slane %v300_v4, 4  ;;  %v320_v23 = vrot.slane %v318_v15, 4  ;;  %v323_v27 = vrot.slane %v321_v16, 5  ;;  %v327_v28 = vshll.u32 %v5240_v9, 16  ;;  %v4995_v16 = vld [vmem:[%s6175_s1 + $0x150] sm:$0xff]  }
  0x22   : > { %v331_v29 = vshrl.u32 %v5240_v9, 16  ;;  %v311_v32 = vrot.slane %v310_v19, 4  ;;  %v339_v47 = vrot.slane %v337_v33, 5  ;;  %v347_v54 = vrot.slane %v345_v44, 5  ;;  %v5321_v33 = vld [vmem:[%s5154_s10 + $0x50] sm:$0x1] }
  0x23   : > { %4273 = vmatpush3.bf16.msra.mxu1 %v4985_v10  ;;  %v282_v10 = vsel %vm5199_vm2, %v277_v63, %v281_v46  ;;  %v324_v38 = vor.u32 %v323_v27, %v320_v23  ;;  %v329_v39 = vrot.slane %v327_v28, 5  ;;  %v4993_v46 = vld [vmem:[%s6175_s1 + $0x148] sm:$0xff]   ;;  %v361_v57 = vshll.u32 %v5266_v35, 16 }
  0x24   : > { %4465 = vmatpush3.bf16.msra.mxu0 %v4986_v11  ;;  %4274 = vmatprep.subr.bf16.mxu1 %v4987_v17  ;;  %v292_v11 = vsel %vm5199_vm2, %v287_v0, %v291_v50  ;;  %v333_v40 = vrot.slane %v331_v29, 4  ;;  %v316_v45 = vsel %vm5199_vm2, %v311_v32, %v315_v20  ;;  %v351_v50 = vshll.u32 %v5257_v30, 16  ;;  %v5295_v0 = vld [vmem:[%s5154_s10 + $0x40] sm:$0xf]  ;;  %v5312_v27 = vld [vmem:[%s5154_s10 + $0x48] sm:$0xf] }
  0x25   : > { %4466 = vmatprep.subr.bf16.mxu0 %v4988_v31  ;;  %v325_v52 = vrot.slane %v324_v38, 4  ;;  %v5288_v60 = vcombine.low %v5205_v41, %v5208_v42  ;;  %v357_v4 = vrot.slane %v355_v56, 4  ;;  %v363_v5 = vrot.slane %v361_v57, 5  ;;  %v5315_v28 = vld [vmem:[%s5154_s10 + $0x4c] sm:$0xf] }
  0x26   : > { %v353_v55 = vrot.slane %v351_v50, 5  ;;  %v369_v6 = vshll.u32 %v5281_v58, 16  ;;  %v399_v44 = vshll.u32 %v5315_v28, 16  ;;  %v403_v50 = vshrl.u32 %v5315_v28, 16 }
  0x27   : > { %4275 = vmatpush3.bf16.msra.mxu1 %v4987_v17  ;;  %v3628_v17 = vcombine.low %v282_v10, %v292_v11  ;;  %v330_v61 = vsel %vm5199_vm2, %v325_v52, %v329_v39  ;;  %v375_v10 = vshll.u32 %v5295_v0, 16 }
  0x28   : > { %4467 = vmatpush3.bf16.msra.mxu0 %v4988_v31  ;;  %4276 = vmatprep.subr.bf16.mxu1 %v4989_v36  ;;  %v306_v31 = vsel %vm5199_vm2, %v301_v18, %v305_v2  ;;  %v366_v2 = vshrl.u32 %v5281_v58, 16  ;;  %v358_v19 = vor.u32 %v357_v4, %v353_v55  ;;  %v371_v20 = vrot.slane %v369_v6, 5  ;;  %v5352_v6 = vld [vmem:[%s5154_s10 + $0x58] sm:$0xf] }
  0x29   : > { %4468 = vmatprep.subr.bf16.mxu0 %v4990_v53  ;;  %4470 = vmatprep.mubr.bf16.mxu0 %v3628_v17  ;;  %v5276_v51 = vcombine.low %v306_v31, %v316_v45  ;;  %v377_v23 = vrot.slane %v375_v10, 5  ;;  %v4996_v45 = vld [vmem:[%s6175_s1 + $0x158] sm:$0xff]  }
  0x2a   : > { %v359_v38 = vrot.slane %v358_v19, 4  ;;  %v5355_v10 = vld [vmem:[%s5154_s10 + $0x5c] sm:$0x1] }
  0x2b   : > { %4277 = vmatpush3.bf16.msra.mxu1 %v4989_v36  ;;  %v342_v36 = vshrl.u32 %v5252_v22, 16 }
  0x2c   : > { %4469 = vmatpush3.bf16.msra.mxu0 %v4990_v53  ;;  %4310 = vmatprep.subr.bf16.mxu1 %v4991_v1  ;;  %v334_v53 = vor.u32 %v333_v40, %v329_v39  ;;  %v393_v40 = vshll.u32 %v5312_v27, 16  ;;  %v364_v52 = vsel %vm5199_vm2, %v359_v38, %v363_v5  ;;  %v5349_v5 = vld [vmem:[%s5154_s10 + $0x54] sm:$0xf] }
  0x2d   : > { %4502 = vmatprep.subr.bf16.mxu0 %v4992_v8  ;;  %v344_v49 = vrot.slane %v342_v36, 4  ;;  %v5000_v36 = vld [vmem:[%s6175_s1 + $0x18] sm:$0xff]   ;;  %v414_v19 = vshrl.u32 %v5349_v5, 16 }
  0x2e   : > { %4279 = vmatmul.mubr.bf16.vlgmr.msra.gmra.mrb[0].mxu1 %v3628_v17  ;;  %v335_v62 = vrot.slane %v334_v53, 4  ;;  %v379_v17 = vshrl.u32 %v5295_v0, 16 }
  0x2f   : > { %4311 = vmatpush3.bf16.msra.mxu1 %v4991_v1  ;;  %4471 = vmatmul.mubr.bf16.vlgmr.msra.gmra.mrb[0].mxu0 %v5276_v51  ;;  %v348_v63 = vor.u32 %v347_v54, %v344_v49  ;;  %v5298_v1 = vld [vmem:[%s5154_s10 + $0x44] sm:$0x1]  ;;  %v395_v54 = vrot.slane %v393_v40, 5  ;;  %v427_v40 = vshrl.u32 %v5352_v6, 16 }
  0x30   : > { %4312 = vmatprep.subr.bf16.mxu1 %v4994_v34  ;;  %4282 = vmatprep.mubr.bf16.mxu1 %v5276_v51  ;;  %v340_v11 = vsel %vm5199_vm2, %v335_v62, %v339_v47  ;;  %v381_v31 = vrot.slane %v379_v17, 4  ;;  %v385_v32 = vshll.u32 %v5298_v1, 16  ;;  %v409_v62 = vshll.u32 %v5321_v33, 16 }
  0x31   : > { %4503 = vmatpush3.bf16.msra.mxu0 %v4992_v8  ;;  %v349_v15 = vrot.slane %v348_v63, 4  ;;  %v368_v8 = vrot.slane %v366_v2, 4  ;;  %v5309_v18 = vcombine.low %v330_v61, %v340_v11  ;;  %v405_v61 = vrot.slane %v403_v50, 4  ;;  %v4998_v63 = vld [vmem:[%s6175_s1 + $0x160] sm:$0xff]   ;;  %v5389_v50 = vld [vmem:[%s5154_s10 + $0x68] sm:$0x1] }
  0x32   : > { %4504 = vmatprep.subr.bf16.mxu0 %v4993_v46  ;;  %v382_v47 = vor.u32 %v381_v31, %v377_v23  ;;  %v387_v49 = vrot.slane %v385_v32, 5  ;;  %v5003_v2 = vld [vmem:[%s6175_s1 + $0x20] sm:$0xff]   ;;  %v5359_v11 = vcombine.low %v5232_v3, %v5240_v9  ;;  %v411_v17 = vrot.slane %v409_v62, 5 }
  0x33   : > { %4313 = vmatpush3.bf16.msra.mxu1 %v4994_v34  ;;  %6196 = vst [vmem:[#allocation2_spill] sm:$0xff] %v5309_v18  ;;  %v354_v29 = vsel %vm5199_vm2, %v349_v15, %v353_v55  ;;  %v390_v34 = vshrl.u32 %v5312_v27, 16  ;;  %4474 = vmatprep.mubr.bf16.mxu0 %v5309_v18  ;;  %v372_v39 = vor.u32 %v371_v20, %v368_v8  ;;  %v401_v55 = vrot.slane %v399_v44, 5  ;;  %v5375_v32 = vld [vmem:[%s5154_s10 + $0x60] sm:$0xf] }
  0x34   : > { %4314 = vmatprep.subr.bf16.mxu1 %v4997_v59  ;;  %v5337_v56 = vcombine.low %v354_v29, %v364_v52  ;;  %v383_v57 = vrot.slane %v382_v47, 4  ;;  %v5363_v15 = vcombine.low %v5252_v22, %v5257_v30  ;;  %v417_v29 = vshll.u32 %v5349_v5, 16  ;;  %v5383_v47 = vld [vmem:[%s5154_s10 + $0x64] sm:$0xf] }
  0x35   : > { %4505 = vmatpush3.bf16.msra.mxu0 %v4993_v46  ;;  %v392_v46 = vrot.slane %v390_v34, 4  ;;  %v373_v53 = vrot.slane %v372_v39, 4  ;;  %v406_v8 = vor.u32 %v405_v61, %v401_v55  ;;  %v423_v31 = vshll.u32 %v5352_v6, 16  ;;  %v5005_v34 = vld [vmem:[%s6175_s1 + $0x28] sm:$0xff]  }
  0x36   : > { %4283 = vmatmul.mubr.bf16.gmra.mrb[4].mxu1 %v5309_v18  ;;  %4506 = vmatprep.subr.bf16.mxu0 %v4995_v16  ;;  %6197 = vst [vmem:[#allocation3_spill] sm:$0xff] %v5337_v56  ;;  %v416_v39 = vrot.slane %v414_v19, 4  ;;  %v433_v44 = vshll.u32 %v5355_v10, 16  ;;  %v438_v52 = vshrl.u32 %v5375_v32, 16  ;;  %v457_v19 = vshll.u32 %v5389_v50, 16 }
  0x37   : > { %4315 = vmatpush3.bf16.msra.mxu1 %v4997_v59  ;;  %v378_v4 = vsel %vm5199_vm2, %v373_v53, %v377_v23  ;;  %v396_v59 = vor.u32 %v395_v54, %v392_v46  ;;  %4475 = vmatmul.mubr.bf16.gmra.mrb[4].mxu0 %v5337_v56  ;;  %v407_v38 = vrot.slane %v406_v8, 4  ;;  %v425_v46 = vrot.slane %v423_v31, 5 }
  0x38   : > { %4316 = vmatprep.subr.bf16.mxu1 %v5000_v36  ;;  %4286 = vmatprep.mubr.bf16.mxu1 %v5337_v56  ;;  %v429_v54 = vrot.slane %v427_v40, 4  ;;  %v5417_v40 = vld [vmem:[%s5154_s10 + $0x6c] sm:$0xf] }
  0x39   : > { %4507 = vmatpush3.bf16.msra.mxu0 %v4995_v16  ;;  %v388_v16 = vsel %vm5199_vm2, %v383_v57, %v387_v49  ;;  %v397_v23 = vrot.slane %v396_v59, 4  ;;  %v412_v53 = vsel %vm5199_vm2, %v407_v38, %v411_v17  ;;  %v435_v57 = vrot.slane %v433_v44, 5 }
  0x3a   : > { %4508 = vmatprep.subr.bf16.mxu0 %v4996_v45  ;;  %v5370_v20 = vcombine.low %v378_v4, %v388_v16  ;;  %v440_v4 = vrot.slane %v438_v52, 4  ;;  %v447_v59 = vshll.u32 %v5383_v47, 16  ;;  %v430_v16 = vor.u32 %v429_v54, %v425_v46 }
  0x3b   : > { %4317 = vmatpush3.bf16.msra.mxu1 %v5000_v36  ;;  %v402_v49 = vsel %vm5199_vm2, %v397_v23, %v401_v55  ;;  %v419_v36 = vrot.slane %v417_v29, 5  ;;  %v441_v55 = vshll.u32 %v5375_v32, 16  ;;  %v451_v17 = vshrl.u32 %v5383_v47, 16  ;;  %v5007_v29 = vld [vmem:[%s6175_s1 + $0x30] sm:$0xff]  }
  0x3c   : > { %6198 = vst [vmem:[#allocation4_spill] sm:$0xff] %v5370_v20  ;;  %4318 = vmatprep.subr.bf16.mxu1 %v5003_v2  ;;  %4478 = vmatprep.mubr.bf16.mxu0 %v5370_v20  ;;  %v5399_v61 = vcombine.low %v402_v49, %v412_v53  ;;  %v449_v31 = vrot.slane %v447_v59, 5  ;;  %v3676_v38 = vrot.slane %v5177_v21, 9  ;;  %v431_v44 = vrot.slane %v430_v16, 4  ;;  %v5424_v53 = vld [vmem:[%s5154_s10 + $0x70] sm:$0xf] }
  0x3d   : > { %4509 = vmatpush3.bf16.msra.mxu0 %v4996_v45  ;;  %v4999_v45 = vld [vmem:[%s6175_s1 + $0x168] sm:$0xff]   ;;  %v420_v62 = vor.u32 %v419_v36, %v416_v39  ;;  %v443_v8 = vrot.slane %v441_v55, 5  ;;  %v1252_v39 = vrot.slane %v5180_v24, 5  ;;  %v453_v36 = vrot.slane %v451_v17, 4 }
  0x3e   : > { %4287 = vmatmul.mubr.bf16.gmra.mrb[8].mxu1 %v5370_v20  ;;  %4510 = vmatprep.subr.bf16.mxu0 %v4998_v63  ;;  %6199 = vst [vmem:[#allocation5_spill] sm:$0xff] %v5399_v61  ;;  %v459_v52 = vrot.slane %v457_v19, 5  ;;  %v1255_v55 = vrot.slane %v5183_v25, 5  ;;  %v436_v59 = vsel %vm5199_vm2, %v431_v44, %v435_v57  ;;  %v471_v19 = vshll.u32 %v5424_v53, 16 }
  0x3f   : > { %4319 = vmatpush3.bf16.msra.mxu1 %v5003_v2  ;;  %4290 = vmatprep.mubr.bf16.mxu1 %v5399_v61  ;;  %v421_v2 = vrot.slane %v420_v62, 4  ;;  %v444_v49 = vor.u32 %v443_v8, %v440_v4  ;;  %v1253_v24 = vsel %vm5406_vm5, %v3676_v38, %v1252_v39  ;;  %v1254_v54 = vrot.slane %v1252_v39, 4  ;;  %v5432_v62 = vld [vmem:[%s5154_s10 + $0x74] sm:$0x1]  ;;  %v5009_v4 = vld [vmem:[%s6175_s1 + $0x38] sm:$0xff]  }
  0x40   : > { %4320 = vmatprep.subr.bf16.mxu1 %v5005_v34  ;;  %4479 = vmatmul.mubr.bf16.gmra.mrb[8].mxu0 %v5399_v61  ;;  %v454_v8 = vor.u32 %v453_v36, %v449_v31  ;;  %v473_v36 = vrot.slane %v471_v19, 5  ;;  %v1273_v20 = vrot.slane %v5257_v30, 5 }
  0x41   : > { %4511 = vmatpush3.bf16.msra.mxu0 %v4998_v63  ;;  %v5001_v63 = vld [vmem:[%s6175_s1 + $0x170] sm:$0xff]   ;;  %v426_v21 = vsel %vm5199_vm2, %v421_v2, %v425_v46  ;;  %v445_v16 = vrot.slane %v444_v49, 4  ;;  %v462_v46 = vshrl.u32 %v5417_v40, 16  ;;  %v1256_v25 = vsel %vm5406_vm5, %v1254_v54, %v1255_v55  ;;  %v5447_v2 = vld [vmem:[%s5154_s10 + $0x78] sm:$0xf] }
  0x42   : > { %4512 = vmatprep.subr.bf16.mxu0 %v4999_v45  ;;  %v5440_v17 = vcombine.low %v426_v21, %v436_v59  ;;  %v455_v38 = vrot.slane %v454_v8, 4  ;;  %v5454_v39 = vcombine.low %v1253_v24, %v1256_v25  ;;  %v475_v21 = vshrl.u32 %v5424_v53, 16  ;;  %v5461_v54 = vld [vmem:[%s5154_s10 + $0x7c] sm:$0xf] }
  0x43   : > { %4321 = vmatpush3.bf16.msra.mxu1 %v5005_v34  ;;  %v465_v34 = vshll.u32 %v5417_v40, 16  ;;  %v450_v57 = vsel %vm5199_vm2, %v445_v16, %v449_v31  ;;  %v464_v44 = vrot.slane %v462_v46, 4  ;;  %v481_v31 = vshll.u32 %v5432_v62, 16  ;;  %v5468_v16 = vld [vmem:[%s5154_s10 + $0x80] sm:$0x1] }
  0x44   : > { %4322 = vmatprep.subr.bf16.mxu1 %v5007_v29  ;;  %6202 = vst [vmem:[#allocation6_spill] sm:$0xff] %v5440_v17  ;;  %4482 = vmatprep.mubr.bf16.mxu0 %v5440_v17  ;;  %v460_v55 = vsel %vm5199_vm2, %v455_v38, %v459_v52  ;;  %v3677_v59 = vrot.slane %v5205_v41, 9  ;;  %v1259_v24 = vrot.slane %v5208_v42, 5  ;;  %v486_v8 = vshrl.u32 %v5447_v2, 16  ;;  %v5476_v52 = vld [vmem:[%s6175_s1 + $0x80] sm:$0xff]  }
  0x45   : > { %4513 = vmatpush3.bf16.msra.mxu0 %v4999_v45  ;;  %v5002_v45 = vld [vmem:[%s6175_s1 + $0x178] sm:$0xff]   ;;  %v467_v49 = vrot.slane %v465_v34, 5  ;;  %v5471_v46 = vcombine.low %v450_v57, %v460_v55  ;;  %v477_v34 = vrot.slane %v475_v21, 4  ;;  %v483_v19 = vrot.slane %v481_v31, 5  ;;  %v5485_v38 = vld [vmem:[%s5154_s10 + $0x84] sm:$0xf] }
  0x46   : > { %4514 = vmatprep.subr.bf16.mxu0 %v5001_v63  ;;  %4291 = vmatmul.mubr.bf16.gmra.mrb[12].mxu1 %v5440_v17  ;;  %v1260_v41 = vsel %vm5406_vm5, %v3677_v59, %v1259_v24  ;;  %v1261_v42 = vrot.slane %v1259_v24, 4  ;;  %v488_v57 = vrot.slane %v486_v8, 4  ;;  %v495_v21 = vshll.u32 %v5461_v54, 16 }
  0x47   : > { %4323 = vmatpush3.bf16.msra.mxu1 %v5007_v29  ;;  %6203 = vst [vmem:[#allocation7_spill] sm:$0xff] %v5471_v46  ;;  %v468_v25 = vor.u32 %v467_v49, %v464_v44  ;;  %v5004_v29 = vld [vmem:[%s6175_s1 + $0x180] sm:$0xff]   ;;  %4294 = vmatprep.mubr.bf16.mxu1 %v5471_v46  ;;  %v478_v49 = vor.u32 %v477_v34, %v473_v36  ;;  %v499_v31 = vshrl.u32 %v5461_v54, 16  ;;  %v505_v24 = vshll.u32 %v5468_v16, 16 }
  0x48   : > { %4324 = vmatprep.subr.bf16.mxu1 %v5009_v4  ;;  %4483 = vmatmul.mubr.bf16.gmra.mrb[12].mxu0 %v5471_v46  ;;  %v1263_v55 = vsel %vm5406_vm5, %v1261_v42, %v1262_v7  ;;  %v3678_v8 = vrot.slane %v5232_v3, 9  ;;  %v497_v46 = vrot.slane %v495_v21, 5  ;;  %v5505_v3 = vld [vmem:[%s5154_s10 + $0x88] sm:$0xf] }
  0x49   : > { %4515 = vmatpush3.bf16.msra.mxu0 %v5001_v63  ;;  %v489_v63 = vshll.u32 %v5447_v2, 16  ;;  %v469_v44 = vrot.slane %v468_v25, 4  ;;  %4518 = vmatprep.mubr.bf16.mxu0 %v5454_v39  ;;  %v479_v34 = vrot.slane %v478_v49, 4  ;;  %v5500_v26 = vcombine.low %v1260_v41, %v1263_v55 }
  0x4a   : > { %4516 = vmatprep.subr.bf16.mxu0 %v5002_v45  ;;  %v501_v7 = vrot.slane %v499_v31, 4  ;;  %v507_v42 = vrot.slane %v505_v24, 5  ;;  %v510_v41 = vshrl.u32 %v5485_v38, 16  ;;  %v5006_v31 = vld [vmem:[%s6175_s1 + $0x188] sm:$0xff]   ;;  %v5524_v24 = vld [vmem:[%s5154_s10 + $0x90] sm:$0xf] }
  0x4b   : > { %v491_v59 = vrot.slane %v489_v63, 5  ;;  %4325 = vmatpush3.bf16.msra.mxu1 %v5009_v4  ;;  %v474_v25 = vsel %vm5199_vm2, %v469_v44, %v473_v36  ;;  %v1266_v63 = vrot.slane %v5240_v9, 5  ;;  %v484_v4 = vsel %vm5199_vm2, %v479_v34, %v483_v19  ;;  %v5511_v36 = vld [vmem:[%s5154_s10 + $0x8c] sm:$0x1]  ;;  %v5527_v34 = vld [vmem:[%s5154_s10 + $0x94] sm:$0xf] }
  0x4c   : > { %4358 = vmatprep.subr.bf16.mxu1 %v5476_v52  ;;  %v513_v44 = vshll.u32 %v5485_v38, 16  ;;  %v502_v21 = vor.u32 %v501_v7, %v497_v46  ;;  %v512_v55 = vrot.slane %v510_v41, 4  ;;  %v529_v7 = vshll.u32 %v5511_v36, 16 }
  0x4d   : > { %4517 = vmatpush3.bf16.msra.mxu0 %v5002_v45  ;;  %v492_v48 = vor.u32 %v491_v59, %v488_v57  ;;  %v1269_v45 = vrot.slane %v5247_v14, 5  ;;  %v5515_v57 = vcombine.low %v474_v25, %v484_v4  ;;  %v1267_v9 = vsel %vm5406_vm5, %v3678_v8, %v1266_v63 }
  0x4e   : > { %4550 = vmatprep.subr.bf16.mxu0 %v5004_v29  ;;  %v1268_v19 = vrot.slane %v1266_v63, 4  ;;  %v515_v14 = vrot.slane %v513_v44, 5  ;;  %v519_v59 = vshll.u32 %v5505_v3, 16  ;;  %v523_v8 = vshrl.u32 %v5505_v3, 16 }
  0x4f   : > { %6204 = vst [vmem:[#allocation8_spill] sm:$0xff] %v5515_v57  ;;  %v493_v49 = vrot.slane %v492_v48, 4  ;;  %4295 = vmatmul.mubr.bf16.gmra.mrb[16].mxu1 %v5515_v57  ;;  %v503_v48 = vrot.slane %v502_v21, 4  ;;  %v3679_v44 = vrot.slane %v5252_v22, 9  ;;  %v531_v21 = vrot.slane %v529_v7, 5  ;;  %v5008_v22 = vld [vmem:[%s6175_s1 + $0x190] sm:$0xff]  }
  0x50   : > { %4519 = vmatmul.mubr.bf16.vlgmr.msra.gmra.mrb[0].mxu0 %v5500_v26  ;;  %v1270_v63 = vsel %vm5406_vm5, %v1268_v19, %v1269_v45  ;;  %v516_v4 = vor.u32 %v515_v14, %v512_v55  ;;  %v521_v41 = vrot.slane %v519_v59, 5  ;;  %v1276_v45 = vrot.slane %v5266_v35, 5  ;;  %v5563_v59 = vld [vmem:[%s5154_s10 + $0x9c] sm:$0xf] }
  0x51   : > { %v498_v25 = vsel %vm5199_vm2, %v493_v49, %v497_v46  ;;  %4551 = vmatpush3.bf16.msra.mxu0 %v5004_v29  ;;  %v508_v57 = vsel %vm5199_vm2, %v503_v48, %v507_v42  ;;  %v5540_v46 = vcombine.low %v1267_v9, %v1270_v63  ;;  %v525_v49 = vrot.slane %v523_v8, 4  ;;  %v5551_v42 = vld [vmem:[%s5154_s10 + $0x98] sm:$0x1]  ;;  %v5566_v63 = vld [vmem:[%s5154_s10 + $0xa0] sm:$0xf] }
  0x52   : > { %v5542_v17 = vcombine.low %v498_v25, %v508_v57  ;;  %v517_v61 = vrot.slane %v516_v4, 4  ;;  %4552 = vmatprep.subr.bf16.mxu0 %v5006_v31  ;;  %v534_v57 = vshrl.u32 %v5524_v24, 16  ;;  %v537_v9 = vshll.u32 %v5524_v24, 16 }
  0x53   : > { %4522 = vmatprep.mubr.bf16.mxu0 %v5540_v46  ;;  %v526_v29 = vor.u32 %v525_v49, %v521_v41  ;;  %v543_v19 = vshll.u32 %v5527_v34, 16  ;;  %v1274_v35 = vsel %vm5406_vm5, %v3679_v44, %v1273_v20  ;;  %v1275_v55 = vrot.slane %v1273_v20, 4  ;;  %v5573_v20 = vld [vmem:[%s5154_s10 + $0xa4] sm:$0x1] }
  0x54   : > { %6205 = vst [vmem:[#allocation9_spill] sm:$0xff] %v5542_v17  ;;  %4298 = vmatprep.mubr.bf16.mxu1 %v5542_v17  ;;  %v522_v30 = vsel %vm5199_vm2, %v517_v61, %v521_v41  ;;  %v547_v14 = vshrl.u32 %v5527_v34, 16  ;;  %v536_v48 = vrot.slane %v534_v57, 4  ;;  %v539_v8 = vrot.slane %v537_v9, 5 }
  0x55   : > { %v527_v25 = vrot.slane %v526_v29, 4  ;;  %4553 = vmatpush3.bf16.msra.mxu0 %v5006_v31  ;;  %v545_v7 = vrot.slane %v543_v19, 5  ;;  %v1277_v4 = vsel %vm5406_vm5, %v1275_v55, %v1276_v45  ;;  %v553_v61 = vshll.u32 %v5551_v42, 16  ;;  %v5010_v45 = vld [vmem:[%s6175_s1 + $0x198] sm:$0xff]  }
  0x56   : > { %v549_v49 = vrot.slane %v547_v14, 4  ;;  %v3680_v41 = vrot.slane %v5281_v58, 9  ;;  %4554 = vmatprep.subr.bf16.mxu0 %v5008_v22  ;;  %v5577_v44 = vcombine.low %v1274_v35, %v1277_v4  ;;  %v540_v29 = vor.u32 %v539_v8, %v536_v48 }
  0x57   : > { %v532_v31 = vsel %vm5199_vm2, %v527_v25, %v531_v21  ;;  %v1280_v57 = vrot.slane %v5295_v0, 5  ;;  %v555_v58 = vrot.slane %v553_v61, 5  ;;  %v1283_v55 = vrot.slane %v5298_v1, 5  ;;  %v5591_v25 = vld [vmem:[%s5154_s10 + $0xa8] sm:$0xf] }
  0x58   : > { %v5583_v9 = vcombine.low %v522_v30, %v532_v31  ;;  %v550_v19 = vor.u32 %v549_v49, %v545_v7  ;;  %4523 = vmatmul.mubr.bf16.gmra.mrb[4].mxu0 %v5577_v44  ;;  %v541_v14 = vrot.slane %v540_v29, 4  ;;  %v558_v0 = vshrl.u32 %v5563_v59, 16  ;;  %v5014_v30 = vld [vmem:[%s6175_s1 + $0x1a0] sm:$0xff]   ;;  %v5601_v49 = vld [vmem:[%s5154_s10 + $0xac] sm:$0xf] }
  0x59   : > { %v1281_v21 = vsel %vm5406_vm5, %v3680_v41, %v1280_v57  ;;  %v1282_v35 = vrot.slane %v1280_v57, 4  ;;  %v561_v1 = vshll.u32 %v5563_v59, 16  ;;  %v567_v8 = vshll.u32 %v5566_v63, 16  ;;  %4555 = vmatpush3.bf16.msra.mxu0 %v5008_v22 }
  0x5a   : > { %6206 = vst [vmem:[#allocation10_spill] sm:$0xff] %v5583_v9  ;;  %4299 = vmatmul.mubr.bf16.gmra.mrb[20].mxu1 %v5583_v9  ;;  %v551_v48 = vrot.slane %v550_v19, 4  ;;  %v571_v4 = vshrl.u32 %v5566_v63, 16  ;;  %v546_v61 = vsel %vm5199_vm2, %v541_v14, %v545_v7  ;;  %v560_v31 = vrot.slane %v558_v0, 4  ;;  %4556 = vmatprep.subr.bf16.mxu0 %v5010_v45  ;;  %v5616_v14 = vld [vmem:[%s5154_s10 + $0xb0] sm:$0x1] }
  0x5b   : > { %v1284_v41 = vsel %vm5406_vm5, %v1282_v35, %v1283_v55  ;;  %v577_v29 = vshll.u32 %v5573_v20, 16  ;;  %v563_v9 = vrot.slane %v561_v1, 5  ;;  %v569_v17 = vrot.slane %v567_v8, 5 }
  0x5c   : > { %v556_v57 = vsel %vm5199_vm2, %v551_v48, %v555_v58  ;;  %v5610_v19 = vcombine.low %v1281_v21, %v1284_v41  ;;  %v573_v56 = vrot.slane %v571_v4, 4  ;;  %v3681_v7 = vrot.slane %v5312_v27, 9 }
  0x5d   : > { %v5612_v22 = vcombine.low %v546_v61, %v556_v57  ;;  %v579_v18 = vrot.slane %v577_v29, 5  ;;  %v564_v55 = vor.u32 %v563_v9, %v560_v31  ;;  %v1287_v35 = vrot.slane %v5315_v28, 5  ;;  %4557 = vmatpush3.bf16.msra.mxu0 %v5010_v45  ;;  %v5018_v28 = vld [vmem:[%s6175_s1 + $0x1a8] sm:$0xff]  }
  0x5e   : > { %4526 = vmatprep.mubr.bf16.mxu0 %v5610_v19  ;;  %v1290_v0 = vrot.slane %v5321_v33, 5  ;;  %v582_v58 = vshrl.u32 %v5591_v25, 16  ;;  %v574_v21 = vor.u32 %v573_v56, %v569_v17  ;;  %v585_v48 = vshll.u32 %v5591_v25, 16  ;;  %4558 = vmatprep.subr.bf16.mxu0 %v5014_v30 }
  0x5f   : > { %6207 = vst [vmem:[#allocation11_spill] sm:$0xff] %v5612_v22  ;;  %4302 = vmatprep.mubr.bf16.mxu1 %v5612_v22  ;;  %v591_v1 = vshll.u32 %v5601_v49, 16  ;;  %v595_v27 = vshrl.u32 %v5601_v49, 16  ;;  %v565_v9 = vrot.slane %v564_v55, 4  ;;  %v1288_v33 = vsel %vm5406_vm5, %v3681_v7, %v1287_v35  ;;  %v5638_v22 = vld [vmem:[%s5154_s10 + $0xb4] sm:$0xf] }
  0x60   : > { %v1289_v45 = vrot.slane %v1287_v35, 4  ;;  %v584_v8 = vrot.slane %v582_v58, 4  ;;  %v575_v56 = vrot.slane %v574_v21, 4  ;;  %v587_v4 = vrot.slane %v585_v48, 5  ;;  %v5645_v48 = vld [vmem:[%s5154_s10 + $0xb8] sm:$0xf] }
  0x61   : > { %v593_v61 = vrot.slane %v591_v1, 5  ;;  %v597_v41 = vrot.slane %v595_v27, 4  ;;  %v570_v31 = vsel %vm5199_vm2, %v565_v9, %v569_v17  ;;  %v601_v57 = vshll.u32 %v5616_v14, 16  ;;  %4559 = vmatpush3.bf16.msra.mxu0 %v5014_v30  ;;  %v5022_v17 = vld [vmem:[%s6175_s1 + $0x1b0] sm:$0xff]   ;;  %v5655_v27 = vld [vmem:[%s5154_s10 + $0xbc] sm:$0x1] }
  0x62   : > { %v1291_v29 = vsel %vm5406_vm5, %v1289_v45, %v1290_v0  ;;  %v3682_v55 = vrot.slane %v5349_v5, 9  ;;  %v580_v7 = vsel %vm5199_vm2, %v575_v56, %v579_v18  ;;  %v588_v58 = vor.u32 %v587_v4, %v584_v8  ;;  %4560 = vmatprep.subr.bf16.mxu0 %v5018_v28  ;;  %v5026_v4 = vld [vmem:[%s6175_s1 + $0x1b8] sm:$0xff]  }
  0x63   : > { %v5642_v35 = vcombine.low %v1288_v33, %v1291_v29  ;;  %v598_v21 = vor.u32 %v597_v41, %v593_v61  ;;  %v5650_v0 = vcombine.low %v570_v31, %v580_v7  ;;  %v603_v5 = vrot.slane %v601_v57, 5 }
  0x64   : > { %v1294_v1 = vrot.slane %v5352_v6, 5  ;;  %v1297_v30 = vrot.slane %v5355_v10, 5  ;;  %v589_v18 = vrot.slane %v588_v58, 4  ;;  %v606_v33 = vshrl.u32 %v5638_v22, 16 }
  0x65   : > { %6208 = vst [vmem:[#allocation12_spill] sm:$0xff] %v5650_v0  ;;  %4527 = vmatmul.mubr.bf16.gmra.mrb[8].mxu0 %v5642_v35  ;;  %v599_v9 = vrot.slane %v598_v21, 4  ;;  %v609_v45 = vshll.u32 %v5638_v22, 16  ;;  %4303 = vmatmul.mubr.bf16.gmra.mrb[24].mxu1 %v5650_v0  ;;  %v615_v6 = vshll.u32 %v5645_v48, 16  ;;  %v619_v10 = vshrl.u32 %v5645_v48, 16 }
  0x66   : > { %v1295_v8 = vsel %vm5406_vm5, %v3682_v55, %v1294_v1  ;;  %v1296_v56 = vrot.slane %v1294_v1, 4  ;;  %4561 = vmatpush3.bf16.msra.mxu0 %v5018_v28  ;;  %v594_v41 = vsel %vm5199_vm2, %v589_v18, %v593_v61  ;;  %v608_v29 = vrot.slane %v606_v33, 4 }
  0x67   : > { %v604_v31 = vsel %vm5199_vm2, %v599_v9, %v603_v5  ;;  %v611_v57 = vrot.slane %v609_v45, 5  ;;  %4562 = vmatprep.subr.bf16.mxu0 %v5022_v17  ;;  %v617_v58 = vrot.slane %v615_v6, 5  ;;  %v621_v28 = vrot.slane %v619_v10, 4 }
  0x68   : > { %v5672_v55 = vcombine.low %v594_v41, %v604_v31  ;;  %v1298_v7 = vsel %vm5406_vm5, %v1296_v56, %v1297_v30  ;;  %v625_v0 = vshll.u32 %v5655_v27, 16  ;;  %v3683_v61 = vrot.slane %v5375_v32, 9  ;;  %v5687_v30 = vld [vmem:[%s6175_s1 + $0x1c0] sm:$0xff]  }
  0x69   : > { %v5676_v21 = vcombine.low %v1295_v8, %v1298_v7  ;;  %v612_v1 = vor.u32 %v611_v57, %v608_v29  ;;  %v622_v5 = vor.u32 %v621_v28, %v617_v58  ;;  %v1301_v18 = vrot.slane %v5383_v47, 5 }
  0x6a   : > { %4306 = vmatprep.mubr.bf16.mxu1 %v5672_v55  ;;  %v1304_v9 = vrot.slane %v5389_v50, 5  ;;  %v3684_v33 = vrot.slane %v5417_v40, 9  ;;  %4563 = vmatpush3.bf16.msra.mxu0 %v5022_v17  ;;  %v627_v8 = vrot.slane %v625_v0, 5  ;;  %v1308_v56 = vrot.slane %v5424_v53, 5 }
  0x6b   : > { %4530 = vmatprep.mubr.bf16.mxu0 %v5676_v21  ;;  %v613_v45 = vrot.slane %v612_v1, 4  ;;  %v1311_v6 = vrot.slane %v5432_v62, 5  ;;  %4564 = vmatprep.subr.bf16.mxu0 %v5026_v4  ;;  %v623_v10 = vrot.slane %v622_v5, 4  ;;  %v1302_v50 = vsel %vm5406_vm5, %v3683_v61, %v1301_v18 }
  0x6c   : > { %v1303_v41 = vrot.slane %v1301_v18, 4  ;;  %v3685_v17 = vrot.slane %v5447_v2, 9  ;;  %v1309_v29 = vsel %vm5406_vm5, %v3684_v33, %v1308_v56  ;;  %v1310_v57 = vrot.slane %v1308_v56, 4 }
  0x6d   : > { %v618_v31 = vsel %vm5199_vm2, %v613_v45, %v617_v58  ;;  %v1315_v0 = vrot.slane %v5461_v54, 5  ;;  %v628_v62 = vsel %vm5199_vm2, %v623_v10, %v627_v8  ;;  %v1318_v28 = vrot.slane %v5468_v16, 5 }
  0x6e   : > { %v1305_v7 = vsel %vm5406_vm5, %v1303_v41, %v1304_v9  ;;  %v3686_v1 = vrot.slane %v5485_v38, 9  ;;  %4565 = vmatpush3.bf16.msra.mxu0 %v5026_v4  ;;  %v5706_v61 = vcombine.low %v618_v31, %v628_v62  ;;  %v1312_v5 = vsel %vm5406_vm5, %v1310_v57, %v1311_v6  ;;  %v5017_v57 = vld [vmem:[%s6175_s1 + $0x88] sm:$0xff]  }
  0x6f   : > { %v5708_v58 = vcombine.low %v1302_v50, %v1305_v7  ;;  %4598 = vmatprep.subr.bf16.mxu0 %v5687_v30  ;;  %v5713_v18 = vcombine.low %v1309_v29, %v1312_v5  ;;  %v1317_v33 = vrot.slane %v1315_v0, 4  ;;  %v1322_v45 = vrot.slane %v5505_v3, 5 }
  0x70   : > { %v1325_v9 = vrot.slane %v5511_v36, 5  ;;  %4307 = vmatmul.mubr.bf16.gmra.mrb[28].mxu1 %v5706_v61  ;;  %v6209_v16 = vcombine.low %v5163_v12, %v5166_v13  ;;  %v1316_v4 = vsel %vm5406_vm5, %v3685_v17, %v1315_v0  ;;  %v1329_v6 = vrot.slane %v5527_v34, 5 }
  0x71   : > { %4531 = vmatmul.mubr.bf16.gmra.mrb[12].mxu0 %v5708_v58  ;;  %v1319_v8 = vsel %vm5406_vm5, %v1317_v33, %v1318_v28  ;;  %v1324_v56 = vrot.slane %v1322_v45, 4  ;;  %v1336_v36 = vrot.slane %v5566_v63, 5  ;;  %v1323_v10 = vsel %vm5406_vm5, %v3686_v1, %v1322_v45 }
  0x72   : > { %4326 = vmatprep.mubr.bf16.mxu1 %v6209_v16  ;;  %4534 = vmatprep.mubr.bf16.mxu0 %v5713_v18  ;;  %v5733_v13 = vcombine.low %v1316_v4, %v1319_v8  ;;  %v3687_v50 = vrot.slane %v5524_v24, 9  ;;  %v1332_v41 = vrot.slane %v5551_v42, 5  ;;  %v1331_v17 = vrot.slane %v1329_v6, 4 }
  0x73   : > { %v1326_v12 = vsel %vm5406_vm5, %v1324_v56, %v1325_v9  ;;  %v3688_v31 = vrot.slane %v5563_v59, 9  ;;  %v1338_v0 = vrot.slane %v1336_v36, 4  ;;  %v1339_v62 = vrot.slane %v5573_v20, 5 }
  0x74   : > { %v5738_v29 = vcombine.low %v1323_v10, %v1326_v12  ;;  %v1330_v7 = vsel %vm5406_vm5, %v3687_v50, %v1329_v6  ;;  %v1343_v42 = vrot.slane %v5601_v49, 5  ;;  %v5751_v28 = vcombine.low %v5375_v32, %v5383_v47  ;;  %v5021_v47 = vld [vmem:[%s6175_s1 + $0x90] sm:$0xff]   ;;  %v222_v6 = vld [vmem:[%s5154_s10 + $0xc8] sm:$0x1]  ;;  %v5066_v10 = vld [vmem:[%s5154_s10 + $0x40] sm:$0xf] }
  0x75   : > { %v1333_v20 = vsel %vm5406_vm5, %v1331_v17, %v1332_v41  ;;  %v1337_v1 = vsel %vm5406_vm5, %v3688_v31, %v1336_v36  ;;  %v3689_v5 = vrot.slane %v5591_v25, 9  ;;  %v5762_v33 = vcombine.low %v5417_v40, %v5424_v53  ;;  %v5065_v36 = vld [vmem:[%s5154_s10 + $0x3c] sm:$0xf]  ;;  %v5067_v41 = vld [vmem:[%s5154_s10 + $0x48] sm:$0xf] }
  0x76   : > { %v1340_v32 = vsel %vm5406_vm5, %v1338_v0, %v1339_v62  ;;  %v5773_v45 = vcombine.low %v5447_v2, %v5461_v54  ;;  %v5777_v40 = vcombine.low %v5485_v38, %v5505_v3  ;;  %v5781_v53 = vcombine.low %v5524_v24, %v5527_v34  ;;  %v5801_v24 = vld [vmem:[%s5154_s10 + $0xc4] sm:$0xf]  ;;  %v5068_v17 = vld [vmem:[%s5154_s10 + $0x4c] sm:$0xf] }
  0x77   : > { %v5785_v9 = vcombine.low %v5563_v59, %v5566_v63  ;;  %v5789_v16 = vcombine.low %v5591_v25, %v5601_v49  ;;  %v5791_v4 = vcombine.low %v1330_v7, %v1333_v20  ;;  %v1345_v2 = vrot.slane %v1343_v42, 4  ;;  %v5025_v25 = vld [vmem:[%s6175_s1 + $0x98] sm:$0xff]  }
  0x78   : > { %4327 = vmatmul.mubr.bf16.vlgmr.msra.gmra.mrb[0].mxu1 %v5212_v43  ;;  %v1346_v54 = vrot.slane %v5616_v14, 5  ;;  %v5796_v38 = vcombine.low %v5638_v22, %v5645_v48  ;;  %v5798_v3 = vcombine.low %v1337_v1, %v1340_v32  ;;  %v3690_v34 = vrot.slane %v5638_v22, 9  ;;  %v5815_v14 = vld [vmem:[%s5154_s10 + $0xc0] sm:$0xf] }
  0x79   : > { %4535 = vmatmul.mubr.bf16.gmra.mrb[16].mxu0 %v5733_v13  ;;  %4359 = vmatpush3.bf16.msra.mxu1 %v5476_v52  ;;  %v1350_v52 = vrot.slane %v5645_v48, 5  ;;  %v1353_v63 = vrot.slane %v5655_v27, 5  ;;  %v1344_v49 = vsel %vm5406_vm5, %v3689_v5, %v1343_v42  ;;  %v2230_v48 = vrot.slane %v5801_v24, 5  ;;  %v5029_v27 = vld [vmem:[%s6175_s1 + $0xa0] sm:$0xff]  }
  0x7a   : > { %4330 = vmatprep.mubr.bf16.mxu1 %v5288_v60  ;;  %4538 = vmatprep.mubr.bf16.mxu0 %v5738_v29  ;;  %v1347_v22 = vsel %vm5406_vm5, %v1345_v2, %v1346_v54  ;;  %v5830_v12 = vcombine.low %v5065_v36, %v5066_v10  ;;  %v5836_v31 = vcombine.low %v5067_v41, %v5068_v17  ;;  %v1945_v0 = vshll.u32 %v5815_v14, 16  ;;  %v5033_v54 = vld [vmem:[%s6175_s1 + $0xa8] sm:$0xff]   ;;  %v5037_v36 = vld [vmem:[%s6175_s1 + $0xb0] sm:$0xff]   ;;  %v5070_v10 = vld [vmem:[%s5154_s10 + $0x58] sm:$0xf] }
  0x7b   : > { %4360 = vmatprep.subr.bf16.mxu1 %v5017_v57  ;;  %v1352_v59 = vrot.slane %v1350_v52, 4  ;;  %v1351_v8 = vsel %vm5406_vm5, %v3690_v34, %v1350_v52  ;;  %v5832_v50 = vcombine.low %v1344_v49, %v1347_v22  ;;  %v1951_v62 = vshll.u32 %v5801_v24, 16 }
  0x7c   : > { %v1955_v7 = vshrl.u32 %v5801_v24, 16  ;;  %v3781_v20 = vrot.slane %v5815_v14, 9  ;;  %v2232_v1 = vrot.slane %v2230_v48, 4  ;;  %v2233_v5 = vrot.slane %v222_v6, 5 }
  0x7d   : > { %4361 = vmatpush3.bf16.msra.mxu1 %v5017_v57  ;;  %v1354_v56 = vsel %vm5406_vm5, %v1352_v59, %v1353_v63  ;;  %v1942_v57 = vshrl.u32 %v5815_v14, 16  ;;  %v1953_v52 = vrot.slane %v1951_v62, 5  ;;  %v1961_v63 = vshll.u32 %v222_v6, 16  ;;  %v5069_v6 = vld [vmem:[%s5154_s10 + $0x54] sm:$0xf]  ;;  %v5043_v62 = vld [vmem:[%s6175_s1 + $0xc0] sm:$0xff]  }
  0x7e   : > { %4362 = vmatprep.subr.bf16.mxu1 %v5021_v47  ;;  %v5842_v42 = vcombine.low %v1351_v8, %v1354_v56  ;;  %v1957_v2 = vrot.slane %v1955_v7, 4  ;;  %v2234_v49 = vsel %vm5406_vm5, %v2232_v1, %v2233_v5  ;;  %v5861_v41 = vcombine.low %v5069_v6, %v5070_v10  ;;  %v5034_v7 = vld [vmem:[%s6175_s1 + $0x1c8] sm:$0xff]   ;;  %v5042_v1 = vld [vmem:[%s6175_s1 + $0x1d8] sm:$0xff]   ;;  %v5047_v6 = vld [vmem:[%s6175_s1 + $0xd0] sm:$0xff]  }
  0x7f   : > { %v1944_v32 = vrot.slane %v1942_v57, 4  ;;  %v1963_v56 = vrot.slane %v1961_v63, 5  ;;  %v5050_v10 = vld [vmem:[%s6175_s1 + $0xd8] sm:$0xff]  }
  0x80   : > { %4331 = vmatmul.mubr.bf16.gmra.mrb[4].mxu1 %v5359_v11  ;;  %v1958_v59 = vor.u32 %v1957_v2, %v1953_v52  ;;  %v5073_v2 = vld [vmem:[%s5154_s10] sm:$0xf] }
  0x81   : > { %4539 = vmatmul.mubr.bf16.gmra.mrb[20].mxu0 %v5791_v4  ;;  %4334 = vmatprep.mubr.bf16.mxu1 %v5363_v15 }
  0x82   : > { %4542 = vmatprep.mubr.bf16.mxu0 %v5798_v3  ;;  %4363 = vmatpush3.bf16.msra.mxu1 %v5021_v47  ;;  %v1947_v47 = vrot.slane %v1945_v0, 5  ;;  %v1959_v8 = vrot.slane %v1958_v59, 4  ;;  %v5041_v0 = vld [vmem:[%s6175_s1 + $0xb8] sm:$0xff]   ;;  %v5046_v59 = vld [vmem:[%s6175_s1 + $0x1e8] sm:$0xff]  }
  0x83   : > { %4364 = vmatprep.subr.bf16.mxu1 %v5025_v25 }
  0x84   : > { %v1948_v34 = vor.u32 %v1947_v47, %v1944_v32  ;;  %v5044_v32 = vld [vmem:[%s6175_s1 + $0x1e0] sm:$0xff]   ;;  %v5072_v47 = vld [vmem:[%s5154_s10 + $0x8] sm:$0x1] }
  0x86   : > { %4365 = vmatpush3.bf16.msra.mxu1 %v5025_v25  ;;  %v2231_v25 = vsel %vm5406_vm5, %v3781_v20, %v2230_v48  ;;  %v1949_v22 = vrot.slane %v1948_v34, 4  ;;  %v5038_v20 = vld [vmem:[%s6175_s1 + $0x1d0] sm:$0xff]  }
  0x87   : > { %4366 = vmatprep.subr.bf16.mxu1 %v5029_v27  ;;  %v5863_v17 = vcombine.low %v2231_v25, %v2234_v49  ;;  %v5048_v49 = vld [vmem:[%s6175_s1 + $0x1f0] sm:$0xff]  }
  0x88   : > { %4335 = vmatmul.mubr.bf16.gmra.mrb[8].mxu1 %v5830_v12  ;;  %v1954_v48 = vsel %vm5199_vm2, %v1949_v22, %v1953_v52  ;;  %v1248_v52 = vrot.slane %v5072_v47, 5  ;;  %v6212_v47 = vld [vmem:[#allocation4_spill] sm:$0xff] }
  0x89   : > { %4543 = vmatmul.mubr.bf16.gmra.mrb[24].mxu0 %v5832_v50  ;;  %4338 = vmatprep.mubr.bf16.mxu1 %v5836_v31 }
  0x8a   : > { %4546 = vmatprep.mubr.bf16.mxu0 %v5842_v42  ;;  %4367 = vmatpush3.bf16.msra.mxu1 %v5029_v27  ;;  %v1964_v27 = vsel %vm5199_vm2, %v1959_v8, %v1963_v56  ;;  %v5052_v8 = vld [vmem:[%s6175_s1 + $0x1f8] sm:$0xff]   ;;  %v5054_v56 = vld [vmem:[%s6175_s1 + $0x200] sm:$0xff]  }
  0x8b   : > { %4368 = vmatprep.subr.bf16.mxu1 %v5033_v54  ;;  %v5869_v57 = vcombine.low %v1954_v48, %v1964_v27  ;;  %v5950_v48 = vcombine.low %v5815_v14, %v5801_v24  ;;  %v5055_v27 = vld [vmem:[%s6175_s1 + $0xe8] sm:$0xff]   ;;  %v5057_v24 = vld [vmem:[%s6175_s1 + $0xf0] sm:$0xff]  }
  0x8e   : > { %4369 = vmatpush3.bf16.msra.mxu1 %v5033_v54  ;;  %v3675_v54 = vrot.slane %v5073_v2, 9  ;;  %v5061_v2 = vld [vmem:[%s6175_s1 + $0x220] sm:$0xff]  }
  0x8f   : > { %4370 = vmatprep.subr.bf16.mxu1 %v5037_v36 }
  0x90   : > { %4339 = vmatmul.mubr.bf16.gmra.mrb[12].mxu1 %v5861_v41 }
  0x91   : > { %4547 = vmatmul.mubr.bf16.gmra.mrb[28].mxu0 %v5863_v17  ;;  %4342 = vmatprep.mubr.bf16.mxu1 %v5751_v28 }
  0x92   : > { %4566 = vmatprep.mubr.bf16.mxu0 %v5288_v60  ;;  %4371 = vmatpush3.bf16.msra.mxu1 %v5037_v36  ;;  %v5045_v36 = vld [vmem:[%s6175_s1 + $0xc8] sm:$0xff]  }
  0x93   : > { %4372 = vmatprep.subr.bf16.mxu1 %v5041_v0 }
  0x96   : > { %4373 = vmatpush3.bf16.msra.mxu1 %v5041_v0  ;;  %v5960_v0 = vld [vmem:[%s5154_s10 + $0xcc] sm:$0xf] }
  0x97   : > { %4406 = vmatprep.subr.bf16.mxu1 %v5043_v62 }
  0x98   : > { %4343 = vmatmul.mubr.bf16.gmra.mrb[16].mxu1 %v5762_v33 }
  0x99   : > { %4567 = vmatmul.mubr.bf16.vlgmr.msra.gmra.mrb[0].mxu0 %v5359_v11  ;;  %4346 = vmatprep.mubr.bf16.mxu1 %v5773_v45 }
  0x9a   : > { %4599 = vmatpush3.bf16.msra.mxu0 %v5687_v30  ;;  %4570 = vmatprep.mubr.bf16.mxu0 %v5363_v15  ;;  %v5071_v30 = vld [vmem:[%s5154_s10 + $0x4] sm:$0xf] }
  0x9b   : > { %4600 = vmatprep.subr.bf16.mxu0 %v5034_v7  ;;  %v1245_v5 = vrot.slane %v5071_v30, 5  ;;  %v6210_v30 = vld [vmem:[#allocation2_spill] sm:$0xff] }
  0x9d   : > { %v1247_v34 = vrot.slane %v1245_v5, 4  ;;  %v1246_v63 = vsel %vm5406_vm5, %v3675_v54, %v1245_v5  ;;  %v5058_v5 = vld [vmem:[%s6175_s1 + $0x210] sm:$0xff]   ;;  %v5062_v54 = vld [vmem:[%s6175_s1 + $0x228] sm:$0xff]  }
  0x9e   : > { %4601 = vmatpush3.bf16.msra.mxu0 %v5034_v7  ;;  %v5059_v7 = vld [vmem:[%s6175_s1 + $0xf8] sm:$0xff]  }
  0x9f   : > { %4602 = vmatprep.subr.bf16.mxu0 %v5038_v20  ;;  %v1249_v25 = vsel %vm5406_vm5, %v1247_v34, %v1248_v52  ;;  %v6213_v52 = vld [vmem:[#allocation5_spill] sm:$0xff]  ;;  %v6214_v34 = vld [vmem:[#allocation6_spill] sm:$0xff] }
  0xa0   : > { %4347 = vmatmul.mubr.bf16.gmra.mrb[20].mxu1 %v5777_v40  ;;  %v3707_v22 = vcombine.low %v1246_v63, %v1249_v25  ;;  %v5063_v63 = vld [vmem:[%s6175_s1 + $0x230] sm:$0xff]   ;;  %v5064_v25 = vld [vmem:[%s6175_s1 + $0x238] sm:$0xff]  }
  0xa1   : > { %4571 = vmatmul.mubr.bf16.gmra.mrb[4].mxu0 %v5830_v12  ;;  %4350 = vmatprep.mubr.bf16.mxu1 %v5781_v53 }
  0xa2   : > { %4574 = vmatprep.mubr.bf16.mxu0 %v5836_v31  ;;  %4603 = vmatpush3.bf16.msra.mxu0 %v5038_v20  ;;  %v5056_v20 = vld [vmem:[%s6175_s1 + $0x208] sm:$0xff]  }
  0xa3   : > { %4604 = vmatprep.subr.bf16.mxu0 %v5042_v1 }
  0xa6   : > { %4605 = vmatpush3.bf16.msra.mxu0 %v5042_v1  ;;  %v5074_v1 = vld [vmem:[%s6175_s1 + $0x100] sm:$0xff]  }
  0xa7   : > { %4606 = vmatprep.subr.bf16.mxu0 %v5044_v32 }
  0xa8   : > { %4351 = vmatmul.mubr.bf16.gmra.mrb[24].mxu1 %v5785_v9 }
  0xa9   : > { %4575 = vmatmul.mubr.bf16.gmra.mrb[8].mxu0 %v5861_v41  ;;  %4354 = vmatprep.mubr.bf16.mxu1 %v5789_v16 }
  0xaa   : > { %4578 = vmatprep.mubr.bf16.mxu0 %v5751_v28  ;;  %4607 = vmatpush3.bf16.msra.mxu0 %v5044_v32  ;;  %v5060_v32 = vld [vmem:[%s6175_s1 + $0x218] sm:$0xff]  }
  0xab   : > { %4608 = vmatprep.subr.bf16.mxu0 %v5046_v59 }
  0xae   : > { %4609 = vmatpush3.bf16.msra.mxu0 %v5046_v59  ;;  %v6215_v59 = vld [vmem:[#allocation7_spill] sm:$0xff] }
  0xaf   : > { %4610 = vmatprep.subr.bf16.mxu0 %v5048_v49 }
  0xb0   : > { %4355 = vmatmul.mubr.bf16.gmra.mrb[28].mxu1 %v5796_v38 }
  0xb1   : > { %4579 = vmatmul.mubr.bf16.gmra.mrb[12].mxu0 %v5762_v33  ;;  %4374 = vmatprep.mubr.bf16.mxu1 %v3707_v22  ;;  %v6217_v22 = vld [vmem:[#allocation9_spill] sm:$0xff] }
  0xb2   : > { %4582 = vmatprep.mubr.bf16.mxu0 %v5773_v45  ;;  %4611 = vmatpush3.bf16.msra.mxu0 %v5048_v49  ;;  %v6216_v49 = vld [vmem:[#allocation8_spill] sm:$0xff] }
  0xb3   : > { %4612 = vmatprep.subr.bf16.mxu0 %v5052_v8 }
  0xb6   : > { %4613 = vmatpush3.bf16.msra.mxu0 %v5052_v8  ;;  %v6218_v8 = vld [vmem:[#allocation10_spill] sm:$0xff] }
  0xb7   : > { %4646 = vmatprep.subr.bf16.mxu0 %v5054_v56 }
  0xb8   : > { %4375 = vmatmul.mubr.bf16.vlgmr.msra.gmra.mrb[0].mxu1 %v5454_v39  ;;  %v5053_v39 = vld [vmem:[%s6175_s1 + $0xe0] sm:$0xff]  }
  0xb9   : > { %4583 = vmatmul.mubr.bf16.gmra.mrb[16].mxu0 %v5777_v40  ;;  %4407 = vmatpush3.bf16.msra.mxu1 %v5043_v62  ;;  %v5963_v62 = vld [vmem:[%s5154_s10 + $0xd0] sm:$0xf] }
  0xba   : > { %4378 = vmatprep.mubr.bf16.mxu1 %v5500_v26  ;;  %4586 = vmatprep.mubr.bf16.mxu0 %v5781_v53  ;;  %v3823_v14 = vcombine.low %v5960_v0, %v5963_v62 }
  0xbb   : > { %4408 = vmatprep.subr.bf16.mxu1 %v5045_v36 }
  0xbd   : > { %4409 = vmatpush3.bf16.msra.mxu1 %v5045_v36  ;;  %v2765_v36 = vshll.u32 %v5960_v0, 16 }
  0xbe   : > { %4410 = vmatprep.subr.bf16.mxu1 %v5047_v6 }
  0xc0   : > { %4379 = vmatmul.mubr.bf16.gmra.mrb[4].mxu1 %v5540_v46 }
  0xc1   : > { %4587 = vmatmul.mubr.bf16.gmra.mrb[20].mxu0 %v5785_v9  ;;  %4382 = vmatprep.mubr.bf16.mxu1 %v5577_v44 }
  0xc2   : > { %4590 = vmatprep.mubr.bf16.mxu0 %v5789_v16  ;;  %4411 = vmatpush3.bf16.msra.mxu1 %v5047_v6  ;;  %v2775_v6 = vshrl.u32 %v5963_v62, 16 }
  0xc3   : > { %4412 = vmatprep.subr.bf16.mxu1 %v5050_v10 }
  0xc6   : > { %4413 = vmatpush3.bf16.msra.mxu1 %v5050_v10  ;;  %v6219_v10 = vld [vmem:[#allocation11_spill] sm:$0xff] }
  0xc7   : > { %4414 = vmatprep.subr.bf16.mxu1 %v5053_v39 }
  0xc8   : > { %4383 = vmatmul.mubr.bf16.gmra.mrb[8].mxu1 %v5610_v19 }
  0xc9   : > { %4591 = vmatmul.mubr.bf16.gmra.mrb[24].mxu0 %v5796_v38  ;;  %4386 = vmatprep.mubr.bf16.mxu1 %v5642_v35 }
  0xca   : > { %4594 = vmatprep.mubr.bf16.mxu0 %v5950_v48  ;;  %4415 = vmatpush3.bf16.msra.mxu1 %v5053_v39 }
  0xcb   : > { %4416 = vmatprep.subr.bf16.mxu1 %v5055_v27 }
  0xce   : > { %4417 = vmatpush3.bf16.msra.mxu1 %v5055_v27  ;;  %v2767_v27 = vrot.slane %v2765_v36, 5 }
  0xcf   : > { %4418 = vmatprep.subr.bf16.mxu1 %v5057_v24 }
  0xd0   : > { %4387 = vmatmul.mubr.bf16.gmra.mrb[12].mxu1 %v5676_v21 }
  0xd1   : > { %4595 = vmatmul.mubr.bf16.gmra.mrb[28].mxu0 %v3823_v14  ;;  %4390 = vmatprep.mubr.bf16.mxu1 %v5708_v58  ;;  %v2777_v14 = vrot.slane %v2775_v6, 4 }
  0xd2   : > { %4614 = vmatprep.mubr.bf16.mxu0 %v5276_v51  ;;  %4419 = vmatpush3.bf16.msra.mxu1 %v5057_v24  ;;  %v6211_v51 = vld [vmem:[#allocation3_spill] sm:$0xff] }
  0xd3   : > { %4420 = vmatprep.subr.bf16.mxu1 %v5059_v7 }
  0xd6   : > { %4421 = vmatpush3.bf16.msra.mxu1 %v5059_v7  ;;  %v5076_v7 = vld [vmem:[%s6175_s1 + $0x110] sm:$0xff]  }
  0xd7   : > { %4694 = vmatprep.subr.bf16.mxu1 %v5074_v1 }
  0xd8   : > { %4391 = vmatmul.mubr.bf16.gmra.mrb[16].mxu1 %v5713_v18 }
  0xd9   : > { %4615 = vmatmul.mubr.bf16.vlgmr.msra.gmra.mrb[0].mxu0 %v6210_v30  ;;  %4394 = vmatprep.mubr.bf16.mxu1 %v5733_v13 }
  0xda   : > { %4647 = vmatpush3.bf16.msra.mxu0 %v5054_v56  ;;  %4618 = vmatprep.mubr.bf16.mxu0 %v6211_v51  ;;  %v2762_v56 = vshrl.u32 %v5960_v0, 16 }
  0xdb   : > { %4648 = vmatprep.subr.bf16.mxu0 %v5056_v20 }
  0xdc   : > { %v2764_v39 = vrot.slane %v2762_v56, 4 }
  0xde   : > { %4649 = vmatpush3.bf16.msra.mxu0 %v5056_v20  ;;  %v6220_v20 = vld [vmem:[#allocation12_spill] sm:$0xff] }
  0xdf   : > { %4650 = vmatprep.subr.bf16.mxu0 %v5058_v5 }
  0xe0   : > { %4395 = vmatmul.mubr.bf16.gmra.mrb[20].mxu1 %v5738_v29 }
  0xe1   : > { %4619 = vmatmul.mubr.bf16.gmra.mrb[4].mxu0 %v6212_v47  ;;  %4398 = vmatprep.mubr.bf16.mxu1 %v5791_v4 }
  0xe2   : > { %4622 = vmatprep.mubr.bf16.mxu0 %v6213_v52  ;;  %4651 = vmatpush3.bf16.msra.mxu0 %v5058_v5  ;;  %v5077_v5 = vld [vmem:[%s6175_s1 + $0x118] sm:$0xff]  }
  0xe3   : > { %4652 = vmatprep.subr.bf16.mxu0 %v5060_v32 }
  0xe6   : > { %4653 = vmatpush3.bf16.msra.mxu0 %v5060_v32 }
  0xe7   : > { %4654 = vmatprep.subr.bf16.mxu0 %v5061_v2 }
  0xe8   : > { %4399 = vmatmul.mubr.bf16.gmra.mrb[24].mxu1 %v5798_v3 }
  0xe9   : > { %4623 = vmatmul.mubr.bf16.gmra.mrb[8].mxu0 %v6214_v34  ;;  %4402 = vmatprep.mubr.bf16.mxu1 %v5832_v50 }
  0xea   : > { %4626 = vmatprep.mubr.bf16.mxu0 %v6215_v59  ;;  %4655 = vmatpush3.bf16.msra.mxu0 %v5061_v2 }
  0xeb   : > { %4656 = vmatprep.subr.bf16.mxu0 %v5062_v54 }
  0xee   : > { %4657 = vmatpush3.bf16.msra.mxu0 %v5062_v54  ;;  %v5079_v54 = vld [vmem:[%s6175_s1 + $0x128] sm:$0xff]  }
  0xef   : > { %4658 = vmatprep.subr.bf16.mxu0 %v5063_v63 }
  0xf0   : > { %4403 = vmatmul.mubr.bf16.gmra.mrb[28].mxu1 %v5842_v42 }
  0xf1   : > { %4627 = vmatmul.mubr.bf16.gmra.mrb[12].mxu0 %v6216_v49  ;;  %4422 = vmatprep.mubr.bf16.mxu1 %v5212_v43  ;;  %v2771_v43 = vshll.u32 %v5963_v62, 16 }
  0xf2   : > { %4630 = vmatprep.mubr.bf16.mxu0 %v6217_v22  ;;  %4659 = vmatpush3.bf16.msra.mxu0 %v5063_v63 }
  0xf3   : > { %4660 = vmatprep.subr.bf16.mxu0 %v5064_v25  ;;  %v2773_v24 = vrot.slane %v2771_v43, 5 }
  0xf5   : > { %v2778_v30 = vor.u32 %v2777_v14, %v2773_v24 }
  0xf6   : > { %4661 = vmatpush3.bf16.msra.mxu0 %v5064_v25 }
  0xf7   : > { %v2779_v47 = vrot.slane %v2778_v30, 4 }
  0xf8   : > { %4423 = vmatmul.mubr.bf16.vlgmr.msra.gmra.mrb[0].mxu1 %v5288_v60  ;;  %v5075_v60 = vld [vmem:[%s6175_s1 + $0x108] sm:$0xff]  }
  0xf9   : > { %4631 = vmatmul.mubr.bf16.gmra.mrb[16].mxu0 %v6218_v8  ;;  %4702 = vmatpush3.bf16.msra.mxu1 %v5074_v1  ;;  %v2768_v1 = vor.u32 %v2767_v27, %v2764_v39 }
  0xfa   : > { %4426 = vmatprep.mubr.bf16.mxu1 %v5359_v11  ;;  %4634 = vmatprep.mubr.bf16.mxu0 %v6219_v10  ;;  %v6031_v11 = vld [vmem:[%s5154_s10 + $0xd4] sm:$0x1] }
  0xfb   : > { %4695 = vmatprep.subr.bf16.mxu1 %v5075_v60  ;;  %v2781_v51 = vshll.u32 %v6031_v11, 16  ;;  %v2769_v32 = vrot.slane %v2768_v1, 4 }
  0xfd   : > { %4703 = vmatpush3.bf16.msra.mxu1 %v5075_v60  ;;  %v2783_v52 = vrot.slane %v2781_v51, 5 }
  0xfe   : > { %4696 = vmatprep.subr.bf16.mxu1 %v5076_v7 }
  0xff   : > { %v2784_v2 = vsel %vm5199_vm2, %v2779_v47, %v2783_v52 }
 0x100   : > { %4427 = vmatmul.mubr.bf16.gmra.mrb[4].mxu1 %v5363_v15  ;;  %v5078_v15 = vld [vmem:[%s6175_s1 + $0x120] sm:$0xff]  }
 0x101   : > { %4635 = vmatmul.mubr.bf16.gmra.mrb[20].mxu0 %v6220_v20  ;;  %4430 = vmatprep.mubr.bf16.mxu1 %v5830_v12  ;;  %v2774_v12 = vsel %vm5199_vm2, %v2769_v32, %v2773_v24 }
 0x102   : > { %4638 = vmatprep.mubr.bf16.mxu0 %v5672_v55  ;;  %4704 = vmatpush3.bf16.msra.mxu1 %v5076_v7  ;;  %v3848_v34 = vcombine.low %v2774_v12, %v2784_v2 }
 0x103   : > { %4697 = vmatprep.subr.bf16.mxu1 %v5077_v5 }
 0x106   : > { %4705 = vmatpush3.bf16.msra.mxu1 %v5077_v5 }
 0x107   : > { %4698 = vmatprep.subr.bf16.mxu1 %v5078_v15 }
 0x108   : > { %4431 = vmatmul.mubr.bf16.gmra.mrb[8].mxu1 %v5836_v31  ;;  %v5080_v31 = vld [vmem:[%s6175_s1 + $0x130] sm:$0xff]  }
 0x109   : > { %4639 = vmatmul.mubr.bf16.gmra.mrb[24].mxu0 %v5706_v61  ;;  %4434 = vmatprep.mubr.bf16.mxu1 %v5861_v41 }
 0x10a   : > { %4642 = vmatprep.mubr.bf16.mxu0 %v5869_v57  ;;  %4706 = vmatpush3.bf16.msra.mxu1 %v5078_v15 }
 0x10b   : > { %4699 = vmatprep.subr.bf16.mxu1 %v5079_v54 }
 0x10e   : > { %4707 = vmatpush3.bf16.msra.mxu1 %v5079_v54 }
 0x10f   : > { %4700 = vmatprep.subr.bf16.mxu1 %v5080_v31 }
 0x110   : > { %4435 = vmatmul.mubr.bf16.gmra.mrb[12].mxu1 %v5751_v28 }
 0x111   : > { %4643 = vmatmul.mubr.bf16.gmra.mrb[28].mxu0 %v3848_v34  ;;  %4438 = vmatprep.mubr.bf16.mxu1 %v5762_v33 }
 0x112   : > { %4662 = vmatprep.mubr.bf16.mxu0 %v5500_v26  ;;  %4708 = vmatpush3.bf16.msra.mxu1 %v5080_v31  ;;  %v3050_v26 = vrot.slane %v5963_v62, 5 }
 0x113   : > { %4701 = vmatprep.subr.bf16.mxu1 %v5081_v37 }
 0x116   : > { %4709 = vmatpush3.bf16.msra.mxu1 %v5081_v37 }
 0x118   : > { %4439 = vmatmul.mubr.bf16.gmra.mrb[16].mxu1 %v5773_v45 }
 0x119   : > { %4663 = vmatmul.mubr.bf16.vlgmr.msra.gmra.mrb[0].mxu0 %v5540_v46  ;;  %4442 = vmatprep.mubr.bf16.mxu1 %v5777_v40  ;;  %v3857_v46 = vrot.slane %v5960_v0, 9 }
 0x11a   : > { %4666 = vmatprep.mubr.bf16.mxu0 %v5577_v44  ;;  %v3052_v44 = vrot.slane %v3050_v26, 4 }
 0x120   : > { %4443 = vmatmul.mubr.bf16.gmra.mrb[20].mxu1 %v5781_v53 }
 0x121   : > { %4667 = vmatmul.mubr.bf16.gmra.mrb[4].mxu0 %v5610_v19  ;;  %4446 = vmatprep.mubr.bf16.mxu1 %v5785_v9  ;;  %v3053_v19 = vrot.slane %v6031_v11, 5 }
 0x122   : > { %4670 = vmatprep.mubr.bf16.mxu0 %v5642_v35  ;;  %v3051_v35 = vsel %vm5406_vm5, %v3857_v46, %v3050_v26 }
 0x128   : > { %4447 = vmatmul.mubr.bf16.gmra.mrb[24].mxu1 %v5789_v16 }
 0x129   : > { %4671 = vmatmul.mubr.bf16.gmra.mrb[8].mxu0 %v5676_v21  ;;  %4450 = vmatprep.mubr.bf16.mxu1 %v5796_v38  ;;  %v3054_v21 = vsel %vm5406_vm5, %v3052_v44, %v3053_v19 }
 0x12a   : > { %4674 = vmatprep.mubr.bf16.mxu0 %v5708_v58  ;;  %v3874_v58 = vcombine.low %v3051_v35, %v3054_v21 }
 0x130   : > { %4451 = vmatmul.mubr.bf16.gmra.mrb[28].mxu1 %v5950_v48 }
 0x131   : > { %4675 = vmatmul.mubr.bf16.gmra.mrb[12].mxu0 %v5713_v18  ;;  %4486 = vmatprep.mubr.bf16.mxu1 %v6216_v49 }
 0x132   : > { %4678 = vmatprep.mubr.bf16.mxu0 %v5733_v13 }
 0x138   : > { %4487 = vmatmul.mubr.bf16.vlgmr.msra.gmra.mrb[16].mxu1 %v6217_v22 }
 0x139   : > { %4679 = vmatmul.mubr.bf16.gmra.mrb[16].mxu0 %v5738_v29  ;;  %4490 = vmatprep.mubr.bf16.mxu1 %v6218_v8 }
 0x13a   : > { %4682 = vmatprep.mubr.bf16.mxu0 %v5791_v4 }
 0x140   : > { %4491 = vmatmul.mubr.bf16.gmra.mrb[20].mxu1 %v6219_v10 }
 0x141   : > { %4683 = vmatmul.mubr.bf16.gmra.mrb[20].mxu0 %v5798_v3  ;;  %4494 = vmatprep.mubr.bf16.mxu1 %v6220_v20 }
 0x142   : > { %4686 = vmatprep.mubr.bf16.mxu0 %v5832_v50 }
 0x148   : > { %4495 = vmatmul.mubr.bf16.gmra.mrb[24].mxu1 %v5672_v55 }
 0x149   : > { %4687 = vmatmul.mubr.bf16.gmra.mrb[24].mxu0 %v5842_v42  ;;  %4498 = vmatprep.mubr.bf16.mxu1 %v5706_v61  ;;  %v6111_v42 = vld [vmem:[%s6176_s2] ss:$0 sm:$0xff] }
 0x14a   : > { %4690 = vmatprep.mubr.bf16.mxu0 %v5863_v17 }
 0x150   : > { %4499 = vmatmul.mubr.bf16.gmra.mrb[28].mxu1 %v5869_v57 }
 0x151   : > { %4691 = vmatmul.mubr.bf16.gmra.mrb[28].mxu0 %v3874_v58 }
 0x1cb   : > { %v4424_v18 = vpop.f32.mrb[0].mxu1 }
 0x1cc   : > { %v1782_v13 = vpop.f32.mrb[1].mxu1 }
 0x1cd   : > { %v4425_v29 = vpop.f32.mrb[2].mxu1 }
 0x1ce   : > { %v1785_v55 = vpop.f32.mrb[3].mxu1 }
 0x1d3   : > { %v4428_v28 = vpop.f32.mrb[4].mxu1 }
 0x1d4   : > { %v1798_v33 = vpop.f32.mrb[5].mxu1 }
 0x1d5   : > { %v4429_v45 = vpop.f32.mrb[6].mxu1 }
 0x1d6   : > { %v1801_v61 = vpop.f32.mrb[7].mxu1 }
 0x1db   : > { %v4432_v40 = vpop.f32.mrb[8].mxu1 }
 0x1dc   : > { %v1814_v53 = vpop.f32.mrb[9].mxu1 }
 0x1dd   : > { %v4433_v9 = vpop.f32.mrb[10].mxu1 }
 0x1de   : > { %v1817_v16 = vpop.f32.mrb[11].mxu1 }
 0x1e3   : > { %v6100_v4 = vpop.f32.mrb[12].mxu1 }
 0x1e4   : > { %v6102_v23 = vpop.f32.mrb[13].mxu1 }
 0x1e5   : > { %v6104_v38 = vpop.f32.mrb[14].mxu1 }
 0x1e6   : > { %v6106_v3 = vpop.f32.mrb[15].mxu1 }
 0x1ec   : > { %v4664_v50 = vpop.f32.mrb[0].mxu0 }
 0x1ed   : > { %v4710_v41 = vadd.f32 %v4664_v50, %v4424_v18  ;;  %v3158_v17 = vpop.f32.mrb[1].mxu0 }
 0x1ee   : > { %v4711_v57 = vadd.f32 %v3158_v17, %v1782_v13  ;;  %v4665_v48 = vpop.f32.mrb[2].mxu0 }
 0x1ef   : > { %v3326_v0 = vadd.f32 %v4710_v41, %v6111_v42  ;;  %v4712_v62 = vadd.f32 %v4665_v48, %v4425_v29  ;;  %v3161_v59 = vpop.f32.mrb[3].mxu0 }
 0x1f0   : > { %v3324_v63 = vadd.f32 %v4711_v57, %v6111_v42  ;;  %v4713_v25 = vadd.f32 %v3161_v59, %v1785_v55 }
 0x1f1   : > { %v3327_v49 = vadd.f32 %v4712_v62, %v6111_v42  ;;  %v3358_v8 = vmax.f32 %v3326_v0, 0.0 }
 0x1f2   : > { %v3325_v22 = vadd.f32 %v4713_v25, %v6111_v42  ;;  %v3356_v36 = vmax.f32 %v3324_v63, 0.0 }
 0x1f3   : > { %v3359_v56 = vmax.f32 %v3327_v49, 0.0 }
 0x1f4   : > { %v3357_v6 = vmax.f32 %v3325_v22, 0.0  ;;  %v4668_v43 = vpop.f32.mrb[4].mxu0 }
 0x1f5   : > { %v3959_v10 = vpack.c.bf16 %v3359_v56, %v3358_v8  ;;  %v4714_v60 = vadd.f32 %v4668_v43, %v4428_v28  ;;  %v3174_v39 = vpop.f32.mrb[5].mxu0 }
 0x1f6   : > { %v3954_v27 = vpack.c.bf16 %v3357_v6, %v3356_v36  ;;  %v4715_v24 = vadd.f32 %v3174_v39, %v1798_v33  ;;  %v4669_v14 = vpop.f32.mrb[6].mxu0 }
 0x1f7   : > { %4031 = vst [vmem:[%s6121_s11 + $0x8] sm:$0xff] %v3959_v10   ;;  %v3330_v7 = vadd.f32 %v4714_v60, %v6111_v42  ;;  %v4716_v11 = vadd.f32 %v4669_v14, %v4429_v45  ;;  %v3177_v20 = vpop.f32.mrb[7].mxu0 }
 0x1f8   : > { %3955 = vst [vmem:[%s6121_s11] sm:$0xff] %v3954_v27   ;;  %v3328_v1 = vadd.f32 %v4715_v24, %v6111_v42  ;;  %v4717_v30 = vadd.f32 %v3177_v20, %v1801_v61 }
 0x1f9   : > { %v3331_v51 = vadd.f32 %v4716_v11, %v6111_v42  ;;  %v3362_v32 = vmax.f32 %v3330_v7, 0.0 }
 0x1fa   : > { %v3329_v5 = vadd.f32 %v4717_v30, %v6111_v42  ;;  %v3360_v52 = vmax.f32 %v3328_v1, 0.0 }
 0x1fb   : > { %v3363_v47 = vmax.f32 %v3331_v51, 0.0 }
 0x1fc   : > { %v3361_v15 = vmax.f32 %v3329_v5, 0.0  ;;  %v4672_v12 = vpop.f32.mrb[8].mxu0 }
 0x1fd   : > { %v3969_v2 = vpack.c.bf16 %v3363_v47, %v3362_v32  ;;  %v4718_v54 = vadd.f32 %v4672_v12, %v4432_v40  ;;  %v3190_v34 = vpop.f32.mrb[9].mxu0 }
 0x1fe   : > { %v3964_v31 = vpack.c.bf16 %v3361_v15, %v3360_v52  ;;  %v4719_v37 = vadd.f32 %v3190_v34, %v1814_v53  ;;  %v4673_v26 = vpop.f32.mrb[10].mxu0 }
 0x1ff   : > { %4033 = vst [vmem:[%s6121_s11 + $0x18] sm:$0xff] %v3969_v2   ;;  %v3334_v46 = vadd.f32 %v4718_v54, %v6111_v42  ;;  %v4720_v44 = vadd.f32 %v4673_v26, %v4433_v9  ;;  %v3193_v19 = vpop.f32.mrb[11].mxu0 }
 0x200   : > { %4032 = vst [vmem:[%s6121_s11 + $0x10] sm:$0xff] %v3964_v31   ;;  %v3332_v35 = vadd.f32 %v4719_v37, %v6111_v42  ;;  %v4721_v21 = vadd.f32 %v3193_v19, %v1817_v16 }
 0x201   : > { %v3335_v58 = vadd.f32 %v4720_v44, %v6111_v42  ;;  %v3366_v13 = vmax.f32 %v3334_v46, 0.0 }
 0x202   : > { %v3333_v18 = vadd.f32 %v4721_v21, %v6111_v42  ;;  %v3364_v55 = vmax.f32 %v3332_v35, 0.0 }
 0x203   : > { %v3367_v29 = vmax.f32 %v3335_v58, 0.0 }
 0x204   : > { %v3365_v28 = vmax.f32 %v3333_v18, 0.0  ;;  %v4676_v33 = vpop.f32.mrb[12].mxu0 }
 0x205   : > { %v3979_v45 = vpack.c.bf16 %v3367_v29, %v3366_v13  ;;  %v4722_v61 = vadd.f32 %v4676_v33, %v6100_v4  ;;  %v3206_v40 = vpop.f32.mrb[13].mxu0 }
 0x206   : > { %v3974_v53 = vpack.c.bf16 %v3365_v28, %v3364_v55  ;;  %v4723_v9 = vadd.f32 %v3206_v40, %v6102_v23  ;;  %v4677_v50 = vpop.f32.mrb[14].mxu0 }
 0x207   : > { %4035 = vst [vmem:[%s6121_s11 + $0x28] sm:$0xff] %v3979_v45   ;;  %v3338_v16 = vadd.f32 %v4722_v61, %v6111_v42  ;;  %v4724_v41 = vadd.f32 %v4677_v50, %v6104_v38  ;;  %v3209_v17 = vpop.f32.mrb[15].mxu0 }
 0x208   : > { %4034 = vst [vmem:[%s6121_s11 + $0x20] sm:$0xff] %v3974_v53   ;;  %v3336_v57 = vadd.f32 %v4723_v9, %v6111_v42  ;;  %v4725_v48 = vadd.f32 %v3209_v17, %v6106_v3 }
 0x209   : > { %v3339_v0 = vadd.f32 %v4724_v41, %v6111_v42  ;;  %v3370_v62 = vmax.f32 %v3338_v16, 0.0 }
 0x20a   : > { %v3337_v4 = vadd.f32 %v4725_v48, %v6111_v42  ;;  %v3368_v23 = vmax.f32 %v3336_v57, 0.0 }
 0x20b   : > { %v3371_v59 = vmax.f32 %v3339_v0, 0.0  ;;  %v4488_v25 = vpop.f32.mrb[16].mxu1 }
 0x20c   : > { %v3369_v63 = vmax.f32 %v3337_v4, 0.0  ;;  %v4680_v49 = vpop.f32.mrb[16].mxu0  ;;  %v2132_v8 = vpop.f32.mrb[17].mxu1 }
 0x20d   : > { %v3989_v22 = vpack.c.bf16 %v3371_v59, %v3370_v62  ;;  %v4726_v38 = vadd.f32 %v4680_v49, %v4488_v25  ;;  %v3222_v56 = vpop.f32.mrb[17].mxu0  ;;  %v4489_v43 = vpop.f32.mrb[18].mxu1 }
 0x20e   : > { %v3984_v36 = vpack.c.bf16 %v3369_v63, %v3368_v23  ;;  %v4727_v6 = vadd.f32 %v3222_v56, %v2132_v8  ;;  %v4681_v3 = vpop.f32.mrb[18].mxu0  ;;  %v2135_v39 = vpop.f32.mrb[19].mxu1 }
 0x20f   : > { %4037 = vst [vmem:[%s6121_s11 + $0x38] sm:$0xff] %v3989_v22   ;;  %v3342_v10 = vadd.f32 %v4726_v38, %v6111_v42  ;;  %v4728_v60 = vadd.f32 %v4681_v3, %v4489_v43  ;;  %v3225_v27 = vpop.f32.mrb[19].mxu0 }
 0x210   : > { %4036 = vst [vmem:[%s6121_s11 + $0x30] sm:$0xff] %v3984_v36   ;;  %v3340_v24 = vadd.f32 %v4727_v6, %v6111_v42  ;;  %v4729_v14 = vadd.f32 %v3225_v27, %v2135_v39 }
 0x211   : > { %v3343_v7 = vadd.f32 %v4728_v60, %v6111_v42  ;;  %v3374_v20 = vmax.f32 %v3342_v10, 0.0 }
 0x212   : > { %v3341_v11 = vadd.f32 %v4729_v14, %v6111_v42  ;;  %v3372_v30 = vmax.f32 %v3340_v24, 0.0 }
 0x213   : > { %v3375_v1 = vmax.f32 %v3343_v7, 0.0  ;;  %v4492_v5 = vpop.f32.mrb[20].mxu1 }
 0x214   : > { %v3373_v51 = vmax.f32 %v3341_v11, 0.0  ;;  %v4684_v32 = vpop.f32.mrb[20].mxu0  ;;  %v2148_v15 = vpop.f32.mrb[21].mxu1 }
 0x215   : > { %v3999_v47 = vpack.c.bf16 %v3375_v1, %v3374_v20  ;;  %v4730_v52 = vadd.f32 %v4684_v32, %v4492_v5  ;;  %v3238_v12 = vpop.f32.mrb[21].mxu0  ;;  %v4493_v34 = vpop.f32.mrb[22].mxu1 }
 0x216   : > { %v3994_v2 = vpack.c.bf16 %v3373_v51, %v3372_v30  ;;  %v4731_v54 = vadd.f32 %v3238_v12, %v2148_v15  ;;  %v4685_v31 = vpop.f32.mrb[22].mxu0  ;;  %v2151_v46 = vpop.f32.mrb[23].mxu1 }
 0x217   : > { %4039 = vst [vmem:[%s6121_s11 + $0x48] sm:$0xff] %v3999_v47   ;;  %v3346_v37 = vadd.f32 %v4730_v52, %v6111_v42  ;;  %v4732_v26 = vadd.f32 %v4685_v31, %v4493_v34  ;;  %v3241_v44 = vpop.f32.mrb[23].mxu0 }
 0x218   : > { %4038 = vst [vmem:[%s6121_s11 + $0x40] sm:$0xff] %v3994_v2   ;;  %v3344_v19 = vadd.f32 %v4731_v54, %v6111_v42  ;;  %v4733_v35 = vadd.f32 %v3241_v44, %v2151_v46 }
 0x219   : > { %v3347_v21 = vadd.f32 %v4732_v26, %v6111_v42  ;;  %v3378_v18 = vmax.f32 %v3346_v37, 0.0 }
 0x21a   : > { %v3345_v58 = vadd.f32 %v4733_v35, %v6111_v42  ;;  %v3376_v29 = vmax.f32 %v3344_v19, 0.0 }
 0x21b   : > { %v3379_v13 = vmax.f32 %v3347_v21, 0.0  ;;  %v4496_v28 = vpop.f32.mrb[24].mxu1 }
 0x21c   : > { %v3377_v55 = vmax.f32 %v3345_v58, 0.0  ;;  %v4688_v33 = vpop.f32.mrb[24].mxu0  ;;  %v2164_v40 = vpop.f32.mrb[25].mxu1 }
 0x21d   : > { %v4009_v45 = vpack.c.bf16 %v3379_v13, %v3378_v18  ;;  %v4734_v61 = vadd.f32 %v4688_v33, %v4496_v28  ;;  %v3254_v53 = vpop.f32.mrb[25].mxu0  ;;  %v4497_v16 = vpop.f32.mrb[26].mxu1 }
 0x21e   : > { %v4004_v9 = vpack.c.bf16 %v3377_v55, %v3376_v29  ;;  %v4735_v50 = vadd.f32 %v3254_v53, %v2164_v40  ;;  %v4689_v41 = vpop.f32.mrb[26].mxu0  ;;  %v2167_v48 = vpop.f32.mrb[27].mxu1 }
 0x21f   : > { %4041 = vst [vmem:[%s6121_s11 + $0x58] sm:$0xff] %v4009_v45   ;;  %v3350_v17 = vadd.f32 %v4734_v61, %v6111_v42  ;;  %v4736_v57 = vadd.f32 %v4689_v41, %v4497_v16  ;;  %v3257_v0 = vpop.f32.mrb[27].mxu0 }
 0x220   : > { %4040 = vst [vmem:[%s6121_s11 + $0x50] sm:$0xff] %v4004_v9   ;;  %v3348_v4 = vadd.f32 %v4735_v50, %v6111_v42  ;;  %v4737_v62 = vadd.f32 %v3257_v0, %v2167_v48 }
 0x221   : > { %v3351_v59 = vadd.f32 %v4736_v57, %v6111_v42  ;;  %v3382_v63 = vmax.f32 %v3350_v17, 0.0 }
 0x222   : > { %v3349_v23 = vadd.f32 %v4737_v62, %v6111_v42  ;;  %v3380_v49 = vmax.f32 %v3348_v4, 0.0 }
 0x223   : > { %v3383_v25 = vmax.f32 %v3351_v59, 0.0  ;;  %v4500_v38 = vpop.f32.mrb[28].mxu1 }
 0x224   : > { %v3381_v22 = vmax.f32 %v3349_v23, 0.0  ;;  %v4692_v8 = vpop.f32.mrb[28].mxu0  ;;  %v2180_v6 = vpop.f32.mrb[29].mxu1 }
 0x225   : > { %v4019_v56 = vpack.c.bf16 %v3383_v25, %v3382_v63  ;;  %v4738_v36 = vadd.f32 %v4692_v8, %v4500_v38  ;;  %v3270_v43 = vpop.f32.mrb[29].mxu0  ;;  %v4501_v60 = vpop.f32.mrb[30].mxu1 }
 0x226   : > { %v4014_v3 = vpack.c.bf16 %v3381_v22, %v3380_v49  ;;  %v4739_v10 = vadd.f32 %v3270_v43, %v2180_v6  ;;  %v4693_v39 = vpop.f32.mrb[30].mxu0  ;;  %v2183_v14 = vpop.f32.mrb[31].mxu1 }
 0x227   : > { %4043 = vst [vmem:[%s6121_s11 + $0x68] sm:$0xff] %v4019_v56   ;;  %v3354_v27 = vadd.f32 %v4738_v36, %v6111_v42  ;;  %v4740_v24 = vadd.f32 %v4693_v39, %v4501_v60  ;;  %v3273_v7 = vpop.f32.mrb[31].mxu0 }
 0x228   : > { %4042 = vst [vmem:[%s6121_s11 + $0x60] sm:$0xff] %v4014_v3   ;;  %v3352_v11 = vadd.f32 %v4739_v10, %v6111_v42  ;;  %v4741_v20 = vadd.f32 %v3273_v7, %v2183_v14 }
 0x229   : > { %v3355_v1 = vadd.f32 %v4740_v24, %v6111_v42  ;;  %v3386_v51 = vmax.f32 %v3354_v27, 0.0 }
 0x22a   : > { %v3353_v30 = vadd.f32 %v4741_v20, %v6111_v42  ;;  %v3384_v32 = vmax.f32 %v3352_v11, 0.0 }
 0x22b   : > { %v3387_v5 = vmax.f32 %v3355_v1, 0.0 }
 0x22c   : > { %v3385_v47 = vmax.f32 %v3353_v30, 0.0 }
 0x22d   : > { %v4029_v52 = vpack.c.bf16 %v3387_v5, %v3386_v51 }
 0x22e   : > { %v4024_v15 = vpack.c.bf16 %v3385_v47, %v3384_v32 }
 0x22f   : > { %4045 = vst [vmem:[%s6121_s11 + $0x78] sm:$0xff] %v4029_v52  }
 0x230   : > { %4044 = vst [vmem:[%s6121_s11 + $0x70] sm:$0xff] %v4024_v15  }
 0x231 PF: > { %s13_s12 = sadd.s32 1, %s5088_s12  }
 0x232   : > { %p10_p4 = scmp.ge.s32.totalorder %s13_s12, 4  }
 0x234   :  { %12 = sbr.rel (!%p10_p4) target bundleno = 1 (0x1), region = 70 }

</bundles_post_ra>
